<compile_context>
chip_gen: v7x
topology: tpu7x:2x2x1
jax: 0.10.0
libtpu: 0.0.40
codegen_flags: <defaults>
</compile_context>

<pallas_src>
import functools

import jax
import jax.numpy as jnp
from jax.experimental import pallas as pl
from jax.experimental.pallas import tpu as pltpu

IN_CHANNELS = 1                 # == num_channels of the input (see note above)
HIDDEN_DIMS = (8, 16, 32)       # scaled-down [32, 64, 128]
LATENT_DIM = HIDDEN_DIMS[2]     # decoder_fc(z) forces latent_dim == hidden_dims[2]
FUTURE_SEQ = 10

_F32 = jnp.float32
_BF16 = jnp.bfloat16


def _lstm_step(gates, c):
    """One ConvLSTMCell1D update with L == 1.  Gate order (torch.split): i,f,o,g."""
    hidden = gates.shape[-1] // 4
    sg = jax.nn.sigmoid(gates)              # one EUP pass over the whole (b, 4H) tile
    i = sg[:, 0 * hidden:1 * hidden]
    f = sg[:, 1 * hidden:2 * hidden]
    o = sg[:, 2 * hidden:3 * hidden]
    g = jnp.tanh(gates[:, 3 * hidden:4 * hidden])
    c_next = f * c + i * g
    h_next = o * jnp.tanh(c_next)
    return h_next, c_next


def _beta_vae_kernel(hidden_dims, seq_len, future_seq, wlay, rlay,
                     x_ref, eps_ref, w_ref, r_ref, wc_ref, bc_ref,
                     out_ref, mu_ref, logvar_ref):
    H1, H2, H3 = hidden_dims
    latent = H3
    bsz = mu_ref.shape[0]

    # --- packed-parameter accessors (static slices; no value hoisting so the
    #     unrolled loops don't pin the weights in vregs) --------------------
    def W(name):                                    # bf16 MXU matrix
        blk, rows, cols = wlay[name]
        return w_ref[0:rows, 128 * blk: 128 * blk + cols]

    def R(name):                                    # f32 (1, n) row / bias
        blk, cols = rlay[name]
        return r_ref[0:1, 128 * blk: 128 * blk + cols]

    def mm(a, name):                                # bf16 operands, f32 accumulate
        return jnp.dot(a.astype(_BF16), W(name), preferred_element_type=_F32)

    # ------------------------------- encoder --------------------------------
    x = x_ref[...]                                   # (b, seq_len), lane-dense time
    # layer 1 input projection hoisted out of the time loop (in_channels == 1,
    # so it's a loop-invariant VPU broadcast-multiply; bias folded in).
    gx1_all = (x[:, :, None] * R("e1_wx")[None, :, :]
               + R("e1_b")[None, :, :])              # (b, seq_len, 4*H1)
    # biases pre-broadcast ONCE (broadcast_in_dim is not CSE'd across unrolls).
    e2_bb = jnp.broadcast_to(R("e2_b"), (bsz, 4 * H2))
    e3_bb = jnp.broadcast_to(R("e3_b"), (bsz, 4 * H3))

    h1 = jnp.zeros((bsz, H1), _F32); c1 = jnp.zeros((bsz, H1), _F32)
    h2 = jnp.zeros((bsz, H2), _F32); c2 = jnp.zeros((bsz, H2), _F32)
    h3 = jnp.zeros((bsz, H3), _F32); c3 = jnp.zeros((bsz, H3), _F32)

    # Fully unrolled: short static trip count, static slices, cross-step overlap.
    for t in range(seq_len):
        g1 = gx1_all[:, t, :] + mm(h1, "e1_wh")
        h1, c1 = _lstm_step(g1, c1)
        # split Wx / Wh dots (no per-step concat): the Wh operand is the
        # previous step's state, so its dot issues off the critical path.
        g2 = mm(h1, "e2_wx") + mm(h2, "e2_wh") + e2_bb
        h2, c2 = _lstm_step(g2, c2)
        g3 = mm(h2, "e3_wx") + mm(h3, "e3_wh") + e3_bb
        h3, c3 = _lstm_step(g3, c3)

    # fused mu / logvar head: one MXU push (host-concatenated [wmu|wlv]).
    mulv = mm(h3, "w_mulv") + R("b_mulv")            # (b, 2*latent)
    mu = mulv[:, :latent]
    logvar = mulv[:, latent:]
    mu_ref[...] = mu
    logvar_ref[...] = logvar

    # --------------------------- reparameterize -----------------------------
    # eps is generated host-side (jax.random.normal) and DMA'd in: zero serial
    # PRNG cost in-kernel and works in both compiled and interpret modes.
    z = mu + eps_ref[...] * jnp.exp(0.5 * logvar)

    # ------------------------------- decoder --------------------------------
    zfc = mm(z, "wfc") + R("bfc")
    # decoder layer-1 input projection is loop-invariant (same zfc every step);
    # its bias is folded in here.
    gx1 = mm(zfc, "d1_wx") + R("d1_b")
    d2_bb = jnp.broadcast_to(R("d2_b"), (bsz, 4 * H1))
    d3_bb = jnp.broadcast_to(R("d3_b"), (bsz, 4 * IN_CHANNELS))
    d3_wh = R("d3_wh")                               # (1, 4): VPU outer product

    dh1 = jnp.zeros((bsz, H2), _F32); dc1 = jnp.zeros((bsz, H2), _F32)
    dh2 = jnp.zeros((bsz, H1), _F32); dc2 = jnp.zeros((bsz, H1), _F32)
    dh3 = jnp.zeros((bsz, IN_CHANNELS), _F32)
    dc3 = jnp.zeros((bsz, IN_CHANNELS), _F32)

    y_cols = []                                      # register-resident step outputs
    for _ in range(future_seq):
        g1d = gx1 + mm(dh1, "d1_wh")
        dh1, dc1 = _lstm_step(g1d, dc1)
        g2d = mm(dh1, "d2_wx") + mm(dh2, "d2_wh") + d2_bb
        dh2, dc2 = _lstm_step(g2d, dc2)
        # layer 3: hidden_dim == out_channels == 1, so h @ Wh is a VPU outer
        # product (avoids a K=1 MXU matmul on the critical path).
        g3d = mm(dh2, "d3_wx") + dh3 * d3_wh + d3_bb
        dh3, dc3 = _lstm_step(g3d, dc3)
        y_cols.append(dh3)                           # (b, 1)

    # output_conv: 3-tap Conv1d over the future_seq axis (out_ch == in_ch == 1,
    # zero padding 1), then sigmoid.  Done on the stacked (b, future_seq) tile:
    # one concat, two shifted adds, ONE sigmoid pass, one lane-dense store.
    # TODO(synk): generalise output_conv to out_channels > 1 (channel mixing).
    y = jnp.concatenate(y_cols, axis=1)              # (b, future_seq)
    zero_col = jnp.zeros((bsz, 1), _F32)
    y_prev = jnp.concatenate([zero_col, y[:, :-1]], axis=1)
    y_next = jnp.concatenate([y[:, 1:], zero_col], axis=1)
    wc0, wc1, wc2, bc0 = wc_ref[0], wc_ref[1], wc_ref[2], bc_ref[0]
    out_ref[...] = jax.nn.sigmoid(wc0 * y_prev + wc1 * y + wc2 * y_next + bc0)


def _init_params(key):
    H1, H2, H3 = HIDDEN_DIMS
    OC = IN_CHANNELS
    latent = LATENT_DIM
    keys = iter(jax.random.split(key, 24))

    def w(shape, scale=0.1):
        return scale * jax.random.normal(next(keys), shape, _F32)

    def b(n):
        return jnp.zeros((1, n), _F32)

    return {
        # encoder ConvLSTM cells (centre-tap conv weights, L == 1)
        "e1_wx": w((OC, 4 * H1)), "e1_wh": w((H1, 4 * H1)), "e1_b": b(4 * H1),
        "e2_wx": w((H1, 4 * H2)), "e2_wh": w((H2, 4 * H2)), "e2_b": b(4 * H2),
        "e3_wx": w((H2, 4 * H3)), "e3_wh": w((H3, 4 * H3)), "e3_b": b(4 * H3),
        # latent heads
        "wmu": w((H3, latent)), "bmu": b(latent),
        "wlv": w((H3, latent)), "blv": b(latent),
        # decoder
        "wfc": w((latent, H3)), "bfc": b(H3),
        "d1_wx": w((H3, 4 * H2)), "d1_wh": w((H2, 4 * H2)), "d1_b": b(4 * H2),
        "d2_wx": w((H2, 4 * H1)), "d2_wh": w((H1, 4 * H1)), "d2_b": b(4 * H1),
        "d3_wx": w((H1, 4 * OC)), "d3_wh": w((OC, 4 * OC)), "d3_b": b(4 * OC),
        # output_conv (1 -> 1 channels, kernel 3)
        "wc": 0.1 * jax.random.normal(next(keys), (3,), _F32),
        "bc": jnp.zeros((1,), _F32),
    }


def _pack_params(params):
    """Host-side packing: all MXU weight matrices into ONE bf16 VMEM tile
    (each matrix in its own 128-lane-aligned block), and all (1, n) VPU rows
    and biases into ONE f32 tile -> 2 weight DMAs instead of ~23 tiny ones."""
    mats = {
        "e1_wh": params["e1_wh"],
        "e2_wx": params["e2_wx"], "e2_wh": params["e2_wh"],
        "e3_wx": params["e3_wx"], "e3_wh": params["e3_wh"],
        "w_mulv": jnp.concatenate([params["wmu"], params["wlv"]], axis=1),
        "wfc": params["wfc"],
        "d1_wx": params["d1_wx"], "d1_wh": params["d1_wh"],
        "d2_wx": params["d2_wx"], "d2_wh": params["d2_wh"],
        "d3_wx": params["d3_wx"],
    }
    max_rows = max(m.shape[0] for m in mats.values())
    max_rows = (max_rows + 7) // 8 * 8
    wpack = jnp.zeros((max_rows, 128 * len(mats)), _BF16)
    wlay = {}
    for i, (name, m) in enumerate(mats.items()):
        r, c = m.shape
        wpack = wpack.at[:r, 128 * i: 128 * i + c].set(m.astype(_BF16))
        wlay[name] = (i, r, c)

    rows = {
        "e1_wx": params["e1_wx"], "e1_b": params["e1_b"],
        "e2_b": params["e2_b"], "e3_b": params["e3_b"],
        "b_mulv": jnp.concatenate([params["bmu"], params["blv"]], axis=1),
        "bfc": params["bfc"],
        "d1_b": params["d1_b"], "d2_b": params["d2_b"],
        "d3_wh": params["d3_wh"], "d3_b": params["d3_b"],
    }
    rpack = jnp.zeros((1, 128 * len(rows)), _F32)
    rlay = {}
    for i, (name, v) in enumerate(rows.items()):
        c = v.shape[1]
        rpack = rpack.at[:, 128 * i: 128 * i + c].set(v.astype(_F32))
        rlay[name] = (i, c)
    return wpack, wlay, rpack, rlay


def beta_vae_forward(x, params, future_seq, rng_key):
    b, seq_len, num_channels = x.shape
    assert num_channels == IN_CHANNELS == 1
    latent = LATENT_DIM

    # lane-dense (batch, seq_len) encoder input (channel dim == 1 is squeezed).
    x2d = x[:, :, 0].astype(_F32)
    # reparameterization noise (torch.randn_like equivalent), drawn host-side.
    eps = jax.random.normal(rng_key, (b, latent), _F32)
    wpack, wlay, rpack, rlay = _pack_params(params)

    vmem = pl.BlockSpec(memory_space=pltpu.MemorySpace.VMEM)
    smem = pl.BlockSpec(memory_space=pltpu.MemorySpace.SMEM)

    fused = pl.pallas_call(
        functools.partial(_beta_vae_kernel, HIDDEN_DIMS, seq_len, future_seq,
                          wlay, rlay),
        out_shape=(jax.ShapeDtypeStruct((b, future_seq), _F32),
                   jax.ShapeDtypeStruct((b, latent), _F32),
                   jax.ShapeDtypeStruct((b, latent), _F32)),
        in_specs=[vmem, vmem, vmem, vmem, smem, smem],
        out_specs=(vmem, vmem, vmem),
    )
    y, mu, logvar = fused(x2d, eps, wpack, rpack, params["wc"], params["bc"])
    outputs = y[:, None, :]            # (b, C=1, future_seq) — PyTorch NCL layout
    return outputs, mu, logvar


if __name__ == "__main__":
    root = jax.random.PRNGKey(0)
    pkey, xkey, ekey = jax.random.split(root, 3)

    params = _init_params(pkey)
    batch, seq_len = 2, 8
    x = jax.random.normal(xkey, (batch, seq_len, IN_CHANNELS), _F32)

    outputs, mu, logvar = beta_vae_forward(x, params, FUTURE_SEQ, ekey)
    jax.block_until_ready((outputs, mu, logvar))

    assert outputs.shape == (batch, IN_CHANNELS, FUTURE_SEQ)
    assert mu.shape == (batch, LATENT_DIM)
    assert logvar.shape == (batch, LATENT_DIM)
    assert bool(jnp.all(jnp.isfinite(outputs)))
    assert bool(jnp.all((outputs >= 0.0) & (outputs <= 1.0)))   # post-sigmoid range
    print("KERNEL_OK")
</pallas_src>

<mosaic_0001>
module attributes {stable_mosaic.version = 11 : i64} {
  func.func @_beta_vae_kernel(%arg0: memref<2x8xf32, #tpu.memory_space<vmem>>, %arg1: memref<2x32xf32, #tpu.memory_space<vmem>>, %arg2: memref<32x1536xbf16, #tpu.memory_space<vmem>>, %arg3: memref<1x1280xf32, #tpu.memory_space<vmem>>, %arg4: memref<3xf32, #tpu.memory_space<smem>>, %arg5: memref<1xf32, #tpu.memory_space<smem>>, %arg6: memref<2x10xf32, #tpu.memory_space<vmem>>, %arg7: memref<2x32xf32, #tpu.memory_space<vmem>>, %arg8: memref<2x32xf32, #tpu.memory_space<vmem>>) attributes {dimension_semantics = [], scalar_prefetch = 0 : i64, scratch_operands = 0 : i64, tpu.core_type = #tpu.core_type<tc>} {
    %c0 = arith.constant 0 : index
    %c0_0 = arith.constant 0 : index
    %0 = vector.load %arg0[%c0, %c0_0] : memref<2x8xf32, #tpu.memory_space<vmem>>, vector<2x8xf32>
    %1 = vector.shape_cast %0 : vector<2x8xf32> to vector<2x8x1xf32>
    %c0_1 = arith.constant 0 : index
    %c0_2 = arith.constant 0 : index
    %2 = vector.load %arg3[%c0_1, %c0_2] : memref<1x1280xf32, #tpu.memory_space<vmem>>, vector<1x32xf32>
    %3 = vector.shape_cast %2 : vector<1x32xf32> to vector<1x1x32xf32>
    %4 = vector.broadcast %1 : vector<2x8x1xf32> to vector<2x8x32xf32>
    %5 = vector.broadcast %3 : vector<1x1x32xf32> to vector<2x8x32xf32>
    %6 = arith.mulf %4, %5 : vector<2x8x32xf32>
    %c0_3 = arith.constant 0 : index
    %c128 = arith.constant 128 : index
    %7 = vector.load %arg3[%c0_3, %c128] : memref<1x1280xf32, #tpu.memory_space<vmem>>, vector<1x32xf32>
    %8 = vector.shape_cast %7 : vector<1x32xf32> to vector<1x1x32xf32>
    %9 = vector.broadcast %8 : vector<1x1x32xf32> to vector<2x8x32xf32>
    %10 = arith.addf %6, %9 : vector<2x8x32xf32>
    %c0_4 = arith.constant 0 : index
    %c256 = arith.constant 256 : index
    %11 = vector.load %arg3[%c0_4, %c256] : memref<1x1280xf32, #tpu.memory_space<vmem>>, vector<1x64xf32>
    %12 = vector.shape_cast %11 : vector<1x64xf32> to vector<1x64xf32>
    %13 = vector.broadcast %12 : vector<1x64xf32> to vector<2x64xf32>
    %c0_5 = arith.constant 0 : index
    %c384 = arith.constant 384 : index
    %14 = vector.load %arg3[%c0_5, %c384] : memref<1x1280xf32, #tpu.memory_space<vmem>>, vector<1x128xf32>
    %15 = vector.shape_cast %14 : vector<1x128xf32> to vector<1x128xf32>
    %16 = vector.broadcast %15 : vector<1x128xf32> to vector<2x128xf32>
    %cst = arith.constant 0.000000e+00 : f32
    %17 = vector.broadcast %cst : f32 to vector<2x8xf32>
    %cst_6 = arith.constant 0.000000e+00 : f32
    %18 = vector.broadcast %cst_6 : f32 to vector<2x8xf32>
    %cst_7 = arith.constant 0.000000e+00 : f32
    %19 = vector.broadcast %cst_7 : f32 to vector<2x16xf32>
    %cst_8 = arith.constant 0.000000e+00 : f32
    %20 = vector.broadcast %cst_8 : f32 to vector<2x16xf32>
    %cst_9 = arith.constant 0.000000e+00 : f32
    %21 = vector.broadcast %cst_9 : f32 to vector<2x32xf32>
    %cst_10 = arith.constant 0.000000e+00 : f32
    %22 = vector.broadcast %cst_10 : f32 to vector<2x32xf32>
    %23 = vector.extract_strided_slice %10 {offsets = [0, 0, 0], sizes = [2, 1, 32], strides = [1, 1, 1]} : vector<2x8x32xf32> to vector<2x1x32xf32>
    %24 = vector.shape_cast %23 : vector<2x1x32xf32> to vector<2x32xf32>
    %25 = arith.truncf %17 : vector<2x8xf32> to vector<2x8xbf16>
    %c0_11 = arith.constant 0 : index
    %c0_12 = arith.constant 0 : index
    %26 = vector.load %arg2[%c0_11, %c0_12] : memref<32x1536xbf16, #tpu.memory_space<vmem>>, vector<8x32xbf16>
    %cst_13 = arith.constant dense<0.000000e+00> : vector<2x32xf32>
    %27 = tpu.matmul %25, %26, %cst_13 {dimension_numbers = #tpu.dot_dimension_numbers<[1], [0], [0], [1], [0, 0, 1, 1], [], []>} : vector<2x8xbf16>, vector<8x32xbf16>, vector<2x32xf32> -> vector<2x32xf32>
    %28 = arith.addf %24, %27 : vector<2x32xf32>
    %29 = arith.negf %28 : vector<2x32xf32>
    %30 = math.exp %29 : vector<2x32xf32>
    %cst_14 = arith.constant 1.000000e+00 : f32
    %31 = vector.broadcast %cst_14 : f32 to vector<2x32xf32>
    %32 = arith.addf %31, %30 : vector<2x32xf32>
    %33 = arith.divf %31, %32 : vector<2x32xf32>
    %34 = vector.extract_strided_slice %33 {offsets = [0, 0], sizes = [2, 8], strides = [1, 1]} : vector<2x32xf32> to vector<2x8xf32>
    %35 = vector.extract_strided_slice %33 {offsets = [0, 8], sizes = [2, 8], strides = [1, 1]} : vector<2x32xf32> to vector<2x8xf32>
    %36 = vector.extract_strided_slice %33 {offsets = [0, 16], sizes = [2, 8], strides = [1, 1]} : vector<2x32xf32> to vector<2x8xf32>
    %37 = vector.extract_strided_slice %28 {offsets = [0, 24], sizes = [2, 8], strides = [1, 1]} : vector<2x32xf32> to vector<2x8xf32>
    %38 = math.tanh %37 : vector<2x8xf32>
    %39 = arith.mulf %35, %18 : vector<2x8xf32>
    %40 = arith.mulf %34, %38 : vector<2x8xf32>
    %41 = arith.addf %39, %40 : vector<2x8xf32>
    %42 = math.tanh %41 : vector<2x8xf32>
    %43 = arith.mulf %36, %42 : vector<2x8xf32>
    %44 = arith.truncf %43 : vector<2x8xf32> to vector<2x8xbf16>
    %c0_15 = arith.constant 0 : index
    %c128_16 = arith.constant 128 : index
    %45 = vector.load %arg2[%c0_15, %c128_16] : memref<32x1536xbf16, #tpu.memory_space<vmem>>, vector<8x64xbf16>
    %cst_17 = arith.constant dense<0.000000e+00> : vector<2x64xf32>
    %46 = tpu.matmul %44, %45, %cst_17 {dimension_numbers = #tpu.dot_dimension_numbers<[1], [0], [0], [1], [0, 0, 1, 1], [], []>} : vector<2x8xbf16>, vector<8x64xbf16>, vector<2x64xf32> -> vector<2x64xf32>
    %47 = arith.truncf %19 : vector<2x16xf32> to vector<2x16xbf16>
    %c0_18 = arith.constant 0 : index
    %c256_19 = arith.constant 256 : index
    %48 = vector.load %arg2[%c0_18, %c256_19] : memref<32x1536xbf16, #tpu.memory_space<vmem>>, vector<16x64xbf16>
    %cst_20 = arith.constant dense<0.000000e+00> : vector<2x64xf32>
    %49 = tpu.matmul %47, %48, %cst_20 {dimension_numbers = #tpu.dot_dimension_numbers<[1], [0], [0], [1], [0, 0, 1, 1], [], []>} : vector<2x16xbf16>, vector<16x64xbf16>, vector<2x64xf32> -> vector<2x64xf32>
    %50 = arith.addf %46, %49 : vector<2x64xf32>
    %51 = arith.addf %50, %13 : vector<2x64xf32>
    %52 = arith.negf %51 : vector<2x64xf32>
    %53 = math.exp %52 : vector<2x64xf32>
    %cst_21 = arith.constant 1.000000e+00 : f32
    %54 = vector.broadcast %cst_21 : f32 to vector<2x64xf32>
    %55 = arith.addf %54, %53 : vector<2x64xf32>
    %56 = arith.divf %54, %55 : vector<2x64xf32>
    %57 = vector.extract_strided_slice %56 {offsets = [0, 0], sizes = [2, 16], strides = [1, 1]} : vector<2x64xf32> to vector<2x16xf32>
    %58 = vector.extract_strided_slice %56 {offsets = [0, 16], sizes = [2, 16], strides = [1, 1]} : vector<2x64xf32> to vector<2x16xf32>
    %59 = vector.extract_strided_slice %56 {offsets = [0, 32], sizes = [2, 16], strides = [1, 1]} : vector<2x64xf32> to vector<2x16xf32>
    %60 = vector.extract_strided_slice %51 {offsets = [0, 48], sizes = [2, 16], strides = [1, 1]} : vector<2x64xf32> to vector<2x16xf32>
    %61 = math.tanh %60 : vector<2x16xf32>
    %62 = arith.mulf %58, %20 : vector<2x16xf32>
    %63 = arith.mulf %57, %61 : vector<2x16xf32>
    %64 = arith.addf %62, %63 : vector<2x16xf32>
    %65 = math.tanh %64 : vector<2x16xf32>
    %66 = arith.mulf %59, %65 : vector<2x16xf32>
    %67 = arith.truncf %66 : vector<2x16xf32> to vector<2x16xbf16>
    %c0_22 = arith.constant 0 : index
    %c384_23 = arith.constant 384 : index
    %68 = vector.load %arg2[%c0_22, %c384_23] : memref<32x1536xbf16, #tpu.memory_space<vmem>>, vector<16x128xbf16>
    %cst_24 = arith.constant dense<0.000000e+00> : vector<2x128xf32>
    %69 = tpu.matmul %67, %68, %cst_24 {dimension_numbers = #tpu.dot_dimension_numbers<[1], [0], [0], [1], [0, 0, 1, 1], [], []>} : vector<2x16xbf16>, vector<16x128xbf16>, vector<2x128xf32> -> vector<2x128xf32>
    %70 = arith.truncf %21 : vector<2x32xf32> to vector<2x32xbf16>
    %c0_25 = arith.constant 0 : index
    %c512 = arith.constant 512 : index
    %71 = vector.load %arg2[%c0_25, %c512] : memref<32x1536xbf16, #tpu.memory_space<vmem>>, vector<32x128xbf16>
    %cst_26 = arith.constant dense<0.000000e+00> : vector<2x128xf32>
    %72 = tpu.matmul %70, %71, %cst_26 {dimension_numbers = #tpu.dot_dimension_numbers<[1], [0], [0], [1], [0, 0, 1, 1], [], []>} : vector<2x32xbf16>, vector<32x128xbf16>, vector<2x128xf32> -> vector<2x128xf32>
    %73 = arith.addf %69, %72 : vector<2x128xf32>
    %74 = arith.addf %73, %16 : vector<2x128xf32>
    %75 = arith.negf %74 : vector<2x128xf32>
    %76 = math.exp %75 : vector<2x128xf32>
    %cst_27 = arith.constant 1.000000e+00 : f32
    %77 = vector.broadcast %cst_27 : f32 to vector<2x128xf32>
    %78 = arith.addf %77, %76 : vector<2x128xf32>
    %79 = arith.divf %77, %78 : vector<2x128xf32>
    %80 = vector.extract_strided_slice %79 {offsets = [0, 0], sizes = [2, 32], strides = [1, 1]} : vector<2x128xf32> to vector<2x32xf32>
    %81 = vector.extract_strided_slice %79 {offsets = [0, 32], sizes = [2, 32], strides = [1, 1]} : vector<2x128xf32> to vector<2x32xf32>
    %82 = vector.extract_strided_slice %79 {offsets = [0, 64], sizes = [2, 32], strides = [1, 1]} : vector<2x128xf32> to vector<2x32xf32>
    %83 = vector.extract_strided_slice %74 {offsets = [0, 96], sizes = [2, 32], strides = [1, 1]} : vector<2x128xf32> to vector<2x32xf32>
    %84 = math.tanh %83 : vector<2x32xf32>
    %85 = arith.mulf %81, %22 : vector<2x32xf32>
    %86 = arith.mulf %80, %84 : vector<2x32xf32>
    %87 = arith.addf %85, %86 : vector<2x32xf32>
    %88 = math.tanh %87 : vector<2x32xf32>
    %89 = arith.mulf %82, %88 : vector<2x32xf32>
    %90 = vector.extract_strided_slice %10 {offsets = [0, 1, 0], sizes = [2, 1, 32], strides = [1, 1, 1]} : vector<2x8x32xf32> to vector<2x1x32xf32>
    %91 = vector.shape_cast %90 : vector<2x1x32xf32> to vector<2x32xf32>
    %92 = arith.truncf %43 : vector<2x8xf32> to vector<2x8xbf16>
    %c0_28 = arith.constant 0 : index
    %c0_29 = arith.constant 0 : index
    %93 = vector.load %arg2[%c0_28, %c0_29] : memref<32x1536xbf16, #tpu.memory_space<vmem>>, vector<8x32xbf16>
    %cst_30 = arith.constant dense<0.000000e+00> : vector<2x32xf32>
    %94 = tpu.matmul %92, %93, %cst_30 {dimension_numbers = #tpu.dot_dimension_numbers<[1], [0], [0], [1], [0, 0, 1, 1], [], []>} : vector<2x8xbf16>, vector<8x32xbf16>, vector<2x32xf32> -> vector<2x32xf32>
    %95 = arith.addf %91, %94 : vector<2x32xf32>
    %96 = arith.negf %95 : vector<2x32xf32>
    %97 = math.exp %96 : vector<2x32xf32>
    %cst_31 = arith.constant 1.000000e+00 : f32
    %98 = vector.broadcast %cst_31 : f32 to vector<2x32xf32>
    %99 = arith.addf %98, %97 : vector<2x32xf32>
    %100 = arith.divf %98, %99 : vector<2x32xf32>
    %101 = vector.extract_strided_slice %100 {offsets = [0, 0], sizes = [2, 8], strides = [1, 1]} : vector<2x32xf32> to vector<2x8xf32>
    %102 = vector.extract_strided_slice %100 {offsets = [0, 8], sizes = [2, 8], strides = [1, 1]} : vector<2x32xf32> to vector<2x8xf32>
    %103 = vector.extract_strided_slice %100 {offsets = [0, 16], sizes = [2, 8], strides = [1, 1]} : vector<2x32xf32> to vector<2x8xf32>
    %104 = vector.extract_strided_slice %95 {offsets = [0, 24], sizes = [2, 8], strides = [1, 1]} : vector<2x32xf32> to vector<2x8xf32>
    %105 = math.tanh %104 : vector<2x8xf32>
    %106 = arith.mulf %102, %41 : vector<2x8xf32>
    %107 = arith.mulf %101, %105 : vector<2x8xf32>
    %108 = arith.addf %106, %107 : vector<2x8xf32>
    %109 = math.tanh %108 : vector<2x8xf32>
    %110 = arith.mulf %103, %109 : vector<2x8xf32>
    %111 = arith.truncf %110 : vector<2x8xf32> to vector<2x8xbf16>
    %c0_32 = arith.constant 0 : index
    %c128_33 = arith.constant 128 : index
    %112 = vector.load %arg2[%c0_32, %c128_33] : memref<32x1536xbf16, #tpu.memory_space<vmem>>, vector<8x64xbf16>
    %cst_34 = arith.constant dense<0.000000e+00> : vector<2x64xf32>
    %113 = tpu.matmul %111, %112, %cst_34 {dimension_numbers = #tpu.dot_dimension_numbers<[1], [0], [0], [1], [0, 0, 1, 1], [], []>} : vector<2x8xbf16>, vector<8x64xbf16>, vector<2x64xf32> -> vector<2x64xf32>
    %114 = arith.truncf %66 : vector<2x16xf32> to vector<2x16xbf16>
    %c0_35 = arith.constant 0 : index
    %c256_36 = arith.constant 256 : index
    %115 = vector.load %arg2[%c0_35, %c256_36] : memref<32x1536xbf16, #tpu.memory_space<vmem>>, vector<16x64xbf16>
    %cst_37 = arith.constant dense<0.000000e+00> : vector<2x64xf32>
    %116 = tpu.matmul %114, %115, %cst_37 {dimension_numbers = #tpu.dot_dimension_numbers<[1], [0], [0], [1], [0, 0, 1, 1], [], []>} : vector<2x16xbf16>, vector<16x64xbf16>, vector<2x64xf32> -> vector<2x64xf32>
    %117 = arith.addf %113, %116 : vector<2x64xf32>
    %118 = arith.addf %117, %13 : vector<2x64xf32>
    %119 = arith.negf %118 : vector<2x64xf32>
    %120 = math.exp %119 : vector<2x64xf32>
    %cst_38 = arith.constant 1.000000e+00 : f32
    %121 = vector.broadcast %cst_38 : f32 to vector<2x64xf32>
    %122 = arith.addf %121, %120 : vector<2x64xf32>
    %123 = arith.divf %121, %122 : vector<2x64xf32>
    %124 = vector.extract_strided_slice %123 {offsets = [0, 0], sizes = [2, 16], strides = [1, 1]} : vector<2x64xf32> to vector<2x16xf32>
    %125 = vector.extract_strided_slice %123 {offsets = [0, 16], sizes = [2, 16], strides = [1, 1]} : vector<2x64xf32> to vector<2x16xf32>
    %126 = vector.extract_strided_slice %123 {offsets = [0, 32], sizes = [2, 16], strides = [1, 1]} : vector<2x64xf32> to vector<2x16xf32>
    %127 = vector.extract_strided_slice %118 {offsets = [0, 48], sizes = [2, 16], strides = [1, 1]} : vector<2x64xf32> to vector<2x16xf32>
    %128 = math.tanh %127 : vector<2x16xf32>
    %129 = arith.mulf %125, %64 : vector<2x16xf32>
    %130 = arith.mulf %124, %128 : vector<2x16xf32>
    %131 = arith.addf %129, %130 : vector<2x16xf32>
    %132 = math.tanh %131 : vector<2x16xf32>
    %133 = arith.mulf %126, %132 : vector<2x16xf32>
    %134 = arith.truncf %133 : vector<2x16xf32> to vector<2x16xbf16>
    %c0_39 = arith.constant 0 : index
    %c384_40 = arith.constant 384 : index
    %135 = vector.load %arg2[%c0_39, %c384_40] : memref<32x1536xbf16, #tpu.memory_space<vmem>>, vector<16x128xbf16>
    %cst_41 = arith.constant dense<0.000000e+00> : vector<2x128xf32>
    %136 = tpu.matmul %134, %135, %cst_41 {dimension_numbers = #tpu.dot_dimension_numbers<[1], [0], [0], [1], [0, 0, 1, 1], [], []>} : vector<2x16xbf16>, vector<16x128xbf16>, vector<2x128xf32> -> vector<2x128xf32>
    %137 = arith.truncf %89 : vector<2x32xf32> to vector<2x32xbf16>
    %c0_42 = arith.constant 0 : index
    %c512_43 = arith.constant 512 : index
    %138 = vector.load %arg2[%c0_42, %c512_43] : memref<32x1536xbf16, #tpu.memory_space<vmem>>, vector<32x128xbf16>
    %cst_44 = arith.constant dense<0.000000e+00> : vector<2x128xf32>
    %139 = tpu.matmul %137, %138, %cst_44 {dimension_numbers = #tpu.dot_dimension_numbers<[1], [0], [0], [1], [0, 0, 1, 1], [], []>} : vector<2x32xbf16>, vector<32x128xbf16>, vector<2x128xf32> -> vector<2x128xf32>
    %140 = arith.addf %136, %139 : vector<2x128xf32>
    %141 = arith.addf %140, %16 : vector<2x128xf32>
    %142 = arith.negf %141 : vector<2x128xf32>
    %143 = math.exp %142 : vector<2x128xf32>
    %cst_45 = arith.constant 1.000000e+00 : f32
    %144 = vector.broadcast %cst_45 : f32 to vector<2x128xf32>
    %145 = arith.addf %144, %143 : vector<2x128xf32>
    %146 = arith.divf %144, %145 : vector<2x128xf32>
    %147 = vector.extract_strided_slice %146 {offsets = [0, 0], sizes = [2, 32], strides = [1, 1]} : vector<2x128xf32> to vector<2x32xf32>
    %148 = vector.extract_strided_slice %146 {offsets = [0, 32], sizes = [2, 32], strides = [1, 1]} : vector<2x128xf32> to vector<2x32xf32>
    %149 = vector.extract_strided_slice %146 {offsets = [0, 64], sizes = [2, 32], strides = [1, 1]} : vector<2x128xf32> to vector<2x32xf32>
    %150 = vector.extract_strided_slice %141 {offsets = [0, 96], sizes = [2, 32], strides = [1, 1]} : vector<2x128xf32> to vector<2x32xf32>
    %151 = math.tanh %150 : vector<2x32xf32>
    %152 = arith.mulf %148, %87 : vector<2x32xf32>
    %153 = arith.mulf %147, %151 : vector<2x32xf32>
    %154 = arith.addf %152, %153 : vector<2x32xf32>
    %155 = math.tanh %154 : vector<2x32xf32>
    %156 = arith.mulf %149, %155 : vector<2x32xf32>
    %157 = vector.extract_strided_slice %10 {offsets = [0, 2, 0], sizes = [2, 1, 32], strides = [1, 1, 1]} : vector<2x8x32xf32> to vector<2x1x32xf32>
    %158 = vector.shape_cast %157 : vector<2x1x32xf32> to vector<2x32xf32>
    %159 = arith.truncf %110 : vector<2x8xf32> to vector<2x8xbf16>
    %c0_46 = arith.constant 0 : index
    %c0_47 = arith.constant 0 : index
    %160 = vector.load %arg2[%c0_46, %c0_47] : memref<32x1536xbf16, #tpu.memory_space<vmem>>, vector<8x32xbf16>
    %cst_48 = arith.constant dense<0.000000e+00> : vector<2x32xf32>
    %161 = tpu.matmul %159, %160, %cst_48 {dimension_numbers = #tpu.dot_dimension_numbers<[1], [0], [0], [1], [0, 0, 1, 1], [], []>} : vector<2x8xbf16>, vector<8x32xbf16>, vector<2x32xf32> -> vector<2x32xf32>
    %162 = arith.addf %158, %161 : vector<2x32xf32>
    %163 = arith.negf %162 : vector<2x32xf32>
    %164 = math.exp %163 : vector<2x32xf32>
    %cst_49 = arith.constant 1.000000e+00 : f32
    %165 = vector.broadcast %cst_49 : f32 to vector<2x32xf32>
    %166 = arith.addf %165, %164 : vector<2x32xf32>
    %167 = arith.divf %165, %166 : vector<2x32xf32>
    %168 = vector.extract_strided_slice %167 {offsets = [0, 0], sizes = [2, 8], strides = [1, 1]} : vector<2x32xf32> to vector<2x8xf32>
    %169 = vector.extract_strided_slice %167 {offsets = [0, 8], sizes = [2, 8], strides = [1, 1]} : vector<2x32xf32> to vector<2x8xf32>
    %170 = vector.extract_strided_slice %167 {offsets = [0, 16], sizes = [2, 8], strides = [1, 1]} : vector<2x32xf32> to vector<2x8xf32>
    %171 = vector.extract_strided_slice %162 {offsets = [0, 24], sizes = [2, 8], strides = [1, 1]} : vector<2x32xf32> to vector<2x8xf32>
    %172 = math.tanh %171 : vector<2x8xf32>
    %173 = arith.mulf %169, %108 : vector<2x8xf32>
    %174 = arith.mulf %168, %172 : vector<2x8xf32>
    %175 = arith.addf %173, %174 : vector<2x8xf32>
    %176 = math.tanh %175 : vector<2x8xf32>
    %177 = arith.mulf %170, %176 : vector<2x8xf32>
    %178 = arith.truncf %177 : vector<2x8xf32> to vector<2x8xbf16>
    %c0_50 = arith.constant 0 : index
    %c128_51 = arith.constant 128 : index
    %179 = vector.load %arg2[%c0_50, %c128_51] : memref<32x1536xbf16, #tpu.memory_space<vmem>>, vector<8x64xbf16>
    %cst_52 = arith.constant dense<0.000000e+00> : vector<2x64xf32>
    %180 = tpu.matmul %178, %179, %cst_52 {dimension_numbers = #tpu.dot_dimension_numbers<[1], [0], [0], [1], [0, 0, 1, 1], [], []>} : vector<2x8xbf16>, vector<8x64xbf16>, vector<2x64xf32> -> vector<2x64xf32>
    %181 = arith.truncf %133 : vector<2x16xf32> to vector<2x16xbf16>
    %c0_53 = arith.constant 0 : index
    %c256_54 = arith.constant 256 : index
    %182 = vector.load %arg2[%c0_53, %c256_54] : memref<32x1536xbf16, #tpu.memory_space<vmem>>, vector<16x64xbf16>
    %cst_55 = arith.constant dense<0.000000e+00> : vector<2x64xf32>
    %183 = tpu.matmul %181, %182, %cst_55 {dimension_numbers = #tpu.dot_dimension_numbers<[1], [0], [0], [1], [0, 0, 1, 1], [], []>} : vector<2x16xbf16>, vector<16x64xbf16>, vector<2x64xf32> -> vector<2x64xf32>
    %184 = arith.addf %180, %183 : vector<2x64xf32>
    %185 = arith.addf %184, %13 : vector<2x64xf32>
    %186 = arith.negf %185 : vector<2x64xf32>
    %187 = math.exp %186 : vector<2x64xf32>
    %cst_56 = arith.constant 1.000000e+00 : f32
    %188 = vector.broadcast %cst_56 : f32 to vector<2x64xf32>
    %189 = arith.addf %188, %187 : vector<2x64xf32>
    %190 = arith.divf %188, %189 : vector<2x64xf32>
    %191 = vector.extract_strided_slice %190 {offsets = [0, 0], sizes = [2, 16], strides = [1, 1]} : vector<2x64xf32> to vector<2x16xf32>
    %192 = vector.extract_strided_slice %190 {offsets = [0, 16], sizes = [2, 16], strides = [1, 1]} : vector<2x64xf32> to vector<2x16xf32>
    %193 = vector.extract_strided_slice %190 {offsets = [0, 32], sizes = [2, 16], strides = [1, 1]} : vector<2x64xf32> to vector<2x16xf32>
    %194 = vector.extract_strided_slice %185 {offsets = [0, 48], sizes = [2, 16], strides = [1, 1]} : vector<2x64xf32> to vector<2x16xf32>
    %195 = math.tanh %194 : vector<2x16xf32>
    %196 = arith.mulf %192, %131 : vector<2x16xf32>
    %197 = arith.mulf %191, %195 : vector<2x16xf32>
    %198 = arith.addf %196, %197 : vector<2x16xf32>
    %199 = math.tanh %198 : vector<2x16xf32>
    %200 = arith.mulf %193, %199 : vector<2x16xf32>
    %201 = arith.truncf %200 : vector<2x16xf32> to vector<2x16xbf16>
    %c0_57 = arith.constant 0 : index
    %c384_58 = arith.constant 384 : index
    %202 = vector.load %arg2[%c0_57, %c384_58] : memref<32x1536xbf16, #tpu.memory_space<vmem>>, vector<16x128xbf16>
    %cst_59 = arith.constant dense<0.000000e+00> : vector<2x128xf32>
    %203 = tpu.matmul %201, %202, %cst_59 {dimension_numbers = #tpu.dot_dimension_numbers<[1], [0], [0], [1], [0, 0, 1, 1], [], []>} : vector<2x16xbf16>, vector<16x128xbf16>, vector<2x128xf32> -> vector<2x128xf32>
    %204 = arith.truncf %156 : vector<2x32xf32> to vector<2x32xbf16>
    %c0_60 = arith.constant 0 : index
    %c512_61 = arith.constant 512 : index
    %205 = vector.load %arg2[%c0_60, %c512_61] : memref<32x1536xbf16, #tpu.memory_space<vmem>>, vector<32x128xbf16>
    %cst_62 = arith.constant dense<0.000000e+00> : vector<2x128xf32>
    %206 = tpu.matmul %204, %205, %cst_62 {dimension_numbers = #tpu.dot_dimension_numbers<[1], [0], [0], [1], [0, 0, 1, 1], [], []>} : vector<2x32xbf16>, vector<32x128xbf16>, vector<2x128xf32> -> vector<2x128xf32>
    %207 = arith.addf %203, %206 : vector<2x128xf32>
    %208 = arith.addf %207, %16 : vector<2x128xf32>
    %209 = arith.negf %208 : vector<2x128xf32>
    %210 = math.exp %209 : vector<2x128xf32>
    %cst_63 = arith.constant 1.000000e+00 : f32
    %211 = vector.broadcast %cst_63 : f32 to vector<2x128xf32>
    %212 = arith.addf %211, %210 : vector<2x128xf32>
    %213 = arith.divf %211, %212 : vector<2x128xf32>
    %214 = vector.extract_strided_slice %213 {offsets = [0, 0], sizes = [2, 32], strides = [1, 1]} : vector<2x128xf32> to vector<2x32xf32>
    %215 = vector.extract_strided_slice %213 {offsets = [0, 32], sizes = [2, 32], strides = [1, 1]} : vector<2x128xf32> to vector<2x32xf32>
    %216 = vector.extract_strided_slice %213 {offsets = [0, 64], sizes = [2, 32], strides = [1, 1]} : vector<2x128xf32> to vector<2x32xf32>
    %217 = vector.extract_strided_slice %208 {offsets = [0, 96], sizes = [2, 32], strides = [1, 1]} : vector<2x128xf32> to vector<2x32xf32>
    %218 = math.tanh %217 : vector<2x32xf32>
    %219 = arith.mulf %215, %154 : vector<2x32xf32>
    %220 = arith.mulf %214, %218 : vector<2x32xf32>
    %221 = arith.addf %219, %220 : vector<2x32xf32>
    %222 = math.tanh %221 : vector<2x32xf32>
    %223 = arith.mulf %216, %222 : vector<2x32xf32>
    %224 = vector.extract_strided_slice %10 {offsets = [0, 3, 0], sizes = [2, 1, 32], strides = [1, 1, 1]} : vector<2x8x32xf32> to vector<2x1x32xf32>
    %225 = vector.shape_cast %224 : vector<2x1x32xf32> to vector<2x32xf32>
    %226 = arith.truncf %177 : vector<2x8xf32> to vector<2x8xbf16>
    %c0_64 = arith.constant 0 : index
    %c0_65 = arith.constant 0 : index
    %227 = vector.load %arg2[%c0_64, %c0_65] : memref<32x1536xbf16, #tpu.memory_space<vmem>>, vector<8x32xbf16>
    %cst_66 = arith.constant dense<0.000000e+00> : vector<2x32xf32>
    %228 = tpu.matmul %226, %227, %cst_66 {dimension_numbers = #tpu.dot_dimension_numbers<[1], [0], [0], [1], [0, 0, 1, 1], [], []>} : vector<2x8xbf16>, vector<8x32xbf16>, vector<2x32xf32> -> vector<2x32xf32>
    %229 = arith.addf %225, %228 : vector<2x32xf32>
    %230 = arith.negf %229 : vector<2x32xf32>
    %231 = math.exp %230 : vector<2x32xf32>
    %cst_67 = arith.constant 1.000000e+00 : f32
    %232 = vector.broadcast %cst_67 : f32 to vector<2x32xf32>
    %233 = arith.addf %232, %231 : vector<2x32xf32>
    %234 = arith.divf %232, %233 : vector<2x32xf32>
    %235 = vector.extract_strided_slice %234 {offsets = [0, 0], sizes = [2, 8], strides = [1, 1]} : vector<2x32xf32> to vector<2x8xf32>
    %236 = vector.extract_strided_slice %234 {offsets = [0, 8], sizes = [2, 8], strides = [1, 1]} : vector<2x32xf32> to vector<2x8xf32>
    %237 = vector.extract_strided_slice %234 {offsets = [0, 16], sizes = [2, 8], strides = [1, 1]} : vector<2x32xf32> to vector<2x8xf32>
    %238 = vector.extract_strided_slice %229 {offsets = [0, 24], sizes = [2, 8], strides = [1, 1]} : vector<2x32xf32> to vector<2x8xf32>
    %239 = math.tanh %238 : vector<2x8xf32>
    %240 = arith.mulf %236, %175 : vector<2x8xf32>
    %241 = arith.mulf %235, %239 : vector<2x8xf32>
    %242 = arith.addf %240, %241 : vector<2x8xf32>
    %243 = math.tanh %242 : vector<2x8xf32>
    %244 = arith.mulf %237, %243 : vector<2x8xf32>
    %245 = arith.truncf %244 : vector<2x8xf32> to vector<2x8xbf16>
    %c0_68 = arith.constant 0 : index
    %c128_69 = arith.constant 128 : index
    %246 = vector.load %arg2[%c0_68, %c128_69] : memref<32x1536xbf16, #tpu.memory_space<vmem>>, vector<8x64xbf16>
    %cst_70 = arith.constant dense<0.000000e+00> : vector<2x64xf32>
    %247 = tpu.matmul %245, %246, %cst_70 {dimension_numbers = #tpu.dot_dimension_numbers<[1], [0], [0], [1], [0, 0, 1, 1], [], []>} : vector<2x8xbf16>, vector<8x64xbf16>, vector<2x64xf32> -> vector<2x64xf32>
    %248 = arith.truncf %200 : vector<2x16xf32> to vector<2x16xbf16>
    %c0_71 = arith.constant 0 : index
    %c256_72 = arith.constant 256 : index
    %249 = vector.load %arg2[%c0_71, %c256_72] : memref<32x1536xbf16, #tpu.memory_space<vmem>>, vector<16x64xbf16>
    %cst_73 = arith.constant dense<0.000000e+00> : vector<2x64xf32>
    %250 = tpu.matmul %248, %249, %cst_73 {dimension_numbers = #tpu.dot_dimension_numbers<[1], [0], [0], [1], [0, 0, 1, 1], [], []>} : vector<2x16xbf16>, vector<16x64xbf16>, vector<2x64xf32> -> vector<2x64xf32>
    %251 = arith.addf %247, %250 : vector<2x64xf32>
    %252 = arith.addf %251, %13 : vector<2x64xf32>
    %253 = arith.negf %252 : vector<2x64xf32>
    %254 = math.exp %253 : vector<2x64xf32>
    %cst_74 = arith.constant 1.000000e+00 : f32
    %255 = vector.broadcast %cst_74 : f32 to vector<2x64xf32>
    %256 = arith.addf %255, %254 : vector<2x64xf32>
    %257 = arith.divf %255, %256 : vector<2x64xf32>
    %258 = vector.extract_strided_slice %257 {offsets = [0, 0], sizes = [2, 16], strides = [1, 1]} : vector<2x64xf32> to vector<2x16xf32>
    %259 = vector.extract_strided_slice %257 {offsets = [0, 16], sizes = [2, 16], strides = [1, 1]} : vector<2x64xf32> to vector<2x16xf32>
    %260 = vector.extract_strided_slice %257 {offsets = [0, 32], sizes = [2, 16], strides = [1, 1]} : vector<2x64xf32> to vector<2x16xf32>
    %261 = vector.extract_strided_slice %252 {offsets = [0, 48], sizes = [2, 16], strides = [1, 1]} : vector<2x64xf32> to vector<2x16xf32>
    %262 = math.tanh %261 : vector<2x16xf32>
    %263 = arith.mulf %259, %198 : vector<2x16xf32>
    %264 = arith.mulf %258, %262 : vector<2x16xf32>
    %265 = arith.addf %263, %264 : vector<2x16xf32>
    %266 = math.tanh %265 : vector<2x16xf32>
    %267 = arith.mulf %260, %266 : vector<2x16xf32>
    %268 = arith.truncf %267 : vector<2x16xf32> to vector<2x16xbf16>
    %c0_75 = arith.constant 0 : index
    %c384_76 = arith.constant 384 : index
    %269 = vector.load %arg2[%c0_75, %c384_76] : memref<32x1536xbf16, #tpu.memory_space<vmem>>, vector<16x128xbf16>
    %cst_77 = arith.constant dense<0.000000e+00> : vector<2x128xf32>
    %270 = tpu.matmul %268, %269, %cst_77 {dimension_numbers = #tpu.dot_dimension_numbers<[1], [0], [0], [1], [0, 0, 1, 1], [], []>} : vector<2x16xbf16>, vector<16x128xbf16>, vector<2x128xf32> -> vector<2x128xf32>
    %271 = arith.truncf %223 : vector<2x32xf32> to vector<2x32xbf16>
    %c0_78 = arith.constant 0 : index
    %c512_79 = arith.constant 512 : index
    %272 = vector.load %arg2[%c0_78, %c512_79] : memref<32x1536xbf16, #tpu.memory_space<vmem>>, vector<32x128xbf16>
    %cst_80 = arith.constant dense<0.000000e+00> : vector<2x128xf32>
    %273 = tpu.matmul %271, %272, %cst_80 {dimension_numbers = #tpu.dot_dimension_numbers<[1], [0], [0], [1], [0, 0, 1, 1], [], []>} : vector<2x32xbf16>, vector<32x128xbf16>, vector<2x128xf32> -> vector<2x128xf32>
    %274 = arith.addf %270, %273 : vector<2x128xf32>
    %275 = arith.addf %274, %16 : vector<2x128xf32>
    %276 = arith.negf %275 : vector<2x128xf32>
    %277 = math.exp %276 : vector<2x128xf32>
    %cst_81 = arith.constant 1.000000e+00 : f32
    %278 = vector.broadcast %cst_81 : f32 to vector<2x128xf32>
    %279 = arith.addf %278, %277 : vector<2x128xf32>
    %280 = arith.divf %278, %279 : vector<2x128xf32>
    %281 = vector.extract_strided_slice %280 {offsets = [0, 0], sizes = [2, 32], strides = [1, 1]} : vector<2x128xf32> to vector<2x32xf32>
    %282 = vector.extract_strided_slice %280 {offsets = [0, 32], sizes = [2, 32], strides = [1, 1]} : vector<2x128xf32> to vector<2x32xf32>
    %283 = vector.extract_strided_slice %280 {offsets = [0, 64], sizes = [2, 32], strides = [1, 1]} : vector<2x128xf32> to vector<2x32xf32>
    %284 = vector.extract_strided_slice %275 {offsets = [0, 96], sizes = [2, 32], strides = [1, 1]} : vector<2x128xf32> to vector<2x32xf32>
    %285 = math.tanh %284 : vector<2x32xf32>
    %286 = arith.mulf %282, %221 : vector<2x32xf32>
    %287 = arith.mulf %281, %285 : vector<2x32xf32>
    %288 = arith.addf %286, %287 : vector<2x32xf32>
    %289 = math.tanh %288 : vector<2x32xf32>
    %290 = arith.mulf %283, %289 : vector<2x32xf32>
    %291 = vector.extract_strided_slice %10 {offsets = [0, 4, 0], sizes = [2, 1, 32], strides = [1, 1, 1]} : vector<2x8x32xf32> to vector<2x1x32xf32>
    %292 = vector.shape_cast %291 : vector<2x1x32xf32> to vector<2x32xf32>
    %293 = arith.truncf %244 : vector<2x8xf32> to vector<2x8xbf16>
    %c0_82 = arith.constant 0 : index
    %c0_83 = arith.constant 0 : index
    %294 = vector.load %arg2[%c0_82, %c0_83] : memref<32x1536xbf16, #tpu.memory_space<vmem>>, vector<8x32xbf16>
    %cst_84 = arith.constant dense<0.000000e+00> : vector<2x32xf32>
    %295 = tpu.matmul %293, %294, %cst_84 {dimension_numbers = #tpu.dot_dimension_numbers<[1], [0], [0], [1], [0, 0, 1, 1], [], []>} : vector<2x8xbf16>, vector<8x32xbf16>, vector<2x32xf32> -> vector<2x32xf32>
    %296 = arith.addf %292, %295 : vector<2x32xf32>
    %297 = arith.negf %296 : vector<2x32xf32>
    %298 = math.exp %297 : vector<2x32xf32>
    %cst_85 = arith.constant 1.000000e+00 : f32
    %299 = vector.broadcast %cst_85 : f32 to vector<2x32xf32>
    %300 = arith.addf %299, %298 : vector<2x32xf32>
    %301 = arith.divf %299, %300 : vector<2x32xf32>
    %302 = vector.extract_strided_slice %301 {offsets = [0, 0], sizes = [2, 8], strides = [1, 1]} : vector<2x32xf32> to vector<2x8xf32>
    %303 = vector.extract_strided_slice %301 {offsets = [0, 8], sizes = [2, 8], strides = [1, 1]} : vector<2x32xf32> to vector<2x8xf32>
    %304 = vector.extract_strided_slice %301 {offsets = [0, 16], sizes = [2, 8], strides = [1, 1]} : vector<2x32xf32> to vector<2x8xf32>
    %305 = vector.extract_strided_slice %296 {offsets = [0, 24], sizes = [2, 8], strides = [1, 1]} : vector<2x32xf32> to vector<2x8xf32>
    %306 = math.tanh %305 : vector<2x8xf32>
    %307 = arith.mulf %303, %242 : vector<2x8xf32>
    %308 = arith.mulf %302, %306 : vector<2x8xf32>
    %309 = arith.addf %307, %308 : vector<2x8xf32>
    %310 = math.tanh %309 : vector<2x8xf32>
    %311 = arith.mulf %304, %310 : vector<2x8xf32>
    %312 = arith.truncf %311 : vector<2x8xf32> to vector<2x8xbf16>
    %c0_86 = arith.constant 0 : index
    %c128_87 = arith.constant 128 : index
    %313 = vector.load %arg2[%c0_86, %c128_87] : memref<32x1536xbf16, #tpu.memory_space<vmem>>, vector<8x64xbf16>
    %cst_88 = arith.constant dense<0.000000e+00> : vector<2x64xf32>
    %314 = tpu.matmul %312, %313, %cst_88 {dimension_numbers = #tpu.dot_dimension_numbers<[1], [0], [0], [1], [0, 0, 1, 1], [], []>} : vector<2x8xbf16>, vector<8x64xbf16>, vector<2x64xf32> -> vector<2x64xf32>
    %315 = arith.truncf %267 : vector<2x16xf32> to vector<2x16xbf16>
    %c0_89 = arith.constant 0 : index
    %c256_90 = arith.constant 256 : index
    %316 = vector.load %arg2[%c0_89, %c256_90] : memref<32x1536xbf16, #tpu.memory_space<vmem>>, vector<16x64xbf16>
    %cst_91 = arith.constant dense<0.000000e+00> : vector<2x64xf32>
    %317 = tpu.matmul %315, %316, %cst_91 {dimension_numbers = #tpu.dot_dimension_numbers<[1], [0], [0], [1], [0, 0, 1, 1], [], []>} : vector<2x16xbf16>, vector<16x64xbf16>, vector<2x64xf32> -> vector<2x64xf32>
    %318 = arith.addf %314, %317 : vector<2x64xf32>
    %319 = arith.addf %318, %13 : vector<2x64xf32>
    %320 = arith.negf %319 : vector<2x64xf32>
    %321 = math.exp %320 : vector<2x64xf32>
    %cst_92 = arith.constant 1.000000e+00 : f32
    %322 = vector.broadcast %cst_92 : f32 to vector<2x64xf32>
    %323 = arith.addf %322, %321 : vector<2x64xf32>
    %324 = arith.divf %322, %323 : vector<2x64xf32>
    %325 = vector.extract_strided_slice %324 {offsets = [0, 0], sizes = [2, 16], strides = [1, 1]} : vector<2x64xf32> to vector<2x16xf32>
    %326 = vector.extract_strided_slice %324 {offsets = [0, 16], sizes = [2, 16], strides = [1, 1]} : vector<2x64xf32> to vector<2x16xf32>
    %327 = vector.extract_strided_slice %324 {offsets = [0, 32], sizes = [2, 16], strides = [1, 1]} : vector<2x64xf32> to vector<2x16xf32>
    %328 = vector.extract_strided_slice %319 {offsets = [0, 48], sizes = [2, 16], strides = [1, 1]} : vector<2x64xf32> to vector<2x16xf32>
    %329 = math.tanh %328 : vector<2x16xf32>
    %330 = arith.mulf %326, %265 : vector<2x16xf32>
    %331 = arith.mulf %325, %329 : vector<2x16xf32>
    %332 = arith.addf %330, %331 : vector<2x16xf32>
    %333 = math.tanh %332 : vector<2x16xf32>
    %334 = arith.mulf %327, %333 : vector<2x16xf32>
    %335 = arith.truncf %334 : vector<2x16xf32> to vector<2x16xbf16>
    %c0_93 = arith.constant 0 : index
    %c384_94 = arith.constant 384 : index
    %336 = vector.load %arg2[%c0_93, %c384_94] : memref<32x1536xbf16, #tpu.memory_space<vmem>>, vector<16x128xbf16>
    %cst_95 = arith.constant dense<0.000000e+00> : vector<2x128xf32>
    %337 = tpu.matmul %335, %336, %cst_95 {dimension_numbers = #tpu.dot_dimension_numbers<[1], [0], [0], [1], [0, 0, 1, 1], [], []>} : vector<2x16xbf16>, vector<16x128xbf16>, vector<2x128xf32> -> vector<2x128xf32>
    %338 = arith.truncf %290 : vector<2x32xf32> to vector<2x32xbf16>
    %c0_96 = arith.constant 0 : index
    %c512_97 = arith.constant 512 : index
    %339 = vector.load %arg2[%c0_96, %c512_97] : memref<32x1536xbf16, #tpu.memory_space<vmem>>, vector<32x128xbf16>
    %cst_98 = arith.constant dense<0.000000e+00> : vector<2x128xf32>
    %340 = tpu.matmul %338, %339, %cst_98 {dimension_numbers = #tpu.dot_dimension_numbers<[1], [0], [0], [1], [0, 0, 1, 1], [], []>} : vector<2x32xbf16>, vector<32x128xbf16>, vector<2x128xf32> -> vector<2x128xf32>
    %341 = arith.addf %337, %340 : vector<2x128xf32>
    %342 = arith.addf %341, %16 : vector<2x128xf32>
    %343 = arith.negf %342 : vector<2x128xf32>
    %344 = math.exp %343 : vector<2x128xf32>
    %cst_99 = arith.constant 1.000000e+00 : f32
    %345 = vector.broadcast %cst_99 : f32 to vector<2x128xf32>
    %346 = arith.addf %345, %344 : vector<2x128xf32>
    %347 = arith.divf %345, %346 : vector<2x128xf32>
    %348 = vector.extract_strided_slice %347 {offsets = [0, 0], sizes = [2, 32], strides = [1, 1]} : vector<2x128xf32> to vector<2x32xf32>
    %349 = vector.extract_strided_slice %347 {offsets = [0, 32], sizes = [2, 32], strides = [1, 1]} : vector<2x128xf32> to vector<2x32xf32>
    %350 = vector.extract_strided_slice %347 {offsets = [0, 64], sizes = [2, 32], strides = [1, 1]} : vector<2x128xf32> to vector<2x32xf32>
    %351 = vector.extract_strided_slice %342 {offsets = [0, 96], sizes = [2, 32], strides = [1, 1]} : vector<2x128xf32> to vector<2x32xf32>
    %352 = math.tanh %351 : vector<2x32xf32>
    %353 = arith.mulf %349, %288 : vector<2x32xf32>
    %354 = arith.mulf %348, %352 : vector<2x32xf32>
    %355 = arith.addf %353, %354 : vector<2x32xf32>
    %356 = math.tanh %355 : vector<2x32xf32>
    %357 = arith.mulf %350, %356 : vector<2x32xf32>
    %358 = vector.extract_strided_slice %10 {offsets = [0, 5, 0], sizes = [2, 1, 32], strides = [1, 1, 1]} : vector<2x8x32xf32> to vector<2x1x32xf32>
    %359 = vector.shape_cast %358 : vector<2x1x32xf32> to vector<2x32xf32>
    %360 = arith.truncf %311 : vector<2x8xf32> to vector<2x8xbf16>
    %c0_100 = arith.constant 0 : index
    %c0_101 = arith.constant 0 : index
    %361 = vector.load %arg2[%c0_100, %c0_101] : memref<32x1536xbf16, #tpu.memory_space<vmem>>, vector<8x32xbf16>
    %cst_102 = arith.constant dense<0.000000e+00> : vector<2x32xf32>
    %362 = tpu.matmul %360, %361, %cst_102 {dimension_numbers = #tpu.dot_dimension_numbers<[1], [0], [0], [1], [0, 0, 1, 1], [], []>} : vector<2x8xbf16>, vector<8x32xbf16>, vector<2x32xf32> -> vector<2x32xf32>
    %363 = arith.addf %359, %362 : vector<2x32xf32>
    %364 = arith.negf %363 : vector<2x32xf32>
    %365 = math.exp %364 : vector<2x32xf32>
    %cst_103 = arith.constant 1.000000e+00 : f32
    %366 = vector.broadcast %cst_103 : f32 to vector<2x32xf32>
    %367 = arith.addf %366, %365 : vector<2x32xf32>
    %368 = arith.divf %366, %367 : vector<2x32xf32>
    %369 = vector.extract_strided_slice %368 {offsets = [0, 0], sizes = [2, 8], strides = [1, 1]} : vector<2x32xf32> to vector<2x8xf32>
    %370 = vector.extract_strided_slice %368 {offsets = [0, 8], sizes = [2, 8], strides = [1, 1]} : vector<2x32xf32> to vector<2x8xf32>
    %371 = vector.extract_strided_slice %368 {offsets = [0, 16], sizes = [2, 8], strides = [1, 1]} : vector<2x32xf32> to vector<2x8xf32>
    %372 = vector.extract_strided_slice %363 {offsets = [0, 24], sizes = [2, 8], strides = [1, 1]} : vector<2x32xf32> to vector<2x8xf32>
    %373 = math.tanh %372 : vector<2x8xf32>
    %374 = arith.mulf %370, %309 : vector<2x8xf32>
    %375 = arith.mulf %369, %373 : vector<2x8xf32>
    %376 = arith.addf %374, %375 : vector<2x8xf32>
    %377 = math.tanh %376 : vector<2x8xf32>
    %378 = arith.mulf %371, %377 : vector<2x8xf32>
    %379 = arith.truncf %378 : vector<2x8xf32> to vector<2x8xbf16>
    %c0_104 = arith.constant 0 : index
    %c128_105 = arith.constant 128 : index
    %380 = vector.load %arg2[%c0_104, %c128_105] : memref<32x1536xbf16, #tpu.memory_space<vmem>>, vector<8x64xbf16>
    %cst_106 = arith.constant dense<0.000000e+00> : vector<2x64xf32>
    %381 = tpu.matmul %379, %380, %cst_106 {dimension_numbers = #tpu.dot_dimension_numbers<[1], [0], [0], [1], [0, 0, 1, 1], [], []>} : vector<2x8xbf16>, vector<8x64xbf16>, vector<2x64xf32> -> vector<2x64xf32>
    %382 = arith.truncf %334 : vector<2x16xf32> to vector<2x16xbf16>
    %c0_107 = arith.constant 0 : index
    %c256_108 = arith.constant 256 : index
    %383 = vector.load %arg2[%c0_107, %c256_108] : memref<32x1536xbf16, #tpu.memory_space<vmem>>, vector<16x64xbf16>
    %cst_109 = arith.constant dense<0.000000e+00> : vector<2x64xf32>
    %384 = tpu.matmul %382, %383, %cst_109 {dimension_numbers = #tpu.dot_dimension_numbers<[1], [0], [0], [1], [0, 0, 1, 1], [], []>} : vector<2x16xbf16>, vector<16x64xbf16>, vector<2x64xf32> -> vector<2x64xf32>
    %385 = arith.addf %381, %384 : vector<2x64xf32>
    %386 = arith.addf %385, %13 : vector<2x64xf32>
    %387 = arith.negf %386 : vector<2x64xf32>
    %388 = math.exp %387 : vector<2x64xf32>
    %cst_110 = arith.constant 1.000000e+00 : f32
    %389 = vector.broadcast %cst_110 : f32 to vector<2x64xf32>
    %390 = arith.addf %389, %388 : vector<2x64xf32>
    %391 = arith.divf %389, %390 : vector<2x64xf32>
    %392 = vector.extract_strided_slice %391 {offsets = [0, 0], sizes = [2, 16], strides = [1, 1]} : vector<2x64xf32> to vector<2x16xf32>
    %393 = vector.extract_strided_slice %391 {offsets = [0, 16], sizes = [2, 16], strides = [1, 1]} : vector<2x64xf32> to vector<2x16xf32>
    %394 = vector.extract_strided_slice %391 {offsets = [0, 32], sizes = [2, 16], strides = [1, 1]} : vector<2x64xf32> to vector<2x16xf32>
    %395 = vector.extract_strided_slice %386 {offsets = [0, 48], sizes = [2, 16], strides = [1, 1]} : vector<2x64xf32> to vector<2x16xf32>
    %396 = math.tanh %395 : vector<2x16xf32>
    %397 = arith.mulf %393, %332 : vector<2x16xf32>
    %398 = arith.mulf %392, %396 : vector<2x16xf32>
    %399 = arith.addf %397, %398 : vector<2x16xf32>
    %400 = math.tanh %399 : vector<2x16xf32>
    %401 = arith.mulf %394, %400 : vector<2x16xf32>
    %402 = arith.truncf %401 : vector<2x16xf32> to vector<2x16xbf16>
    %c0_111 = arith.constant 0 : index
    %c384_112 = arith.constant 384 : index
    %403 = vector.load %arg2[%c0_111, %c384_112] : memref<32x1536xbf16, #tpu.memory_space<vmem>>, vector<16x128xbf16>
    %cst_113 = arith.constant dense<0.000000e+00> : vector<2x128xf32>
    %404 = tpu.matmul %402, %403, %cst_113 {dimension_numbers = #tpu.dot_dimension_numbers<[1], [0], [0], [1], [0, 0, 1, 1], [], []>} : vector<2x16xbf16>, vector<16x128xbf16>, vector<2x128xf32> -> vector<2x128xf32>
    %405 = arith.truncf %357 : vector<2x32xf32> to vector<2x32xbf16>
    %c0_114 = arith.constant 0 : index
    %c512_115 = arith.constant 512 : index
    %406 = vector.load %arg2[%c0_114, %c512_115] : memref<32x1536xbf16, #tpu.memory_space<vmem>>, vector<32x128xbf16>
    %cst_116 = arith.constant dense<0.000000e+00> : vector<2x128xf32>
    %407 = tpu.matmul %405, %406, %cst_116 {dimension_numbers = #tpu.dot_dimension_numbers<[1], [0], [0], [1], [0, 0, 1, 1], [], []>} : vector<2x32xbf16>, vector<32x128xbf16>, vector<2x128xf32> -> vector<2x128xf32>
    %408 = arith.addf %404, %407 : vector<2x128xf32>
    %409 = arith.addf %408, %16 : vector<2x128xf32>
    %410 = arith.negf %409 : vector<2x128xf32>
    %411 = math.exp %410 : vector<2x128xf32>
    %cst_117 = arith.constant 1.000000e+00 : f32
    %412 = vector.broadcast %cst_117 : f32 to vector<2x128xf32>
    %413 = arith.addf %412, %411 : vector<2x128xf32>
    %414 = arith.divf %412, %413 : vector<2x128xf32>
    %415 = vector.extract_strided_slice %414 {offsets = [0, 0], sizes = [2, 32], strides = [1, 1]} : vector<2x128xf32> to vector<2x32xf32>
    %416 = vector.extract_strided_slice %414 {offsets = [0, 32], sizes = [2, 32], strides = [1, 1]} : vector<2x128xf32> to vector<2x32xf32>
    %417 = vector.extract_strided_slice %414 {offsets = [0, 64], sizes = [2, 32], strides = [1, 1]} : vector<2x128xf32> to vector<2x32xf32>
    %418 = vector.extract_strided_slice %409 {offsets = [0, 96], sizes = [2, 32], strides = [1, 1]} : vector<2x128xf32> to vector<2x32xf32>
    %419 = math.tanh %418 : vector<2x32xf32>
    %420 = arith.mulf %416, %355 : vector<2x32xf32>
    %421 = arith.mulf %415, %419 : vector<2x32xf32>
    %422 = arith.addf %420, %421 : vector<2x32xf32>
    %423 = math.tanh %422 : vector<2x32xf32>
    %424 = arith.mulf %417, %423 : vector<2x32xf32>
    %425 = vector.extract_strided_slice %10 {offsets = [0, 6, 0], sizes = [2, 1, 32], strides = [1, 1, 1]} : vector<2x8x32xf32> to vector<2x1x32xf32>
    %426 = vector.shape_cast %425 : vector<2x1x32xf32> to vector<2x32xf32>
    %427 = arith.truncf %378 : vector<2x8xf32> to vector<2x8xbf16>
    %c0_118 = arith.constant 0 : index
    %c0_119 = arith.constant 0 : index
    %428 = vector.load %arg2[%c0_118, %c0_119] : memref<32x1536xbf16, #tpu.memory_space<vmem>>, vector<8x32xbf16>
    %cst_120 = arith.constant dense<0.000000e+00> : vector<2x32xf32>
    %429 = tpu.matmul %427, %428, %cst_120 {dimension_numbers = #tpu.dot_dimension_numbers<[1], [0], [0], [1], [0, 0, 1, 1], [], []>} : vector<2x8xbf16>, vector<8x32xbf16>, vector<2x32xf32> -> vector<2x32xf32>
    %430 = arith.addf %426, %429 : vector<2x32xf32>
    %431 = arith.negf %430 : vector<2x32xf32>
    %432 = math.exp %431 : vector<2x32xf32>
    %cst_121 = arith.constant 1.000000e+00 : f32
    %433 = vector.broadcast %cst_121 : f32 to vector<2x32xf32>
    %434 = arith.addf %433, %432 : vector<2x32xf32>
    %435 = arith.divf %433, %434 : vector<2x32xf32>
    %436 = vector.extract_strided_slice %435 {offsets = [0, 0], sizes = [2, 8], strides = [1, 1]} : vector<2x32xf32> to vector<2x8xf32>
    %437 = vector.extract_strided_slice %435 {offsets = [0, 8], sizes = [2, 8], strides = [1, 1]} : vector<2x32xf32> to vector<2x8xf32>
    %438 = vector.extract_strided_slice %435 {offsets = [0, 16], sizes = [2, 8], strides = [1, 1]} : vector<2x32xf32> to vector<2x8xf32>
    %439 = vector.extract_strided_slice %430 {offsets = [0, 24], sizes = [2, 8], strides = [1, 1]} : vector<2x32xf32> to vector<2x8xf32>
    %440 = math.tanh %439 : vector<2x8xf32>
    %441 = arith.mulf %437, %376 : vector<2x8xf32>
    %442 = arith.mulf %436, %440 : vector<2x8xf32>
    %443 = arith.addf %441, %442 : vector<2x8xf32>
    %444 = math.tanh %443 : vector<2x8xf32>
    %445 = arith.mulf %438, %444 : vector<2x8xf32>
    %446 = arith.truncf %445 : vector<2x8xf32> to vector<2x8xbf16>
    %c0_122 = arith.constant 0 : index
    %c128_123 = arith.constant 128 : index
    %447 = vector.load %arg2[%c0_122, %c128_123] : memref<32x1536xbf16, #tpu.memory_space<vmem>>, vector<8x64xbf16>
    %cst_124 = arith.constant dense<0.000000e+00> : vector<2x64xf32>
    %448 = tpu.matmul %446, %447, %cst_124 {dimension_numbers = #tpu.dot_dimension_numbers<[1], [0], [0], [1], [0, 0, 1, 1], [], []>} : vector<2x8xbf16>, vector<8x64xbf16>, vector<2x64xf32> -> vector<2x64xf32>
    %449 = arith.truncf %401 : vector<2x16xf32> to vector<2x16xbf16>
    %c0_125 = arith.constant 0 : index
    %c256_126 = arith.constant 256 : index
    %450 = vector.load %arg2[%c0_125, %c256_126] : memref<32x1536xbf16, #tpu.memory_space<vmem>>, vector<16x64xbf16>
    %cst_127 = arith.constant dense<0.000000e+00> : vector<2x64xf32>
    %451 = tpu.matmul %449, %450, %cst_127 {dimension_numbers = #tpu.dot_dimension_numbers<[1], [0], [0], [1], [0, 0, 1, 1], [], []>} : vector<2x16xbf16>, vector<16x64xbf16>, vector<2x64xf32> -> vector<2x64xf32>
    %452 = arith.addf %448, %451 : vector<2x64xf32>
    %453 = arith.addf %452, %13 : vector<2x64xf32>
    %454 = arith.negf %453 : vector<2x64xf32>
    %455 = math.exp %454 : vector<2x64xf32>
    %cst_128 = arith.constant 1.000000e+00 : f32
    %456 = vector.broadcast %cst_128 : f32 to vector<2x64xf32>
    %457 = arith.addf %456, %455 : vector<2x64xf32>
    %458 = arith.divf %456, %457 : vector<2x64xf32>
    %459 = vector.extract_strided_slice %458 {offsets = [0, 0], sizes = [2, 16], strides = [1, 1]} : vector<2x64xf32> to vector<2x16xf32>
    %460 = vector.extract_strided_slice %458 {offsets = [0, 16], sizes = [2, 16], strides = [1, 1]} : vector<2x64xf32> to vector<2x16xf32>
    %461 = vector.extract_strided_slice %458 {offsets = [0, 32], sizes = [2, 16], strides = [1, 1]} : vector<2x64xf32> to vector<2x16xf32>
    %462 = vector.extract_strided_slice %453 {offsets = [0, 48], sizes = [2, 16], strides = [1, 1]} : vector<2x64xf32> to vector<2x16xf32>
    %463 = math.tanh %462 : vector<2x16xf32>
    %464 = arith.mulf %460, %399 : vector<2x16xf32>
    %465 = arith.mulf %459, %463 : vector<2x16xf32>
    %466 = arith.addf %464, %465 : vector<2x16xf32>
    %467 = math.tanh %466 : vector<2x16xf32>
    %468 = arith.mulf %461, %467 : vector<2x16xf32>
    %469 = arith.truncf %468 : vector<2x16xf32> to vector<2x16xbf16>
    %c0_129 = arith.constant 0 : index
    %c384_130 = arith.constant 384 : index
    %470 = vector.load %arg2[%c0_129, %c384_130] : memref<32x1536xbf16, #tpu.memory_space<vmem>>, vector<16x128xbf16>
    %cst_131 = arith.constant dense<0.000000e+00> : vector<2x128xf32>
    %471 = tpu.matmul %469, %470, %cst_131 {dimension_numbers = #tpu.dot_dimension_numbers<[1], [0], [0], [1], [0, 0, 1, 1], [], []>} : vector<2x16xbf16>, vector<16x128xbf16>, vector<2x128xf32> -> vector<2x128xf32>
    %472 = arith.truncf %424 : vector<2x32xf32> to vector<2x32xbf16>
    %c0_132 = arith.constant 0 : index
    %c512_133 = arith.constant 512 : index
    %473 = vector.load %arg2[%c0_132, %c512_133] : memref<32x1536xbf16, #tpu.memory_space<vmem>>, vector<32x128xbf16>
    %cst_134 = arith.constant dense<0.000000e+00> : vector<2x128xf32>
    %474 = tpu.matmul %472, %473, %cst_134 {dimension_numbers = #tpu.dot_dimension_numbers<[1], [0], [0], [1], [0, 0, 1, 1], [], []>} : vector<2x32xbf16>, vector<32x128xbf16>, vector<2x128xf32> -> vector<2x128xf32>
    %475 = arith.addf %471, %474 : vector<2x128xf32>
    %476 = arith.addf %475, %16 : vector<2x128xf32>
    %477 = arith.negf %476 : vector<2x128xf32>
    %478 = math.exp %477 : vector<2x128xf32>
    %cst_135 = arith.constant 1.000000e+00 : f32
    %479 = vector.broadcast %cst_135 : f32 to vector<2x128xf32>
    %480 = arith.addf %479, %478 : vector<2x128xf32>
    %481 = arith.divf %479, %480 : vector<2x128xf32>
    %482 = vector.extract_strided_slice %481 {offsets = [0, 0], sizes = [2, 32], strides = [1, 1]} : vector<2x128xf32> to vector<2x32xf32>
    %483 = vector.extract_strided_slice %481 {offsets = [0, 32], sizes = [2, 32], strides = [1, 1]} : vector<2x128xf32> to vector<2x32xf32>
    %484 = vector.extract_strided_slice %481 {offsets = [0, 64], sizes = [2, 32], strides = [1, 1]} : vector<2x128xf32> to vector<2x32xf32>
    %485 = vector.extract_strided_slice %476 {offsets = [0, 96], sizes = [2, 32], strides = [1, 1]} : vector<2x128xf32> to vector<2x32xf32>
    %486 = math.tanh %485 : vector<2x32xf32>
    %487 = arith.mulf %483, %422 : vector<2x32xf32>
    %488 = arith.mulf %482, %486 : vector<2x32xf32>
    %489 = arith.addf %487, %488 : vector<2x32xf32>
    %490 = math.tanh %489 : vector<2x32xf32>
    %491 = arith.mulf %484, %490 : vector<2x32xf32>
    %492 = vector.extract_strided_slice %10 {offsets = [0, 7, 0], sizes = [2, 1, 32], strides = [1, 1, 1]} : vector<2x8x32xf32> to vector<2x1x32xf32>
    %493 = vector.shape_cast %492 : vector<2x1x32xf32> to vector<2x32xf32>
    %494 = arith.truncf %445 : vector<2x8xf32> to vector<2x8xbf16>
    %c0_136 = arith.constant 0 : index
    %c0_137 = arith.constant 0 : index
    %495 = vector.load %arg2[%c0_136, %c0_137] : memref<32x1536xbf16, #tpu.memory_space<vmem>>, vector<8x32xbf16>
    %cst_138 = arith.constant dense<0.000000e+00> : vector<2x32xf32>
    %496 = tpu.matmul %494, %495, %cst_138 {dimension_numbers = #tpu.dot_dimension_numbers<[1], [0], [0], [1], [0, 0, 1, 1], [], []>} : vector<2x8xbf16>, vector<8x32xbf16>, vector<2x32xf32> -> vector<2x32xf32>
    %497 = arith.addf %493, %496 : vector<2x32xf32>
    %498 = arith.negf %497 : vector<2x32xf32>
    %499 = math.exp %498 : vector<2x32xf32>
    %cst_139 = arith.constant 1.000000e+00 : f32
    %500 = vector.broadcast %cst_139 : f32 to vector<2x32xf32>
    %501 = arith.addf %500, %499 : vector<2x32xf32>
    %502 = arith.divf %500, %501 : vector<2x32xf32>
    %503 = vector.extract_strided_slice %502 {offsets = [0, 0], sizes = [2, 8], strides = [1, 1]} : vector<2x32xf32> to vector<2x8xf32>
    %504 = vector.extract_strided_slice %502 {offsets = [0, 8], sizes = [2, 8], strides = [1, 1]} : vector<2x32xf32> to vector<2x8xf32>
    %505 = vector.extract_strided_slice %502 {offsets = [0, 16], sizes = [2, 8], strides = [1, 1]} : vector<2x32xf32> to vector<2x8xf32>
    %506 = vector.extract_strided_slice %497 {offsets = [0, 24], sizes = [2, 8], strides = [1, 1]} : vector<2x32xf32> to vector<2x8xf32>
    %507 = math.tanh %506 : vector<2x8xf32>
    %508 = arith.mulf %504, %443 : vector<2x8xf32>
    %509 = arith.mulf %503, %507 : vector<2x8xf32>
    %510 = arith.addf %508, %509 : vector<2x8xf32>
    %511 = math.tanh %510 : vector<2x8xf32>
    %512 = arith.mulf %505, %511 : vector<2x8xf32>
    %513 = arith.truncf %512 : vector<2x8xf32> to vector<2x8xbf16>
    %c0_140 = arith.constant 0 : index
    %c128_141 = arith.constant 128 : index
    %514 = vector.load %arg2[%c0_140, %c128_141] : memref<32x1536xbf16, #tpu.memory_space<vmem>>, vector<8x64xbf16>
    %cst_142 = arith.constant dense<0.000000e+00> : vector<2x64xf32>
    %515 = tpu.matmul %513, %514, %cst_142 {dimension_numbers = #tpu.dot_dimension_numbers<[1], [0], [0], [1], [0, 0, 1, 1], [], []>} : vector<2x8xbf16>, vector<8x64xbf16>, vector<2x64xf32> -> vector<2x64xf32>
    %516 = arith.truncf %468 : vector<2x16xf32> to vector<2x16xbf16>
    %c0_143 = arith.constant 0 : index
    %c256_144 = arith.constant 256 : index
    %517 = vector.load %arg2[%c0_143, %c256_144] : memref<32x1536xbf16, #tpu.memory_space<vmem>>, vector<16x64xbf16>
    %cst_145 = arith.constant dense<0.000000e+00> : vector<2x64xf32>
    %518 = tpu.matmul %516, %517, %cst_145 {dimension_numbers = #tpu.dot_dimension_numbers<[1], [0], [0], [1], [0, 0, 1, 1], [], []>} : vector<2x16xbf16>, vector<16x64xbf16>, vector<2x64xf32> -> vector<2x64xf32>
    %519 = arith.addf %515, %518 : vector<2x64xf32>
    %520 = arith.addf %519, %13 : vector<2x64xf32>
    %521 = arith.negf %520 : vector<2x64xf32>
    %522 = math.exp %521 : vector<2x64xf32>
    %cst_146 = arith.constant 1.000000e+00 : f32
    %523 = vector.broadcast %cst_146 : f32 to vector<2x64xf32>
    %524 = arith.addf %523, %522 : vector<2x64xf32>
    %525 = arith.divf %523, %524 : vector<2x64xf32>
    %526 = vector.extract_strided_slice %525 {offsets = [0, 0], sizes = [2, 16], strides = [1, 1]} : vector<2x64xf32> to vector<2x16xf32>
    %527 = vector.extract_strided_slice %525 {offsets = [0, 16], sizes = [2, 16], strides = [1, 1]} : vector<2x64xf32> to vector<2x16xf32>
    %528 = vector.extract_strided_slice %525 {offsets = [0, 32], sizes = [2, 16], strides = [1, 1]} : vector<2x64xf32> to vector<2x16xf32>
    %529 = vector.extract_strided_slice %520 {offsets = [0, 48], sizes = [2, 16], strides = [1, 1]} : vector<2x64xf32> to vector<2x16xf32>
    %530 = math.tanh %529 : vector<2x16xf32>
    %531 = arith.mulf %527, %466 : vector<2x16xf32>
    %532 = arith.mulf %526, %530 : vector<2x16xf32>
    %533 = arith.addf %531, %532 : vector<2x16xf32>
    %534 = math.tanh %533 : vector<2x16xf32>
    %535 = arith.mulf %528, %534 : vector<2x16xf32>
    %536 = arith.truncf %535 : vector<2x16xf32> to vector<2x16xbf16>
    %c0_147 = arith.constant 0 : index
    %c384_148 = arith.constant 384 : index
    %537 = vector.load %arg2[%c0_147, %c384_148] : memref<32x1536xbf16, #tpu.memory_space<vmem>>, vector<16x128xbf16>
    %cst_149 = arith.constant dense<0.000000e+00> : vector<2x128xf32>
    %538 = tpu.matmul %536, %537, %cst_149 {dimension_numbers = #tpu.dot_dimension_numbers<[1], [0], [0], [1], [0, 0, 1, 1], [], []>} : vector<2x16xbf16>, vector<16x128xbf16>, vector<2x128xf32> -> vector<2x128xf32>
    %539 = arith.truncf %491 : vector<2x32xf32> to vector<2x32xbf16>
    %c0_150 = arith.constant 0 : index
    %c512_151 = arith.constant 512 : index
    %540 = vector.load %arg2[%c0_150, %c512_151] : memref<32x1536xbf16, #tpu.memory_space<vmem>>, vector<32x128xbf16>
    %cst_152 = arith.constant dense<0.000000e+00> : vector<2x128xf32>
    %541 = tpu.matmul %539, %540, %cst_152 {dimension_numbers = #tpu.dot_dimension_numbers<[1], [0], [0], [1], [0, 0, 1, 1], [], []>} : vector<2x32xbf16>, vector<32x128xbf16>, vector<2x128xf32> -> vector<2x128xf32>
    %542 = arith.addf %538, %541 : vector<2x128xf32>
    %543 = arith.addf %542, %16 : vector<2x128xf32>
    %544 = arith.negf %543 : vector<2x128xf32>
    %545 = math.exp %544 : vector<2x128xf32>
    %cst_153 = arith.constant 1.000000e+00 : f32
    %546 = vector.broadcast %cst_153 : f32 to vector<2x128xf32>
    %547 = arith.addf %546, %545 : vector<2x128xf32>
    %548 = arith.divf %546, %547 : vector<2x128xf32>
    %549 = vector.extract_strided_slice %548 {offsets = [0, 0], sizes = [2, 32], strides = [1, 1]} : vector<2x128xf32> to vector<2x32xf32>
    %550 = vector.extract_strided_slice %548 {offsets = [0, 32], sizes = [2, 32], strides = [1, 1]} : vector<2x128xf32> to vector<2x32xf32>
    %551 = vector.extract_strided_slice %548 {offsets = [0, 64], sizes = [2, 32], strides = [1, 1]} : vector<2x128xf32> to vector<2x32xf32>
    %552 = vector.extract_strided_slice %543 {offsets = [0, 96], sizes = [2, 32], strides = [1, 1]} : vector<2x128xf32> to vector<2x32xf32>
    %553 = math.tanh %552 : vector<2x32xf32>
    %554 = arith.mulf %550, %489 : vector<2x32xf32>
    %555 = arith.mulf %549, %553 : vector<2x32xf32>
    %556 = arith.addf %554, %555 : vector<2x32xf32>
    %557 = math.tanh %556 : vector<2x32xf32>
    %558 = arith.mulf %551, %557 : vector<2x32xf32>
    %559 = arith.truncf %558 : vector<2x32xf32> to vector<2x32xbf16>
    %c0_154 = arith.constant 0 : index
    %c640 = arith.constant 640 : index
    %560 = vector.load %arg2[%c0_154, %c640] : memref<32x1536xbf16, #tpu.memory_space<vmem>>, vector<32x64xbf16>
    %cst_155 = arith.constant dense<0.000000e+00> : vector<2x64xf32>
    %561 = tpu.matmul %559, %560, %cst_155 {dimension_numbers = #tpu.dot_dimension_numbers<[1], [0], [0], [1], [0, 0, 1, 1], [], []>} : vector<2x32xbf16>, vector<32x64xbf16>, vector<2x64xf32> -> vector<2x64xf32>
    %c0_156 = arith.constant 0 : index
    %c512_157 = arith.constant 512 : index
    %562 = vector.load %arg3[%c0_156, %c512_157] : memref<1x1280xf32, #tpu.memory_space<vmem>>, vector<1x64xf32>
    %563 = vector.broadcast %562 : vector<1x64xf32> to vector<2x64xf32>
    %564 = arith.addf %561, %563 : vector<2x64xf32>
    %565 = vector.extract_strided_slice %564 {offsets = [0, 0], sizes = [2, 32], strides = [1, 1]} : vector<2x64xf32> to vector<2x32xf32>
    %566 = vector.extract_strided_slice %564 {offsets = [0, 32], sizes = [2, 32], strides = [1, 1]} : vector<2x64xf32> to vector<2x32xf32>
    %c0_158 = arith.constant 0 : index
    %c0_159 = arith.constant 0 : index
    %567 = vector.load %arg7[%c0_158, %c0_159] : memref<2x32xf32, #tpu.memory_space<vmem>>, vector<2x32xf32>
    tpu.vector_store %arg7[%c0_158, %c0_159], %565 {strides = array<i32>} : memref<2x32xf32, #tpu.memory_space<vmem>>, vector<2x32xf32>,
    %c0_160 = arith.constant 0 : index
    %c0_161 = arith.constant 0 : index
    %568 = vector.load %arg8[%c0_160, %c0_161] : memref<2x32xf32, #tpu.memory_space<vmem>>, vector<2x32xf32>
    tpu.vector_store %arg8[%c0_160, %c0_161], %566 {strides = array<i32>} : memref<2x32xf32, #tpu.memory_space<vmem>>, vector<2x32xf32>,
    %c0_162 = arith.constant 0 : index
    %c0_163 = arith.constant 0 : index
    %569 = vector.load %arg1[%c0_162, %c0_163] : memref<2x32xf32, #tpu.memory_space<vmem>>, vector<2x32xf32>
    %cst_164 = arith.constant 5.000000e-01 : f32
    %570 = vector.broadcast %cst_164 : f32 to vector<2x32xf32>
    %571 = arith.mulf %570, %566 : vector<2x32xf32>
    %572 = math.exp %571 : vector<2x32xf32>
    %573 = arith.mulf %569, %572 : vector<2x32xf32>
    %574 = arith.addf %565, %573 : vector<2x32xf32>
    %575 = arith.truncf %574 : vector<2x32xf32> to vector<2x32xbf16>
    %c0_165 = arith.constant 0 : index
    %c768 = arith.constant 768 : index
    %576 = vector.load %arg2[%c0_165, %c768] : memref<32x1536xbf16, #tpu.memory_space<vmem>>, vector<32x32xbf16>
    %cst_166 = arith.constant dense<0.000000e+00> : vector<2x32xf32>
    %577 = tpu.matmul %575, %576, %cst_166 {dimension_numbers = #tpu.dot_dimension_numbers<[1], [0], [0], [1], [0, 0, 1, 1], [], []>} : vector<2x32xbf16>, vector<32x32xbf16>, vector<2x32xf32> -> vector<2x32xf32>
    %c0_167 = arith.constant 0 : index
    %c640_168 = arith.constant 640 : index
    %578 = vector.load %arg3[%c0_167, %c640_168] : memref<1x1280xf32, #tpu.memory_space<vmem>>, vector<1x32xf32>
    %579 = vector.broadcast %578 : vector<1x32xf32> to vector<2x32xf32>
    %580 = arith.addf %577, %579 : vector<2x32xf32>
    %581 = arith.truncf %580 : vector<2x32xf32> to vector<2x32xbf16>
    %c0_169 = arith.constant 0 : index
    %c896 = arith.constant 896 : index
    %582 = vector.load %arg2[%c0_169, %c896] : memref<32x1536xbf16, #tpu.memory_space<vmem>>, vector<32x64xbf16>
    %cst_170 = arith.constant dense<0.000000e+00> : vector<2x64xf32>
    %583 = tpu.matmul %581, %582, %cst_170 {dimension_numbers = #tpu.dot_dimension_numbers<[1], [0], [0], [1], [0, 0, 1, 1], [], []>} : vector<2x32xbf16>, vector<32x64xbf16>, vector<2x64xf32> -> vector<2x64xf32>
    %c0_171 = arith.constant 0 : index
    %c768_172 = arith.constant 768 : index
    %584 = vector.load %arg3[%c0_171, %c768_172] : memref<1x1280xf32, #tpu.memory_space<vmem>>, vector<1x64xf32>
    %585 = vector.broadcast %584 : vector<1x64xf32> to vector<2x64xf32>
    %586 = arith.addf %583, %585 : vector<2x64xf32>
    %c0_173 = arith.constant 0 : index
    %c896_174 = arith.constant 896 : index
    %587 = vector.load %arg3[%c0_173, %c896_174] : memref<1x1280xf32, #tpu.memory_space<vmem>>, vector<1x32xf32>
    %588 = vector.shape_cast %587 : vector<1x32xf32> to vector<1x32xf32>
    %589 = vector.broadcast %588 : vector<1x32xf32> to vector<2x32xf32>
    %c0_175 = arith.constant 0 : index
    %c1152 = arith.constant 1152 : index
    %590 = vector.load %arg3[%c0_175, %c1152] : memref<1x1280xf32, #tpu.memory_space<vmem>>, vector<1x4xf32>
    %591 = vector.shape_cast %590 : vector<1x4xf32> to vector<1x4xf32>
    %592 = vector.broadcast %591 : vector<1x4xf32> to vector<2x4xf32>
    %c0_176 = arith.constant 0 : index
    %c1024 = arith.constant 1024 : index
    %593 = vector.load %arg3[%c0_176, %c1024] : memref<1x1280xf32, #tpu.memory_space<vmem>>, vector<1x4xf32>
    %cst_177 = arith.constant 0.000000e+00 : f32
    %594 = vector.broadcast %cst_177 : f32 to vector<2x16xf32>
    %cst_178 = arith.constant 0.000000e+00 : f32
    %595 = vector.broadcast %cst_178 : f32 to vector<2x16xf32>
    %cst_179 = arith.constant 0.000000e+00 : f32
    %596 = vector.broadcast %cst_179 : f32 to vector<2x8xf32>
    %cst_180 = arith.constant 0.000000e+00 : f32
    %597 = vector.broadcast %cst_180 : f32 to vector<2x8xf32>
    %cst_181 = arith.constant 0.000000e+00 : f32
    %598 = vector.broadcast %cst_181 : f32 to vector<2x1xf32>
    %cst_182 = arith.constant 0.000000e+00 : f32
    %599 = vector.broadcast %cst_182 : f32 to vector<2x1xf32>
    %600 = arith.truncf %594 : vector<2x16xf32> to vector<2x16xbf16>
    %c0_183 = arith.constant 0 : index
    %c1024_184 = arith.constant 1024 : index
    %601 = vector.load %arg2[%c0_183, %c1024_184] : memref<32x1536xbf16, #tpu.memory_space<vmem>>, vector<16x64xbf16>
    %cst_185 = arith.constant dense<0.000000e+00> : vector<2x64xf32>
    %602 = tpu.matmul %600, %601, %cst_185 {dimension_numbers = #tpu.dot_dimension_numbers<[1], [0], [0], [1], [0, 0, 1, 1], [], []>} : vector<2x16xbf16>, vector<16x64xbf16>, vector<2x64xf32> -> vector<2x64xf32>
    %603 = arith.addf %586, %602 : vector<2x64xf32>
    %604 = arith.negf %603 : vector<2x64xf32>
    %605 = math.exp %604 : vector<2x64xf32>
    %cst_186 = arith.constant 1.000000e+00 : f32
    %606 = vector.broadcast %cst_186 : f32 to vector<2x64xf32>
    %607 = arith.addf %606, %605 : vector<2x64xf32>
    %608 = arith.divf %606, %607 : vector<2x64xf32>
    %609 = vector.extract_strided_slice %608 {offsets = [0, 0], sizes = [2, 16], strides = [1, 1]} : vector<2x64xf32> to vector<2x16xf32>
    %610 = vector.extract_strided_slice %608 {offsets = [0, 16], sizes = [2, 16], strides = [1, 1]} : vector<2x64xf32> to vector<2x16xf32>
    %611 = vector.extract_strided_slice %608 {offsets = [0, 32], sizes = [2, 16], strides = [1, 1]} : vector<2x64xf32> to vector<2x16xf32>
    %612 = vector.extract_strided_slice %603 {offsets = [0, 48], sizes = [2, 16], strides = [1, 1]} : vector<2x64xf32> to vector<2x16xf32>
    %613 = math.tanh %612 : vector<2x16xf32>
    %614 = arith.mulf %610, %595 : vector<2x16xf32>
    %615 = arith.mulf %609, %613 : vector<2x16xf32>
    %616 = arith.addf %614, %615 : vector<2x16xf32>
    %617 = math.tanh %616 : vector<2x16xf32>
    %618 = arith.mulf %611, %617 : vector<2x16xf32>
    %619 = arith.truncf %618 : vector<2x16xf32> to vector<2x16xbf16>
    %c0_187 = arith.constant 0 : index
    %c1152_188 = arith.constant 1152 : index
    %620 = vector.load %arg2[%c0_187, %c1152_188] : memref<32x1536xbf16, #tpu.memory_space<vmem>>, vector<16x32xbf16>
    %cst_189 = arith.constant dense<0.000000e+00> : vector<2x32xf32>
    %621 = tpu.matmul %619, %620, %cst_189 {dimension_numbers = #tpu.dot_dimension_numbers<[1], [0], [0], [1], [0, 0, 1, 1], [], []>} : vector<2x16xbf16>, vector<16x32xbf16>, vector<2x32xf32> -> vector<2x32xf32>
    %622 = arith.truncf %596 : vector<2x8xf32> to vector<2x8xbf16>
    %c0_190 = arith.constant 0 : index
    %c1280 = arith.constant 1280 : index
    %623 = vector.load %arg2[%c0_190, %c1280] : memref<32x1536xbf16, #tpu.memory_space<vmem>>, vector<8x32xbf16>
    %cst_191 = arith.constant dense<0.000000e+00> : vector<2x32xf32>
    %624 = tpu.matmul %622, %623, %cst_191 {dimension_numbers = #tpu.dot_dimension_numbers<[1], [0], [0], [1], [0, 0, 1, 1], [], []>} : vector<2x8xbf16>, vector<8x32xbf16>, vector<2x32xf32> -> vector<2x32xf32>
    %625 = arith.addf %621, %624 : vector<2x32xf32>
    %626 = arith.addf %625, %589 : vector<2x32xf32>
    %627 = arith.negf %626 : vector<2x32xf32>
    %628 = math.exp %627 : vector<2x32xf32>
    %cst_192 = arith.constant 1.000000e+00 : f32
    %629 = vector.broadcast %cst_192 : f32 to vector<2x32xf32>
    %630 = arith.addf %629, %628 : vector<2x32xf32>
    %631 = arith.divf %629, %630 : vector<2x32xf32>
    %632 = vector.extract_strided_slice %631 {offsets = [0, 0], sizes = [2, 8], strides = [1, 1]} : vector<2x32xf32> to vector<2x8xf32>
    %633 = vector.extract_strided_slice %631 {offsets = [0, 8], sizes = [2, 8], strides = [1, 1]} : vector<2x32xf32> to vector<2x8xf32>
    %634 = vector.extract_strided_slice %631 {offsets = [0, 16], sizes = [2, 8], strides = [1, 1]} : vector<2x32xf32> to vector<2x8xf32>
    %635 = vector.extract_strided_slice %626 {offsets = [0, 24], sizes = [2, 8], strides = [1, 1]} : vector<2x32xf32> to vector<2x8xf32>
    %636 = math.tanh %635 : vector<2x8xf32>
    %637 = arith.mulf %633, %597 : vector<2x8xf32>
    %638 = arith.mulf %632, %636 : vector<2x8xf32>
    %639 = arith.addf %637, %638 : vector<2x8xf32>
    %640 = math.tanh %639 : vector<2x8xf32>
    %641 = arith.mulf %634, %640 : vector<2x8xf32>
    %642 = arith.truncf %641 : vector<2x8xf32> to vector<2x8xbf16>
    %c0_193 = arith.constant 0 : index
    %c1408 = arith.constant 1408 : index
    %643 = vector.load %arg2[%c0_193, %c1408] : memref<32x1536xbf16, #tpu.memory_space<vmem>>, vector<8x4xbf16>
    %cst_194 = arith.constant dense<0.000000e+00> : vector<2x4xf32>
    %644 = tpu.matmul %642, %643, %cst_194 {dimension_numbers = #tpu.dot_dimension_numbers<[1], [0], [0], [1], [0, 0, 1, 1], [], []>} : vector<2x8xbf16>, vector<8x4xbf16>, vector<2x4xf32> -> vector<2x4xf32>
    %645 = vector.broadcast %598 : vector<2x1xf32> to vector<2x4xf32>
    %646 = vector.broadcast %593 : vector<1x4xf32> to vector<2x4xf32>
    %647 = arith.mulf %645, %646 : vector<2x4xf32>
    %648 = arith.addf %644, %647 : vector<2x4xf32>
    %649 = arith.addf %648, %592 : vector<2x4xf32>
    %650 = arith.negf %649 : vector<2x4xf32>
    %651 = math.exp %650 : vector<2x4xf32>
    %cst_195 = arith.constant 1.000000e+00 : f32
    %652 = vector.broadcast %cst_195 : f32 to vector<2x4xf32>
    %653 = arith.addf %652, %651 : vector<2x4xf32>
    %654 = arith.divf %652, %653 : vector<2x4xf32>
    %655 = vector.extract_strided_slice %654 {offsets = [0, 0], sizes = [2, 1], strides = [1, 1]} : vector<2x4xf32> to vector<2x1xf32>
    %656 = vector.extract_strided_slice %654 {offsets = [0, 1], sizes = [2, 1], strides = [1, 1]} : vector<2x4xf32> to vector<2x1xf32>
    %657 = vector.extract_strided_slice %654 {offsets = [0, 2], sizes = [2, 1], strides = [1, 1]} : vector<2x4xf32> to vector<2x1xf32>
    %658 = vector.extract_strided_slice %649 {offsets = [0, 3], sizes = [2, 1], strides = [1, 1]} : vector<2x4xf32> to vector<2x1xf32>
    %659 = math.tanh %658 : vector<2x1xf32>
    %660 = arith.mulf %656, %599 : vector<2x1xf32>
    %661 = arith.mulf %655, %659 : vector<2x1xf32>
    %662 = arith.addf %660, %661 : vector<2x1xf32>
    %663 = math.tanh %662 : vector<2x1xf32>
    %664 = arith.mulf %657, %663 : vector<2x1xf32>
    %665 = arith.truncf %618 : vector<2x16xf32> to vector<2x16xbf16>
    %c0_196 = arith.constant 0 : index
    %c1024_197 = arith.constant 1024 : index
    %666 = vector.load %arg2[%c0_196, %c1024_197] : memref<32x1536xbf16, #tpu.memory_space<vmem>>, vector<16x64xbf16>
    %cst_198 = arith.constant dense<0.000000e+00> : vector<2x64xf32>
    %667 = tpu.matmul %665, %666, %cst_198 {dimension_numbers = #tpu.dot_dimension_numbers<[1], [0], [0], [1], [0, 0, 1, 1], [], []>} : vector<2x16xbf16>, vector<16x64xbf16>, vector<2x64xf32> -> vector<2x64xf32>
    %668 = arith.addf %586, %667 : vector<2x64xf32>
    %669 = arith.negf %668 : vector<2x64xf32>
    %670 = math.exp %669 : vector<2x64xf32>
    %cst_199 = arith.constant 1.000000e+00 : f32
    %671 = vector.broadcast %cst_199 : f32 to vector<2x64xf32>
    %672 = arith.addf %671, %670 : vector<2x64xf32>
    %673 = arith.divf %671, %672 : vector<2x64xf32>
    %674 = vector.extract_strided_slice %673 {offsets = [0, 0], sizes = [2, 16], strides = [1, 1]} : vector<2x64xf32> to vector<2x16xf32>
    %675 = vector.extract_strided_slice %673 {offsets = [0, 16], sizes = [2, 16], strides = [1, 1]} : vector<2x64xf32> to vector<2x16xf32>
    %676 = vector.extract_strided_slice %673 {offsets = [0, 32], sizes = [2, 16], strides = [1, 1]} : vector<2x64xf32> to vector<2x16xf32>
    %677 = vector.extract_strided_slice %668 {offsets = [0, 48], sizes = [2, 16], strides = [1, 1]} : vector<2x64xf32> to vector<2x16xf32>
    %678 = math.tanh %677 : vector<2x16xf32>
    %679 = arith.mulf %675, %616 : vector<2x16xf32>
    %680 = arith.mulf %674, %678 : vector<2x16xf32>
    %681 = arith.addf %679, %680 : vector<2x16xf32>
    %682 = math.tanh %681 : vector<2x16xf32>
    %683 = arith.mulf %676, %682 : vector<2x16xf32>
    %684 = arith.truncf %683 : vector<2x16xf32> to vector<2x16xbf16>
    %c0_200 = arith.constant 0 : index
    %c1152_201 = arith.constant 1152 : index
    %685 = vector.load %arg2[%c0_200, %c1152_201] : memref<32x1536xbf16, #tpu.memory_space<vmem>>, vector<16x32xbf16>
    %cst_202 = arith.constant dense<0.000000e+00> : vector<2x32xf32>
    %686 = tpu.matmul %684, %685, %cst_202 {dimension_numbers = #tpu.dot_dimension_numbers<[1], [0], [0], [1], [0, 0, 1, 1], [], []>} : vector<2x16xbf16>, vector<16x32xbf16>, vector<2x32xf32> -> vector<2x32xf32>
    %687 = arith.truncf %641 : vector<2x8xf32> to vector<2x8xbf16>
    %c0_203 = arith.constant 0 : index
    %c1280_204 = arith.constant 1280 : index
    %688 = vector.load %arg2[%c0_203, %c1280_204] : memref<32x1536xbf16, #tpu.memory_space<vmem>>, vector<8x32xbf16>
    %cst_205 = arith.constant dense<0.000000e+00> : vector<2x32xf32>
    %689 = tpu.matmul %687, %688, %cst_205 {dimension_numbers = #tpu.dot_dimension_numbers<[1], [0], [0], [1], [0, 0, 1, 1], [], []>} : vector<2x8xbf16>, vector<8x32xbf16>, vector<2x32xf32> -> vector<2x32xf32>
    %690 = arith.addf %686, %689 : vector<2x32xf32>
    %691 = arith.addf %690, %589 : vector<2x32xf32>
    %692 = arith.negf %691 : vector<2x32xf32>
    %693 = math.exp %692 : vector<2x32xf32>
    %cst_206 = arith.constant 1.000000e+00 : f32
    %694 = vector.broadcast %cst_206 : f32 to vector<2x32xf32>
    %695 = arith.addf %694, %693 : vector<2x32xf32>
    %696 = arith.divf %694, %695 : vector<2x32xf32>
    %697 = vector.extract_strided_slice %696 {offsets = [0, 0], sizes = [2, 8], strides = [1, 1]} : vector<2x32xf32> to vector<2x8xf32>
    %698 = vector.extract_strided_slice %696 {offsets = [0, 8], sizes = [2, 8], strides = [1, 1]} : vector<2x32xf32> to vector<2x8xf32>
    %699 = vector.extract_strided_slice %696 {offsets = [0, 16], sizes = [2, 8], strides = [1, 1]} : vector<2x32xf32> to vector<2x8xf32>
    %700 = vector.extract_strided_slice %691 {offsets = [0, 24], sizes = [2, 8], strides = [1, 1]} : vector<2x32xf32> to vector<2x8xf32>
    %701 = math.tanh %700 : vector<2x8xf32>
    %702 = arith.mulf %698, %639 : vector<2x8xf32>
    %703 = arith.mulf %697, %701 : vector<2x8xf32>
    %704 = arith.addf %702, %703 : vector<2x8xf32>
    %705 = math.tanh %704 : vector<2x8xf32>
    %706 = arith.mulf %699, %705 : vector<2x8xf32>
    %707 = arith.truncf %706 : vector<2x8xf32> to vector<2x8xbf16>
    %c0_207 = arith.constant 0 : index
    %c1408_208 = arith.constant 1408 : index
    %708 = vector.load %arg2[%c0_207, %c1408_208] : memref<32x1536xbf16, #tpu.memory_space<vmem>>, vector<8x4xbf16>
    %cst_209 = arith.constant dense<0.000000e+00> : vector<2x4xf32>
    %709 = tpu.matmul %707, %708, %cst_209 {dimension_numbers = #tpu.dot_dimension_numbers<[1], [0], [0], [1], [0, 0, 1, 1], [], []>} : vector<2x8xbf16>, vector<8x4xbf16>, vector<2x4xf32> -> vector<2x4xf32>
    %710 = vector.broadcast %664 : vector<2x1xf32> to vector<2x4xf32>
    %711 = vector.broadcast %593 : vector<1x4xf32> to vector<2x4xf32>
    %712 = arith.mulf %710, %711 : vector<2x4xf32>
    %713 = arith.addf %709, %712 : vector<2x4xf32>
    %714 = arith.addf %713, %592 : vector<2x4xf32>
    %715 = arith.negf %714 : vector<2x4xf32>
    %716 = math.exp %715 : vector<2x4xf32>
    %cst_210 = arith.constant 1.000000e+00 : f32
    %717 = vector.broadcast %cst_210 : f32 to vector<2x4xf32>
    %718 = arith.addf %717, %716 : vector<2x4xf32>
    %719 = arith.divf %717, %718 : vector<2x4xf32>
    %720 = vector.extract_strided_slice %719 {offsets = [0, 0], sizes = [2, 1], strides = [1, 1]} : vector<2x4xf32> to vector<2x1xf32>
    %721 = vector.extract_strided_slice %719 {offsets = [0, 1], sizes = [2, 1], strides = [1, 1]} : vector<2x4xf32> to vector<2x1xf32>
    %722 = vector.extract_strided_slice %719 {offsets = [0, 2], sizes = [2, 1], strides = [1, 1]} : vector<2x4xf32> to vector<2x1xf32>
    %723 = vector.extract_strided_slice %714 {offsets = [0, 3], sizes = [2, 1], strides = [1, 1]} : vector<2x4xf32> to vector<2x1xf32>
    %724 = math.tanh %723 : vector<2x1xf32>
    %725 = arith.mulf %721, %662 : vector<2x1xf32>
    %726 = arith.mulf %720, %724 : vector<2x1xf32>
    %727 = arith.addf %725, %726 : vector<2x1xf32>
    %728 = math.tanh %727 : vector<2x1xf32>
    %729 = arith.mulf %722, %728 : vector<2x1xf32>
    %730 = arith.truncf %683 : vector<2x16xf32> to vector<2x16xbf16>
    %c0_211 = arith.constant 0 : index
    %c1024_212 = arith.constant 1024 : index
    %731 = vector.load %arg2[%c0_211, %c1024_212] : memref<32x1536xbf16, #tpu.memory_space<vmem>>, vector<16x64xbf16>
    %cst_213 = arith.constant dense<0.000000e+00> : vector<2x64xf32>
    %732 = tpu.matmul %730, %731, %cst_213 {dimension_numbers = #tpu.dot_dimension_numbers<[1], [0], [0], [1], [0, 0, 1, 1], [], []>} : vector<2x16xbf16>, vector<16x64xbf16>, vector<2x64xf32> -> vector<2x64xf32>
    %733 = arith.addf %586, %732 : vector<2x64xf32>
    %734 = arith.negf %733 : vector<2x64xf32>
    %735 = math.exp %734 : vector<2x64xf32>
    %cst_214 = arith.constant 1.000000e+00 : f32
    %736 = vector.broadcast %cst_214 : f32 to vector<2x64xf32>
    %737 = arith.addf %736, %735 : vector<2x64xf32>
    %738 = arith.divf %736, %737 : vector<2x64xf32>
    %739 = vector.extract_strided_slice %738 {offsets = [0, 0], sizes = [2, 16], strides = [1, 1]} : vector<2x64xf32> to vector<2x16xf32>
    %740 = vector.extract_strided_slice %738 {offsets = [0, 16], sizes = [2, 16], strides = [1, 1]} : vector<2x64xf32> to vector<2x16xf32>
    %741 = vector.extract_strided_slice %738 {offsets = [0, 32], sizes = [2, 16], strides = [1, 1]} : vector<2x64xf32> to vector<2x16xf32>
    %742 = vector.extract_strided_slice %733 {offsets = [0, 48], sizes = [2, 16], strides = [1, 1]} : vector<2x64xf32> to vector<2x16xf32>
    %743 = math.tanh %742 : vector<2x16xf32>
    %744 = arith.mulf %740, %681 : vector<2x16xf32>
    %745 = arith.mulf %739, %743 : vector<2x16xf32>
    %746 = arith.addf %744, %745 : vector<2x16xf32>
    %747 = math.tanh %746 : vector<2x16xf32>
    %748 = arith.mulf %741, %747 : vector<2x16xf32>
    %749 = arith.truncf %748 : vector<2x16xf32> to vector<2x16xbf16>
    %c0_215 = arith.constant 0 : index
    %c1152_216 = arith.constant 1152 : index
    %750 = vector.load %arg2[%c0_215, %c1152_216] : memref<32x1536xbf16, #tpu.memory_space<vmem>>, vector<16x32xbf16>
    %cst_217 = arith.constant dense<0.000000e+00> : vector<2x32xf32>
    %751 = tpu.matmul %749, %750, %cst_217 {dimension_numbers = #tpu.dot_dimension_numbers<[1], [0], [0], [1], [0, 0, 1, 1], [], []>} : vector<2x16xbf16>, vector<16x32xbf16>, vector<2x32xf32> -> vector<2x32xf32>
    %752 = arith.truncf %706 : vector<2x8xf32> to vector<2x8xbf16>
    %c0_218 = arith.constant 0 : index
    %c1280_219 = arith.constant 1280 : index
    %753 = vector.load %arg2[%c0_218, %c1280_219] : memref<32x1536xbf16, #tpu.memory_space<vmem>>, vector<8x32xbf16>
    %cst_220 = arith.constant dense<0.000000e+00> : vector<2x32xf32>
    %754 = tpu.matmul %752, %753, %cst_220 {dimension_numbers = #tpu.dot_dimension_numbers<[1], [0], [0], [1], [0, 0, 1, 1], [], []>} : vector<2x8xbf16>, vector<8x32xbf16>, vector<2x32xf32> -> vector<2x32xf32>
    %755 = arith.addf %751, %754 : vector<2x32xf32>
    %756 = arith.addf %755, %589 : vector<2x32xf32>
    %757 = arith.negf %756 : vector<2x32xf32>
    %758 = math.exp %757 : vector<2x32xf32>
    %cst_221 = arith.constant 1.000000e+00 : f32
    %759 = vector.broadcast %cst_221 : f32 to vector<2x32xf32>
    %760 = arith.addf %759, %758 : vector<2x32xf32>
    %761 = arith.divf %759, %760 : vector<2x32xf32>
    %762 = vector.extract_strided_slice %761 {offsets = [0, 0], sizes = [2, 8], strides = [1, 1]} : vector<2x32xf32> to vector<2x8xf32>
    %763 = vector.extract_strided_slice %761 {offsets = [0, 8], sizes = [2, 8], strides = [1, 1]} : vector<2x32xf32> to vector<2x8xf32>
    %764 = vector.extract_strided_slice %761 {offsets = [0, 16], sizes = [2, 8], strides = [1, 1]} : vector<2x32xf32> to vector<2x8xf32>
    %765 = vector.extract_strided_slice %756 {offsets = [0, 24], sizes = [2, 8], strides = [1, 1]} : vector<2x32xf32> to vector<2x8xf32>
    %766 = math.tanh %765 : vector<2x8xf32>
    %767 = arith.mulf %763, %704 : vector<2x8xf32>
    %768 = arith.mulf %762, %766 : vector<2x8xf32>
    %769 = arith.addf %767, %768 : vector<2x8xf32>
    %770 = math.tanh %769 : vector<2x8xf32>
    %771 = arith.mulf %764, %770 : vector<2x8xf32>
    %772 = arith.truncf %771 : vector<2x8xf32> to vector<2x8xbf16>
    %c0_222 = arith.constant 0 : index
    %c1408_223 = arith.constant 1408 : index
    %773 = vector.load %arg2[%c0_222, %c1408_223] : memref<32x1536xbf16, #tpu.memory_space<vmem>>, vector<8x4xbf16>
    %cst_224 = arith.constant dense<0.000000e+00> : vector<2x4xf32>
    %774 = tpu.matmul %772, %773, %cst_224 {dimension_numbers = #tpu.dot_dimension_numbers<[1], [0], [0], [1], [0, 0, 1, 1], [], []>} : vector<2x8xbf16>, vector<8x4xbf16>, vector<2x4xf32> -> vector<2x4xf32>
    %775 = vector.broadcast %729 : vector<2x1xf32> to vector<2x4xf32>
    %776 = vector.broadcast %593 : vector<1x4xf32> to vector<2x4xf32>
    %777 = arith.mulf %775, %776 : vector<2x4xf32>
    %778 = arith.addf %774, %777 : vector<2x4xf32>
    %779 = arith.addf %778, %592 : vector<2x4xf32>
    %780 = arith.negf %779 : vector<2x4xf32>
    %781 = math.exp %780 : vector<2x4xf32>
    %cst_225 = arith.constant 1.000000e+00 : f32
    %782 = vector.broadcast %cst_225 : f32 to vector<2x4xf32>
    %783 = arith.addf %782, %781 : vector<2x4xf32>
    %784 = arith.divf %782, %783 : vector<2x4xf32>
    %785 = vector.extract_strided_slice %784 {offsets = [0, 0], sizes = [2, 1], strides = [1, 1]} : vector<2x4xf32> to vector<2x1xf32>
    %786 = vector.extract_strided_slice %784 {offsets = [0, 1], sizes = [2, 1], strides = [1, 1]} : vector<2x4xf32> to vector<2x1xf32>
    %787 = vector.extract_strided_slice %784 {offsets = [0, 2], sizes = [2, 1], strides = [1, 1]} : vector<2x4xf32> to vector<2x1xf32>
    %788 = vector.extract_strided_slice %779 {offsets = [0, 3], sizes = [2, 1], strides = [1, 1]} : vector<2x4xf32> to vector<2x1xf32>
    %789 = math.tanh %788 : vector<2x1xf32>
    %790 = arith.mulf %786, %727 : vector<2x1xf32>
    %791 = arith.mulf %785, %789 : vector<2x1xf32>
    %792 = arith.addf %790, %791 : vector<2x1xf32>
    %793 = math.tanh %792 : vector<2x1xf32>
    %794 = arith.mulf %787, %793 : vector<2x1xf32>
    %795 = arith.truncf %748 : vector<2x16xf32> to vector<2x16xbf16>
    %c0_226 = arith.constant 0 : index
    %c1024_227 = arith.constant 1024 : index
    %796 = vector.load %arg2[%c0_226, %c1024_227] : memref<32x1536xbf16, #tpu.memory_space<vmem>>, vector<16x64xbf16>
    %cst_228 = arith.constant dense<0.000000e+00> : vector<2x64xf32>
    %797 = tpu.matmul %795, %796, %cst_228 {dimension_numbers = #tpu.dot_dimension_numbers<[1], [0], [0], [1], [0, 0, 1, 1], [], []>} : vector<2x16xbf16>, vector<16x64xbf16>, vector<2x64xf32> -> vector<2x64xf32>
    %798 = arith.addf %586, %797 : vector<2x64xf32>
    %799 = arith.negf %798 : vector<2x64xf32>
    %800 = math.exp %799 : vector<2x64xf32>
    %cst_229 = arith.constant 1.000000e+00 : f32
    %801 = vector.broadcast %cst_229 : f32 to vector<2x64xf32>
    %802 = arith.addf %801, %800 : vector<2x64xf32>
    %803 = arith.divf %801, %802 : vector<2x64xf32>
    %804 = vector.extract_strided_slice %803 {offsets = [0, 0], sizes = [2, 16], strides = [1, 1]} : vector<2x64xf32> to vector<2x16xf32>
    %805 = vector.extract_strided_slice %803 {offsets = [0, 16], sizes = [2, 16], strides = [1, 1]} : vector<2x64xf32> to vector<2x16xf32>
    %806 = vector.extract_strided_slice %803 {offsets = [0, 32], sizes = [2, 16], strides = [1, 1]} : vector<2x64xf32> to vector<2x16xf32>
    %807 = vector.extract_strided_slice %798 {offsets = [0, 48], sizes = [2, 16], strides = [1, 1]} : vector<2x64xf32> to vector<2x16xf32>
    %808 = math.tanh %807 : vector<2x16xf32>
    %809 = arith.mulf %805, %746 : vector<2x16xf32>
    %810 = arith.mulf %804, %808 : vector<2x16xf32>
    %811 = arith.addf %809, %810 : vector<2x16xf32>
    %812 = math.tanh %811 : vector<2x16xf32>
    %813 = arith.mulf %806, %812 : vector<2x16xf32>
    %814 = arith.truncf %813 : vector<2x16xf32> to vector<2x16xbf16>
    %c0_230 = arith.constant 0 : index
    %c1152_231 = arith.constant 1152 : index
    %815 = vector.load %arg2[%c0_230, %c1152_231] : memref<32x1536xbf16, #tpu.memory_space<vmem>>, vector<16x32xbf16>
    %cst_232 = arith.constant dense<0.000000e+00> : vector<2x32xf32>
    %816 = tpu.matmul %814, %815, %cst_232 {dimension_numbers = #tpu.dot_dimension_numbers<[1], [0], [0], [1], [0, 0, 1, 1], [], []>} : vector<2x16xbf16>, vector<16x32xbf16>, vector<2x32xf32> -> vector<2x32xf32>
    %817 = arith.truncf %771 : vector<2x8xf32> to vector<2x8xbf16>
    %c0_233 = arith.constant 0 : index
    %c1280_234 = arith.constant 1280 : index
    %818 = vector.load %arg2[%c0_233, %c1280_234] : memref<32x1536xbf16, #tpu.memory_space<vmem>>, vector<8x32xbf16>
    %cst_235 = arith.constant dense<0.000000e+00> : vector<2x32xf32>
    %819 = tpu.matmul %817, %818, %cst_235 {dimension_numbers = #tpu.dot_dimension_numbers<[1], [0], [0], [1], [0, 0, 1, 1], [], []>} : vector<2x8xbf16>, vector<8x32xbf16>, vector<2x32xf32> -> vector<2x32xf32>
    %820 = arith.addf %816, %819 : vector<2x32xf32>
    %821 = arith.addf %820, %589 : vector<2x32xf32>
    %822 = arith.negf %821 : vector<2x32xf32>
    %823 = math.exp %822 : vector<2x32xf32>
    %cst_236 = arith.constant 1.000000e+00 : f32
    %824 = vector.broadcast %cst_236 : f32 to vector<2x32xf32>
    %825 = arith.addf %824, %823 : vector<2x32xf32>
    %826 = arith.divf %824, %825 : vector<2x32xf32>
    %827 = vector.extract_strided_slice %826 {offsets = [0, 0], sizes = [2, 8], strides = [1, 1]} : vector<2x32xf32> to vector<2x8xf32>
    %828 = vector.extract_strided_slice %826 {offsets = [0, 8], sizes = [2, 8], strides = [1, 1]} : vector<2x32xf32> to vector<2x8xf32>
    %829 = vector.extract_strided_slice %826 {offsets = [0, 16], sizes = [2, 8], strides = [1, 1]} : vector<2x32xf32> to vector<2x8xf32>
    %830 = vector.extract_strided_slice %821 {offsets = [0, 24], sizes = [2, 8], strides = [1, 1]} : vector<2x32xf32> to vector<2x8xf32>
    %831 = math.tanh %830 : vector<2x8xf32>
    %832 = arith.mulf %828, %769 : vector<2x8xf32>
    %833 = arith.mulf %827, %831 : vector<2x8xf32>
    %834 = arith.addf %832, %833 : vector<2x8xf32>
    %835 = math.tanh %834 : vector<2x8xf32>
    %836 = arith.mulf %829, %835 : vector<2x8xf32>
    %837 = arith.truncf %836 : vector<2x8xf32> to vector<2x8xbf16>
    %c0_237 = arith.constant 0 : index
    %c1408_238 = arith.constant 1408 : index
    %838 = vector.load %arg2[%c0_237, %c1408_238] : memref<32x1536xbf16, #tpu.memory_space<vmem>>, vector<8x4xbf16>
    %cst_239 = arith.constant dense<0.000000e+00> : vector<2x4xf32>
    %839 = tpu.matmul %837, %838, %cst_239 {dimension_numbers = #tpu.dot_dimension_numbers<[1], [0], [0], [1], [0, 0, 1, 1], [], []>} : vector<2x8xbf16>, vector<8x4xbf16>, vector<2x4xf32> -> vector<2x4xf32>
    %840 = vector.broadcast %794 : vector<2x1xf32> to vector<2x4xf32>
    %841 = vector.broadcast %593 : vector<1x4xf32> to vector<2x4xf32>
    %842 = arith.mulf %840, %841 : vector<2x4xf32>
    %843 = arith.addf %839, %842 : vector<2x4xf32>
    %844 = arith.addf %843, %592 : vector<2x4xf32>
    %845 = arith.negf %844 : vector<2x4xf32>
    %846 = math.exp %845 : vector<2x4xf32>
    %cst_240 = arith.constant 1.000000e+00 : f32
    %847 = vector.broadcast %cst_240 : f32 to vector<2x4xf32>
    %848 = arith.addf %847, %846 : vector<2x4xf32>
    %849 = arith.divf %847, %848 : vector<2x4xf32>
    %850 = vector.extract_strided_slice %849 {offsets = [0, 0], sizes = [2, 1], strides = [1, 1]} : vector<2x4xf32> to vector<2x1xf32>
    %851 = vector.extract_strided_slice %849 {offsets = [0, 1], sizes = [2, 1], strides = [1, 1]} : vector<2x4xf32> to vector<2x1xf32>
    %852 = vector.extract_strided_slice %849 {offsets = [0, 2], sizes = [2, 1], strides = [1, 1]} : vector<2x4xf32> to vector<2x1xf32>
    %853 = vector.extract_strided_slice %844 {offsets = [0, 3], sizes = [2, 1], strides = [1, 1]} : vector<2x4xf32> to vector<2x1xf32>
    %854 = math.tanh %853 : vector<2x1xf32>
    %855 = arith.mulf %851, %792 : vector<2x1xf32>
    %856 = arith.mulf %850, %854 : vector<2x1xf32>
    %857 = arith.addf %855, %856 : vector<2x1xf32>
    %858 = math.tanh %857 : vector<2x1xf32>
    %859 = arith.mulf %852, %858 : vector<2x1xf32>
    %860 = arith.truncf %813 : vector<2x16xf32> to vector<2x16xbf16>
    %c0_241 = arith.constant 0 : index
    %c1024_242 = arith.constant 1024 : index
    %861 = vector.load %arg2[%c0_241, %c1024_242] : memref<32x1536xbf16, #tpu.memory_space<vmem>>, vector<16x64xbf16>
    %cst_243 = arith.constant dense<0.000000e+00> : vector<2x64xf32>
    %862 = tpu.matmul %860, %861, %cst_243 {dimension_numbers = #tpu.dot_dimension_numbers<[1], [0], [0], [1], [0, 0, 1, 1], [], []>} : vector<2x16xbf16>, vector<16x64xbf16>, vector<2x64xf32> -> vector<2x64xf32>
    %863 = arith.addf %586, %862 : vector<2x64xf32>
    %864 = arith.negf %863 : vector<2x64xf32>
    %865 = math.exp %864 : vector<2x64xf32>
    %cst_244 = arith.constant 1.000000e+00 : f32
    %866 = vector.broadcast %cst_244 : f32 to vector<2x64xf32>
    %867 = arith.addf %866, %865 : vector<2x64xf32>
    %868 = arith.divf %866, %867 : vector<2x64xf32>
    %869 = vector.extract_strided_slice %868 {offsets = [0, 0], sizes = [2, 16], strides = [1, 1]} : vector<2x64xf32> to vector<2x16xf32>
    %870 = vector.extract_strided_slice %868 {offsets = [0, 16], sizes = [2, 16], strides = [1, 1]} : vector<2x64xf32> to vector<2x16xf32>
    %871 = vector.extract_strided_slice %868 {offsets = [0, 32], sizes = [2, 16], strides = [1, 1]} : vector<2x64xf32> to vector<2x16xf32>
    %872 = vector.extract_strided_slice %863 {offsets = [0, 48], sizes = [2, 16], strides = [1, 1]} : vector<2x64xf32> to vector<2x16xf32>
    %873 = math.tanh %872 : vector<2x16xf32>
    %874 = arith.mulf %870, %811 : vector<2x16xf32>
    %875 = arith.mulf %869, %873 : vector<2x16xf32>
    %876 = arith.addf %874, %875 : vector<2x16xf32>
    %877 = math.tanh %876 : vector<2x16xf32>
    %878 = arith.mulf %871, %877 : vector<2x16xf32>
    %879 = arith.truncf %878 : vector<2x16xf32> to vector<2x16xbf16>
    %c0_245 = arith.constant 0 : index
    %c1152_246 = arith.constant 1152 : index
    %880 = vector.load %arg2[%c0_245, %c1152_246] : memref<32x1536xbf16, #tpu.memory_space<vmem>>, vector<16x32xbf16>
    %cst_247 = arith.constant dense<0.000000e+00> : vector<2x32xf32>
    %881 = tpu.matmul %879, %880, %cst_247 {dimension_numbers = #tpu.dot_dimension_numbers<[1], [0], [0], [1], [0, 0, 1, 1], [], []>} : vector<2x16xbf16>, vector<16x32xbf16>, vector<2x32xf32> -> vector<2x32xf32>
    %882 = arith.truncf %836 : vector<2x8xf32> to vector<2x8xbf16>
    %c0_248 = arith.constant 0 : index
    %c1280_249 = arith.constant 1280 : index
    %883 = vector.load %arg2[%c0_248, %c1280_249] : memref<32x1536xbf16, #tpu.memory_space<vmem>>, vector<8x32xbf16>
    %cst_250 = arith.constant dense<0.000000e+00> : vector<2x32xf32>
    %884 = tpu.matmul %882, %883, %cst_250 {dimension_numbers = #tpu.dot_dimension_numbers<[1], [0], [0], [1], [0, 0, 1, 1], [], []>} : vector<2x8xbf16>, vector<8x32xbf16>, vector<2x32xf32> -> vector<2x32xf32>
    %885 = arith.addf %881, %884 : vector<2x32xf32>
    %886 = arith.addf %885, %589 : vector<2x32xf32>
    %887 = arith.negf %886 : vector<2x32xf32>
    %888 = math.exp %887 : vector<2x32xf32>
    %cst_251 = arith.constant 1.000000e+00 : f32
    %889 = vector.broadcast %cst_251 : f32 to vector<2x32xf32>
    %890 = arith.addf %889, %888 : vector<2x32xf32>
    %891 = arith.divf %889, %890 : vector<2x32xf32>
    %892 = vector.extract_strided_slice %891 {offsets = [0, 0], sizes = [2, 8], strides = [1, 1]} : vector<2x32xf32> to vector<2x8xf32>
    %893 = vector.extract_strided_slice %891 {offsets = [0, 8], sizes = [2, 8], strides = [1, 1]} : vector<2x32xf32> to vector<2x8xf32>
    %894 = vector.extract_strided_slice %891 {offsets = [0, 16], sizes = [2, 8], strides = [1, 1]} : vector<2x32xf32> to vector<2x8xf32>
    %895 = vector.extract_strided_slice %886 {offsets = [0, 24], sizes = [2, 8], strides = [1, 1]} : vector<2x32xf32> to vector<2x8xf32>
    %896 = math.tanh %895 : vector<2x8xf32>
    %897 = arith.mulf %893, %834 : vector<2x8xf32>
    %898 = arith.mulf %892, %896 : vector<2x8xf32>
    %899 = arith.addf %897, %898 : vector<2x8xf32>
    %900 = math.tanh %899 : vector<2x8xf32>
    %901 = arith.mulf %894, %900 : vector<2x8xf32>
    %902 = arith.truncf %901 : vector<2x8xf32> to vector<2x8xbf16>
    %c0_252 = arith.constant 0 : index
    %c1408_253 = arith.constant 1408 : index
    %903 = vector.load %arg2[%c0_252, %c1408_253] : memref<32x1536xbf16, #tpu.memory_space<vmem>>, vector<8x4xbf16>
    %cst_254 = arith.constant dense<0.000000e+00> : vector<2x4xf32>
    %904 = tpu.matmul %902, %903, %cst_254 {dimension_numbers = #tpu.dot_dimension_numbers<[1], [0], [0], [1], [0, 0, 1, 1], [], []>} : vector<2x8xbf16>, vector<8x4xbf16>, vector<2x4xf32> -> vector<2x4xf32>
    %905 = vector.broadcast %859 : vector<2x1xf32> to vector<2x4xf32>
    %906 = vector.broadcast %593 : vector<1x4xf32> to vector<2x4xf32>
    %907 = arith.mulf %905, %906 : vector<2x4xf32>
    %908 = arith.addf %904, %907 : vector<2x4xf32>
    %909 = arith.addf %908, %592 : vector<2x4xf32>
    %910 = arith.negf %909 : vector<2x4xf32>
    %911 = math.exp %910 : vector<2x4xf32>
    %cst_255 = arith.constant 1.000000e+00 : f32
    %912 = vector.broadcast %cst_255 : f32 to vector<2x4xf32>
    %913 = arith.addf %912, %911 : vector<2x4xf32>
    %914 = arith.divf %912, %913 : vector<2x4xf32>
    %915 = vector.extract_strided_slice %914 {offsets = [0, 0], sizes = [2, 1], strides = [1, 1]} : vector<2x4xf32> to vector<2x1xf32>
    %916 = vector.extract_strided_slice %914 {offsets = [0, 1], sizes = [2, 1], strides = [1, 1]} : vector<2x4xf32> to vector<2x1xf32>
    %917 = vector.extract_strided_slice %914 {offsets = [0, 2], sizes = [2, 1], strides = [1, 1]} : vector<2x4xf32> to vector<2x1xf32>
    %918 = vector.extract_strided_slice %909 {offsets = [0, 3], sizes = [2, 1], strides = [1, 1]} : vector<2x4xf32> to vector<2x1xf32>
    %919 = math.tanh %918 : vector<2x1xf32>
    %920 = arith.mulf %916, %857 : vector<2x1xf32>
    %921 = arith.mulf %915, %919 : vector<2x1xf32>
    %922 = arith.addf %920, %921 : vector<2x1xf32>
    %923 = math.tanh %922 : vector<2x1xf32>
    %924 = arith.mulf %917, %923 : vector<2x1xf32>
    %925 = arith.truncf %878 : vector<2x16xf32> to vector<2x16xbf16>
    %c0_256 = arith.constant 0 : index
    %c1024_257 = arith.constant 1024 : index
    %926 = vector.load %arg2[%c0_256, %c1024_257] : memref<32x1536xbf16, #tpu.memory_space<vmem>>, vector<16x64xbf16>
    %cst_258 = arith.constant dense<0.000000e+00> : vector<2x64xf32>
    %927 = tpu.matmul %925, %926, %cst_258 {dimension_numbers = #tpu.dot_dimension_numbers<[1], [0], [0], [1], [0, 0, 1, 1], [], []>} : vector<2x16xbf16>, vector<16x64xbf16>, vector<2x64xf32> -> vector<2x64xf32>
    %928 = arith.addf %586, %927 : vector<2x64xf32>
    %929 = arith.negf %928 : vector<2x64xf32>
    %930 = math.exp %929 : vector<2x64xf32>
    %cst_259 = arith.constant 1.000000e+00 : f32
    %931 = vector.broadcast %cst_259 : f32 to vector<2x64xf32>
    %932 = arith.addf %931, %930 : vector<2x64xf32>
    %933 = arith.divf %931, %932 : vector<2x64xf32>
    %934 = vector.extract_strided_slice %933 {offsets = [0, 0], sizes = [2, 16], strides = [1, 1]} : vector<2x64xf32> to vector<2x16xf32>
    %935 = vector.extract_strided_slice %933 {offsets = [0, 16], sizes = [2, 16], strides = [1, 1]} : vector<2x64xf32> to vector<2x16xf32>
    %936 = vector.extract_strided_slice %933 {offsets = [0, 32], sizes = [2, 16], strides = [1, 1]} : vector<2x64xf32> to vector<2x16xf32>
    %937 = vector.extract_strided_slice %928 {offsets = [0, 48], sizes = [2, 16], strides = [1, 1]} : vector<2x64xf32> to vector<2x16xf32>
    %938 = math.tanh %937 : vector<2x16xf32>
    %939 = arith.mulf %935, %876 : vector<2x16xf32>
    %940 = arith.mulf %934, %938 : vector<2x16xf32>
    %941 = arith.addf %939, %940 : vector<2x16xf32>
    %942 = math.tanh %941 : vector<2x16xf32>
    %943 = arith.mulf %936, %942 : vector<2x16xf32>
    %944 = arith.truncf %943 : vector<2x16xf32> to vector<2x16xbf16>
    %c0_260 = arith.constant 0 : index
    %c1152_261 = arith.constant 1152 : index
    %945 = vector.load %arg2[%c0_260, %c1152_261] : memref<32x1536xbf16, #tpu.memory_space<vmem>>, vector<16x32xbf16>
    %cst_262 = arith.constant dense<0.000000e+00> : vector<2x32xf32>
    %946 = tpu.matmul %944, %945, %cst_262 {dimension_numbers = #tpu.dot_dimension_numbers<[1], [0], [0], [1], [0, 0, 1, 1], [], []>} : vector<2x16xbf16>, vector<16x32xbf16>, vector<2x32xf32> -> vector<2x32xf32>
    %947 = arith.truncf %901 : vector<2x8xf32> to vector<2x8xbf16>
    %c0_263 = arith.constant 0 : index
    %c1280_264 = arith.constant 1280 : index
    %948 = vector.load %arg2[%c0_263, %c1280_264] : memref<32x1536xbf16, #tpu.memory_space<vmem>>, vector<8x32xbf16>
    %cst_265 = arith.constant dense<0.000000e+00> : vector<2x32xf32>
    %949 = tpu.matmul %947, %948, %cst_265 {dimension_numbers = #tpu.dot_dimension_numbers<[1], [0], [0], [1], [0, 0, 1, 1], [], []>} : vector<2x8xbf16>, vector<8x32xbf16>, vector<2x32xf32> -> vector<2x32xf32>
    %950 = arith.addf %946, %949 : vector<2x32xf32>
    %951 = arith.addf %950, %589 : vector<2x32xf32>
    %952 = arith.negf %951 : vector<2x32xf32>
    %953 = math.exp %952 : vector<2x32xf32>
    %cst_266 = arith.constant 1.000000e+00 : f32
    %954 = vector.broadcast %cst_266 : f32 to vector<2x32xf32>
    %955 = arith.addf %954, %953 : vector<2x32xf32>
    %956 = arith.divf %954, %955 : vector<2x32xf32>
    %957 = vector.extract_strided_slice %956 {offsets = [0, 0], sizes = [2, 8], strides = [1, 1]} : vector<2x32xf32> to vector<2x8xf32>
    %958 = vector.extract_strided_slice %956 {offsets = [0, 8], sizes = [2, 8], strides = [1, 1]} : vector<2x32xf32> to vector<2x8xf32>
    %959 = vector.extract_strided_slice %956 {offsets = [0, 16], sizes = [2, 8], strides = [1, 1]} : vector<2x32xf32> to vector<2x8xf32>
    %960 = vector.extract_strided_slice %951 {offsets = [0, 24], sizes = [2, 8], strides = [1, 1]} : vector<2x32xf32> to vector<2x8xf32>
    %961 = math.tanh %960 : vector<2x8xf32>
    %962 = arith.mulf %958, %899 : vector<2x8xf32>
    %963 = arith.mulf %957, %961 : vector<2x8xf32>
    %964 = arith.addf %962, %963 : vector<2x8xf32>
    %965 = math.tanh %964 : vector<2x8xf32>
    %966 = arith.mulf %959, %965 : vector<2x8xf32>
    %967 = arith.truncf %966 : vector<2x8xf32> to vector<2x8xbf16>
    %c0_267 = arith.constant 0 : index
    %c1408_268 = arith.constant 1408 : index
    %968 = vector.load %arg2[%c0_267, %c1408_268] : memref<32x1536xbf16, #tpu.memory_space<vmem>>, vector<8x4xbf16>
    %cst_269 = arith.constant dense<0.000000e+00> : vector<2x4xf32>
    %969 = tpu.matmul %967, %968, %cst_269 {dimension_numbers = #tpu.dot_dimension_numbers<[1], [0], [0], [1], [0, 0, 1, 1], [], []>} : vector<2x8xbf16>, vector<8x4xbf16>, vector<2x4xf32> -> vector<2x4xf32>
    %970 = vector.broadcast %924 : vector<2x1xf32> to vector<2x4xf32>
    %971 = vector.broadcast %593 : vector<1x4xf32> to vector<2x4xf32>
    %972 = arith.mulf %970, %971 : vector<2x4xf32>
    %973 = arith.addf %969, %972 : vector<2x4xf32>
    %974 = arith.addf %973, %592 : vector<2x4xf32>
    %975 = arith.negf %974 : vector<2x4xf32>
    %976 = math.exp %975 : vector<2x4xf32>
    %cst_270 = arith.constant 1.000000e+00 : f32
    %977 = vector.broadcast %cst_270 : f32 to vector<2x4xf32>
    %978 = arith.addf %977, %976 : vector<2x4xf32>
    %979 = arith.divf %977, %978 : vector<2x4xf32>
    %980 = vector.extract_strided_slice %979 {offsets = [0, 0], sizes = [2, 1], strides = [1, 1]} : vector<2x4xf32> to vector<2x1xf32>
    %981 = vector.extract_strided_slice %979 {offsets = [0, 1], sizes = [2, 1], strides = [1, 1]} : vector<2x4xf32> to vector<2x1xf32>
    %982 = vector.extract_strided_slice %979 {offsets = [0, 2], sizes = [2, 1], strides = [1, 1]} : vector<2x4xf32> to vector<2x1xf32>
    %983 = vector.extract_strided_slice %974 {offsets = [0, 3], sizes = [2, 1], strides = [1, 1]} : vector<2x4xf32> to vector<2x1xf32>
    %984 = math.tanh %983 : vector<2x1xf32>
    %985 = arith.mulf %981, %922 : vector<2x1xf32>
    %986 = arith.mulf %980, %984 : vector<2x1xf32>
    %987 = arith.addf %985, %986 : vector<2x1xf32>
    %988 = math.tanh %987 : vector<2x1xf32>
    %989 = arith.mulf %982, %988 : vector<2x1xf32>
    %990 = arith.truncf %943 : vector<2x16xf32> to vector<2x16xbf16>
    %c0_271 = arith.constant 0 : index
    %c1024_272 = arith.constant 1024 : index
    %991 = vector.load %arg2[%c0_271, %c1024_272] : memref<32x1536xbf16, #tpu.memory_space<vmem>>, vector<16x64xbf16>
    %cst_273 = arith.constant dense<0.000000e+00> : vector<2x64xf32>
    %992 = tpu.matmul %990, %991, %cst_273 {dimension_numbers = #tpu.dot_dimension_numbers<[1], [0], [0], [1], [0, 0, 1, 1], [], []>} : vector<2x16xbf16>, vector<16x64xbf16>, vector<2x64xf32> -> vector<2x64xf32>
    %993 = arith.addf %586, %992 : vector<2x64xf32>
    %994 = arith.negf %993 : vector<2x64xf32>
    %995 = math.exp %994 : vector<2x64xf32>
    %cst_274 = arith.constant 1.000000e+00 : f32
    %996 = vector.broadcast %cst_274 : f32 to vector<2x64xf32>
    %997 = arith.addf %996, %995 : vector<2x64xf32>
    %998 = arith.divf %996, %997 : vector<2x64xf32>
    %999 = vector.extract_strided_slice %998 {offsets = [0, 0], sizes = [2, 16], strides = [1, 1]} : vector<2x64xf32> to vector<2x16xf32>
    %1000 = vector.extract_strided_slice %998 {offsets = [0, 16], sizes = [2, 16], strides = [1, 1]} : vector<2x64xf32> to vector<2x16xf32>
    %1001 = vector.extract_strided_slice %998 {offsets = [0, 32], sizes = [2, 16], strides = [1, 1]} : vector<2x64xf32> to vector<2x16xf32>
    %1002 = vector.extract_strided_slice %993 {offsets = [0, 48], sizes = [2, 16], strides = [1, 1]} : vector<2x64xf32> to vector<2x16xf32>
    %1003 = math.tanh %1002 : vector<2x16xf32>
    %1004 = arith.mulf %1000, %941 : vector<2x16xf32>
    %1005 = arith.mulf %999, %1003 : vector<2x16xf32>
    %1006 = arith.addf %1004, %1005 : vector<2x16xf32>
    %1007 = math.tanh %1006 : vector<2x16xf32>
    %1008 = arith.mulf %1001, %1007 : vector<2x16xf32>
    %1009 = arith.truncf %1008 : vector<2x16xf32> to vector<2x16xbf16>
    %c0_275 = arith.constant 0 : index
    %c1152_276 = arith.constant 1152 : index
    %1010 = vector.load %arg2[%c0_275, %c1152_276] : memref<32x1536xbf16, #tpu.memory_space<vmem>>, vector<16x32xbf16>
    %cst_277 = arith.constant dense<0.000000e+00> : vector<2x32xf32>
    %1011 = tpu.matmul %1009, %1010, %cst_277 {dimension_numbers = #tpu.dot_dimension_numbers<[1], [0], [0], [1], [0, 0, 1, 1], [], []>} : vector<2x16xbf16>, vector<16x32xbf16>, vector<2x32xf32> -> vector<2x32xf32>
    %1012 = arith.truncf %966 : vector<2x8xf32> to vector<2x8xbf16>
    %c0_278 = arith.constant 0 : index
    %c1280_279 = arith.constant 1280 : index
    %1013 = vector.load %arg2[%c0_278, %c1280_279] : memref<32x1536xbf16, #tpu.memory_space<vmem>>, vector<8x32xbf16>
    %cst_280 = arith.constant dense<0.000000e+00> : vector<2x32xf32>
    %1014 = tpu.matmul %1012, %1013, %cst_280 {dimension_numbers = #tpu.dot_dimension_numbers<[1], [0], [0], [1], [0, 0, 1, 1], [], []>} : vector<2x8xbf16>, vector<8x32xbf16>, vector<2x32xf32> -> vector<2x32xf32>
    %1015 = arith.addf %1011, %1014 : vector<2x32xf32>
    %1016 = arith.addf %1015, %589 : vector<2x32xf32>
    %1017 = arith.negf %1016 : vector<2x32xf32>
    %1018 = math.exp %1017 : vector<2x32xf32>
    %cst_281 = arith.constant 1.000000e+00 : f32
    %1019 = vector.broadcast %cst_281 : f32 to vector<2x32xf32>
    %1020 = arith.addf %1019, %1018 : vector<2x32xf32>
    %1021 = arith.divf %1019, %1020 : vector<2x32xf32>
    %1022 = vector.extract_strided_slice %1021 {offsets = [0, 0], sizes = [2, 8], strides = [1, 1]} : vector<2x32xf32> to vector<2x8xf32>
    %1023 = vector.extract_strided_slice %1021 {offsets = [0, 8], sizes = [2, 8], strides = [1, 1]} : vector<2x32xf32> to vector<2x8xf32>
    %1024 = vector.extract_strided_slice %1021 {offsets = [0, 16], sizes = [2, 8], strides = [1, 1]} : vector<2x32xf32> to vector<2x8xf32>
    %1025 = vector.extract_strided_slice %1016 {offsets = [0, 24], sizes = [2, 8], strides = [1, 1]} : vector<2x32xf32> to vector<2x8xf32>
    %1026 = math.tanh %1025 : vector<2x8xf32>
    %1027 = arith.mulf %1023, %964 : vector<2x8xf32>
    %1028 = arith.mulf %1022, %1026 : vector<2x8xf32>
    %1029 = arith.addf %1027, %1028 : vector<2x8xf32>
    %1030 = math.tanh %1029 : vector<2x8xf32>
    %1031 = arith.mulf %1024, %1030 : vector<2x8xf32>
    %1032 = arith.truncf %1031 : vector<2x8xf32> to vector<2x8xbf16>
    %c0_282 = arith.constant 0 : index
    %c1408_283 = arith.constant 1408 : index
    %1033 = vector.load %arg2[%c0_282, %c1408_283] : memref<32x1536xbf16, #tpu.memory_space<vmem>>, vector<8x4xbf16>
    %cst_284 = arith.constant dense<0.000000e+00> : vector<2x4xf32>
    %1034 = tpu.matmul %1032, %1033, %cst_284 {dimension_numbers = #tpu.dot_dimension_numbers<[1], [0], [0], [1], [0, 0, 1, 1], [], []>} : vector<2x8xbf16>, vector<8x4xbf16>, vector<2x4xf32> -> vector<2x4xf32>
    %1035 = vector.broadcast %989 : vector<2x1xf32> to vector<2x4xf32>
    %1036 = vector.broadcast %593 : vector<1x4xf32> to vector<2x4xf32>
    %1037 = arith.mulf %1035, %1036 : vector<2x4xf32>
    %1038 = arith.addf %1034, %1037 : vector<2x4xf32>
    %1039 = arith.addf %1038, %592 : vector<2x4xf32>
    %1040 = arith.negf %1039 : vector<2x4xf32>
    %1041 = math.exp %1040 : vector<2x4xf32>
    %cst_285 = arith.constant 1.000000e+00 : f32
    %1042 = vector.broadcast %cst_285 : f32 to vector<2x4xf32>
    %1043 = arith.addf %1042, %1041 : vector<2x4xf32>
    %1044 = arith.divf %1042, %1043 : vector<2x4xf32>
    %1045 = vector.extract_strided_slice %1044 {offsets = [0, 0], sizes = [2, 1], strides = [1, 1]} : vector<2x4xf32> to vector<2x1xf32>
    %1046 = vector.extract_strided_slice %1044 {offsets = [0, 1], sizes = [2, 1], strides = [1, 1]} : vector<2x4xf32> to vector<2x1xf32>
    %1047 = vector.extract_strided_slice %1044 {offsets = [0, 2], sizes = [2, 1], strides = [1, 1]} : vector<2x4xf32> to vector<2x1xf32>
    %1048 = vector.extract_strided_slice %1039 {offsets = [0, 3], sizes = [2, 1], strides = [1, 1]} : vector<2x4xf32> to vector<2x1xf32>
    %1049 = math.tanh %1048 : vector<2x1xf32>
    %1050 = arith.mulf %1046, %987 : vector<2x1xf32>
    %1051 = arith.mulf %1045, %1049 : vector<2x1xf32>
    %1052 = arith.addf %1050, %1051 : vector<2x1xf32>
    %1053 = math.tanh %1052 : vector<2x1xf32>
    %1054 = arith.mulf %1047, %1053 : vector<2x1xf32>
    %1055 = arith.truncf %1008 : vector<2x16xf32> to vector<2x16xbf16>
    %c0_286 = arith.constant 0 : index
    %c1024_287 = arith.constant 1024 : index
    %1056 = vector.load %arg2[%c0_286, %c1024_287] : memref<32x1536xbf16, #tpu.memory_space<vmem>>, vector<16x64xbf16>
    %cst_288 = arith.constant dense<0.000000e+00> : vector<2x64xf32>
    %1057 = tpu.matmul %1055, %1056, %cst_288 {dimension_numbers = #tpu.dot_dimension_numbers<[1], [0], [0], [1], [0, 0, 1, 1], [], []>} : vector<2x16xbf16>, vector<16x64xbf16>, vector<2x64xf32> -> vector<2x64xf32>
    %1058 = arith.addf %586, %1057 : vector<2x64xf32>
    %1059 = arith.negf %1058 : vector<2x64xf32>
    %1060 = math.exp %1059 : vector<2x64xf32>
    %cst_289 = arith.constant 1.000000e+00 : f32
    %1061 = vector.broadcast %cst_289 : f32 to vector<2x64xf32>
    %1062 = arith.addf %1061, %1060 : vector<2x64xf32>
    %1063 = arith.divf %1061, %1062 : vector<2x64xf32>
    %1064 = vector.extract_strided_slice %1063 {offsets = [0, 0], sizes = [2, 16], strides = [1, 1]} : vector<2x64xf32> to vector<2x16xf32>
    %1065 = vector.extract_strided_slice %1063 {offsets = [0, 16], sizes = [2, 16], strides = [1, 1]} : vector<2x64xf32> to vector<2x16xf32>
    %1066 = vector.extract_strided_slice %1063 {offsets = [0, 32], sizes = [2, 16], strides = [1, 1]} : vector<2x64xf32> to vector<2x16xf32>
    %1067 = vector.extract_strided_slice %1058 {offsets = [0, 48], sizes = [2, 16], strides = [1, 1]} : vector<2x64xf32> to vector<2x16xf32>
    %1068 = math.tanh %1067 : vector<2x16xf32>
    %1069 = arith.mulf %1065, %1006 : vector<2x16xf32>
    %1070 = arith.mulf %1064, %1068 : vector<2x16xf32>
    %1071 = arith.addf %1069, %1070 : vector<2x16xf32>
    %1072 = math.tanh %1071 : vector<2x16xf32>
    %1073 = arith.mulf %1066, %1072 : vector<2x16xf32>
    %1074 = arith.truncf %1073 : vector<2x16xf32> to vector<2x16xbf16>
    %c0_290 = arith.constant 0 : index
    %c1152_291 = arith.constant 1152 : index
    %1075 = vector.load %arg2[%c0_290, %c1152_291] : memref<32x1536xbf16, #tpu.memory_space<vmem>>, vector<16x32xbf16>
    %cst_292 = arith.constant dense<0.000000e+00> : vector<2x32xf32>
    %1076 = tpu.matmul %1074, %1075, %cst_292 {dimension_numbers = #tpu.dot_dimension_numbers<[1], [0], [0], [1], [0, 0, 1, 1], [], []>} : vector<2x16xbf16>, vector<16x32xbf16>, vector<2x32xf32> -> vector<2x32xf32>
    %1077 = arith.truncf %1031 : vector<2x8xf32> to vector<2x8xbf16>
    %c0_293 = arith.constant 0 : index
    %c1280_294 = arith.constant 1280 : index
    %1078 = vector.load %arg2[%c0_293, %c1280_294] : memref<32x1536xbf16, #tpu.memory_space<vmem>>, vector<8x32xbf16>
    %cst_295 = arith.constant dense<0.000000e+00> : vector<2x32xf32>
    %1079 = tpu.matmul %1077, %1078, %cst_295 {dimension_numbers = #tpu.dot_dimension_numbers<[1], [0], [0], [1], [0, 0, 1, 1], [], []>} : vector<2x8xbf16>, vector<8x32xbf16>, vector<2x32xf32> -> vector<2x32xf32>
    %1080 = arith.addf %1076, %1079 : vector<2x32xf32>
    %1081 = arith.addf %1080, %589 : vector<2x32xf32>
    %1082 = arith.negf %1081 : vector<2x32xf32>
    %1083 = math.exp %1082 : vector<2x32xf32>
    %cst_296 = arith.constant 1.000000e+00 : f32
    %1084 = vector.broadcast %cst_296 : f32 to vector<2x32xf32>
    %1085 = arith.addf %1084, %1083 : vector<2x32xf32>
    %1086 = arith.divf %1084, %1085 : vector<2x32xf32>
    %1087 = vector.extract_strided_slice %1086 {offsets = [0, 0], sizes = [2, 8], strides = [1, 1]} : vector<2x32xf32> to vector<2x8xf32>
    %1088 = vector.extract_strided_slice %1086 {offsets = [0, 8], sizes = [2, 8], strides = [1, 1]} : vector<2x32xf32> to vector<2x8xf32>
    %1089 = vector.extract_strided_slice %1086 {offsets = [0, 16], sizes = [2, 8], strides = [1, 1]} : vector<2x32xf32> to vector<2x8xf32>
    %1090 = vector.extract_strided_slice %1081 {offsets = [0, 24], sizes = [2, 8], strides = [1, 1]} : vector<2x32xf32> to vector<2x8xf32>
    %1091 = math.tanh %1090 : vector<2x8xf32>
    %1092 = arith.mulf %1088, %1029 : vector<2x8xf32>
    %1093 = arith.mulf %1087, %1091 : vector<2x8xf32>
    %1094 = arith.addf %1092, %1093 : vector<2x8xf32>
    %1095 = math.tanh %1094 : vector<2x8xf32>
    %1096 = arith.mulf %1089, %1095 : vector<2x8xf32>
    %1097 = arith.truncf %1096 : vector<2x8xf32> to vector<2x8xbf16>
    %c0_297 = arith.constant 0 : index
    %c1408_298 = arith.constant 1408 : index
    %1098 = vector.load %arg2[%c0_297, %c1408_298] : memref<32x1536xbf16, #tpu.memory_space<vmem>>, vector<8x4xbf16>
    %cst_299 = arith.constant dense<0.000000e+00> : vector<2x4xf32>
    %1099 = tpu.matmul %1097, %1098, %cst_299 {dimension_numbers = #tpu.dot_dimension_numbers<[1], [0], [0], [1], [0, 0, 1, 1], [], []>} : vector<2x8xbf16>, vector<8x4xbf16>, vector<2x4xf32> -> vector<2x4xf32>
    %1100 = vector.broadcast %1054 : vector<2x1xf32> to vector<2x4xf32>
    %1101 = vector.broadcast %593 : vector<1x4xf32> to vector<2x4xf32>
    %1102 = arith.mulf %1100, %1101 : vector<2x4xf32>
    %1103 = arith.addf %1099, %1102 : vector<2x4xf32>
    %1104 = arith.addf %1103, %592 : vector<2x4xf32>
    %1105 = arith.negf %1104 : vector<2x4xf32>
    %1106 = math.exp %1105 : vector<2x4xf32>
    %cst_300 = arith.constant 1.000000e+00 : f32
    %1107 = vector.broadcast %cst_300 : f32 to vector<2x4xf32>
    %1108 = arith.addf %1107, %1106 : vector<2x4xf32>
    %1109 = arith.divf %1107, %1108 : vector<2x4xf32>
    %1110 = vector.extract_strided_slice %1109 {offsets = [0, 0], sizes = [2, 1], strides = [1, 1]} : vector<2x4xf32> to vector<2x1xf32>
    %1111 = vector.extract_strided_slice %1109 {offsets = [0, 1], sizes = [2, 1], strides = [1, 1]} : vector<2x4xf32> to vector<2x1xf32>
    %1112 = vector.extract_strided_slice %1109 {offsets = [0, 2], sizes = [2, 1], strides = [1, 1]} : vector<2x4xf32> to vector<2x1xf32>
    %1113 = vector.extract_strided_slice %1104 {offsets = [0, 3], sizes = [2, 1], strides = [1, 1]} : vector<2x4xf32> to vector<2x1xf32>
    %1114 = math.tanh %1113 : vector<2x1xf32>
    %1115 = arith.mulf %1111, %1052 : vector<2x1xf32>
    %1116 = arith.mulf %1110, %1114 : vector<2x1xf32>
    %1117 = arith.addf %1115, %1116 : vector<2x1xf32>
    %1118 = math.tanh %1117 : vector<2x1xf32>
    %1119 = arith.mulf %1112, %1118 : vector<2x1xf32>
    %1120 = arith.truncf %1073 : vector<2x16xf32> to vector<2x16xbf16>
    %c0_301 = arith.constant 0 : index
    %c1024_302 = arith.constant 1024 : index
    %1121 = vector.load %arg2[%c0_301, %c1024_302] : memref<32x1536xbf16, #tpu.memory_space<vmem>>, vector<16x64xbf16>
    %cst_303 = arith.constant dense<0.000000e+00> : vector<2x64xf32>
    %1122 = tpu.matmul %1120, %1121, %cst_303 {dimension_numbers = #tpu.dot_dimension_numbers<[1], [0], [0], [1], [0, 0, 1, 1], [], []>} : vector<2x16xbf16>, vector<16x64xbf16>, vector<2x64xf32> -> vector<2x64xf32>
    %1123 = arith.addf %586, %1122 : vector<2x64xf32>
    %1124 = arith.negf %1123 : vector<2x64xf32>
    %1125 = math.exp %1124 : vector<2x64xf32>
    %cst_304 = arith.constant 1.000000e+00 : f32
    %1126 = vector.broadcast %cst_304 : f32 to vector<2x64xf32>
    %1127 = arith.addf %1126, %1125 : vector<2x64xf32>
    %1128 = arith.divf %1126, %1127 : vector<2x64xf32>
    %1129 = vector.extract_strided_slice %1128 {offsets = [0, 0], sizes = [2, 16], strides = [1, 1]} : vector<2x64xf32> to vector<2x16xf32>
    %1130 = vector.extract_strided_slice %1128 {offsets = [0, 16], sizes = [2, 16], strides = [1, 1]} : vector<2x64xf32> to vector<2x16xf32>
    %1131 = vector.extract_strided_slice %1128 {offsets = [0, 32], sizes = [2, 16], strides = [1, 1]} : vector<2x64xf32> to vector<2x16xf32>
    %1132 = vector.extract_strided_slice %1123 {offsets = [0, 48], sizes = [2, 16], strides = [1, 1]} : vector<2x64xf32> to vector<2x16xf32>
    %1133 = math.tanh %1132 : vector<2x16xf32>
    %1134 = arith.mulf %1130, %1071 : vector<2x16xf32>
    %1135 = arith.mulf %1129, %1133 : vector<2x16xf32>
    %1136 = arith.addf %1134, %1135 : vector<2x16xf32>
    %1137 = math.tanh %1136 : vector<2x16xf32>
    %1138 = arith.mulf %1131, %1137 : vector<2x16xf32>
    %1139 = arith.truncf %1138 : vector<2x16xf32> to vector<2x16xbf16>
    %c0_305 = arith.constant 0 : index
    %c1152_306 = arith.constant 1152 : index
    %1140 = vector.load %arg2[%c0_305, %c1152_306] : memref<32x1536xbf16, #tpu.memory_space<vmem>>, vector<16x32xbf16>
    %cst_307 = arith.constant dense<0.000000e+00> : vector<2x32xf32>
    %1141 = tpu.matmul %1139, %1140, %cst_307 {dimension_numbers = #tpu.dot_dimension_numbers<[1], [0], [0], [1], [0, 0, 1, 1], [], []>} : vector<2x16xbf16>, vector<16x32xbf16>, vector<2x32xf32> -> vector<2x32xf32>
    %1142 = arith.truncf %1096 : vector<2x8xf32> to vector<2x8xbf16>
    %c0_308 = arith.constant 0 : index
    %c1280_309 = arith.constant 1280 : index
    %1143 = vector.load %arg2[%c0_308, %c1280_309] : memref<32x1536xbf16, #tpu.memory_space<vmem>>, vector<8x32xbf16>
    %cst_310 = arith.constant dense<0.000000e+00> : vector<2x32xf32>
    %1144 = tpu.matmul %1142, %1143, %cst_310 {dimension_numbers = #tpu.dot_dimension_numbers<[1], [0], [0], [1], [0, 0, 1, 1], [], []>} : vector<2x8xbf16>, vector<8x32xbf16>, vector<2x32xf32> -> vector<2x32xf32>
    %1145 = arith.addf %1141, %1144 : vector<2x32xf32>
    %1146 = arith.addf %1145, %589 : vector<2x32xf32>
    %1147 = arith.negf %1146 : vector<2x32xf32>
    %1148 = math.exp %1147 : vector<2x32xf32>
    %cst_311 = arith.constant 1.000000e+00 : f32
    %1149 = vector.broadcast %cst_311 : f32 to vector<2x32xf32>
    %1150 = arith.addf %1149, %1148 : vector<2x32xf32>
    %1151 = arith.divf %1149, %1150 : vector<2x32xf32>
    %1152 = vector.extract_strided_slice %1151 {offsets = [0, 0], sizes = [2, 8], strides = [1, 1]} : vector<2x32xf32> to vector<2x8xf32>
    %1153 = vector.extract_strided_slice %1151 {offsets = [0, 8], sizes = [2, 8], strides = [1, 1]} : vector<2x32xf32> to vector<2x8xf32>
    %1154 = vector.extract_strided_slice %1151 {offsets = [0, 16], sizes = [2, 8], strides = [1, 1]} : vector<2x32xf32> to vector<2x8xf32>
    %1155 = vector.extract_strided_slice %1146 {offsets = [0, 24], sizes = [2, 8], strides = [1, 1]} : vector<2x32xf32> to vector<2x8xf32>
    %1156 = math.tanh %1155 : vector<2x8xf32>
    %1157 = arith.mulf %1153, %1094 : vector<2x8xf32>
    %1158 = arith.mulf %1152, %1156 : vector<2x8xf32>
    %1159 = arith.addf %1157, %1158 : vector<2x8xf32>
    %1160 = math.tanh %1159 : vector<2x8xf32>
    %1161 = arith.mulf %1154, %1160 : vector<2x8xf32>
    %1162 = arith.truncf %1161 : vector<2x8xf32> to vector<2x8xbf16>
    %c0_312 = arith.constant 0 : index
    %c1408_313 = arith.constant 1408 : index
    %1163 = vector.load %arg2[%c0_312, %c1408_313] : memref<32x1536xbf16, #tpu.memory_space<vmem>>, vector<8x4xbf16>
    %cst_314 = arith.constant dense<0.000000e+00> : vector<2x4xf32>
    %1164 = tpu.matmul %1162, %1163, %cst_314 {dimension_numbers = #tpu.dot_dimension_numbers<[1], [0], [0], [1], [0, 0, 1, 1], [], []>} : vector<2x8xbf16>, vector<8x4xbf16>, vector<2x4xf32> -> vector<2x4xf32>
    %1165 = vector.broadcast %1119 : vector<2x1xf32> to vector<2x4xf32>
    %1166 = vector.broadcast %593 : vector<1x4xf32> to vector<2x4xf32>
    %1167 = arith.mulf %1165, %1166 : vector<2x4xf32>
    %1168 = arith.addf %1164, %1167 : vector<2x4xf32>
    %1169 = arith.addf %1168, %592 : vector<2x4xf32>
    %1170 = arith.negf %1169 : vector<2x4xf32>
    %1171 = math.exp %1170 : vector<2x4xf32>
    %cst_315 = arith.constant 1.000000e+00 : f32
    %1172 = vector.broadcast %cst_315 : f32 to vector<2x4xf32>
    %1173 = arith.addf %1172, %1171 : vector<2x4xf32>
    %1174 = arith.divf %1172, %1173 : vector<2x4xf32>
    %1175 = vector.extract_strided_slice %1174 {offsets = [0, 0], sizes = [2, 1], strides = [1, 1]} : vector<2x4xf32> to vector<2x1xf32>
    %1176 = vector.extract_strided_slice %1174 {offsets = [0, 1], sizes = [2, 1], strides = [1, 1]} : vector<2x4xf32> to vector<2x1xf32>
    %1177 = vector.extract_strided_slice %1174 {offsets = [0, 2], sizes = [2, 1], strides = [1, 1]} : vector<2x4xf32> to vector<2x1xf32>
    %1178 = vector.extract_strided_slice %1169 {offsets = [0, 3], sizes = [2, 1], strides = [1, 1]} : vector<2x4xf32> to vector<2x1xf32>
    %1179 = math.tanh %1178 : vector<2x1xf32>
    %1180 = arith.mulf %1176, %1117 : vector<2x1xf32>
    %1181 = arith.mulf %1175, %1179 : vector<2x1xf32>
    %1182 = arith.addf %1180, %1181 : vector<2x1xf32>
    %1183 = math.tanh %1182 : vector<2x1xf32>
    %1184 = arith.mulf %1177, %1183 : vector<2x1xf32>
    %1185 = arith.truncf %1138 : vector<2x16xf32> to vector<2x16xbf16>
    %c0_316 = arith.constant 0 : index
    %c1024_317 = arith.constant 1024 : index
    %1186 = vector.load %arg2[%c0_316, %c1024_317] : memref<32x1536xbf16, #tpu.memory_space<vmem>>, vector<16x64xbf16>
    %cst_318 = arith.constant dense<0.000000e+00> : vector<2x64xf32>
    %1187 = tpu.matmul %1185, %1186, %cst_318 {dimension_numbers = #tpu.dot_dimension_numbers<[1], [0], [0], [1], [0, 0, 1, 1], [], []>} : vector<2x16xbf16>, vector<16x64xbf16>, vector<2x64xf32> -> vector<2x64xf32>
    %1188 = arith.addf %586, %1187 : vector<2x64xf32>
    %1189 = arith.negf %1188 : vector<2x64xf32>
    %1190 = math.exp %1189 : vector<2x64xf32>
    %cst_319 = arith.constant 1.000000e+00 : f32
    %1191 = vector.broadcast %cst_319 : f32 to vector<2x64xf32>
    %1192 = arith.addf %1191, %1190 : vector<2x64xf32>
    %1193 = arith.divf %1191, %1192 : vector<2x64xf32>
    %1194 = vector.extract_strided_slice %1193 {offsets = [0, 0], sizes = [2, 16], strides = [1, 1]} : vector<2x64xf32> to vector<2x16xf32>
    %1195 = vector.extract_strided_slice %1193 {offsets = [0, 16], sizes = [2, 16], strides = [1, 1]} : vector<2x64xf32> to vector<2x16xf32>
    %1196 = vector.extract_strided_slice %1193 {offsets = [0, 32], sizes = [2, 16], strides = [1, 1]} : vector<2x64xf32> to vector<2x16xf32>
    %1197 = vector.extract_strided_slice %1188 {offsets = [0, 48], sizes = [2, 16], strides = [1, 1]} : vector<2x64xf32> to vector<2x16xf32>
    %1198 = math.tanh %1197 : vector<2x16xf32>
    %1199 = arith.mulf %1195, %1136 : vector<2x16xf32>
    %1200 = arith.mulf %1194, %1198 : vector<2x16xf32>
    %1201 = arith.addf %1199, %1200 : vector<2x16xf32>
    %1202 = math.tanh %1201 : vector<2x16xf32>
    %1203 = arith.mulf %1196, %1202 : vector<2x16xf32>
    %1204 = arith.truncf %1203 : vector<2x16xf32> to vector<2x16xbf16>
    %c0_320 = arith.constant 0 : index
    %c1152_321 = arith.constant 1152 : index
    %1205 = vector.load %arg2[%c0_320, %c1152_321] : memref<32x1536xbf16, #tpu.memory_space<vmem>>, vector<16x32xbf16>
    %cst_322 = arith.constant dense<0.000000e+00> : vector<2x32xf32>
    %1206 = tpu.matmul %1204, %1205, %cst_322 {dimension_numbers = #tpu.dot_dimension_numbers<[1], [0], [0], [1], [0, 0, 1, 1], [], []>} : vector<2x16xbf16>, vector<16x32xbf16>, vector<2x32xf32> -> vector<2x32xf32>
    %1207 = arith.truncf %1161 : vector<2x8xf32> to vector<2x8xbf16>
    %c0_323 = arith.constant 0 : index
    %c1280_324 = arith.constant 1280 : index
    %1208 = vector.load %arg2[%c0_323, %c1280_324] : memref<32x1536xbf16, #tpu.memory_space<vmem>>, vector<8x32xbf16>
    %cst_325 = arith.constant dense<0.000000e+00> : vector<2x32xf32>
    %1209 = tpu.matmul %1207, %1208, %cst_325 {dimension_numbers = #tpu.dot_dimension_numbers<[1], [0], [0], [1], [0, 0, 1, 1], [], []>} : vector<2x8xbf16>, vector<8x32xbf16>, vector<2x32xf32> -> vector<2x32xf32>
    %1210 = arith.addf %1206, %1209 : vector<2x32xf32>
    %1211 = arith.addf %1210, %589 : vector<2x32xf32>
    %1212 = arith.negf %1211 : vector<2x32xf32>
    %1213 = math.exp %1212 : vector<2x32xf32>
    %cst_326 = arith.constant 1.000000e+00 : f32
    %1214 = vector.broadcast %cst_326 : f32 to vector<2x32xf32>
    %1215 = arith.addf %1214, %1213 : vector<2x32xf32>
    %1216 = arith.divf %1214, %1215 : vector<2x32xf32>
    %1217 = vector.extract_strided_slice %1216 {offsets = [0, 0], sizes = [2, 8], strides = [1, 1]} : vector<2x32xf32> to vector<2x8xf32>
    %1218 = vector.extract_strided_slice %1216 {offsets = [0, 8], sizes = [2, 8], strides = [1, 1]} : vector<2x32xf32> to vector<2x8xf32>
    %1219 = vector.extract_strided_slice %1216 {offsets = [0, 16], sizes = [2, 8], strides = [1, 1]} : vector<2x32xf32> to vector<2x8xf32>
    %1220 = vector.extract_strided_slice %1211 {offsets = [0, 24], sizes = [2, 8], strides = [1, 1]} : vector<2x32xf32> to vector<2x8xf32>
    %1221 = math.tanh %1220 : vector<2x8xf32>
    %1222 = arith.mulf %1218, %1159 : vector<2x8xf32>
    %1223 = arith.mulf %1217, %1221 : vector<2x8xf32>
    %1224 = arith.addf %1222, %1223 : vector<2x8xf32>
    %1225 = math.tanh %1224 : vector<2x8xf32>
    %1226 = arith.mulf %1219, %1225 : vector<2x8xf32>
    %1227 = arith.truncf %1226 : vector<2x8xf32> to vector<2x8xbf16>
    %c0_327 = arith.constant 0 : index
    %c1408_328 = arith.constant 1408 : index
    %1228 = vector.load %arg2[%c0_327, %c1408_328] : memref<32x1536xbf16, #tpu.memory_space<vmem>>, vector<8x4xbf16>
    %cst_329 = arith.constant dense<0.000000e+00> : vector<2x4xf32>
    %1229 = tpu.matmul %1227, %1228, %cst_329 {dimension_numbers = #tpu.dot_dimension_numbers<[1], [0], [0], [1], [0, 0, 1, 1], [], []>} : vector<2x8xbf16>, vector<8x4xbf16>, vector<2x4xf32> -> vector<2x4xf32>
    %1230 = vector.broadcast %1184 : vector<2x1xf32> to vector<2x4xf32>
    %1231 = vector.broadcast %593 : vector<1x4xf32> to vector<2x4xf32>
    %1232 = arith.mulf %1230, %1231 : vector<2x4xf32>
    %1233 = arith.addf %1229, %1232 : vector<2x4xf32>
    %1234 = arith.addf %1233, %592 : vector<2x4xf32>
    %1235 = arith.negf %1234 : vector<2x4xf32>
    %1236 = math.exp %1235 : vector<2x4xf32>
    %cst_330 = arith.constant 1.000000e+00 : f32
    %1237 = vector.broadcast %cst_330 : f32 to vector<2x4xf32>
    %1238 = arith.addf %1237, %1236 : vector<2x4xf32>
    %1239 = arith.divf %1237, %1238 : vector<2x4xf32>
    %1240 = vector.extract_strided_slice %1239 {offsets = [0, 0], sizes = [2, 1], strides = [1, 1]} : vector<2x4xf32> to vector<2x1xf32>
    %1241 = vector.extract_strided_slice %1239 {offsets = [0, 1], sizes = [2, 1], strides = [1, 1]} : vector<2x4xf32> to vector<2x1xf32>
    %1242 = vector.extract_strided_slice %1239 {offsets = [0, 2], sizes = [2, 1], strides = [1, 1]} : vector<2x4xf32> to vector<2x1xf32>
    %1243 = vector.extract_strided_slice %1234 {offsets = [0, 3], sizes = [2, 1], strides = [1, 1]} : vector<2x4xf32> to vector<2x1xf32>
    %1244 = math.tanh %1243 : vector<2x1xf32>
    %1245 = arith.mulf %1241, %1182 : vector<2x1xf32>
    %1246 = arith.mulf %1240, %1244 : vector<2x1xf32>
    %1247 = arith.addf %1245, %1246 : vector<2x1xf32>
    %1248 = math.tanh %1247 : vector<2x1xf32>
    %1249 = arith.mulf %1242, %1248 : vector<2x1xf32>
    %1250 = tpu.concatenate %664, %729, %794, %859, %924, %989, %1054, %1119, %1184, %1249 in 1 : vector<2x1xf32>, vector<2x1xf32>, vector<2x1xf32>, vector<2x1xf32>, vector<2x1xf32>, vector<2x1xf32>, vector<2x1xf32>, vector<2x1xf32>, vector<2x1xf32>, vector<2x1xf32> -> vector<2x10xf32>
    %cst_331 = arith.constant 0.000000e+00 : f32
    %1251 = vector.broadcast %cst_331 : f32 to vector<2x1xf32>
    %1252 = vector.extract_strided_slice %1250 {offsets = [0, 0], sizes = [2, 9], strides = [1, 1]} : vector<2x10xf32> to vector<2x9xf32>
    %1253 = tpu.concatenate %1251, %1252 in 1 : vector<2x1xf32>, vector<2x9xf32> -> vector<2x10xf32>
    %1254 = vector.extract_strided_slice %1250 {offsets = [0, 1], sizes = [2, 9], strides = [1, 1]} : vector<2x10xf32> to vector<2x9xf32>
    %1255 = tpu.concatenate %1254, %1251 in 1 : vector<2x9xf32>, vector<2x1xf32> -> vector<2x10xf32>
    %c0_332 = arith.constant 0 : index
    %1256 = memref.load %arg4[%c0_332] : memref<3xf32, #tpu.memory_space<smem>>
    %c1 = arith.constant 1 : index
    %1257 = memref.load %arg4[%c1] : memref<3xf32, #tpu.memory_space<smem>>
    %c2 = arith.constant 2 : index
    %1258 = memref.load %arg4[%c2] : memref<3xf32, #tpu.memory_space<smem>>
    %c0_333 = arith.constant 0 : index
    %1259 = memref.load %arg5[%c0_333] : memref<1xf32, #tpu.memory_space<smem>>
    %1260 = vector.broadcast %1256 : f32 to vector<2x10xf32>
    %1261 = arith.mulf %1260, %1253 : vector<2x10xf32>
    %1262 = vector.broadcast %1257 : f32 to vector<2x10xf32>
    %1263 = arith.mulf %1262, %1250 : vector<2x10xf32>
    %1264 = arith.addf %1261, %1263 : vector<2x10xf32>
    %1265 = vector.broadcast %1258 : f32 to vector<2x10xf32>
    %1266 = arith.mulf %1265, %1255 : vector<2x10xf32>
    %1267 = arith.addf %1264, %1266 : vector<2x10xf32>
    %1268 = vector.broadcast %1259 : f32 to vector<2x10xf32>
    %1269 = arith.addf %1267, %1268 : vector<2x10xf32>
    %1270 = arith.negf %1269 : vector<2x10xf32>
    %1271 = math.exp %1270 : vector<2x10xf32>
    %cst_334 = arith.constant 1.000000e+00 : f32
    %1272 = vector.broadcast %cst_334 : f32 to vector<2x10xf32>
    %1273 = arith.addf %1272, %1271 : vector<2x10xf32>
    %1274 = arith.divf %1272, %1273 : vector<2x10xf32>
    %c0_335 = arith.constant 0 : index
    %c0_336 = arith.constant 0 : index
    %1275 = vector.load %arg6[%c0_335, %c0_336] : memref<2x10xf32, #tpu.memory_space<vmem>>, vector<2x10xf32>
    tpu.vector_store %arg6[%c0_335, %c0_336], %1274 {strides = array<i32>} : memref<2x10xf32, #tpu.memory_space<vmem>>, vector<2x10xf32>,
    return
  }
}

</mosaic_0001>

<bundles_post_ra>
// kernel: tpu_custom_call.1
= control target key start
LH: loop header
LB: loop body
LE: loop exit
PB: predicated region body
PF: predicated region fallthrough
CT: control target
= control target key end

     0   :  { %15 = vsyncpa [#allocation4], 0  ;;  %s8604_s0 = inlined_call_operand.vmem [shape: f32[2,8], index: 0, kind: input, shape index: {}]   ;;  %s8605_s1 = inlined_call_operand.vmem [shape: f32[2,32], index: 1, kind: input, shape index: {}]   ;;  %s8606_s2 = inlined_call_operand.hbm [shape: bf16[32,1536], index: 2, kind: input, shape index: {}]   ;;  %s8607_s3 = inlined_call_operand.vmem [shape: f32[1,1280], index: 3, kind: input, shape index: {}]   ;;  %s8608_s4 = inlined_call_operand.vmem [shape: f32[3], index: 4, kind: input, shape index: {}]   ;;  %s8609_s5 = inlined_call_operand.<no memory space> [shape: f32[1], index: 5, kind: input, shape index: {}]   ;;  %s8610_s6 = inlined_call_operand.hbm [shape: f32[2,10], index: 6, kind: output, shape index: {0}]   ;;  %s8611_s7 = inlined_call_operand.hbm [shape: f32[2,32], index: 7, kind: output, shape index: {1}]   ;;  %s8612_s8 = inlined_call_operand.hbm [shape: f32[2,32], index: 8, kind: output, shape index: {2}]  }
   0x1   :  { %16 = vsyncpa [#allocation6], 0 }
   0x2   :  { %17 = vsyncpa [#allocation5], 0 }
   0x3   :  { %18 = vsyncpa [#allocation10], 0  ;;  %s7315_s27 = smov [#allocation3]   ;;  %s43_s9 = sshll.u32 %s8608_s4, 4  ;;  %s44_s9 = int_to_ptr.vmem [resolvable:$true] %s43_s9 }
   0x4   :  { %s28_s28 = sshll.u32 %s7315_s27, 4  ;;  %s7207_s12 = scalar_lea.hbm %s8606_s2, 3072  ;;  %s29_s28 = int_to_ptr.vmem [resolvable:$true] %s28_s28 }
   0x5   :  { %p7208_p0 = scmp.ne.s32.totalorder %s8606_s2, %s7207_s12  ;;  %p7211_p1 = scmp.lt.u32.totalorder %s7207_s12, %s8606_s2 }
   0x7   :  { %p7213_p2 = pnand %p7211_p1, %p7208_p0 }
   0x9   :  { %7216 = shalt.err (!%p7213_p2)
}
   0xa   :  { %s7217_s17 = scalar_lea.vmem %s29_s28, 3072  ;;  %p7222_p4 = scmp.lt.s32.totalorder %s29_s28, %s29_s28 }
   0xb   :  { %p7218_p3 = scmp.ne.s32.totalorder %s29_s28, %s7217_s17  ;;  %p7223_p5 = scmp.lt.s32.totalorder %s7217_s17, %s7217_s17 }
   0xd   :  { %p7224_p6 = por %p7223_p5, %p7222_p4 }
   0xf   :  { %p7225_p7 = pnand %p7224_p6, %p7218_p3 }
  0x11   :  { %7228 = shalt.err (!%p7225_p7)
}
  0x12   :  { %s7316_s4 = smov 768   ;;  %s7317_s18 = smov 48  }
  0x13   :  { %34 = dma.hbm_to_vmem [thread:$0]  %s8606_s2, 3072, %s29_s28, [#allocation4], %s7316_s4, %s7316_s4, %s7317_s18  }
  0x14   :  { %s7229_s21 = scalar_lea.vmem %s44_s9, 16  ;;  %p7234_p9 = scmp.lt.s32.totalorder %s44_s9, %s44_s9 }
  0x15   :  { %p7230_p8 = scmp.ne.s32.totalorder %s44_s9, %s7229_s21  ;;  %p7235_p10 = scmp.lt.s32.totalorder %s7229_s21, %s7229_s21 }
  0x17   :  { %p7236_p11 = por %p7235_p10, %p7234_p9 }
  0x19   :  { %p7237_p12 = pnand %p7236_p11, %p7230_p8 }
  0x1b   :  { %7240 = shalt.err (!%p7237_p12)
}
  0x1c   :  { %s7318_s22 = smov [#allocation7]  }
  0x1d   :  { %46 = dma.vmem_to_smem %s44_s9, 16, %s7318_s22, [#allocation6]  }
  0x1e   :  { %7307 = dma.done.wait [#allocation4], 3072  }
  0x1f   :  { %7308 = vsyncadd [#allocation4], 4294964224 }
  0x20   :  { %7309 = dma.done.wait [#allocation6], 16  }
  0x21   :  { %7310 = vsyncadd [#allocation6], 4294967280 }
  0x22   :  { %55 = sfence }
  0x23   :  { %v104_v0 = vld [vmem:[#allocation3] sm:$0xf]  ;;  %vm109_vm0 = vcmask 1043456   ;;  %v58_v1 = vlaneseq  ;;  %v7319_v2 = vmov 0.0   ;;  %vm7320_vm1 = vmmov 0   ;;  %s7322_s27 = smov 104  }
  0x24   :  { %6131 = vmatprep.subr.bf16.mxu0 %v7319_v2  ;;  %v7406_v3 = vsel %vm109_vm0, %v104_v0, 0  ;;  %6137 = vmatprep.subr.bf16.mxu1 %v7319_v2  ;;  %v57_v5 = vld [vmem:[%s8604_s0] sm:$0x3]  ;;  %v7321_v8 = vmov 0   ;;  %s7323_s28 = smov 8   ;;  %vm266_vm2 = vcmask 1041409  }
  0x25   :  { %6132 = vmatpush3.bf16.msra.mxu0 %v7406_v3  ;;  %6133 = vmatprep.mubr.msk.bf16.mxu0 %vm7320_vm1, %v7319_v2  ;;  %v59_v4 = vshrl.u32 %v58_v1, 7  ;;  %v5789_v12 = vld [vmem:[%s8607_s3] ss:$0 sm:$0xff]  ;;  %v5790_v15 = vld [vmem:[%s8607_s3 + $0x1] ss:$0 sm:$0xff]  ;;  %s7324_s29 = smov 112  }
  0x26   :  { %6139 = vmatprep.mubr.msk.bf16.mxu1 %vm7320_vm1, %v7319_v2  ;;  %6143 = vmatprep.subr.bf16.mxu0 %v7319_v2  ;;  %v7444_v47 = vld [vmem:[#allocation3 + $0x8] ss:$48 sps:$4 sm:$0xff]   ;;  %v209_v48 = vld [vmem:[#allocation3 + $0x4] sm:$0xf]  ;;  %v7447_v49 = vld [vmem:[#allocation3 + $0x10] ss:$48 sps:$4 sm:$0xff]  }
  0x27   :  { %v67_v6 = vsub.s32 1, %v59_v4  ;;  %v60_v7 = vsub.s32 0, %v59_v4  ;;  %6138 = vmatpush3.bf16.msra.mxu1 %v7444_v47  ;;  %v7450_v50 = vsel %vm109_vm0, %v209_v48, 0  ;;  %v7458_v52 = vld [vmem:[#allocation3 + $0x70] ss:$48 sps:$4 sm:$0xff]   ;;  %vm105_vm3 = vcmask 64512  }
  0x28   :  { %6134 = vmatmul.mubr.bf16.vlgmr.msra.gmra.mrb[0].mxu0 %v7321_v8  ;;  %6149 = vmatprep.subr.bf16.mxu1 %v7319_v2  ;;  %s7325_s10 = smov 80   ;;  %s7326_s11 = smov 16   ;;  %vm218_vm4 = vcmask 130048   ;;  %vm361_vm5 = vcmask 261120   ;;  %vm2929_vm6 = vcmask 254976   ;;  %vm5698_vm7 = vcmask 7168  }
  0x29   :  { %v68_v9 = vrot.slane %v57_v5, %v67_v6  ;;  %6145 = vmatprep.mubr.msk.bf16.mxu0 %vm7320_vm1, %v7319_v2  ;;  %v61_v10 = vrot.slane %v57_v5, %v60_v7  ;;  %6144 = vmatpush3.bf16.msra.mxu0 %v7450_v50  ;;  %s7327_s12 = smov 96   ;;  %s7328_s15 = smov 32   ;;  %vm5700_vm8 = vcmask 15360   ;;  %vm5702_vm9 = vcmask 23552  }
  0x2a   :  { %6157 = vmatprep.subr.bf16.mxu0 %v7319_v2  ;;  %6140 = vmatmul.mubr.bf16.vlgmr.msra.gmra.mrb[0].mxu1 %v7321_v8  ;;  %s7329_s16 = smov 64   ;;  %s7337_s20 = smov 2   ;;  %vm5704_vm10 = vcmask 31744   ;;  %vm5706_vm11 = vcmask 39936   ;;  %vm5708_vm12 = vcmask 48128   ;;  %vm5710_vm13 = vcmask 56320  }
  0x2b   :  { %70 = vbcast.lane.b32.xlu0 %v68_v9, 256  ;;  %6150 = vmatpush3.bf16.msra.mxu1 %v7447_v49  ;;  %s7338_s21 = smov 4   ;;  %s7339_s22 = smov 6   ;;  %vm5713_vm14 = vcmask 72704  }
  0x2c   :  { %6153 = vmatprep.mubr.msk.bf16.mxu1 %vm7320_vm1, %v7319_v2  ;;  %6151 = vmatprep.subr.bf16.mxu1 %v7319_v2  ;;  %s7340_s2 = smov 7  }
  0x2f   :  { %63 = vbcast.lane.b32.xlu0 %v61_v10, 256  ;;  %6152 = vmatpush3.bf16.msra.mxu1 %v7458_v52 }
  0x30   :  { %6163 = vmatprep.subr.bf16.mxu1 %v7319_v2 }
  0x32   :  { %6154 = vmatmul.mubr.bf16.vlgmr.msra.gmra.mrb[4].mxu1 %v7321_v8 }
  0x33   :  { %6164 = vmatpush3.bf16.msra.mxu1 %v7406_v3  ;;  %6165 = vmatprep.mubr.msk.bf16.mxu1 %vm7320_vm1, %v7319_v2 }
  0x34   :  { %6175 = vmatprep.subr.bf16.mxu1 %v7319_v2 }
  0x9d   :  { %v71_v11 = vpop.permute.xlu0 %70 }
  0x9e   :  { %v80_v13 = vmul.f32 %v5789_v12, %v71_v11 }
  0xa0   :  { %v7427_v17 = vadd.f32 %v5790_v15, %v80_v13 }
  0xa1   :  { %v64_v14 = vpop.permute.xlu0 %63 }
  0xa2   :  { %v79_v16 = vmul.f32 %v5789_v12, %v64_v14  ;;  %v7485_v12 = vld [vmem:[%s8607_s3 + $0x2] ss:$0 sm:$0xff] }
  0xa4   :  { %v7429_v21 = vadd.f32 %v5790_v15, %v79_v16 }
  0xfb   :  { %v147_v18 = vpop.f32.mrb[0].mxu0 }
  0xfc   :  { %v154_v19 = vrot.slane %v147_v18, 1  ;;  %v6135_v20 = vpop.f32.mrb[1].mxu0  ;;  %v157_v25 = vadd.f32 %v147_v18, %v7429_v21 }
  0xfd   :  { %v150_v22 = vpop.f32.mrb[2].mxu0  ;;  %v255_v0 = vpop.f32.mrb[0].mxu1 }
  0xfe   :  { %v158_v23 = vadd.f32 %v154_v19, %v7427_v17  ;;  %v6136_v24 = vpop.f32.mrb[3].mxu0  ;;  %v5793_v29 = vmul.f32 -1.442695, %v157_v25  ;;  %v6141_v1 = vpop.f32.mrb[1].mxu1 }
  0xff   :  { %v258_v4 = vpop.f32.mrb[2].mxu1 }
 0x100   :  { %6694 = vtanh.f32 %v158_v23  ;;  %v5794_v28 = vmul.f32 -1.442695, %v158_v23  ;;  %v6142_v5 = vpop.f32.mrb[3].mxu1 }
 0x101   :  { %6696 = vtanh.f32 %v157_v25 }
 0x102   :  { %6698 = vpow2.f32 %v5794_v28 }
 0x103   :  { %6700 = vpow2.f32 %v5793_v29 }
 0x105   :  { %v7472_v6 = vpop.f32.mrb[4].mxu1 }
 0x106   :  { %v6155_v7 = vpop.f32.mrb[5].mxu1 }
 0x107   :  { %v401_v9 = vpop.f32.mrb[6].mxu1 }
 0x108   :  { %v6156_v10 = vpop.f32.mrb[7].mxu1 }
 0x10a   :  { %v6695_v26 = vpop.eup %6694 }
 0x10b   :  { %179 = vrot.lane.b32.xlu1 %v6695_v26, %s7322_s27  ;;  %v6697_v27 = vpop.eup %6696 }
 0x10c   :  { %v6699_v30 = vpop.eup %6698 }
 0x10d   :  { %v166_v31 = vadd.f32 1.0, %v6699_v30  ;;  %v6701_v32 = vpop.eup %6700 }
 0x10e   :  { %v165_v33 = vadd.f32 1.0, %v6701_v32 }
 0x10f   :  { %177 = vrot.lane.b32.xlu1 %v6697_v27, %s7322_s27  ;;  %6702 = vrcp.f32 %v166_v31 }
 0x110   :  { %6704 = vrcp.f32 %v165_v33 }
 0x119   :  { %v6703_v34 = vpop.eup %6702 }
 0x11a   :  { %v6705_v37 = vpop.eup %6704  ;;  %v174_v40 = vmul.f32 0.0, %v6703_v34 }
 0x11b   :  { %v173_v43 = vmul.f32 0.0, %v6705_v37 }
 0x17d   :  { %v180_v35 = vpop.permute.xlu1 %179 }
 0x17e   :  { %v184_v36 = vmul.f32 %v6703_v34, %v180_v35 }
 0x180   :  { %189 = vrot.lane.b32.xlu0 %v184_v36, %s7323_s28 }
 0x181   :  { %v178_v38 = vpop.permute.xlu1 %177 }
 0x182   :  { %v183_v39 = vmul.f32 %v6705_v37, %v178_v38 }
 0x184   :  { %187 = vrot.lane.b32.xlu1 %v183_v39, %s7323_s28 }
 0x1f2   :  { %v190_v41 = vpop.permute.xlu0 %189 }
 0x1f3   :  { %v7437_v42 = vadd.f32 %v190_v41, %v174_v40 }
 0x1f5   :  { %6706 = vtanh.f32 %v7437_v42 }
 0x1f6   :  { %v188_v44 = vpop.permute.xlu1 %187 }
 0x1f7   :  { %v7440_v45 = vadd.f32 %v188_v44, %v173_v43 }
 0x1f9   :  { %6708 = vtanh.f32 %v7440_v45 }
 0x1ff   :  { %v6707_v46 = vpop.eup %6706 }
 0x200   :  { %201 = vrot.lane.b32.xlu0 %v6707_v46, %s7323_s28 }
 0x203   :  { %v6709_v51 = vpop.eup %6708 }
 0x204   :  { %199 = vrot.lane.b32.xlu1 %v6709_v51, %s7323_s28 }
 0x272   :  { %v202_v53 = vpop.permute.xlu0 %201 }
 0x273   :  { %v206_v54 = vmul.f32 %v6703_v34, %v202_v53 }
 0x275   :  { %v208_v55 = vpack.c.bf16 %v206_v54, %v206_v54 }
 0x276   :  { %v200_v56 = vpop.permute.xlu1 %199 }
 0x277   :  { %v264_v57 = vunpack.c.l.b16 %v208_v55  ;;  %v205_v58 = vmul.f32 %v6705_v37, %v200_v56 }
 0x279   :  { %v207_v59 = vpack.c.bf16 %v205_v58, %v205_v58  ;;  %v265_v60 = vrot.slane %v264_v57, 7  ;;  %v544_v57 = vrot.slane %v7437_v42, 7  ;;  %v543_v58 = vrot.slane %v7440_v45, 7  ;;  %v7508_v42 = vld [vmem:[#allocation3 + $0xc] ss:$48 sps:$4 sm:$0xff]  }
 0x27b   :  { %v263_v61 = vunpack.c.l.b16 %v207_v59 }
 0x27d   :  { %v267_v62 = vsel %vm266_vm2, %v265_v60, %v263_v61 }
 0x27e   :  { %v268_v63 = vpack.c.b16 %v267_v62, %v267_v62 }
 0x280   :  { %269 = vrot.lane.b32.xlu0 %v268_v63, %s7324_s29 }
 0x2f2   :  { %v270_v11 = vpop.permute.xlu0 %269 }
 0x2f3   :  { %6146 = vmatmul.mubr.msk.bf16.vlgmr.msra.gmra.mrb[4].mxu0 %vm105_vm3, %v270_v11  ;;  %6166 = vmatmul.mubr.msk.bf16.vlgmr.msra.gmra.mrb[8].mxu1 %vm105_vm3, %v270_v11 }
 0x2f4   :  { %6159 = vmatprep.mubr.msk.bf16.mxu0 %vm7320_vm1, %v7319_v2  ;;  %6176 = vmatpush3.bf16.msra.mxu1 %v7450_v50 }
 0x2f5   :  { %6177 = vmatprep.mubr.msk.bf16.mxu1 %vm7320_vm1, %v7319_v2  ;;  %6189 = vmatprep.subr.bf16.mxu1 %v7319_v2 }
 0x2f6   :  { %6158 = vmatpush3.bf16.msra.mxu0 %v7508_v42 }
 0x2f7   :  { %6169 = vmatprep.subr.bf16.mxu0 %v7319_v2 }
 0x3c6   :  { %v311_v13 = vpop.f32.mrb[4].mxu0  ;;  %v515_v14 = vpop.f32.mrb[8].mxu1 }
 0x3c7   :  { %v312_v15 = vadd.f32 %v311_v13, %v255_v0  ;;  %v522_v16 = vrot.slane %v515_v14, 7  ;;  %v6147_v18 = vpop.f32.mrb[5].mxu0  ;;  %v6167_v19 = vpop.f32.mrb[9].mxu1  ;;  %v526_v26 = vadd.f32 %v515_v14, %v7427_v17 }
 0x3c8   :  { %v314_v20 = vpop.f32.mrb[6].mxu0  ;;  %v518_v22 = vpop.f32.mrb[10].mxu1 }
 0x3c9   :  { %v317_v23 = vadd.f32 %v7485_v12, %v312_v15  ;;  %v6148_v24 = vpop.f32.mrb[7].mxu0  ;;  %v6168_v25 = vpop.f32.mrb[11].mxu1  ;;  %v525_v27 = vadd.f32 %v522_v16, %v7429_v21  ;;  %v5805_v32 = vmul.f32 -1.442695, %v526_v26 }
 0x3cb   :  { %6710 = vtanh.f32 %v317_v23  ;;  %v5797_v31 = vmul.f32 -1.442695, %v317_v23  ;;  %v5804_v33 = vmul.f32 -1.442695, %v525_v27 }
 0x3cc   :  { %6712 = vtanh.f32 %v526_v26 }
 0x3cd   :  { %6714 = vtanh.f32 %v525_v27  ;;  %v7540_v27 = vld [vmem:[%s8607_s3 + $0x3] ss:$0 sm:$0xff] }
 0x3ce   :  { %6716 = vpow2.f32 %v5797_v31 }
 0x3cf   :  { %6718 = vpow2.f32 %v5805_v32 }
 0x3d0   :  { %6720 = vpow2.f32 %v5804_v33 }
 0x3d5   :  { %v6711_v28 = vpop.eup %6710 }
 0x3d6   :  { %327 = vrot.lane.b32.xlu1 %v6711_v28, %s7325_s10  ;;  %v6713_v29 = vpop.eup %6712 }
 0x3d7   :  { %v6715_v30 = vpop.eup %6714 }
 0x3d8   :  { %551 = vrot.lane.b32.xlu0 %v6715_v30, %s7322_s27  ;;  %v6717_v34 = vpop.eup %6716 }
 0x3d9   :  { %v6719_v35 = vpop.eup %6718  ;;  %v321_v36 = vadd.f32 1.0, %v6717_v34 }
 0x3da   :  { %553 = vrot.lane.b32.xlu1 %v6713_v29, %s7322_s27  ;;  %v6721_v37 = vpop.eup %6720  ;;  %v534_v38 = vadd.f32 1.0, %v6719_v35 }
 0x3db   :  { %6722 = vrcp.f32 %v321_v36  ;;  %v533_v39 = vadd.f32 1.0, %v6721_v37 }
 0x3dc   :  { %6724 = vrcp.f32 %v534_v38 }
 0x3dd   :  { %6726 = vrcp.f32 %v533_v39 }
 0x3e5   :  { %v6723_v40 = vpop.eup %6722 }
 0x3e6   :  { %v6725_v44 = vpop.eup %6724  ;;  %v325_v55 = vmul.f32 0.0, %v6723_v40 }
 0x3e7   :  { %v6727_v46 = vpop.eup %6726  ;;  %v548_v61 = vmul.f32 %v6725_v44, %v544_v57 }
 0x3e8   :  { %v547_v60 = vmul.f32 %v6727_v46, %v543_v58 }
 0x448   :  { %v328_v41 = vpop.permute.xlu1 %327 }
 0x449   :  { %v330_v43 = vmul.f32 %v6723_v40, %v328_v41 }
 0x44a   :  { %v552_v48 = vpop.permute.xlu0 %551 }
 0x44b   :  { %332 = vrot.lane.b32.xlu0 %v330_v43, %s7326_s11  ;;  %v557_v53 = vmul.f32 %v6727_v46, %v552_v48 }
 0x44c   :  { %v554_v51 = vpop.permute.xlu1 %553 }
 0x44d   :  { %v558_v54 = vmul.f32 %v6725_v44, %v554_v51  ;;  %561 = vrot.lane.b32.xlu1 %v557_v53, %s7323_s28 }
 0x44f   :  { %563 = vrot.lane.b32.xlu0 %v558_v54, %s7323_s28 }
 0x4bd   :  { %v333_v56 = vpop.permute.xlu0 %332 }
 0x4be   :  { %v7498_v59 = vadd.f32 %v333_v56, %v325_v55 }
 0x4bf   :  { %v562_v62 = vpop.permute.xlu1 %561 }
 0x4c0   :  { %6728 = vtanh.f32 %v7498_v59  ;;  %v7501_v0 = vadd.f32 %v562_v62, %v547_v60 }
 0x4c1   :  { %v564_v63 = vpop.permute.xlu0 %563 }
 0x4c2   :  { %v7503_v1 = vadd.f32 %v564_v63, %v548_v61  ;;  %6730 = vtanh.f32 %v7501_v0 }
 0x4c4   :  { %6732 = vtanh.f32 %v7503_v1 }
 0x4ca   :  { %v6729_v4 = vpop.eup %6728 }
 0x4cb   :  { %338 = vrot.lane.b32.xlu1 %v6729_v4, %s7326_s11 }
 0x4cc   :  { %v6731_v45 = vpop.eup %6730 }
 0x4cd   :  { %573 = vrot.lane.b32.xlu0 %v6731_v45, %s7323_s28 }
 0x4ce   :  { %v6733_v5 = vpop.eup %6732 }
 0x4cf   :  { %575 = vrot.lane.b32.xlu1 %v6733_v5, %s7323_s28 }
 0x53d   :  { %v339_v7 = vpop.permute.xlu1 %338 }
 0x53e   :  { %v341_v9 = vmul.f32 %v6723_v40, %v339_v7 }
 0x53f   :  { %v574_v11 = vpop.permute.xlu0 %573 }
 0x540   :  { %v342_v10 = vpack.c.bf16 %v341_v9, %v341_v9  ;;  %v579_v13 = vmul.f32 %v6727_v46, %v574_v11 }
 0x541   :  { %v576_v14 = vpop.permute.xlu1 %575 }
 0x542   :  { %405 = vrot.lane.b32.xlu0 %v342_v10, %s7327_s12  ;;  %v580_v15 = vmul.f32 %v6725_v44, %v576_v14  ;;  %v581_v16 = vpack.c.bf16 %v579_v13, %v579_v13 }
 0x544   :  { %v582_v18 = vpack.c.bf16 %v580_v15, %v580_v15  ;;  %v625_v19 = vunpack.c.l.b16 %v581_v16 }
 0x546   :  { %v626_v20 = vunpack.c.l.b16 %v582_v18  ;;  %v627_v22 = vrot.slane %v625_v19, 1 }
 0x548   :  { %v628_v23 = vsel %vm266_vm2, %v626_v20, %v627_v22 }
 0x549   :  { %v629_v24 = vpack.c.b16 %v628_v23, %v628_v23 }
 0x54b   :  { %630 = vrot.lane.b32.xlu1 %v629_v24, %s7324_s29 }
 0x5b4   :  { %v406_v25 = vpop.permute.xlu0 %405 }
 0x5b5   :  { %6160 = vmatmul.mubr.msk.bf16.vlgmr.msra.gmra.mrb[8].mxu0 %vm218_vm4, %v406_v25 }
 0x5b6   :  { %6170 = vmatpush3.bf16.msra.mxu0 %v7444_v47  ;;  %6171 = vmatprep.mubr.msk.bf16.mxu0 %vm7320_vm1, %v7319_v2 }
 0x5b7   :  { %6181 = vmatprep.subr.bf16.mxu0 %v7319_v2 }
 0x5bd   :  { %6172 = vmatmul.mubr.msk.bf16.vlgmr.msra.gmra.mrb[12].mxu0 %vm218_vm4, %v406_v25  ;;  %v7526_v26 = vpop.permute.xlu1 %630 }
 0x5be   :  { %6182 = vmatpush3.bf16.msra.mxu0 %v7447_v49  ;;  %6185 = vmatprep.mubr.msk.bf16.mxu0 %vm7320_vm1, %v7319_v2 }
 0x5bf   :  { %6183 = vmatprep.subr.bf16.mxu0 %v7319_v2  ;;  %6178 = vmatmul.mubr.msk.bf16.vlgmr.msra.gmra.mrb[12].mxu1 %vm105_vm3, %v7526_v26 }
 0x5c0   :  { %6190 = vmatpush3.bf16.msra.mxu1 %v7508_v42  ;;  %6191 = vmatprep.mubr.msk.bf16.mxu1 %vm7320_vm1, %v7319_v2 }
 0x5c1   :  { %6201 = vmatprep.subr.bf16.mxu1 %v7319_v2 }
 0x5c2   :  { %6184 = vmatpush3.bf16.msra.mxu0 %v7458_v52 }
 0x5c3   :  { %6195 = vmatprep.subr.bf16.mxu0 %v7319_v2 }
 0x688   :  { %v450_v28 = vpop.f32.mrb[8].mxu0 }
 0x689   :  { %v451_v29 = vadd.f32 %v450_v28, %v7472_v6  ;;  %v6161_v30 = vpop.f32.mrb[9].mxu0 }
 0x68a   :  { %v453_v31 = vpop.f32.mrb[10].mxu0 }
 0x68b   :  { %v456_v32 = vadd.f32 %v7540_v27, %v451_v29  ;;  %v6162_v33 = vpop.f32.mrb[11].mxu0 }
 0x68d   :  { %6734 = vtanh.f32 %v456_v32  ;;  %v5802_v48 = vmul.f32 -1.442695, %v456_v32 }
 0x690   :  { %v617_v34 = vpop.f32.mrb[12].mxu0 }
 0x691   :  { %v6173_v35 = vpop.f32.mrb[13].mxu0 }
 0x692   :  { %v620_v36 = vpop.f32.mrb[14].mxu0  ;;  %v669_v37 = vpop.f32.mrb[12].mxu1 }
 0x693   :  { %v6174_v38 = vpop.f32.mrb[15].mxu0  ;;  %v670_v39 = vadd.f32 %v669_v37, %v617_v34  ;;  %v6179_v40 = vpop.f32.mrb[13].mxu1 }
 0x694   :  { %v672_v41 = vpop.f32.mrb[14].mxu1 }
 0x695   :  { %v675_v43 = vadd.f32 %v7485_v12, %v670_v39  ;;  %v6180_v44 = vpop.f32.mrb[15].mxu1 }
 0x697   :  { %v6735_v46 = vpop.eup %6734  ;;  %6736 = vtanh.f32 %v675_v43  ;;  %v5808_v51 = vmul.f32 -1.442695, %v675_v43 }
 0x698   :  { %466 = vrot.lane.b32.xlu0 %v6735_v46, %s7328_s15  ;;  %6738 = vpow2.f32 %v5802_v48 }
 0x699   :  { %6740 = vpow2.f32 %v5808_v51 }
 0x6a1   :  { %v6737_v6 = vpop.eup %6736 }
 0x6a2   :  { %685 = vrot.lane.b32.xlu1 %v6737_v6, %s7325_s10  ;;  %v6739_v53 = vpop.eup %6738 }
 0x6a3   :  { %v460_v54 = vadd.f32 1.0, %v6739_v53  ;;  %v6741_v55 = vpop.eup %6740 }
 0x6a4   :  { %v679_v56 = vadd.f32 1.0, %v6741_v55 }
 0x6a5   :  { %6742 = vrcp.f32 %v460_v54 }
 0x6a6   :  { %6744 = vrcp.f32 %v679_v56 }
 0x6af   :  { %v6743_v57 = vpop.eup %6742 }
 0x6b0   :  { %v6745_v61 = vpop.eup %6744  ;;  %v464_v4 = vmul.f32 0.0, %v6743_v57 }
 0x6b1   :  { %v683_v7 = vmul.f32 %v6745_v61, %v7498_v59 }
 0x70a   :  { %v467_v58 = vpop.permute.xlu0 %466 }
 0x70b   :  { %v469_v60 = vmul.f32 %v6743_v57, %v467_v58 }
 0x70d   :  { %471 = vrot.lane.b32.xlu0 %v469_v60, %s7328_s15 }
 0x714   :  { %v686_v62 = vpop.permute.xlu1 %685 }
 0x715   :  { %v688_v63 = vmul.f32 %v6745_v61, %v686_v62 }
 0x717   :  { %690 = vrot.lane.b32.xlu1 %v688_v63, %s7326_s11 }
 0x77f   :  { %v472_v45 = vpop.permute.xlu0 %471 }
 0x780   :  { %v7549_v5 = vadd.f32 %v472_v45, %v464_v4 }
 0x782   :  { %6746 = vtanh.f32 %v7549_v5 }
 0x789   :  { %v691_v9 = vpop.permute.xlu1 %690 }
 0x78a   :  { %v7553_v10 = vadd.f32 %v691_v9, %v683_v7 }
 0x78c   :  { %v6747_v11 = vpop.eup %6746  ;;  %6748 = vtanh.f32 %v7553_v10 }
 0x78d   :  { %477 = vrot.lane.b32.xlu0 %v6747_v11, %s7328_s15 }
 0x796   :  { %v6749_v13 = vpop.eup %6748 }
 0x797   :  { %696 = vrot.lane.b32.xlu1 %v6749_v13, %s7326_s11 }
 0x7ff   :  { %v478_v14 = vpop.permute.xlu0 %477 }
 0x800   :  { %v480_v15 = vmul.f32 %v6743_v57, %v478_v14 }
 0x802   :  { %v701_v16 = vpack.c.bf16 %v480_v15, %v480_v15 }
 0x804   :  { %703 = vrot.lane.b32.xlu0 %v701_v16, %s7329_s16 }
 0x809   :  { %v697_v18 = vpop.permute.xlu1 %696 }
 0x80a   :  { %v699_v19 = vmul.f32 %v6745_v61, %v697_v18  ;;  %v882_v18 = vrot.slane %v7501_v0, 7 }
 0x80c   :  { %v700_v59 = vpack.c.bf16 %v699_v19, %v699_v19 }
 0x80e   :  { %749 = vrot.lane.b32.xlu1 %v700_v59, %s7327_s12 }
 0x876   :  { %v704_v20 = vpop.permute.xlu0 %703 }
 0x877   :  { %6186 = vmatmul.mubr.msk.bf16.vlgmr.msra.gmra.mrb[16].mxu0 %vm361_vm5, %v704_v20 }
 0x878   :  { %6196 = vmatpush3.bf16.msra.mxu0 %v7406_v3  ;;  %6197 = vmatprep.mubr.msk.bf16.mxu0 %vm7320_vm1, %v7319_v2 }
 0x879   :  { %6207 = vmatprep.subr.bf16.mxu0 %v7319_v2 }
 0x87f   :  { %6198 = vmatmul.mubr.msk.bf16.vlgmr.msra.gmra.mrb[20].mxu0 %vm105_vm3, %v7526_v26 }
 0x880   :  { %6208 = vmatpush3.bf16.msra.mxu0 %v7450_v50  ;;  %6209 = vmatprep.mubr.msk.bf16.mxu0 %vm7320_vm1, %v7319_v2  ;;  %v750_v22 = vpop.permute.xlu1 %749 }
 0x881   :  { %6221 = vmatprep.subr.bf16.mxu0 %v7319_v2  ;;  %6192 = vmatmul.mubr.msk.bf16.vlgmr.msra.gmra.mrb[16].mxu1 %vm218_vm4, %v750_v22 }
 0x882   :  { %6202 = vmatpush3.bf16.msra.mxu1 %v7444_v47  ;;  %6203 = vmatprep.mubr.msk.bf16.mxu1 %vm7320_vm1, %v7319_v2 }
 0x883   :  { %6213 = vmatprep.subr.bf16.mxu1 %v7319_v2 }
 0x889   :  { %6204 = vmatmul.mubr.msk.bf16.vlgmr.msra.gmra.mrb[20].mxu1 %vm218_vm4, %v750_v22 }
 0x88a   :  { %6214 = vmatpush3.bf16.msra.mxu1 %v7447_v49  ;;  %6217 = vmatprep.mubr.msk.bf16.mxu1 %vm7320_vm1, %v7319_v2 }
 0x88b   :  { %6215 = vmatprep.subr.bf16.mxu1 %v7319_v2 }
 0x88e   :  { %6216 = vmatpush3.bf16.msra.mxu1 %v7458_v52 }
 0x88f   :  { %6227 = vmatprep.subr.bf16.mxu1 %v7319_v2 }
 0x94a   :  { %v742_v23 = vpop.f32.mrb[16].mxu0 }
 0x94b   :  { %v6187_v24 = vpop.f32.mrb[17].mxu0 }
 0x94c   :  { %v745_v25 = vpop.f32.mrb[18].mxu0  ;;  %v883_v24 = vrot.slane %v7503_v1, 7 }
 0x94d   :  { %v6188_v26 = vpop.f32.mrb[19].mxu0 }
 0x952   :  { %v853_v28 = vpop.f32.mrb[20].mxu0 }
 0x953   :  { %v860_v29 = vrot.slane %v853_v28, 6  ;;  %v6199_v30 = vpop.f32.mrb[21].mxu0  ;;  %v861_v37 = vrot.slane %v853_v28, 7 }
 0x954   :  { %v856_v31 = vpop.f32.mrb[22].mxu0  ;;  %v788_v33 = vpop.f32.mrb[16].mxu1 }
 0x955   :  { %v864_v32 = vadd.f32 %v860_v29, %v7429_v21  ;;  %v6200_v34 = vpop.f32.mrb[23].mxu0  ;;  %v789_v35 = vadd.f32 %v788_v33, %v742_v23  ;;  %v6193_v36 = vpop.f32.mrb[17].mxu1  ;;  %v865_v41 = vadd.f32 %v861_v37, %v7427_v17 }
 0x956   :  { %v791_v38 = vpop.f32.mrb[18].mxu1 }
 0x957   :  { %6750 = vtanh.f32 %v864_v32  ;;  %v794_v39 = vadd.f32 %v7540_v27, %v789_v35  ;;  %v6194_v40 = vpop.f32.mrb[19].mxu1  ;;  %v5813_v54 = vmul.f32 -1.442695, %v864_v32  ;;  %v5814_v56 = vmul.f32 -1.442695, %v865_v41 }
 0x959   :  { %6752 = vtanh.f32 %v794_v39  ;;  %v5811_v55 = vmul.f32 -1.442695, %v794_v39 }
 0x95a   :  { %6754 = vtanh.f32 %v865_v41 }
 0x95b   :  { %6756 = vpow2.f32 %v5813_v54 }
 0x95c   :  { %v7586_v43 = vpop.f32.mrb[20].mxu1  ;;  %6758 = vpow2.f32 %v5811_v55 }
 0x95d   :  { %v6205_v44 = vpop.f32.mrb[21].mxu1  ;;  %6760 = vpow2.f32 %v5814_v56 }
 0x95e   :  { %v959_v46 = vpop.f32.mrb[22].mxu1 }
 0x95f   :  { %v6206_v6 = vpop.f32.mrb[23].mxu1 }
 0x961   :  { %v6751_v48 = vpop.eup %6750 }
 0x962   :  { %890 = vrot.lane.b32.xlu1 %v6751_v48, %s7322_s27 }
 0x963   :  { %v6753_v51 = vpop.eup %6752 }
 0x964   :  { %804 = vrot.lane.b32.xlu0 %v6753_v51, %s7328_s15  ;;  %v6755_v53 = vpop.eup %6754 }
 0x965   :  { %v6757_v57 = vpop.eup %6756 }
 0x966   :  { %v872_v58 = vadd.f32 1.0, %v6757_v57  ;;  %v6759_v60 = vpop.eup %6758 }
 0x967   :  { %v798_v61 = vadd.f32 1.0, %v6759_v60  ;;  %v6761_v62 = vpop.eup %6760 }
 0x968   :  { %892 = vrot.lane.b32.xlu0 %v6755_v53, %s7322_s27  ;;  %6762 = vrcp.f32 %v872_v58  ;;  %v873_v63 = vadd.f32 1.0, %v6761_v62 }
 0x969   :  { %6764 = vrcp.f32 %v798_v61 }
 0x96a   :  { %6766 = vrcp.f32 %v873_v63 }
 0x972   :  { %v6763_v4 = vpop.eup %6762 }
 0x973   :  { %v6765_v9 = vpop.eup %6764  ;;  %v886_v19 = vmul.f32 %v6763_v4, %v882_v18 }
 0x974   :  { %v6767_v14 = vpop.eup %6766  ;;  %v802_v22 = vmul.f32 %v6765_v9, %v7549_v5 }
 0x975   :  { %v887_v26 = vmul.f32 %v6767_v14, %v883_v24 }
 0x9d4   :  { %v891_v45 = vpop.permute.xlu1 %890 }
 0x9d5   :  { %v896_v7 = vmul.f32 %v6763_v4, %v891_v45 }
 0x9d6   :  { %v805_v11 = vpop.permute.xlu0 %804 }
 0x9d7   :  { %900 = vrot.lane.b32.xlu0 %v896_v7, %s7323_s28  ;;  %v807_v13 = vmul.f32 %v6765_v9, %v805_v11 }
 0x9d9   :  { %809 = vrot.lane.b32.xlu1 %v807_v13, %s7328_s15 }
 0x9da   :  { %v893_v15 = vpop.permute.xlu0 %892 }
 0x9db   :  { %v897_v16 = vmul.f32 %v6767_v14, %v893_v15 }
 0x9dd   :  { %902 = vrot.lane.b32.xlu1 %v897_v16, %s7323_s28 }
 0xa49   :  { %v901_v59 = vpop.permute.xlu0 %900 }
 0xa4a   :  { %v7595_v20 = vadd.f32 %v901_v59, %v886_v19 }
 0xa4b   :  { %v810_v23 = vpop.permute.xlu1 %809 }
 0xa4c   :  { %6768 = vtanh.f32 %v7595_v20  ;;  %v7600_v25 = vadd.f32 %v810_v23, %v802_v22 }
 0xa4e   :  { %6770 = vtanh.f32 %v7600_v25 }
 0xa4f   :  { %v903_v28 = vpop.permute.xlu1 %902 }
 0xa50   :  { %v7603_v29 = vadd.f32 %v903_v28, %v887_v26 }
 0xa52   :  { %6772 = vtanh.f32 %v7603_v29 }
 0xa56   :  { %v6769_v0 = vpop.eup %6768 }
 0xa57   :  { %912 = vrot.lane.b32.xlu1 %v6769_v0, %s7323_s28 }
 0xa58   :  { %v6771_v30 = vpop.eup %6770 }
 0xa59   :  { %815 = vrot.lane.b32.xlu0 %v6771_v30, %s7328_s15 }
 0xa5c   :  { %v6773_v5 = vpop.eup %6772 }
 0xa5d   :  { %914 = vrot.lane.b32.xlu0 %v6773_v5, %s7323_s28 }
 0xac9   :  { %v913_v1 = vpop.permute.xlu1 %912 }
 0xaca   :  { %v918_v31 = vmul.f32 %v6763_v4, %v913_v1 }
 0xacb   :  { %v816_v32 = vpop.permute.xlu0 %815 }
 0xacc   :  { %v818_v33 = vmul.f32 %v6765_v9, %v816_v32  ;;  %v920_v34 = vpack.c.bf16 %v918_v31, %v918_v31 }
 0xace   :  { %v1041_v35 = vpack.c.bf16 %v818_v33, %v818_v33  ;;  %v964_v38 = vunpack.c.l.b16 %v920_v34 }
 0xacf   :  { %v915_v36 = vpop.permute.xlu0 %914 }
 0xad0   :  { %v919_v37 = vmul.f32 %v6767_v14, %v915_v36  ;;  %1043 = vrot.lane.b32.xlu1 %v1041_v35, %s7329_s16  ;;  %v966_v41 = vrot.slane %v964_v38, 2  ;;  %v1222_v38 = vrot.slane %v7595_v20, 7 }
 0xad2   :  { %v921_v39 = vpack.c.bf16 %v919_v37, %v919_v37 }
 0xad4   :  { %v965_v40 = vunpack.c.l.b16 %v921_v39 }
 0xad6   :  { %v967_v44 = vrot.slane %v965_v40, 1 }
 0xad8   :  { %v968_v46 = vsel %vm266_vm2, %v967_v44, %v966_v41 }
 0xad9   :  { %v969_v6 = vpack.c.b16 %v968_v46, %v968_v46 }
 0xadb   :  { %970 = vrot.lane.b32.xlu0 %v969_v6, %s7324_s29  ;;  %v1223_v6 = vrot.slane %v7603_v29, 7 }
 0xb42   :  { %v1044_v48 = vpop.permute.xlu1 %1043 }
 0xb43   :  { %6218 = vmatmul.mubr.msk.bf16.vlgmr.msra.gmra.mrb[24].mxu1 %vm361_vm5, %v1044_v48 }
 0xb44   :  { %6228 = vmatpush3.bf16.msra.mxu1 %v7406_v3  ;;  %6229 = vmatprep.mubr.msk.bf16.mxu1 %vm7320_vm1, %v7319_v2 }
 0xb45   :  { %6239 = vmatprep.subr.bf16.mxu1 %v7319_v2 }
 0xb4d   :  { %v971_v51 = vpop.permute.xlu0 %970 }
 0xb4e   :  { %6210 = vmatmul.mubr.msk.bf16.vlgmr.msra.gmra.mrb[24].mxu0 %vm105_vm3, %v971_v51  ;;  %6230 = vmatmul.mubr.msk.bf16.vlgmr.msra.gmra.mrb[28].mxu1 %vm105_vm3, %v971_v51 }
 0xb4f   :  { %6222 = vmatpush3.bf16.msra.mxu0 %v7508_v42  ;;  %6223 = vmatprep.mubr.msk.bf16.mxu0 %vm7320_vm1, %v7319_v2 }
 0xb50   :  { %6233 = vmatprep.subr.bf16.mxu0 %v7319_v2  ;;  %6240 = vmatpush3.bf16.msra.mxu1 %v7450_v50 }
 0xb51   :  { %6241 = vmatprep.mubr.msk.bf16.mxu1 %vm7320_vm1, %v7319_v2  ;;  %6253 = vmatprep.subr.bf16.mxu1 %v7319_v2 }
 0xc16   :  { %v7627_v53 = vpop.f32.mrb[24].mxu1 }
 0xc17   :  { %v6219_v54 = vpop.f32.mrb[25].mxu1 }
 0xc18   :  { %v1085_v55 = vpop.f32.mrb[26].mxu1 }
 0xc19   :  { %v6220_v56 = vpop.f32.mrb[27].mxu1 }
 0xc21   :  { %v1009_v57 = vpop.f32.mrb[24].mxu0  ;;  %v1193_v58 = vpop.f32.mrb[28].mxu1 }
 0xc22   :  { %v1010_v60 = vadd.f32 %v1009_v57, %v7586_v43  ;;  %v1200_v61 = vrot.slane %v1193_v58, 5  ;;  %v6211_v62 = vpop.f32.mrb[25].mxu0  ;;  %v6231_v63 = vpop.f32.mrb[29].mxu1  ;;  %v1201_v4 = vrot.slane %v1193_v58, 6 }
 0xc23   :  { %v1012_v45 = vpop.f32.mrb[26].mxu0  ;;  %v1196_v7 = vpop.f32.mrb[30].mxu1 }
 0xc24   :  { %v1015_v9 = vadd.f32 %v7485_v12, %v1010_v60  ;;  %v1204_v11 = vadd.f32 %v1200_v61, %v7429_v21  ;;  %v6212_v13 = vpop.f32.mrb[27].mxu0  ;;  %v6232_v14 = vpop.f32.mrb[31].mxu1  ;;  %v1205_v15 = vadd.f32 %v1201_v4, %v7427_v17 }
 0xc26   :  { %6774 = vtanh.f32 %v1015_v9  ;;  %v5817_v19 = vmul.f32 -1.442695, %v1015_v9  ;;  %v5822_v59 = vmul.f32 -1.442695, %v1204_v11  ;;  %v5823_v22 = vmul.f32 -1.442695, %v1205_v15 }
 0xc27   :  { %6776 = vtanh.f32 %v1204_v11 }
 0xc28   :  { %6778 = vtanh.f32 %v1205_v15 }
 0xc29   :  { %6780 = vpow2.f32 %v5817_v19 }
 0xc2a   :  { %6782 = vpow2.f32 %v5822_v59 }
 0xc2b   :  { %6784 = vpow2.f32 %v5823_v22 }
 0xc30   :  { %v6775_v16 = vpop.eup %6774 }
 0xc31   :  { %v6777_v18 = vpop.eup %6776  ;;  %1025 = vrot.lane.b32.xlu1 %v6775_v16, %s7325_s10 }
 0xc32   :  { %1230 = vrot.lane.b32.xlu0 %v6777_v18, %s7322_s27  ;;  %v6779_v43 = vpop.eup %6778 }
 0xc33   :  { %v6781_v23 = vpop.eup %6780 }
 0xc34   :  { %v6783_v24 = vpop.eup %6782  ;;  %v1019_v26 = vadd.f32 1.0, %v6781_v23 }
 0xc35   :  { %1232 = vrot.lane.b32.xlu1 %v6779_v43, %s7322_s27  ;;  %v1212_v28 = vadd.f32 1.0, %v6783_v24  ;;  %v6785_v0 = vpop.eup %6784 }
 0xc36   :  { %6786 = vrcp.f32 %v1019_v26  ;;  %v1213_v30 = vadd.f32 1.0, %v6785_v0 }
 0xc37   :  { %6788 = vrcp.f32 %v1212_v28 }
 0xc38   :  { %6790 = vrcp.f32 %v1213_v30 }
 0xc40   :  { %v6787_v5 = vpop.eup %6786 }
 0xc41   :  { %v6789_v31 = vpop.eup %6788  ;;  %v1023_v39 = vmul.f32 %v6787_v5, %v7553_v10 }
 0xc42   :  { %v6791_v35 = vpop.eup %6790  ;;  %v1226_v40 = vmul.f32 %v6789_v31, %v1222_v38 }
 0xc43   :  { %v1227_v51 = vmul.f32 %v6791_v35, %v1223_v6 }
 0xca3   :  { %v1026_v1 = vpop.permute.xlu1 %1025 }
 0xca4   :  { %v1231_v32 = vpop.permute.xlu0 %1230  ;;  %v1028_v33 = vmul.f32 %v6787_v5, %v1026_v1 }
 0xca5   :  { %v1236_v34 = vmul.f32 %v6789_v31, %v1231_v32 }
 0xca6   :  { %1030 = vrot.lane.b32.xlu0 %v1028_v33, %s7326_s11 }
 0xca7   :  { %1240 = vrot.lane.b32.xlu1 %v1236_v34, %s7323_s28  ;;  %v1233_v36 = vpop.permute.xlu1 %1232 }
 0xca8   :  { %v1237_v37 = vmul.f32 %v6791_v35, %v1233_v36 }
 0xcaa   :  { %1242 = vrot.lane.b32.xlu0 %v1237_v37, %s7323_s28 }
 0xd18   :  { %v1031_v41 = vpop.permute.xlu0 %1030 }
 0xd19   :  { %v1241_v44 = vpop.permute.xlu1 %1240  ;;  %v7641_v46 = vadd.f32 %v1031_v41, %v1023_v39 }
 0xd1a   :  { %v7644_v48 = vadd.f32 %v1241_v44, %v1226_v40 }
 0xd1b   :  { %6792 = vtanh.f32 %v7641_v46 }
 0xd1c   :  { %6794 = vtanh.f32 %v7644_v48  ;;  %v1243_v54 = vpop.permute.xlu0 %1242 }
 0xd1d   :  { %v7648_v55 = vadd.f32 %v1243_v54, %v1227_v51 }
 0xd1f   :  { %6796 = vtanh.f32 %v7648_v55 }
 0xd25   :  { %v6793_v10 = vpop.eup %6792 }
 0xd26   :  { %v6795_v20 = vpop.eup %6794  ;;  %1036 = vrot.lane.b32.xlu1 %v6793_v10, %s7326_s11 }
 0xd27   :  { %1252 = vrot.lane.b32.xlu0 %v6795_v20, %s7323_s28 }
 0xd29   :  { %v6797_v56 = vpop.eup %6796 }
 0xd2a   :  { %1254 = vrot.lane.b32.xlu1 %v6797_v56, %s7323_s28 }
 0xd98   :  { %v1037_v29 = vpop.permute.xlu1 %1036 }
 0xd99   :  { %v1253_v57 = vpop.permute.xlu0 %1252  ;;  %v1039_v58 = vmul.f32 %v6787_v5, %v1037_v29 }
 0xd9a   :  { %v1258_v60 = vmul.f32 %v6789_v31, %v1253_v57 }
 0xd9b   :  { %v1040_v61 = vpack.c.bf16 %v1039_v58, %v1039_v58 }
 0xd9c   :  { %v1260_v62 = vpack.c.bf16 %v1258_v60, %v1258_v60  ;;  %v1255_v63 = vpop.permute.xlu1 %1254 }
 0xd9d   :  { %1089 = vrot.lane.b32.xlu0 %v1040_v61, %s7327_s12  ;;  %v1259_v4 = vmul.f32 %v6791_v35, %v1255_v63 }
 0xd9e   :  { %v1304_v45 = vunpack.c.l.b16 %v1260_v62 }
 0xd9f   :  { %v1261_v7 = vpack.c.bf16 %v1259_v4, %v1259_v4 }
 0xda0   :  { %v1306_v11 = vrot.slane %v1304_v45, 3  ;;  %v7708_v45 = vld [vmem:[#allocation3 + $0x8] ss:$48 sps:$4 sm:$0xff]  }
 0xda1   :  { %v1305_v9 = vunpack.c.l.b16 %v1261_v7  ;;  %v7715_v7 = vld [vmem:[#allocation3 + $0x10] ss:$48 sps:$4 sm:$0xff]  }
 0xda3   :  { %v1307_v13 = vrot.slane %v1305_v9, 2  ;;  %v7721_v9 = vld [vmem:[#allocation3 + $0x70] ss:$48 sps:$4 sm:$0xff]  }
 0xda5   :  { %v1308_v14 = vsel %vm266_vm2, %v1307_v13, %v1306_v11 }
 0xda6   :  { %v1309_v15 = vpack.c.b16 %v1308_v14, %v1308_v14 }
 0xda8   :  { %1310 = vrot.lane.b32.xlu1 %v1309_v15, %s7324_s29 }
 0xe0f   :  { %v1090_v16 = vpop.permute.xlu0 %1089 }
 0xe10   :  { %6224 = vmatmul.mubr.msk.bf16.vlgmr.msra.gmra.mrb[28].mxu0 %vm218_vm4, %v1090_v16 }
 0xe11   :  { %6234 = vmatpush3.bf16.msra.mxu0 %v7444_v47  ;;  %6235 = vmatprep.mubr.msk.bf16.mxu0 %vm7320_vm1, %v7319_v2 }
 0xe12   :  { %6245 = vmatprep.subr.bf16.mxu0 %v7319_v2 }
 0xe18   :  { %6236 = vmatmul.mubr.msk.bf16.vlgmr.msra.gmra.mrb[32].mxu0 %vm218_vm4, %v1090_v16 }
 0xe19   :  { %6246 = vmatpush3.bf16.msra.mxu0 %v7447_v49  ;;  %6249 = vmatprep.mubr.msk.bf16.mxu0 %vm7320_vm1, %v7319_v2 }
 0xe1a   :  { %6247 = vmatprep.subr.bf16.mxu0 %v7319_v2  ;;  %v7667_v18 = vpop.permute.xlu1 %1310 }
 0xe1b   :  { %6242 = vmatmul.mubr.msk.bf16.vlgmr.msra.gmra.mrb[32].mxu1 %vm105_vm3, %v7667_v18 }
 0xe1c   :  { %6254 = vmatpush3.bf16.msra.mxu1 %v7508_v42  ;;  %6255 = vmatprep.mubr.msk.bf16.mxu1 %vm7320_vm1, %v7319_v2 }
 0xe1d   :  { %6248 = vmatpush3.bf16.msra.mxu0 %v7458_v52  ;;  %6265 = vmatprep.subr.bf16.mxu1 %v7319_v2 }
 0xe1e   :  { %6259 = vmatprep.subr.bf16.mxu0 %v7319_v2 }
 0xee3   :  { %v1128_v47 = vpop.f32.mrb[28].mxu0 }
 0xee4   :  { %v1129_v49 = vadd.f32 %v1128_v47, %v7627_v53  ;;  %v6225_v43 = vpop.f32.mrb[29].mxu0 }
 0xee5   :  { %v1131_v19 = vpop.f32.mrb[30].mxu0 }
 0xee6   :  { %v1134_v59 = vadd.f32 %v7540_v27, %v1129_v49  ;;  %v6226_v22 = vpop.f32.mrb[31].mxu0 }
 0xee8   :  { %6798 = vtanh.f32 %v1134_v59  ;;  %v5820_v32 = vmul.f32 -1.442695, %v1134_v59 }
 0xeeb   :  { %v1296_v23 = vpop.f32.mrb[32].mxu0 }
 0xeec   :  { %v6237_v52 = vpop.f32.mrb[33].mxu0 }
 0xeed   :  { %v1299_v24 = vpop.f32.mrb[34].mxu0 }
 0xeee   :  { %v6238_v42 = vpop.f32.mrb[35].mxu0  ;;  %v1349_v26 = vpop.f32.mrb[32].mxu1 }
 0xeef   :  { %v1350_v28 = vadd.f32 %v1349_v26, %v1296_v23  ;;  %v6243_v0 = vpop.f32.mrb[33].mxu1 }
 0xef0   :  { %v1352_v30 = vpop.f32.mrb[34].mxu1 }
 0xef1   :  { %v1355_v1 = vadd.f32 %v7485_v12, %v1350_v28  ;;  %v6244_v31 = vpop.f32.mrb[35].mxu1 }
 0xef2   :  { %v6799_v5 = vpop.eup %6798 }
 0xef3   :  { %1144 = vrot.lane.b32.xlu0 %v6799_v5, %s7328_s15  ;;  %6800 = vtanh.f32 %v1355_v1  ;;  %v5826_v33 = vmul.f32 -1.442695, %v1355_v1 }
 0xef4   :  { %6802 = vpow2.f32 %v5820_v32 }
 0xef5   :  { %6804 = vpow2.f32 %v5826_v33 }
 0xefd   :  { %v6801_v53 = vpop.eup %6800 }
 0xefe   :  { %1365 = vrot.lane.b32.xlu1 %v6801_v53, %s7325_s10  ;;  %v6803_v34 = vpop.eup %6802 }
 0xeff   :  { %v1138_v35 = vadd.f32 1.0, %v6803_v34  ;;  %v6805_v36 = vpop.eup %6804 }
 0xf00   :  { %v1359_v37 = vadd.f32 1.0, %v6805_v36 }
 0xf01   :  { %6806 = vrcp.f32 %v1138_v35 }
 0xf02   :  { %6808 = vrcp.f32 %v1359_v37 }
 0xf0b   :  { %v6807_v38 = vpop.eup %6806 }
 0xf0c   :  { %v6809_v12 = vpop.eup %6808  ;;  %v1142_v6 = vmul.f32 %v6807_v38, %v7600_v25 }
 0xf0d   :  { %v1363_v10 = vmul.f32 %v6809_v12, %v7641_v46 }
 0xf65   :  { %v1145_v39 = vpop.permute.xlu0 %1144 }
 0xf66   :  { %v1147_v40 = vmul.f32 %v6807_v38, %v1145_v39 }
 0xf68   :  { %1149 = vrot.lane.b32.xlu0 %v1147_v40, %s7328_s15 }
 0xf70   :  { %v1366_v41 = vpop.permute.xlu1 %1365 }
 0xf71   :  { %v1368_v44 = vmul.f32 %v6809_v12, %v1366_v41 }
 0xf73   :  { %1370 = vrot.lane.b32.xlu1 %v1368_v44, %s7326_s11 }
 0xfda   :  { %v1150_v51 = vpop.permute.xlu0 %1149 }
 0xfdb   :  { %v7685_v54 = vadd.f32 %v1150_v51, %v1142_v6 }
 0xfdd   :  { %6810 = vtanh.f32 %v7685_v54 }
 0xfe5   :  { %v1371_v20 = vpop.permute.xlu1 %1370 }
 0xfe6   :  { %v7689_v29 = vadd.f32 %v1371_v20, %v1363_v10 }
 0xfe7   :  { %v6811_v56 = vpop.eup %6810 }
 0xfe8   :  { %1155 = vrot.lane.b32.xlu0 %v6811_v56, %s7328_s15  ;;  %6812 = vtanh.f32 %v7689_v29 }
 0xff2   :  { %v6813_v57 = vpop.eup %6812 }
 0xff3   :  { %1376 = vrot.lane.b32.xlu1 %v6813_v57, %s7326_s11 }
0x105a   :  { %v1156_v58 = vpop.permute.xlu0 %1155 }
0x105b   :  { %v1158_v25 = vmul.f32 %v6807_v38, %v1156_v58  ;;  %v1562_v58 = vrot.slane %v7644_v48, 7 }
0x105d   :  { %v1381_v60 = vpack.c.bf16 %v1158_v25, %v1158_v25 }
0x105f   :  { %1383 = vrot.lane.b32.xlu0 %v1381_v60, %s7329_s16 }
0x1065   :  { %v1377_v61 = vpop.permute.xlu1 %1376 }
0x1066   :  { %v1379_v62 = vmul.f32 %v6809_v12, %v1377_v61 }
0x1068   :  { %v1380_v63 = vpack.c.bf16 %v1379_v62, %v1379_v62 }
0x106a   :  { %1429 = vrot.lane.b32.xlu1 %v1380_v63, %s7327_s12 }
0x10d1   :  { %v1384_v46 = vpop.permute.xlu0 %1383 }
0x10d2   :  { %6250 = vmatmul.mubr.msk.bf16.vlgmr.msra.gmra.mrb[36].mxu0 %vm361_vm5, %v1384_v46  ;;  %v1563_v46 = vrot.slane %v7648_v55, 7 }
0x10d3   :  { %6260 = vmatpush3.bf16.msra.mxu0 %v7406_v3  ;;  %6261 = vmatprep.mubr.msk.bf16.mxu0 %vm7320_vm1, %v7319_v2 }
0x10d4   :  { %6271 = vmatprep.subr.bf16.mxu0 %v7319_v2 }
0x10da   :  { %6262 = vmatmul.mubr.msk.bf16.vlgmr.msra.gmra.mrb[40].mxu0 %vm105_vm3, %v7667_v18 }
0x10db   :  { %6272 = vmatpush3.bf16.msra.mxu0 %v7450_v50  ;;  %6273 = vmatprep.mubr.msk.bf16.mxu0 %vm7320_vm1, %v7319_v2 }
0x10dc   :  { %6285 = vmatprep.subr.bf16.mxu0 %v7319_v2  ;;  %v1430_v4 = vpop.permute.xlu1 %1429 }
0x10dd   :  { %6256 = vmatmul.mubr.msk.bf16.vlgmr.msra.gmra.mrb[36].mxu1 %vm218_vm4, %v1430_v4 }
0x10de   :  { %6266 = vmatpush3.bf16.msra.mxu1 %v7708_v45  ;;  %6267 = vmatprep.mubr.msk.bf16.mxu1 %vm7320_vm1, %v7319_v2 }
0x10df   :  { %6277 = vmatprep.subr.bf16.mxu1 %v7319_v2 }
0x10e5   :  { %6268 = vmatmul.mubr.msk.bf16.vlgmr.msra.gmra.mrb[40].mxu1 %vm218_vm4, %v1430_v4 }
0x10e6   :  { %6278 = vmatpush3.bf16.msra.mxu1 %v7715_v7  ;;  %6281 = vmatprep.mubr.msk.bf16.mxu1 %vm7320_vm1, %v7319_v2 }
0x10e7   :  { %6279 = vmatprep.subr.bf16.mxu1 %v7319_v2 }
0x10ea   :  { %6280 = vmatpush3.bf16.msra.mxu1 %v7721_v9 }
0x10eb   :  { %6291 = vmatprep.subr.bf16.mxu1 %v7319_v2 }
0x11a5   :  { %v1422_v11 = vpop.f32.mrb[36].mxu0 }
0x11a6   :  { %v6251_v13 = vpop.f32.mrb[37].mxu0 }
0x11a7   :  { %v1425_v14 = vpop.f32.mrb[38].mxu0 }
0x11a8   :  { %v6252_v15 = vpop.f32.mrb[39].mxu0 }
0x11ad   :  { %v1533_v16 = vpop.f32.mrb[40].mxu0 }
0x11ae   :  { %v1540_v18 = vrot.slane %v1533_v16, 4  ;;  %v6263_v47 = vpop.f32.mrb[41].mxu0  ;;  %v1541_v22 = vrot.slane %v1533_v16, 5 }
0x11af   :  { %v1536_v49 = vpop.f32.mrb[42].mxu0 }
0x11b0   :  { %v1544_v43 = vadd.f32 %v1540_v18, %v7429_v21  ;;  %v6264_v19 = vpop.f32.mrb[43].mxu0  ;;  %v1468_v59 = vpop.f32.mrb[36].mxu1  ;;  %v1545_v28 = vadd.f32 %v1541_v22, %v7427_v17 }
0x11b1   :  { %v1469_v23 = vadd.f32 %v1468_v59, %v1422_v11  ;;  %v6257_v52 = vpop.f32.mrb[37].mxu1 }
0x11b2   :  { %6814 = vtanh.f32 %v1544_v43  ;;  %v1471_v24 = vpop.f32.mrb[38].mxu1  ;;  %v5832_v34 = vmul.f32 -1.442695, %v1545_v28 }
0x11b3   :  { %v1474_v42 = vadd.f32 %v7540_v27, %v1469_v23  ;;  %v6258_v26 = vpop.f32.mrb[39].mxu1  ;;  %v5831_v27 = vmul.f32 -1.442695, %v1544_v43 }
0x11b5   :  { %6816 = vtanh.f32 %v1474_v42  ;;  %v5829_v33 = vmul.f32 -1.442695, %v1474_v42 }
0x11b6   :  { %6818 = vtanh.f32 %v1545_v28 }
0x11b7   :  { %6820 = vpow2.f32 %v5831_v27 }
0x11b8   :  { %v7728_v0 = vpop.f32.mrb[40].mxu1  ;;  %6822 = vpow2.f32 %v5829_v33 }
0x11b9   :  { %v6269_v30 = vpop.f32.mrb[41].mxu1  ;;  %6824 = vpow2.f32 %v5832_v34 }
0x11ba   :  { %v1639_v5 = vpop.f32.mrb[42].mxu1 }
0x11bb   :  { %v6270_v31 = vpop.f32.mrb[43].mxu1 }
0x11bc   :  { %v6815_v1 = vpop.eup %6814 }
0x11bd   :  { %1570 = vrot.lane.b32.xlu1 %v6815_v1, %s7322_s27  ;;  %v7761_v1 = vld [vmem:[#allocation3 + $0xc] ss:$48 sps:$4 sm:$0xff]  }
0x11bf   :  { %v6817_v53 = vpop.eup %6816 }
0x11c0   :  { %1484 = vrot.lane.b32.xlu0 %v6817_v53, %s7328_s15  ;;  %v6819_v32 = vpop.eup %6818 }
0x11c1   :  { %v6821_v35 = vpop.eup %6820 }
0x11c2   :  { %v1552_v36 = vadd.f32 1.0, %v6821_v35  ;;  %v6823_v37 = vpop.eup %6822 }
0x11c3   :  { %v1478_v38 = vadd.f32 1.0, %v6823_v37  ;;  %v6825_v39 = vpop.eup %6824 }
0x11c4   :  { %1572 = vrot.lane.b32.xlu0 %v6819_v32, %s7322_s27  ;;  %6826 = vrcp.f32 %v1552_v36  ;;  %v1553_v40 = vadd.f32 1.0, %v6825_v39 }
0x11c5   :  { %6828 = vrcp.f32 %v1478_v38 }
0x11c6   :  { %6830 = vrcp.f32 %v1553_v40 }
0x11ce   :  { %v6827_v12 = vpop.eup %6826 }
0x11cf   :  { %v6829_v6 = vpop.eup %6828  ;;  %v1566_v25 = vmul.f32 %v6827_v12, %v1562_v58 }
0x11d0   :  { %v6831_v20 = vpop.eup %6830  ;;  %v1482_v62 = vmul.f32 %v6829_v6, %v7685_v54 }
0x11d1   :  { %v1567_v11 = vmul.f32 %v6831_v20, %v1563_v46 }
0x122f   :  { %v1571_v41 = vpop.permute.xlu1 %1570 }
0x1230   :  { %v1576_v44 = vmul.f32 %v6827_v12, %v1571_v41  ;;  %v7777_v41 = vld [vmem:[%s8607_s3 + $0x2] ss:$0 sm:$0xff] }
0x1232   :  { %1580 = vrot.lane.b32.xlu0 %v1576_v44, %s7323_s28  ;;  %v1485_v51 = vpop.permute.xlu0 %1484 }
0x1233   :  { %v1487_v10 = vmul.f32 %v6829_v6, %v1485_v51 }
0x1235   :  { %1489 = vrot.lane.b32.xlu1 %v1487_v10, %s7328_s15 }
0x1236   :  { %v1573_v56 = vpop.permute.xlu0 %1572 }
0x1237   :  { %v1577_v57 = vmul.f32 %v6831_v20, %v1573_v56 }
0x1239   :  { %1582 = vrot.lane.b32.xlu1 %v1577_v57, %s7323_s28 }
0x12a4   :  { %v1581_v60 = vpop.permute.xlu0 %1580 }
0x12a5   :  { %v7737_v61 = vadd.f32 %v1581_v60, %v1566_v25 }
0x12a7   :  { %6832 = vtanh.f32 %v7737_v61  ;;  %v1490_v63 = vpop.permute.xlu1 %1489 }
0x12a8   :  { %v7742_v4 = vadd.f32 %v1490_v63, %v1482_v62 }
0x12aa   :  { %6834 = vtanh.f32 %v7742_v4 }
0x12ab   :  { %v1583_v13 = vpop.permute.xlu1 %1582 }
0x12ac   :  { %v7745_v14 = vadd.f32 %v1583_v13, %v1567_v11 }
0x12ae   :  { %6836 = vtanh.f32 %v7745_v14 }
0x12b1   :  { %v6833_v48 = vpop.eup %6832 }
0x12b2   :  { %1592 = vrot.lane.b32.xlu1 %v6833_v48, %s7323_s28 }
0x12b4   :  { %v6835_v15 = vpop.eup %6834 }
0x12b5   :  { %1495 = vrot.lane.b32.xlu0 %v6835_v15, %s7328_s15 }
0x12b8   :  { %v6837_v54 = vpop.eup %6836 }
0x12b9   :  { %1594 = vrot.lane.b32.xlu0 %v6837_v54, %s7323_s28 }
0x1324   :  { %v1593_v55 = vpop.permute.xlu1 %1592 }
0x1325   :  { %v1598_v16 = vmul.f32 %v6827_v12, %v1593_v55 }
0x1327   :  { %v1496_v18 = vpop.permute.xlu0 %1495  ;;  %v1600_v49 = vpack.c.bf16 %v1598_v16, %v1598_v16 }
0x1328   :  { %v1498_v47 = vmul.f32 %v6829_v6, %v1496_v18 }
0x1329   :  { %v1644_v22 = vunpack.c.l.b16 %v1600_v49 }
0x132a   :  { %v1721_v43 = vpack.c.bf16 %v1498_v47, %v1498_v47 }
0x132b   :  { %v1595_v19 = vpop.permute.xlu0 %1594  ;;  %v1646_v24 = vrot.slane %v1644_v22, 4 }
0x132c   :  { %v1599_v59 = vmul.f32 %v6831_v20, %v1595_v19  ;;  %1723 = vrot.lane.b32.xlu1 %v1721_v43, %s7329_s16 }
0x132e   :  { %v1601_v23 = vpack.c.bf16 %v1599_v59, %v1599_v59  ;;  %v1902_v59 = vrot.slane %v7737_v61, 7 }
0x1330   :  { %v1645_v52 = vunpack.c.l.b16 %v1601_v23 }
0x1332   :  { %v1647_v42 = vrot.slane %v1645_v52, 3 }
0x1334   :  { %v1648_v26 = vsel %vm266_vm2, %v1647_v42, %v1646_v24 }
0x1335   :  { %v1649_v28 = vpack.c.b16 %v1648_v26, %v1648_v26  ;;  %v1903_v26 = vrot.slane %v7745_v14, 7 }
0x1337   :  { %1650 = vrot.lane.b32.xlu0 %v1649_v28, %s7324_s29 }
0x139e   :  { %v1724_v30 = vpop.permute.xlu1 %1723 }
0x139f   :  { %6282 = vmatmul.mubr.msk.bf16.vlgmr.msra.gmra.mrb[44].mxu1 %vm361_vm5, %v1724_v30 }
0x13a0   :  { %6292 = vmatpush3.bf16.msra.mxu1 %v7406_v3  ;;  %6293 = vmatprep.mubr.msk.bf16.mxu1 %vm7320_vm1, %v7319_v2 }
0x13a1   :  { %6303 = vmatprep.subr.bf16.mxu1 %v7319_v2 }
0x13a9   :  { %v1651_v5 = vpop.permute.xlu0 %1650 }
0x13aa   :  { %6274 = vmatmul.mubr.msk.bf16.vlgmr.msra.gmra.mrb[44].mxu0 %vm105_vm3, %v1651_v5  ;;  %6294 = vmatmul.mubr.msk.bf16.vlgmr.msra.gmra.mrb[48].mxu1 %vm105_vm3, %v1651_v5 }
0x13ab   :  { %6286 = vmatpush3.bf16.msra.mxu0 %v7761_v1  ;;  %6287 = vmatprep.mubr.msk.bf16.mxu0 %vm7320_vm1, %v7319_v2 }
0x13ac   :  { %6297 = vmatprep.subr.bf16.mxu0 %v7319_v2  ;;  %6304 = vmatpush3.bf16.msra.mxu1 %v7450_v50 }
0x13ad   :  { %6305 = vmatprep.mubr.msk.bf16.mxu1 %vm7320_vm1, %v7319_v2  ;;  %6317 = vmatprep.subr.bf16.mxu1 %v7319_v2 }
0x1472   :  { %v7771_v31 = vpop.f32.mrb[44].mxu1 }
0x1473   :  { %v6283_v53 = vpop.f32.mrb[45].mxu1 }
0x1474   :  { %v1765_v32 = vpop.f32.mrb[46].mxu1 }
0x1475   :  { %v6284_v27 = vpop.f32.mrb[47].mxu1 }
0x147d   :  { %v1689_v33 = vpop.f32.mrb[44].mxu0  ;;  %v1873_v34 = vpop.f32.mrb[48].mxu1 }
0x147e   :  { %v1690_v35 = vadd.f32 %v1689_v33, %v7728_v0  ;;  %v1880_v36 = vrot.slane %v1873_v34, 3  ;;  %v6275_v37 = vpop.f32.mrb[45].mxu0  ;;  %v6295_v38 = vpop.f32.mrb[49].mxu1  ;;  %v1881_v39 = vrot.slane %v1873_v34, 4 }
0x147f   :  { %v1692_v40 = vpop.f32.mrb[46].mxu0  ;;  %v1876_v12 = vpop.f32.mrb[50].mxu1 }
0x1480   :  { %v1695_v44 = vadd.f32 %v7777_v41, %v1690_v35  ;;  %v1884_v6 = vadd.f32 %v1880_v36, %v7429_v21  ;;  %v6276_v51 = vpop.f32.mrb[47].mxu0  ;;  %v6296_v10 = vpop.f32.mrb[51].mxu1  ;;  %v1885_v0 = vadd.f32 %v1881_v39, %v7427_v17 }
0x1482   :  { %6838 = vtanh.f32 %v1695_v44  ;;  %v5835_v58 = vmul.f32 -1.442695, %v1695_v44  ;;  %v5840_v25 = vmul.f32 -1.442695, %v1884_v6  ;;  %v5841_v60 = vmul.f32 -1.442695, %v1885_v0 }
0x1483   :  { %6840 = vtanh.f32 %v1884_v6 }
0x1484   :  { %6842 = vtanh.f32 %v1885_v0 }
0x1485   :  { %6844 = vpow2.f32 %v5835_v58 }
0x1486   :  { %6846 = vpow2.f32 %v5840_v25 }
0x1487   :  { %6848 = vpow2.f32 %v5841_v60  ;;  %v7830_v60 = vld [vmem:[%s8607_s3 + $0x3] ss:$0 sm:$0xff] }
0x148c   :  { %v6839_v20 = vpop.eup %6838 }
0x148d   :  { %v6841_v56 = vpop.eup %6840  ;;  %1705 = vrot.lane.b32.xlu1 %v6839_v20, %s7325_s10 }
0x148e   :  { %1910 = vrot.lane.b32.xlu0 %v6841_v56, %s7322_s27  ;;  %v6843_v57 = vpop.eup %6842 }
0x148f   :  { %v6845_v62 = vpop.eup %6844 }
0x1490   :  { %v6847_v63 = vpop.eup %6846  ;;  %v1699_v46 = vadd.f32 1.0, %v6845_v62 }
0x1491   :  { %1912 = vrot.lane.b32.xlu1 %v6843_v57, %s7322_s27  ;;  %v1892_v11 = vadd.f32 1.0, %v6847_v63  ;;  %v6849_v13 = vpop.eup %6848 }
0x1492   :  { %6850 = vrcp.f32 %v1699_v46  ;;  %v1893_v48 = vadd.f32 1.0, %v6849_v13 }
0x1493   :  { %6852 = vrcp.f32 %v1892_v11 }
0x1494   :  { %6854 = vrcp.f32 %v1893_v48 }
0x149c   :  { %v6851_v15 = vpop.eup %6850 }
0x149d   :  { %v6853_v55 = vpop.eup %6852  ;;  %v1703_v22 = vmul.f32 %v6851_v15, %v7689_v29 }
0x149e   :  { %v6855_v49 = vpop.eup %6854  ;;  %v1906_v23 = vmul.f32 %v6853_v55, %v1902_v59 }
0x149f   :  { %v1907_v30 = vmul.f32 %v6855_v49, %v1903_v26 }
0x14ff   :  { %v1706_v54 = vpop.permute.xlu1 %1705 }
0x1500   :  { %v1911_v16 = vpop.permute.xlu0 %1910  ;;  %v1708_v18 = vmul.f32 %v6851_v15, %v1706_v54 }
0x1501   :  { %v1916_v47 = vmul.f32 %v6853_v55, %v1911_v16 }
0x1502   :  { %1710 = vrot.lane.b32.xlu0 %v1708_v18, %s7326_s11 }
0x1503   :  { %1920 = vrot.lane.b32.xlu1 %v1916_v47, %s7323_s28  ;;  %v1913_v43 = vpop.permute.xlu1 %1912 }
0x1504   :  { %v1917_v19 = vmul.f32 %v6855_v49, %v1913_v43 }
0x1506   :  { %1922 = vrot.lane.b32.xlu0 %v1917_v19, %s7323_s28 }
0x1574   :  { %v1711_v52 = vpop.permute.xlu0 %1710 }
0x1575   :  { %v1921_v24 = vpop.permute.xlu1 %1920  ;;  %v7790_v42 = vadd.f32 %v1711_v52, %v1703_v22 }
0x1576   :  { %v7793_v28 = vadd.f32 %v1921_v24, %v1906_v23 }
0x1577   :  { %6856 = vtanh.f32 %v7790_v42 }
0x1578   :  { %6858 = vtanh.f32 %v7793_v28  ;;  %v1923_v5 = vpop.permute.xlu0 %1922 }
0x1579   :  { %v7797_v53 = vadd.f32 %v1923_v5, %v1907_v30 }
0x157b   :  { %6860 = vtanh.f32 %v7797_v53 }
0x1581   :  { %v6857_v29 = vpop.eup %6856 }
0x1582   :  { %v6859_v61 = vpop.eup %6858  ;;  %1716 = vrot.lane.b32.xlu1 %v6857_v29, %s7326_s11 }
0x1583   :  { %1932 = vrot.lane.b32.xlu0 %v6859_v61, %s7323_s28 }
0x1585   :  { %v6861_v32 = vpop.eup %6860 }
0x1586   :  { %1934 = vrot.lane.b32.xlu1 %v6861_v32, %s7323_s28 }
0x15f4   :  { %v1717_v14 = vpop.permute.xlu1 %1716 }
0x15f5   :  { %v1933_v27 = vpop.permute.xlu0 %1932  ;;  %v1719_v33 = vmul.f32 %v6851_v15, %v1717_v14 }
0x15f6   :  { %v1938_v34 = vmul.f32 %v6853_v55, %v1933_v27 }
0x15f7   :  { %v1720_v35 = vpack.c.bf16 %v1719_v33, %v1719_v33 }
0x15f8   :  { %v1940_v36 = vpack.c.bf16 %v1938_v34, %v1938_v34  ;;  %v1935_v37 = vpop.permute.xlu1 %1934 }
0x15f9   :  { %1769 = vrot.lane.b32.xlu0 %v1720_v35, %s7327_s12  ;;  %v1939_v38 = vmul.f32 %v6855_v49, %v1935_v37 }
0x15fa   :  { %v1984_v39 = vunpack.c.l.b16 %v1940_v36 }
0x15fb   :  { %v1941_v40 = vpack.c.bf16 %v1939_v38, %v1939_v38 }
0x15fc   :  { %v1986_v44 = vrot.slane %v1984_v39, 5 }
0x15fd   :  { %v1985_v12 = vunpack.c.l.b16 %v1941_v40 }
0x15ff   :  { %v1987_v6 = vrot.slane %v1985_v12, 4 }
0x1601   :  { %v1988_v51 = vsel %vm266_vm2, %v1987_v6, %v1986_v44 }
0x1602   :  { %v1989_v10 = vpack.c.b16 %v1988_v51, %v1988_v51 }
0x1604   :  { %1990 = vrot.lane.b32.xlu1 %v1989_v10, %s7324_s29 }
0x166b   :  { %v1770_v0 = vpop.permute.xlu0 %1769 }
0x166c   :  { %6288 = vmatmul.mubr.msk.bf16.vlgmr.msra.gmra.mrb[48].mxu0 %vm218_vm4, %v1770_v0 }
0x166d   :  { %6298 = vmatpush3.bf16.msra.mxu0 %v7708_v45  ;;  %6299 = vmatprep.mubr.msk.bf16.mxu0 %vm7320_vm1, %v7319_v2 }
0x166e   :  { %6309 = vmatprep.subr.bf16.mxu0 %v7319_v2 }
0x1674   :  { %6300 = vmatmul.mubr.msk.bf16.vlgmr.msra.gmra.mrb[52].mxu0 %vm218_vm4, %v1770_v0 }
0x1675   :  { %6310 = vmatpush3.bf16.msra.mxu0 %v7715_v7  ;;  %6313 = vmatprep.mubr.msk.bf16.mxu0 %vm7320_vm1, %v7319_v2 }
0x1676   :  { %6311 = vmatprep.subr.bf16.mxu0 %v7319_v2  ;;  %v7816_v20 = vpop.permute.xlu1 %1990 }
0x1677   :  { %6306 = vmatmul.mubr.msk.bf16.vlgmr.msra.gmra.mrb[52].mxu1 %vm105_vm3, %v7816_v20 }
0x1678   :  { %6318 = vmatpush3.bf16.msra.mxu1 %v7761_v1  ;;  %6319 = vmatprep.mubr.msk.bf16.mxu1 %vm7320_vm1, %v7319_v2 }
0x1679   :  { %6312 = vmatpush3.bf16.msra.mxu0 %v7721_v9  ;;  %6329 = vmatprep.subr.bf16.mxu1 %v7319_v2 }
0x167a   :  { %6323 = vmatprep.subr.bf16.mxu0 %v7319_v2 }
0x173f   :  { %v1808_v56 = vpop.f32.mrb[48].mxu0 }
0x1740   :  { %v1809_v57 = vadd.f32 %v1808_v56, %v7771_v31  ;;  %v6289_v58 = vpop.f32.mrb[49].mxu0 }
0x1741   :  { %v1811_v25 = vpop.f32.mrb[50].mxu0 }
0x1742   :  { %v1814_v62 = vadd.f32 %v7830_v60, %v1809_v57  ;;  %v6290_v63 = vpop.f32.mrb[51].mxu0 }
0x1744   :  { %6862 = vtanh.f32 %v1814_v62  ;;  %v5838_v43 = vmul.f32 -1.442695, %v1814_v62 }
0x1747   :  { %v1976_v46 = vpop.f32.mrb[52].mxu0 }
0x1748   :  { %v6301_v11 = vpop.f32.mrb[53].mxu0 }
0x1749   :  { %v1979_v13 = vpop.f32.mrb[54].mxu0 }
0x174a   :  { %v6302_v48 = vpop.f32.mrb[55].mxu0  ;;  %v2029_v15 = vpop.f32.mrb[52].mxu1 }
0x174b   :  { %v2030_v54 = vadd.f32 %v2029_v15, %v1976_v46  ;;  %v6307_v55 = vpop.f32.mrb[53].mxu1 }
0x174c   :  { %v2032_v16 = vpop.f32.mrb[54].mxu1 }
0x174d   :  { %v2035_v18 = vadd.f32 %v7777_v41, %v2030_v54  ;;  %v6308_v47 = vpop.f32.mrb[55].mxu1 }
0x174e   :  { %v6863_v31 = vpop.eup %6862 }
0x174f   :  { %1824 = vrot.lane.b32.xlu0 %v6863_v31, %s7328_s15  ;;  %6864 = vtanh.f32 %v2035_v18  ;;  %v5844_v19 = vmul.f32 -1.442695, %v2035_v18 }
0x1750   :  { %6866 = vpow2.f32 %v5838_v43 }
0x1751   :  { %6868 = vpow2.f32 %v5844_v19 }
0x1759   :  { %v6865_v49 = vpop.eup %6864 }
0x175a   :  { %2045 = vrot.lane.b32.xlu1 %v6865_v49, %s7325_s10  ;;  %v6867_v59 = vpop.eup %6866 }
0x175b   :  { %v1818_v22 = vadd.f32 1.0, %v6867_v59  ;;  %v6869_v23 = vpop.eup %6868 }
0x175c   :  { %v2039_v52 = vadd.f32 1.0, %v6869_v23 }
0x175d   :  { %6870 = vrcp.f32 %v1818_v22 }
0x175e   :  { %6872 = vrcp.f32 %v2039_v52 }
0x1767   :  { %v6871_v24 = vpop.eup %6870 }
0x1768   :  { %v6873_v5 = vpop.eup %6872  ;;  %v1822_v32 = vmul.f32 %v6871_v24, %v7742_v4 }
0x1769   :  { %v2043_v33 = vmul.f32 %v6873_v5, %v7790_v42 }
0x17c1   :  { %v1825_v26 = vpop.permute.xlu0 %1824 }
0x17c2   :  { %v1827_v30 = vmul.f32 %v6871_v24, %v1825_v26 }
0x17c4   :  { %1829 = vrot.lane.b32.xlu0 %v1827_v30, %s7328_s15 }
0x17cc   :  { %v2046_v29 = vpop.permute.xlu1 %2045 }
0x17cd   :  { %v2048_v61 = vmul.f32 %v6873_v5, %v2046_v29 }
0x17cf   :  { %2050 = vrot.lane.b32.xlu1 %v2048_v61, %s7326_s11 }
0x1836   :  { %v1830_v14 = vpop.permute.xlu0 %1829 }
0x1837   :  { %v7839_v27 = vadd.f32 %v1830_v14, %v1822_v32 }
0x1839   :  { %6874 = vtanh.f32 %v7839_v27 }
0x1841   :  { %v2051_v34 = vpop.permute.xlu1 %2050 }
0x1842   :  { %v7843_v36 = vadd.f32 %v2051_v34, %v2043_v33 }
0x1843   :  { %v6875_v35 = vpop.eup %6874 }
0x1844   :  { %1835 = vrot.lane.b32.xlu0 %v6875_v35, %s7328_s15  ;;  %6876 = vtanh.f32 %v7843_v36 }
0x184e   :  { %v6877_v37 = vpop.eup %6876 }
0x184f   :  { %2056 = vrot.lane.b32.xlu1 %v6877_v37, %s7326_s11 }
0x18b6   :  { %v1836_v38 = vpop.permute.xlu0 %1835 }
0x18b7   :  { %v1838_v4 = vmul.f32 %v6871_v24, %v1836_v38 }
0x18b9   :  { %v2061_v39 = vpack.c.bf16 %v1838_v4, %v1838_v4 }
0x18bb   :  { %2063 = vrot.lane.b32.xlu0 %v2061_v39, %s7329_s16 }
0x18c1   :  { %v2057_v40 = vpop.permute.xlu1 %2056 }
0x18c2   :  { %v2059_v12 = vmul.f32 %v6873_v5, %v2057_v40  ;;  %v2242_v40 = vrot.slane %v7793_v28, 7 }
0x18c4   :  { %v2060_v44 = vpack.c.bf16 %v2059_v12, %v2059_v12 }
0x18c6   :  { %2109 = vrot.lane.b32.xlu1 %v2060_v44, %s7327_s12 }
0x192d   :  { %v2064_v42 = vpop.permute.xlu0 %2063 }
0x192e   :  { %6314 = vmatmul.mubr.msk.bf16.vlgmr.msra.gmra.mrb[56].mxu0 %vm361_vm5, %v2064_v42 }
0x192f   :  { %6324 = vmatpush3.bf16.msra.mxu0 %v7406_v3  ;;  %6325 = vmatprep.mubr.msk.bf16.mxu0 %vm7320_vm1, %v7319_v2 }
0x1930   :  { %6335 = vmatprep.subr.bf16.mxu0 %v7319_v2 }
0x1936   :  { %6326 = vmatmul.mubr.msk.bf16.vlgmr.msra.gmra.mrb[60].mxu0 %vm105_vm3, %v7816_v20 }
0x1937   :  { %6336 = vmatpush3.bf16.msra.mxu0 %v7450_v50  ;;  %6337 = vmatprep.mubr.msk.bf16.mxu0 %vm7320_vm1, %v7319_v2 }
0x1938   :  { %6349 = vmatprep.subr.bf16.mxu0 %v7319_v2  ;;  %v2110_v6 = vpop.permute.xlu1 %2109 }
0x1939   :  { %6320 = vmatmul.mubr.msk.bf16.vlgmr.msra.gmra.mrb[56].mxu1 %vm218_vm4, %v2110_v6 }
0x193a   :  { %6330 = vmatpush3.bf16.msra.mxu1 %v7708_v45  ;;  %6331 = vmatprep.mubr.msk.bf16.mxu1 %vm7320_vm1, %v7319_v2 }
0x193b   :  { %6341 = vmatprep.subr.bf16.mxu1 %v7319_v2 }
0x1941   :  { %6332 = vmatmul.mubr.msk.bf16.vlgmr.msra.gmra.mrb[60].mxu1 %vm218_vm4, %v2110_v6 }
0x1942   :  { %6342 = vmatpush3.bf16.msra.mxu1 %v7715_v7  ;;  %6345 = vmatprep.mubr.msk.bf16.mxu1 %vm7320_vm1, %v7319_v2 }
0x1943   :  { %6343 = vmatprep.subr.bf16.mxu1 %v7319_v2 }
0x1946   :  { %6344 = vmatpush3.bf16.msra.mxu1 %v7721_v9 }
0x1947   :  { %6355 = vmatprep.subr.bf16.mxu1 %v7319_v2 }
0x1a01   :  { %v2102_v51 = vpop.f32.mrb[56].mxu0 }
0x1a02   :  { %v6315_v10 = vpop.f32.mrb[57].mxu0 }
0x1a03   :  { %v2105_v0 = vpop.f32.mrb[58].mxu0  ;;  %v2243_v10 = vrot.slane %v7797_v53, 7 }
0x1a04   :  { %v6316_v20 = vpop.f32.mrb[59].mxu0 }
0x1a09   :  { %v2213_v56 = vpop.f32.mrb[60].mxu0 }
0x1a0a   :  { %v2220_v57 = vrot.slane %v2213_v56, 2  ;;  %v6327_v58 = vpop.f32.mrb[61].mxu0  ;;  %v2221_v11 = vrot.slane %v2213_v56, 3 }
0x1a0b   :  { %v2216_v25 = vpop.f32.mrb[62].mxu0 }
0x1a0c   :  { %v2224_v62 = vadd.f32 %v2220_v57, %v7429_v21  ;;  %v6328_v63 = vpop.f32.mrb[63].mxu0  ;;  %v2148_v46 = vpop.f32.mrb[56].mxu1  ;;  %v2225_v16 = vadd.f32 %v2221_v11, %v7427_v17 }
0x1a0d   :  { %v2149_v13 = vadd.f32 %v2148_v46, %v2102_v51  ;;  %v6321_v48 = vpop.f32.mrb[57].mxu1 }
0x1a0e   :  { %6878 = vtanh.f32 %v2224_v62  ;;  %v2151_v15 = vpop.f32.mrb[58].mxu1  ;;  %v5849_v22 = vmul.f32 -1.442695, %v2224_v62  ;;  %v5850_v52 = vmul.f32 -1.442695, %v2225_v16 }
0x1a0f   :  { %v2154_v54 = vadd.f32 %v7830_v60, %v2149_v13  ;;  %v6322_v55 = vpop.f32.mrb[59].mxu1 }
0x1a11   :  { %6880 = vtanh.f32 %v2154_v54  ;;  %v5847_v23 = vmul.f32 -1.442695, %v2154_v54 }
0x1a12   :  { %6882 = vtanh.f32 %v2225_v16 }
0x1a13   :  { %6884 = vpow2.f32 %v5849_v22 }
0x1a14   :  { %v7876_v31 = vpop.f32.mrb[60].mxu1  ;;  %6886 = vpow2.f32 %v5847_v23 }
0x1a15   :  { %v6333_v18 = vpop.f32.mrb[61].mxu1  ;;  %6888 = vpow2.f32 %v5850_v52 }
0x1a16   :  { %v2319_v47 = vpop.f32.mrb[62].mxu1 }
0x1a17   :  { %v6334_v43 = vpop.f32.mrb[63].mxu1 }
0x1a18   :  { %v6879_v49 = vpop.eup %6878 }
0x1a19   :  { %2250 = vrot.lane.b32.xlu1 %v6879_v49, %s7322_s27 }
0x1a1b   :  { %v6881_v19 = vpop.eup %6880 }
0x1a1c   :  { %2164 = vrot.lane.b32.xlu0 %v6881_v19, %s7328_s15  ;;  %v6883_v59 = vpop.eup %6882 }
0x1a1d   :  { %v6885_v24 = vpop.eup %6884 }
0x1a1e   :  { %v2232_v26 = vadd.f32 1.0, %v6885_v24  ;;  %v6887_v30 = vpop.eup %6886 }
0x1a1f   :  { %v2158_v5 = vadd.f32 1.0, %v6887_v30  ;;  %v6889_v29 = vpop.eup %6888 }
0x1a20   :  { %2252 = vrot.lane.b32.xlu0 %v6883_v59, %s7322_s27  ;;  %6890 = vrcp.f32 %v2232_v26  ;;  %v2233_v61 = vadd.f32 1.0, %v6889_v29 }
0x1a21   :  { %6892 = vrcp.f32 %v2158_v5 }
0x1a22   :  { %6894 = vrcp.f32 %v2233_v61 }
0x1a2a   :  { %v6891_v32 = vpop.eup %6890 }
0x1a2b   :  { %v6893_v34 = vpop.eup %6892  ;;  %v2246_v12 = vmul.f32 %v6891_v32, %v2242_v40 }
0x1a2c   :  { %v6895_v38 = vpop.eup %6894  ;;  %v2162_v6 = vmul.f32 %v6893_v34, %v7839_v27 }
0x1a2d   :  { %v2247_v20 = vmul.f32 %v6895_v38, %v2243_v10 }
0x1a8b   :  { %v2251_v14 = vpop.permute.xlu1 %2250 }
0x1a8c   :  { %v2256_v33 = vmul.f32 %v6891_v32, %v2251_v14 }
0x1a8e   :  { %2260 = vrot.lane.b32.xlu0 %v2256_v33, %s7323_s28  ;;  %v2165_v35 = vpop.permute.xlu0 %2164 }
0x1a8f   :  { %v2167_v37 = vmul.f32 %v6893_v34, %v2165_v35 }
0x1a91   :  { %2169 = vrot.lane.b32.xlu1 %v2167_v37, %s7328_s15 }
0x1a92   :  { %v2253_v4 = vpop.permute.xlu0 %2252 }
0x1a93   :  { %v2257_v39 = vmul.f32 %v6895_v38, %v2253_v4 }
0x1a95   :  { %2262 = vrot.lane.b32.xlu1 %v2257_v39, %s7323_s28 }
0x1b00   :  { %v2261_v44 = vpop.permute.xlu0 %2260 }
0x1b01   :  { %v7885_v42 = vadd.f32 %v2261_v44, %v2246_v12 }
0x1b03   :  { %6896 = vtanh.f32 %v7885_v42  ;;  %v2170_v51 = vpop.permute.xlu1 %2169 }
0x1b04   :  { %v7890_v0 = vadd.f32 %v2170_v51, %v2162_v6 }
0x1b06   :  { %6898 = vtanh.f32 %v7890_v0 }
0x1b07   :  { %v2263_v56 = vpop.permute.xlu1 %2262 }
0x1b08   :  { %v7893_v57 = vadd.f32 %v2263_v56, %v2247_v20 }
0x1b0a   :  { %6900 = vtanh.f32 %v7893_v57 }
0x1b0d   :  { %v6897_v28 = vpop.eup %6896 }
0x1b0e   :  { %2272 = vrot.lane.b32.xlu1 %v6897_v28, %s7323_s28 }
0x1b10   :  { %v6899_v58 = vpop.eup %6898 }
0x1b11   :  { %2175 = vrot.lane.b32.xlu0 %v6899_v58, %s7328_s15 }
0x1b14   :  { %v6901_v27 = vpop.eup %6900 }
0x1b15   :  { %2274 = vrot.lane.b32.xlu0 %v6901_v27, %s7323_s28 }
0x1b80   :  { %v2273_v53 = vpop.permute.xlu1 %2272 }
0x1b81   :  { %v2278_v25 = vmul.f32 %v6891_v32, %v2273_v53 }
0x1b83   :  { %v2176_v62 = vpop.permute.xlu0 %2175  ;;  %v2280_v46 = vpack.c.bf16 %v2278_v25, %v2278_v25 }
0x1b84   :  { %v2178_v63 = vmul.f32 %v6893_v34, %v2176_v62 }
0x1b85   :  { %v2324_v15 = vunpack.c.l.b16 %v2280_v46  ;;  %v2582_v46 = vrot.slane %v7885_v42, 7 }
0x1b86   :  { %v2401_v11 = vpack.c.bf16 %v2178_v63, %v2178_v63 }
0x1b87   :  { %v2275_v13 = vpop.permute.xlu0 %2274  ;;  %v2326_v16 = vrot.slane %v2324_v15, 6 }
0x1b88   :  { %v2279_v48 = vmul.f32 %v6895_v38, %v2275_v13  ;;  %2403 = vrot.lane.b32.xlu1 %v2401_v11, %s7329_s16 }
0x1b8a   :  { %v2281_v54 = vpack.c.bf16 %v2279_v48, %v2279_v48 }
0x1b8c   :  { %v2325_v55 = vunpack.c.l.b16 %v2281_v54 }
0x1b8e   :  { %v2327_v18 = vrot.slane %v2325_v55, 5  ;;  %v2583_v55 = vrot.slane %v7893_v57, 7 }
0x1b90   :  { %v2328_v47 = vsel %vm266_vm2, %v2327_v18, %v2326_v16 }
0x1b91   :  { %v2329_v49 = vpack.c.b16 %v2328_v47, %v2328_v47 }
0x1b93   :  { %2330 = vrot.lane.b32.xlu0 %v2329_v49, %s7324_s29 }
0x1bfa   :  { %v2404_v43 = vpop.permute.xlu1 %2403 }
0x1bfb   :  { %6346 = vmatmul.mubr.msk.bf16.vlgmr.msra.gmra.mrb[64].mxu1 %vm361_vm5, %v2404_v43 }
0x1bfc   :  { %6356 = vmatpush3.bf16.msra.mxu1 %v7406_v3  ;;  %6357 = vmatprep.mubr.msk.bf16.mxu1 %vm7320_vm1, %v7319_v2 }
0x1bfd   :  { %6367 = vmatprep.subr.bf16.mxu1 %v7319_v2 }
0x1c05   :  { %v2331_v19 = vpop.permute.xlu0 %2330 }
0x1c06   :  { %6338 = vmatmul.mubr.msk.bf16.vlgmr.msra.gmra.mrb[64].mxu0 %vm105_vm3, %v2331_v19  ;;  %6358 = vmatmul.mubr.msk.bf16.vlgmr.msra.gmra.mrb[68].mxu1 %vm105_vm3, %v2331_v19 }
0x1c07   :  { %6350 = vmatpush3.bf16.msra.mxu0 %v7761_v1  ;;  %6351 = vmatprep.mubr.msk.bf16.mxu0 %vm7320_vm1, %v7319_v2 }
0x1c08   :  { %6361 = vmatprep.subr.bf16.mxu0 %v7319_v2  ;;  %6368 = vmatpush3.bf16.msra.mxu1 %v7450_v50 }
0x1c09   :  { %6369 = vmatprep.mubr.msk.bf16.mxu1 %vm7320_vm1, %v7319_v2  ;;  %6381 = vmatprep.subr.bf16.mxu1 %v7319_v2 }
0x1cce   :  { %v7917_v3 = vpop.f32.mrb[64].mxu1 }
0x1ccf   :  { %v6347_v59 = vpop.f32.mrb[65].mxu1 }
0x1cd0   :  { %v2445_v22 = vpop.f32.mrb[66].mxu1 }
0x1cd1   :  { %v6348_v23 = vpop.f32.mrb[67].mxu1 }
0x1cd9   :  { %v2369_v52 = vpop.f32.mrb[64].mxu0  ;;  %v2553_v24 = vpop.f32.mrb[68].mxu1 }
0x1cda   :  { %v2370_v26 = vadd.f32 %v2369_v52, %v7876_v31  ;;  %v2560_v30 = vrot.slane %v2553_v24, 1  ;;  %v6339_v5 = vpop.f32.mrb[65].mxu0  ;;  %v6359_v29 = vpop.f32.mrb[69].mxu1  ;;  %v2561_v61 = vrot.slane %v2553_v24, 2 }
0x1cdb   :  { %v2372_v32 = vpop.f32.mrb[66].mxu0  ;;  %v2556_v50 = vpop.f32.mrb[70].mxu1 }
0x1cdc   :  { %v2375_v14 = vadd.f32 %v7777_v41, %v2370_v26  ;;  %v2564_v33 = vadd.f32 %v2560_v30, %v7429_v21  ;;  %v6340_v34 = vpop.f32.mrb[67].mxu0  ;;  %v6360_v35 = vpop.f32.mrb[71].mxu1  ;;  %v2565_v37 = vadd.f32 %v2561_v61, %v7427_v17 }
0x1cde   :  { %6902 = vtanh.f32 %v2375_v14  ;;  %v5853_v39 = vmul.f32 -1.442695, %v2375_v14  ;;  %v5858_v40 = vmul.f32 -1.442695, %v2564_v33  ;;  %v5859_v21 = vmul.f32 -1.442695, %v2565_v37 }
0x1cdf   :  { %6904 = vtanh.f32 %v2564_v33 }
0x1ce0   :  { %6906 = vtanh.f32 %v2565_v37 }
0x1ce1   :  { %6908 = vpow2.f32 %v5853_v39 }
0x1ce2   :  { %6910 = vpow2.f32 %v5858_v40 }
0x1ce3   :  { %6912 = vpow2.f32 %v5859_v21 }
0x1ce8   :  { %v6903_v38 = vpop.eup %6902 }
0x1ce9   :  { %v6905_v4 = vpop.eup %6904  ;;  %2385 = vrot.lane.b32.xlu1 %v6903_v38, %s7325_s10 }
0x1cea   :  { %2590 = vrot.lane.b32.xlu0 %v6905_v4, %s7322_s27  ;;  %v6907_v31 = vpop.eup %6906 }
0x1ceb   :  { %v6909_v12 = vpop.eup %6908 }
0x1cec   :  { %v6911_v44 = vpop.eup %6910  ;;  %v2379_v17 = vadd.f32 1.0, %v6909_v12 }
0x1ced   :  { %2592 = vrot.lane.b32.xlu1 %v6907_v31, %s7322_s27  ;;  %v2572_v6 = vadd.f32 1.0, %v6911_v44  ;;  %v6913_v51 = vpop.eup %6912 }
0x1cee   :  { %6914 = vrcp.f32 %v2379_v17  ;;  %v2573_v10 = vadd.f32 1.0, %v6913_v51 }
0x1cef   :  { %6916 = vrcp.f32 %v2572_v6 }
0x1cf0   :  { %6918 = vrcp.f32 %v2573_v10 }
0x1cf8   :  { %v6915_v20 = vpop.eup %6914 }
0x1cf9   :  { %v6917_v28 = vpop.eup %6916  ;;  %v2383_v11 = vmul.f32 %v6915_v20, %v7843_v36 }
0x1cfa   :  { %v6919_v25 = vpop.eup %6918  ;;  %v2586_v13 = vmul.f32 %v6917_v28, %v2582_v46 }
0x1cfb   :  { %v2587_v18 = vmul.f32 %v6919_v25, %v2583_v55 }
0x1d5b   :  { %v2386_v56 = vpop.permute.xlu1 %2385 }
0x1d5c   :  { %v2591_v58 = vpop.permute.xlu0 %2590  ;;  %v2388_v27 = vmul.f32 %v6915_v20, %v2386_v56 }
0x1d5d   :  { %v2596_v53 = vmul.f32 %v6917_v28, %v2591_v58 }
0x1d5e   :  { %2390 = vrot.lane.b32.xlu0 %v2388_v27, %s7326_s11 }
0x1d5f   :  { %2600 = vrot.lane.b32.xlu1 %v2596_v53, %s7323_s28  ;;  %v2593_v62 = vpop.permute.xlu1 %2592 }
0x1d60   :  { %v2597_v63 = vmul.f32 %v6919_v25, %v2593_v62 }
0x1d62   :  { %2602 = vrot.lane.b32.xlu0 %v2597_v63, %s7323_s28 }
0x1dd0   :  { %v2391_v48 = vpop.permute.xlu0 %2390 }
0x1dd1   :  { %v2601_v15 = vpop.permute.xlu1 %2600  ;;  %v7931_v54 = vadd.f32 %v2391_v48, %v2383_v11 }
0x1dd2   :  { %v2606_v16 = vadd.f32 %v2601_v15, %v2586_v13 }
0x1dd3   :  { %6920 = vtanh.f32 %v7931_v54 }
0x1dd4   :  { %6922 = vtanh.f32 %v2606_v16  ;;  %v2603_v47 = vpop.permute.xlu0 %2602 }
0x1dd5   :  { %v2607_v49 = vadd.f32 %v2603_v47, %v2587_v18 }
0x1dd7   :  { %6924 = vtanh.f32 %v2607_v49 }
0x1ddd   :  { %v6921_v43 = vpop.eup %6920 }
0x1dde   :  { %v6923_v19 = vpop.eup %6922  ;;  %2396 = vrot.lane.b32.xlu1 %v6921_v43, %s7326_s11 }
0x1ddf   :  { %2612 = vrot.lane.b32.xlu0 %v6923_v19, %s7323_s28 }
0x1de1   :  { %v6925_v36 = vpop.eup %6924 }
0x1de2   :  { %2614 = vrot.lane.b32.xlu1 %v6925_v36, %s7323_s28 }
0x1e50   :  { %v2397_v42 = vpop.permute.xlu1 %2396 }
0x1e51   :  { %v2613_v59 = vpop.permute.xlu0 %2612  ;;  %v2399_v57 = vmul.f32 %v6915_v20, %v2397_v42 }
0x1e52   :  { %v2618_v22 = vmul.f32 %v6917_v28, %v2613_v59 }
0x1e53   :  { %v2400_v23 = vpack.c.bf16 %v2399_v57, %v2399_v57 }
0x1e54   :  { %v2620_v52 = vpack.c.bf16 %v2618_v22, %v2618_v22  ;;  %v2615_v24 = vpop.permute.xlu1 %2614 }
0x1e55   :  { %2449 = vrot.lane.b32.xlu0 %v2400_v23, %s7327_s12  ;;  %v2619_v26 = vmul.f32 %v6919_v25, %v2615_v24 }
0x1e56   :  { %v2664_v30 = vunpack.c.l.b16 %v2620_v52 }
0x1e57   :  { %v2621_v5 = vpack.c.bf16 %v2619_v26, %v2619_v26 }
0x1e58   :  { %v2666_v61 = vrot.slane %v2664_v30, 7 }
0x1e59   :  { %v2665_v29 = vunpack.c.l.b16 %v2621_v5 }
0x1e5b   :  { %v2667_v32 = vrot.slane %v2665_v29, 6 }
0x1e5d   :  { %v2668_v50 = vsel %vm266_vm2, %v2667_v32, %v2666_v61 }
0x1e5e   :  { %v2669_v14 = vpack.c.b16 %v2668_v50, %v2668_v50 }
0x1e60   :  { %2670 = vrot.lane.b32.xlu1 %v2669_v14, %s7324_s29 }
0x1ec7   :  { %v2450_v33 = vpop.permute.xlu0 %2449 }
0x1ec8   :  { %6352 = vmatmul.mubr.msk.bf16.vlgmr.msra.gmra.mrb[68].mxu0 %vm218_vm4, %v2450_v33 }
0x1ec9   :  { %6362 = vmatpush3.bf16.msra.mxu0 %v7708_v45  ;;  %6363 = vmatprep.mubr.msk.bf16.mxu0 %vm7320_vm1, %v7319_v2 }
0x1eca   :  { %6373 = vmatprep.subr.bf16.mxu0 %v7319_v2 }
0x1ed0   :  { %6364 = vmatmul.mubr.msk.bf16.vlgmr.msra.gmra.mrb[72].mxu0 %vm218_vm4, %v2450_v33 }
0x1ed1   :  { %6374 = vmatpush3.bf16.msra.mxu0 %v7715_v7  ;;  %6377 = vmatprep.mubr.msk.bf16.mxu0 %vm7320_vm1, %v7319_v2 }
0x1ed2   :  { %6375 = vmatprep.subr.bf16.mxu0 %v7319_v2  ;;  %v2671_v34 = vpop.permute.xlu1 %2670 }
0x1ed3   :  { %6370 = vmatmul.mubr.msk.bf16.vlgmr.msra.gmra.mrb[72].mxu1 %vm105_vm3, %v2671_v34 }
0x1ed4   :  { %6382 = vmatpush3.bf16.msra.mxu1 %v7761_v1  ;;  %6383 = vmatprep.mubr.msk.bf16.mxu1 %vm7320_vm1, %v7319_v2 }
0x1ed5   :  { %6376 = vmatpush3.bf16.msra.mxu0 %v7721_v9  ;;  %6395 = vmatprep.subr.bf16.mxu1 %v7319_v2 }
0x1ed6   :  { %6387 = vmatprep.subr.bf16.mxu0 %v7319_v2 }
0x1f9b   :  { %v2488_v45 = vpop.f32.mrb[68].mxu0 }
0x1f9c   :  { %v2489_v7 = vadd.f32 %v2488_v45, %v7917_v3  ;;  %v6353_v35 = vpop.f32.mrb[69].mxu0 }
0x1f9d   :  { %v2491_v37 = vpop.f32.mrb[70].mxu0 }
0x1f9e   :  { %v2494_v38 = vadd.f32 %v7830_v60, %v2489_v7  ;;  %v6354_v4 = vpop.f32.mrb[71].mxu0 }
0x1f9f   :  { %v6687_v4 = vld [vmem:[#allocation3 + $0x74] ss:$48 sps:$4 sm:$0xff]  }
0x1fa0   :  { %6926 = vtanh.f32 %v2494_v38  ;;  %v5856_v10 = vmul.f32 -1.442695, %v2494_v38 }
0x1fa3   :  { %v2656_v31 = vpop.f32.mrb[72].mxu0 }
0x1fa4   :  { %v6365_v9 = vpop.f32.mrb[73].mxu0 }
0x1fa5   :  { %v2659_v39 = vpop.f32.mrb[74].mxu0 }
0x1fa6   :  { %v6366_v1 = vpop.f32.mrb[75].mxu0  ;;  %v2709_v40 = vpop.f32.mrb[72].mxu1 }
0x1fa7   :  { %v2710_v21 = vadd.f32 %v2709_v40, %v2656_v31  ;;  %v6371_v12 = vpop.f32.mrb[73].mxu1 }
0x1fa8   :  { %v2712_v44 = vpop.f32.mrb[74].mxu1  ;;  %v5866_v12 = vld [vmem:[%s8607_s3 + $0x4] ss:$0 sm:$0xff] }
0x1fa9   :  { %v2715_v6 = vadd.f32 %v7777_v41, %v2710_v21  ;;  %v6372_v51 = vpop.f32.mrb[75].mxu1  ;;  %v6688_v21 = vld [vmem:[#allocation3 + $0x18] ss:$48 sps:$4 sm:$0xff]  }
0x1faa   :  { %v6927_v17 = vpop.eup %6926 }
0x1fab   :  { %2504 = vrot.lane.b32.xlu0 %v6927_v17, %s7328_s15  ;;  %6928 = vtanh.f32 %v2715_v6  ;;  %v5862_v20 = vmul.f32 -1.442695, %v2715_v6 }
0x1fac   :  { %6930 = vpow2.f32 %v5856_v10 }
0x1fad   :  { %6932 = vpow2.f32 %v5862_v20 }
0x1fb5   :  { %v6929_v3 = vpop.eup %6928 }
0x1fb6   :  { %2725 = vrot.lane.b32.xlu1 %v6929_v3, %s7325_s10  ;;  %v6931_v56 = vpop.eup %6930 }
0x1fb7   :  { %v2498_v28 = vadd.f32 1.0, %v6931_v56  ;;  %v6933_v58 = vpop.eup %6932  ;;  %v6689_v56 = vld [vmem:[#allocation3 + $0x78] ss:$48 sps:$4 sm:$0xff]  }
0x1fb8   :  { %v2719_v27 = vadd.f32 1.0, %v6933_v58 }
0x1fb9   :  { %6934 = vrcp.f32 %v2498_v28  ;;  %v6690_v28 = vld [vmem:[#allocation3 + $0x1c] ss:$48 sps:$4 sm:$0xff]  }
0x1fba   :  { %6936 = vrcp.f32 %v2719_v27  ;;  %v2936_v27 = vld [vmem:[%s8605_s1] sm:$0x3]  ;;  %s7341_s1 = smov [#allocation9]  }
0x1fbb   :  { %s5762_s23 = sshll.u32 %s7341_s1, 4  ;;  %s5763_s23 = int_to_ptr.vmem [resolvable:$true] %s5762_s23 }
0x1fbc   :  { %s7241_s24 = scalar_lea.vmem %s5763_s23, 32  ;;  %p7246_p0 = scmp.lt.s32.totalorder %s5763_s23, %s5763_s23 }
0x1fbd   :  { %p7242_p13 = scmp.ne.s32.totalorder %s5763_s23, %s7241_s24  ;;  %p7247_p1 = scmp.lt.s32.totalorder %s7241_s24, %s7241_s24 }
0x1fbf   :  { %p7248_p2 = por %p7247_p1, %p7246_p0 }
0x1fc1   :  { %p7249_p3 = pnand %p7248_p2, %p7242_p13 }
0x1fc3   :  { %v6935_v53 = vpop.eup %6934 }
0x1fc4   :  { %v6937_v41 = vpop.eup %6936  ;;  %v2502_v11 = vmul.f32 %v6935_v53, %v7890_v0 }
0x1fc5   :  { %v2723_v15 = vmul.f32 %v6937_v41, %v7931_v54 }
0x201d   :  { %v2505_v25 = vpop.permute.xlu0 %2504 }
0x201e   :  { %v2507_v62 = vmul.f32 %v6935_v53, %v2505_v25 }
0x2020   :  { %2509 = vrot.lane.b32.xlu0 %v2507_v62, %s7328_s15 }
0x2028   :  { %v2726_v63 = vpop.permute.xlu1 %2725 }
0x2029   :  { %v2728_v46 = vmul.f32 %v6937_v41, %v2726_v63 }
0x202b   :  { %2730 = vrot.lane.b32.xlu1 %v2728_v46, %s7326_s11  ;;  %v6692_v46 = vld [vmem:[#allocation3 + $0x7c] ss:$48 sps:$4 sm:$0xff]  }
0x2092   :  { %v2510_v13 = vpop.permute.xlu0 %2509 }
0x2093   :  { %v2512_v48 = vadd.f32 %v2510_v13, %v2502_v11  ;;  %v5870_v11 = vld [vmem:[%s8607_s3 + $0x5] ss:$0 sm:$0xff]  ;;  %v3171_v13 = vld [vmem:[#allocation3 + $0x28] sm:$0xf] }
0x2095   :  { %6938 = vtanh.f32 %v2512_v48 }
0x209d   :  { %v2731_v55 = vpop.permute.xlu1 %2730 }
0x209e   :  { %v2733_v18 = vadd.f32 %v2731_v55, %v2723_v15 }
0x209f   :  { %v6939_v16 = vpop.eup %6938 }
0x20a0   :  { %2515 = vrot.lane.b32.xlu0 %v6939_v16, %s7328_s15  ;;  %6940 = vtanh.f32 %v2733_v18  ;;  %v8018_v18 = vsel %vm109_vm0, %v3171_v13, 0 }
0x20aa   :  { %v6941_v47 = vpop.eup %6940 }
0x20ab   :  { %2736 = vrot.lane.b32.xlu1 %v6941_v47, %s7326_s11 }
0x2112   :  { %v2516_v49 = vpop.permute.xlu0 %2515 }
0x2113   :  { %v2518_v43 = vmul.f32 %v6935_v53, %v2516_v49 }
0x2115   :  { %v2741_v19 = vpack.c.bf16 %v2518_v43, %v2518_v43  ;;  %v3293_v43 = vld [vmem:[#allocation3 + $0x2c] sm:$0xf] }
0x2117   :  { %2743 = vrot.lane.b32.xlu0 %v2741_v19, %s7329_s16 }
0x211d   :  { %v2737_v0 = vpop.permute.xlu1 %2736 }
0x211e   :  { %v2739_v36 = vmul.f32 %v6937_v41, %v2737_v0  ;;  %v8003_v41 = vld [vmem:[#allocation3 + $0x20] ss:$48 sps:$4 sm:$0xff]  }
0x2120   :  { %v2740_v42 = vpack.c.bf16 %v2739_v36, %v2739_v36 }
0x2122   :  { %2789 = vrot.lane.b32.xlu1 %v2740_v42, %s7327_s12  ;;  %v8026_v42 = vsel %vm109_vm0, %v3293_v43, 0 }
0x2189   :  { %v2744_v54 = vpop.permute.xlu0 %2743 }
0x218a   :  { %6378 = vmatmul.mubr.msk.bf16.vlgmr.msra.gmra.mrb[76].mxu0 %vm361_vm5, %v2744_v54 }
0x218b   :  { %6391 = vmatprep.mubr.msk.bf16.mxu0 %vm7320_vm1, %v7319_v2 }
0x2194   :  { %v2790_v59 = vpop.permute.xlu1 %2789 }
0x2195   :  { %6384 = vmatmul.mubr.msk.bf16.vlgmr.msra.gmra.mrb[76].mxu1 %vm218_vm4, %v2790_v59  ;;  %v5874_v59 = vld [vmem:[%s8607_s3 + $0x6] ss:$0 sm:$0xff] }
0x2196   :  { %6399 = vmatprep.mubr.msk.bf16.mxu1 %vm7320_vm1, %v7319_v2  ;;  %6396 = vmatpush3.bf16.msra.mxu1 %v6688_v21 }
0x2197   :  { %6397 = vmatprep.subr.bf16.mxu1 %v7319_v2 }
0x219a   :  { %6398 = vmatpush3.bf16.msra.mxu1 %v6689_v56 }
0x219b   :  { %6411 = vmatprep.subr.bf16.mxu1 %v7319_v2 }
0x225d   :  { %v2782_v57 = vpop.f32.mrb[76].mxu0 }
0x225e   :  { %v6379_v22 = vpop.f32.mrb[77].mxu0 }
0x225f   :  { %v2785_v23 = vpop.f32.mrb[78].mxu0 }
0x2260   :  { %v6380_v52 = vpop.f32.mrb[79].mxu0 }
0x2268   :  { %v2828_v24 = vpop.f32.mrb[76].mxu1 }
0x2269   :  { %v2829_v26 = vadd.f32 %v2828_v24, %v2782_v57  ;;  %v6385_v30 = vpop.f32.mrb[77].mxu1 }
0x226a   :  { %v2831_v5 = vpop.f32.mrb[78].mxu1 }
0x226b   :  { %v2834_v29 = vadd.f32 %v7830_v60, %v2829_v26  ;;  %v6386_v61 = vpop.f32.mrb[79].mxu1  ;;  %v6686_v60 = vld [vmem:[#allocation3 + $0x14] ss:$48 sps:$4 sm:$0xff]  }
0x226c   :  { %6388 = vmatpush3.bf16.msra.mxu0 %v6686_v60 }
0x226d   :  { %6942 = vtanh.f32 %v2834_v29  ;;  %v5865_v50 = vmul.f32 -1.442695, %v2834_v29  ;;  %6389 = vmatprep.subr.bf16.mxu0 %v7319_v2 }
0x226f   :  { %6944 = vpow2.f32 %v5865_v50 }
0x2270   :  { %6390 = vmatpush3.bf16.msra.mxu0 %v6687_v4 }
0x2271   :  { %6403 = vmatprep.subr.bf16.mxu0 %v7319_v2 }
0x2277   :  { %v6943_v32 = vpop.eup %6942 }
0x2278   :  { %2844 = vrot.lane.b32.xlu0 %v6943_v32, %s7328_s15 }
0x2279   :  { %v6945_v14 = vpop.eup %6944 }
0x227a   :  { %v2838_v33 = vadd.f32 1.0, %v6945_v14 }
0x227c   :  { %6946 = vrcp.f32 %v2838_v33 }
0x2286   :  { %v6947_v34 = vpop.eup %6946 }
0x2287   :  { %v2842_v35 = vmul.f32 %v6947_v34, %v2512_v48 }
0x22ea   :  { %v2845_v45 = vpop.permute.xlu0 %2844 }
0x22eb   :  { %v2847_v7 = vmul.f32 %v6947_v34, %v2845_v45  ;;  %v8044_v45 = vld [vmem:[#allocation3 + $0x24] ss:$48 sps:$4 sm:$0xff]  }
0x22ed   :  { %2849 = vrot.lane.b32.xlu1 %v2847_v7, %s7328_s15 }
0x235f   :  { %v2850_v37 = vpop.permute.xlu1 %2849 }
0x2360   :  { %v2852_v38 = vadd.f32 %v2850_v37, %v2842_v35 }
0x2362   :  { %6948 = vtanh.f32 %v2852_v38 }
0x236c   :  { %v6949_v31 = vpop.eup %6948 }
0x236d   :  { %2855 = vrot.lane.b32.xlu0 %v6949_v31, %s7328_s15  ;;  %s7330_s15 = smov 125  }
0x23df   :  { %v2856_v9 = vpop.permute.xlu0 %2855 }
0x23e0   :  { %v2858_v39 = vmul.f32 %v6947_v34, %v2856_v9 }
0x23e2   :  { %v2859_v1 = vpack.c.bf16 %v2858_v39, %v2858_v39 }
0x23e4   :  { %2872 = vrot.lane.b32.xlu1 %v2859_v1, %s7329_s16  ;;  %v8063_v1 = vld [vmem:[%s8607_s3 + $0x7] ss:$0 sm:$0xff]  ;;  %s7331_s16 = smov 1  }
0x2456   :  { %v2873_v40 = vpop.permute.xlu1 %2872 }
0x2457   :  { %6392 = vmatmul.mubr.msk.bf16.vlgmr.msra.gmra.mrb[80].mxu0 %vm361_vm5, %v2873_v40 }
0x2458   :  { %6407 = vmatprep.mubr.msk.bf16.mxu0 %vm7320_vm1, %v7319_v2  ;;  %6404 = vmatpush3.bf16.msra.mxu0 %v6690_v28 }
0x2459   :  { %6405 = vmatprep.subr.bf16.mxu0 %v7319_v2 }
0x245c   :  { %6406 = vmatpush3.bf16.msra.mxu0 %v6692_v46 }
0x245d   :  { %6417 = vmatprep.subr.bf16.mxu0 %v7319_v2 }
0x252a   :  { %v2923_v44 = vpop.f32.mrb[80].mxu0 }
0x252b   :  { %v7991_v17 = vadd.f32 %v5866_v12, %v2923_v44  ;;  %v6393_v6 = vpop.f32.mrb[81].mxu0 }
0x252c   :  { %v2926_v51 = vpop.f32.mrb[82].mxu0 }
0x252d   :  { %v2937_v3 = vmul.f32 0.5, %v7991_v17  ;;  %v6394_v10 = vpop.f32.mrb[83].mxu0  ;;  %2930 = vst.msk [vmem:[#allocation9] sm:$0x3] %vm2929_vm6, %v7991_v17 }
0x252f   :  { %v2938_v20 = vmul.f32 1.442695, %v2937_v3 }
0x2531   :  { %6950 = vpow2.f32 %v2938_v20 }
0x253b   :  { %v6951_v58 = vpop.eup %6950 }
0x253c   :  { %2941 = vrot.lane.b32.xlu0 %v6951_v58, %s7327_s12 }
0x25ae   :  { %v2942_v53 = vpop.permute.xlu0 %2941 }
0x25af   :  { %v2944_v25 = vmul.f32 %v2942_v53, %v2936_v27 }
0x25b1   :  { %v2945_v62 = vadd.f32 %v2944_v25, %v7991_v17 }
0x25b3   :  { %v2946_v63 = vpack.c.bf16 %v2945_v62, %v2945_v62 }
0x25b5   :  { %6400 = vmatmul.mubr.msk.bf16.vlgmr.msra.gmra.mrb[80].mxu1 %vm361_vm5, %v2946_v63 }
0x25b6   :  { %6412 = vmatpush3.bf16.msra.mxu1 %v8003_v41  ;;  %6413 = vmatprep.mubr.msk.bf16.mxu1 %vm7320_vm1, %v7319_v2 }
0x25b7   :  { %6423 = vmatprep.subr.bf16.mxu1 %v7319_v2 }
0x25bd   :  { %6414 = vmatmul.mubr.bf16.vlgmr.msra.gmra.mrb[84].mxu1 %v7321_v8 }
0x25be   :  { %6425 = vmatprep.mubr.msk.bf16.mxu1 %vm7320_vm1, %v7319_v2  ;;  %6424 = vmatpush3.bf16.msra.mxu1 %v8044_v45 }
0x25bf   :  { %6435 = vmatprep.subr.bf16.mxu1 %v7319_v2 }
0x2688   :  { %v3007_v48 = vpop.f32.mrb[80].mxu1 }
0x2689   :  { %v3008_v15 = vadd.f32 %v5870_v11, %v3007_v48  ;;  %v6401_v55 = vpop.f32.mrb[81].mxu1 }
0x268a   :  { %v3010_v16 = vpop.f32.mrb[82].mxu1 }
0x268b   :  { %v3013_v47 = vpack.c.bf16 %v3008_v15, %v3008_v15  ;;  %v6402_v49 = vpop.f32.mrb[83].mxu1 }
0x268d   :  { %6408 = vmatmul.mubr.msk.bf16.vlgmr.msra.gmra.mrb[84].mxu0 %vm361_vm5, %v3013_v47 }
0x268e   :  { %6418 = vmatpush3.bf16.msra.mxu0 %v8018_v18  ;;  %6419 = vmatprep.mubr.msk.bf16.mxu0 %vm7320_vm1, %v7319_v2 }
0x268f   :  { %6429 = vmatprep.subr.bf16.mxu0 %v7319_v2 }
0x2690   :  { %v3137_v19 = vpop.f32.mrb[84].mxu1 }
0x2691   :  { %v6415_v0 = vpop.f32.mrb[85].mxu1 }
0x2692   :  { %v3140_v36 = vpop.f32.mrb[86].mxu1 }
0x2693   :  { %v6416_v54 = vpop.f32.mrb[87].mxu1 }
0x2695   :  { %6420 = vmatmul.mubr.bf16.vlgmr.msra.gmra.mrb[88].mxu0 %v7321_v8 }
0x2696   :  { %6430 = vmatpush3.bf16.msra.mxu0 %v8026_v42  ;;  %6431 = vmatprep.mubr.msk.bf16.mxu0 %vm7320_vm1, %v7319_v2 }
0x2697   :  { %6441 = vmatprep.subr.bf16.mxu0 %v7319_v2 }
0x2760   :  { %v3074_v57 = vpop.f32.mrb[84].mxu0 }
0x2761   :  { %v8036_v22 = vadd.f32 %v5874_v59, %v3074_v57  ;;  %v6409_v23 = vpop.f32.mrb[85].mxu0 }
0x2762   :  { %v3077_v52 = vpop.f32.mrb[86].mxu0 }
0x2763   :  { %v6410_v24 = vpop.f32.mrb[87].mxu0  ;;  %v3143_v26 = vadd.f32 %v3137_v19, %v8036_v22 }
0x2765   :  { %6952 = vtanh.f32 %v3143_v26  ;;  %v5881_v30 = vmul.f32 -1.442695, %v3143_v26 }
0x2767   :  { %6954 = vpow2.f32 %v5881_v30 }
0x2768   :  { %v3209_v37 = vpop.f32.mrb[88].mxu0 }
0x2769   :  { %v6421_v60 = vpop.f32.mrb[89].mxu0 }
0x276a   :  { %v3212_v4 = vpop.f32.mrb[90].mxu0 }
0x276b   :  { %v6422_v9 = vpop.f32.mrb[91].mxu0 }
0x276f   :  { %v6953_v8 = vpop.eup %6952 }
0x2770   :  { %3153 = vrot.lane.b32.xlu1 %v6953_v8, %s7325_s10 }
0x2771   :  { %v6955_v5 = vpop.eup %6954 }
0x2772   :  { %v3147_v29 = vadd.f32 1.0, %v6955_v5 }
0x2774   :  { %6956 = vrcp.f32 %v3147_v29 }
0x277e   :  { %v6957_v61 = vpop.eup %6956 }
0x277f   :  { %v3151_v14 = vmul.f32 0.0, %v6957_v61 }
0x27e2   :  { %v3154_v32 = vpop.permute.xlu1 %3153 }
0x27e3   :  { %v3156_v50 = vmul.f32 %v6957_v61, %v3154_v32 }
0x27e5   :  { %3158 = vrot.lane.b32.xlu0 %v3156_v50, %s7326_s11 }
0x2857   :  { %v3159_v33 = vpop.permute.xlu0 %3158 }
0x2858   :  { %v8041_v34 = vadd.f32 %v3159_v33, %v3151_v14 }
0x285a   :  { %6958 = vtanh.f32 %v8041_v34 }
0x2864   :  { %v6959_v7 = vpop.eup %6958 }
0x2865   :  { %3164 = vrot.lane.b32.xlu1 %v6959_v7, %s7326_s11 }
0x28d7   :  { %v3165_v35 = vpop.permute.xlu1 %3164 }
0x28d8   :  { %v3167_v38 = vmul.f32 %v6957_v61, %v3165_v35 }
0x28da   :  { %v3168_v31 = vpack.c.bf16 %v3167_v38, %v3167_v38 }
0x28dc   :  { %3216 = vrot.lane.b32.xlu0 %v3168_v31, %s7327_s12 }
0x294e   :  { %v3217_v39 = vpop.permute.xlu0 %3216 }
0x294f   :  { %6426 = vmatmul.mubr.msk.bf16.vlgmr.msra.gmra.mrb[88].mxu1 %vm218_vm4, %v3217_v39 }
0x2950   :  { %6436 = vmatpush3.bf16.msra.mxu1 %v8003_v41  ;;  %6437 = vmatprep.mubr.msk.bf16.mxu1 %vm7320_vm1, %v7319_v2 }
0x2951   :  { %6447 = vmatprep.subr.bf16.mxu1 %v7319_v2 }
0x2957   :  { %6438 = vmatmul.mubr.msk.bf16.vlgmr.msra.gmra.mrb[92].mxu1 %vm218_vm4, %v3217_v39 }
0x2958   :  { %6448 = vmatpush3.bf16.msra.mxu1 %v8044_v45  ;;  %6449 = vmatprep.mubr.msk.bf16.mxu1 %vm7320_vm1, %v7319_v2 }
0x2959   :  { %6459 = vmatprep.subr.bf16.mxu1 %v7319_v2 }
0x2a22   :  { %v3261_v40 = vpop.f32.mrb[88].mxu1 }
0x2a23   :  { %v3262_v21 = vadd.f32 %v3261_v40, %v3209_v37  ;;  %v6427_v12 = vpop.f32.mrb[89].mxu1 }
0x2a24   :  { %v3264_v44 = vpop.f32.mrb[90].mxu1 }
0x2a25   :  { %v3267_v6 = vadd.f32 %v8063_v1, %v3262_v21  ;;  %v6428_v51 = vpop.f32.mrb[91].mxu1 }
0x2a27   :  { %6960 = vtanh.f32 %v3267_v6  ;;  %v5884_v53 = vmul.f32 -1.442695, %v3267_v6 }
0x2a2a   :  { %v3409_v3 = vpop.f32.mrb[92].mxu1 }
0x2a2b   :  { %v3415_v10 = vadd.f32 %v3409_v3, %v8036_v22  ;;  %v6439_v20 = vpop.f32.mrb[93].mxu1 }
0x2a2c   :  { %v3412_v56 = vpop.f32.mrb[94].mxu1 }
0x2a2d   :  { %6962 = vtanh.f32 %v3415_v10  ;;  %v6440_v28 = vpop.f32.mrb[95].mxu1  ;;  %v5889_v25 = vmul.f32 -1.442695, %v3415_v10 }
0x2a2e   :  { %6964 = vpow2.f32 %v5884_v53 }
0x2a2f   :  { %6966 = vpow2.f32 %v5889_v25 }
0x2a31   :  { %v6961_v58 = vpop.eup %6960 }
0x2a32   :  { %3277 = vrot.lane.b32.xlu1 %v6961_v58, %s7322_s27 }
0x2a37   :  { %v6963_v27 = vpop.eup %6962 }
0x2a38   :  { %3425 = vrot.lane.b32.xlu0 %v6963_v27, %s7325_s10  ;;  %v6965_v62 = vpop.eup %6964 }
0x2a39   :  { %v3271_v63 = vadd.f32 1.0, %v6965_v62  ;;  %v6967_v46 = vpop.eup %6966 }
0x2a3a   :  { %v3419_v11 = vadd.f32 1.0, %v6967_v46 }
0x2a3b   :  { %6968 = vrcp.f32 %v3271_v63 }
0x2a3c   :  { %6970 = vrcp.f32 %v3419_v11 }
0x2a45   :  { %v6969_v13 = vpop.eup %6968 }
0x2a46   :  { %v6971_v55 = vpop.eup %6970  ;;  %v3275_v49 = vmul.f32 0.0, %v6969_v13 }
0x2a47   :  { %v3423_v0 = vmul.f32 %v6971_v55, %v8041_v34 }
0x2aa4   :  { %v3278_v48 = vpop.permute.xlu1 %3277 }
0x2aa5   :  { %v3280_v15 = vmul.f32 %v6969_v13, %v3278_v48 }
0x2aa7   :  { %3282 = vrot.lane.b32.xlu1 %v3280_v15, %s7323_s28 }
0x2aaa   :  { %v3426_v16 = vpop.permute.xlu0 %3425 }
0x2aab   :  { %v3428_v47 = vmul.f32 %v6971_v55, %v3426_v16 }
0x2aad   :  { %3430 = vrot.lane.b32.xlu0 %v3428_v47, %s7326_s11 }
0x2b19   :  { %v3283_v43 = vpop.permute.xlu1 %3282 }
0x2b1a   :  { %v8071_v19 = vadd.f32 %v3283_v43, %v3275_v49 }
0x2b1c   :  { %6972 = vtanh.f32 %v8071_v19 }
0x2b1f   :  { %v3431_v36 = vpop.permute.xlu0 %3430 }
0x2b20   :  { %v8075_v54 = vadd.f32 %v3431_v36, %v3423_v0 }
0x2b22   :  { %6974 = vtanh.f32 %v8075_v54 }
0x2b26   :  { %v6973_v59 = vpop.eup %6972 }
0x2b27   :  { %3288 = vrot.lane.b32.xlu1 %v6973_v59, %s7323_s28 }
0x2b2c   :  { %v6975_v57 = vpop.eup %6974 }
0x2b2d   :  { %3436 = vrot.lane.b32.xlu0 %v6975_v57, %s7326_s11 }
0x2b99   :  { %v3289_v23 = vpop.permute.xlu1 %3288 }
0x2b9a   :  { %v3291_v52 = vmul.f32 %v6969_v13, %v3289_v23 }
0x2b9c   :  { %v3292_v24 = vpack.c.bf16 %v3291_v52, %v3291_v52 }
0x2b9e   :  { %3302 = vrot.lane.b32.xlu1 %v3292_v24, %s7324_s29 }
0x2b9f   :  { %v3437_v26 = vpop.permute.xlu0 %3436 }
0x2ba0   :  { %v3439_v8 = vmul.f32 %v6971_v55, %v3437_v26 }
0x2ba2   :  { %v3440_v30 = vpack.c.bf16 %v3439_v8, %v3439_v8 }
0x2ba4   :  { %3482 = vrot.lane.b32.xlu0 %v3440_v30, %s7327_s12 }
0x2c10   :  { %v3303_v5 = vpop.permute.xlu1 %3302 }
0x2c11   :  { %6432 = vmatmul.mubr.msk.bf16.vlgmr.msra.gmra.mrb[92].mxu0 %vm105_vm3, %v3303_v5 }
0x2c12   :  { %6442 = vmatpush3.bf16.msra.mxu0 %v8018_v18  ;;  %6443 = vmatprep.mubr.msk.bf16.mxu0 %vm7320_vm1, %v7319_v2 }
0x2c13   :  { %6453 = vmatprep.subr.bf16.mxu0 %v7319_v2 }
0x2c16   :  { %v3483_v29 = vpop.permute.xlu0 %3482 }
0x2c17   :  { %6450 = vmatmul.mubr.msk.bf16.vlgmr.msra.gmra.mrb[96].mxu1 %vm218_vm4, %v3483_v29 }
0x2c18   :  { %6460 = vmatpush3.bf16.msra.mxu1 %v8003_v41  ;;  %6461 = vmatprep.mubr.msk.bf16.mxu1 %vm7320_vm1, %v7319_v2 }
0x2c19   :  { %6444 = vmatmul.mubr.msk.bf16.vlgmr.msra.gmra.mrb[96].mxu0 %vm105_vm3, %v3303_v5  ;;  %6471 = vmatprep.subr.bf16.mxu1 %v7319_v2 }
0x2c1a   :  { %6454 = vmatpush3.bf16.msra.mxu0 %v8026_v42  ;;  %6455 = vmatprep.mubr.msk.bf16.mxu0 %vm7320_vm1, %v7319_v2 }
0x2c1b   :  { %6465 = vmatprep.subr.bf16.mxu0 %v7319_v2 }
0x2c1f   :  { %6462 = vmatmul.mubr.msk.bf16.vlgmr.msra.gmra.mrb[100].mxu1 %vm218_vm4, %v3483_v29 }
0x2c20   :  { %6472 = vmatpush3.bf16.msra.mxu1 %v8044_v45  ;;  %6473 = vmatprep.mubr.msk.bf16.mxu1 %vm7320_vm1, %v7319_v2 }
0x2c21   :  { %6483 = vmatprep.subr.bf16.mxu1 %v7319_v2 }
0x2ce4   :  { %v8102_v61 = vpop.f32.mrb[92].mxu0 }
0x2ce5   :  { %v6433_v32 = vpop.f32.mrb[93].mxu0 }
0x2ce6   :  { %v3347_v50 = vpop.f32.mrb[94].mxu0 }
0x2ce7   :  { %v6434_v14 = vpop.f32.mrb[95].mxu0 }
0x2cea   :  { %v3521_v33 = vpop.f32.mrb[96].mxu1 }
0x2ceb   :  { %v6451_v34 = vpop.f32.mrb[97].mxu1 }
0x2cec   :  { %v3475_v7 = vpop.f32.mrb[96].mxu0  ;;  %v3524_v35 = vpop.f32.mrb[98].mxu1 }
0x2ced   :  { %v3522_v37 = vadd.f32 %v3521_v33, %v3475_v7  ;;  %v6445_v38 = vpop.f32.mrb[97].mxu0  ;;  %v6452_v60 = vpop.f32.mrb[99].mxu1 }
0x2cee   :  { %v3478_v4 = vpop.f32.mrb[98].mxu0 }
0x2cef   :  { %v3527_v31 = vadd.f32 %v8063_v1, %v3522_v37  ;;  %v6446_v9 = vpop.f32.mrb[99].mxu0 }
0x2cf1   :  { %6976 = vtanh.f32 %v3527_v31  ;;  %v5892_v3 = vmul.f32 -1.442695, %v3527_v31 }
0x2cf2   :  { %v3664_v39 = vpop.f32.mrb[100].mxu1 }
0x2cf3   :  { %v3670_v40 = vadd.f32 %v3664_v39, %v8036_v22  ;;  %v6463_v21 = vpop.f32.mrb[101].mxu1 }
0x2cf4   :  { %v3667_v12 = vpop.f32.mrb[102].mxu1 }
0x2cf5   :  { %6978 = vtanh.f32 %v3670_v40  ;;  %v6464_v44 = vpop.f32.mrb[103].mxu1  ;;  %v5896_v10 = vmul.f32 -1.442695, %v3670_v40 }
0x2cf6   :  { %6980 = vpow2.f32 %v5892_v3 }
0x2cf7   :  { %6982 = vpow2.f32 %v5896_v10 }
0x2cfb   :  { %v6977_v6 = vpop.eup %6976 }
0x2cfc   :  { %3537 = vrot.lane.b32.xlu1 %v6977_v6, %s7322_s27 }
0x2cff   :  { %v6979_v51 = vpop.eup %6978 }
0x2d00   :  { %3680 = vrot.lane.b32.xlu0 %v6979_v51, %s7325_s10  ;;  %v6981_v20 = vpop.eup %6980 }
0x2d01   :  { %v3531_v56 = vadd.f32 1.0, %v6981_v20  ;;  %v6983_v28 = vpop.eup %6982 }
0x2d02   :  { %v3674_v58 = vadd.f32 1.0, %v6983_v28 }
0x2d03   :  { %6984 = vrcp.f32 %v3531_v56 }
0x2d04   :  { %6986 = vrcp.f32 %v3674_v58 }
0x2d0d   :  { %v6985_v27 = vpop.eup %6984 }
0x2d0e   :  { %v6987_v62 = vpop.eup %6986  ;;  %v3535_v11 = vmul.f32 %v6985_v27, %v8071_v19 }
0x2d0f   :  { %v3678_v15 = vmul.f32 %v6987_v62, %v8075_v54 }
0x2d6e   :  { %v3538_v53 = vpop.permute.xlu1 %3537 }
0x2d6f   :  { %v3540_v25 = vmul.f32 %v6985_v27, %v3538_v53 }
0x2d71   :  { %3542 = vrot.lane.b32.xlu1 %v3540_v25, %s7323_s28 }
0x2d72   :  { %v3681_v63 = vpop.permute.xlu0 %3680 }
0x2d73   :  { %v3683_v46 = vmul.f32 %v6987_v62, %v3681_v63 }
0x2d75   :  { %3685 = vrot.lane.b32.xlu0 %v3683_v46, %s7326_s11 }
0x2de3   :  { %v3543_v13 = vpop.permute.xlu1 %3542 }
0x2de4   :  { %v8111_v48 = vadd.f32 %v3543_v13, %v3535_v11 }
0x2de6   :  { %6988 = vtanh.f32 %v8111_v48 }
0x2de7   :  { %v3686_v55 = vpop.permute.xlu0 %3685 }
0x2de8   :  { %v8115_v16 = vadd.f32 %v3686_v55, %v3678_v15 }
0x2dea   :  { %6990 = vtanh.f32 %v8115_v16 }
0x2df0   :  { %v6989_v47 = vpop.eup %6988 }
0x2df1   :  { %3548 = vrot.lane.b32.xlu1 %v6989_v47, %s7323_s28 }
0x2df4   :  { %v6991_v49 = vpop.eup %6990 }
0x2df5   :  { %3691 = vrot.lane.b32.xlu0 %v6991_v49, %s7326_s11 }
0x2e63   :  { %v3549_v43 = vpop.permute.xlu1 %3548 }
0x2e64   :  { %v3551_v19 = vmul.f32 %v6985_v27, %v3549_v43 }
0x2e66   :  { %v3552_v0 = vpack.c.bf16 %v3551_v19, %v3551_v19 }
0x2e67   :  { %v3692_v36 = vpop.permute.xlu0 %3691 }
0x2e68   :  { %v3694_v59 = vmul.f32 %v6987_v62, %v3692_v36  ;;  %3560 = vrot.lane.b32.xlu1 %v3552_v0, %s7324_s29 }
0x2e6a   :  { %v3695_v57 = vpack.c.bf16 %v3694_v59, %v3694_v59 }
0x2e6c   :  { %3737 = vrot.lane.b32.xlu0 %v3695_v57, %s7327_s12 }
0x2eda   :  { %v3561_v54 = vpop.permute.xlu1 %3560 }
0x2edb   :  { %6456 = vmatmul.mubr.msk.bf16.vlgmr.msra.gmra.mrb[100].mxu0 %vm105_vm3, %v3561_v54 }
0x2edc   :  { %6466 = vmatpush3.bf16.msra.mxu0 %v8018_v18  ;;  %6467 = vmatprep.mubr.msk.bf16.mxu0 %vm7320_vm1, %v7319_v2 }
0x2edd   :  { %6477 = vmatprep.subr.bf16.mxu0 %v7319_v2 }
0x2ede   :  { %v3738_v23 = vpop.permute.xlu0 %3737 }
0x2edf   :  { %6474 = vmatmul.mubr.msk.bf16.vlgmr.msra.gmra.mrb[104].mxu1 %vm218_vm4, %v3738_v23 }
0x2ee0   :  { %6484 = vmatpush3.bf16.msra.mxu1 %v8003_v41  ;;  %6485 = vmatprep.mubr.msk.bf16.mxu1 %vm7320_vm1, %v7319_v2 }
0x2ee1   :  { %6495 = vmatprep.subr.bf16.mxu1 %v7319_v2 }
0x2ee3   :  { %6468 = vmatmul.mubr.msk.bf16.vlgmr.msra.gmra.mrb[104].mxu0 %vm105_vm3, %v3561_v54 }
0x2ee4   :  { %6478 = vmatpush3.bf16.msra.mxu0 %v8026_v42  ;;  %6479 = vmatprep.mubr.msk.bf16.mxu0 %vm7320_vm1, %v7319_v2 }
0x2ee5   :  { %6489 = vmatprep.subr.bf16.mxu0 %v7319_v2 }
0x2ee7   :  { %6486 = vmatmul.mubr.msk.bf16.vlgmr.msra.gmra.mrb[108].mxu1 %vm218_vm4, %v3738_v23 }
0x2ee8   :  { %6496 = vmatpush3.bf16.msra.mxu1 %v8044_v45  ;;  %6497 = vmatprep.mubr.msk.bf16.mxu1 %vm7320_vm1, %v7319_v2 }
0x2ee9   :  { %6507 = vmatprep.subr.bf16.mxu1 %v7319_v2 }
0x2fae   :  { %v8142_v52 = vpop.f32.mrb[100].mxu0 }
0x2faf   :  { %v6457_v24 = vpop.f32.mrb[101].mxu0 }
0x2fb0   :  { %v3602_v26 = vpop.f32.mrb[102].mxu0 }
0x2fb1   :  { %v6458_v8 = vpop.f32.mrb[103].mxu0 }
0x2fb2   :  { %v3776_v30 = vpop.f32.mrb[104].mxu1 }
0x2fb3   :  { %v6475_v5 = vpop.f32.mrb[105].mxu1 }
0x2fb4   :  { %v3779_v29 = vpop.f32.mrb[106].mxu1 }
0x2fb5   :  { %v6476_v32 = vpop.f32.mrb[107].mxu1 }
0x2fb6   :  { %v3730_v50 = vpop.f32.mrb[104].mxu0 }
0x2fb7   :  { %v3777_v14 = vadd.f32 %v3776_v30, %v3730_v50  ;;  %v6469_v33 = vpop.f32.mrb[105].mxu0 }
0x2fb8   :  { %v3733_v34 = vpop.f32.mrb[106].mxu0 }
0x2fb9   :  { %v3782_v7 = vadd.f32 %v8063_v1, %v3777_v14  ;;  %v6470_v35 = vpop.f32.mrb[107].mxu0 }
0x2fba   :  { %v3919_v37 = vpop.f32.mrb[108].mxu1 }
0x2fbb   :  { %6992 = vtanh.f32 %v3782_v7  ;;  %v3925_v38 = vadd.f32 %v3919_v37, %v8036_v22  ;;  %v6487_v60 = vpop.f32.mrb[109].mxu1  ;;  %v5899_v40 = vmul.f32 -1.442695, %v3782_v7 }
0x2fbc   :  { %v3922_v4 = vpop.f32.mrb[110].mxu1 }
0x2fbd   :  { %v6488_v31 = vpop.f32.mrb[111].mxu1  ;;  %6994 = vtanh.f32 %v3925_v38  ;;  %v5903_v21 = vmul.f32 -1.442695, %v3925_v38 }
0x2fbe   :  { %6996 = vpow2.f32 %v5899_v40 }
0x2fbf   :  { %6998 = vpow2.f32 %v5903_v21 }
0x2fc5   :  { %v6993_v9 = vpop.eup %6992 }
0x2fc6   :  { %3792 = vrot.lane.b32.xlu1 %v6993_v9, %s7322_s27 }
0x2fc7   :  { %v6995_v39 = vpop.eup %6994 }
0x2fc8   :  { %3935 = vrot.lane.b32.xlu0 %v6995_v39, %s7325_s10  ;;  %v6997_v12 = vpop.eup %6996 }
0x2fc9   :  { %v6999_v44 = vpop.eup %6998  ;;  %v3786_v6 = vadd.f32 1.0, %v6997_v12 }
0x2fca   :  { %v3929_v51 = vadd.f32 1.0, %v6999_v44 }
0x2fcb   :  { %7000 = vrcp.f32 %v3786_v6 }
0x2fcc   :  { %7002 = vrcp.f32 %v3929_v51 }
0x2fd5   :  { %v7001_v3 = vpop.eup %7000 }
0x2fd6   :  { %v7003_v56 = vpop.eup %7002  ;;  %v3790_v27 = vmul.f32 %v7001_v3, %v8111_v48 }
0x2fd7   :  { %v3933_v62 = vmul.f32 %v7003_v56, %v8115_v16 }
0x3038   :  { %v3793_v10 = vpop.permute.xlu1 %3792 }
0x3039   :  { %v3795_v20 = vmul.f32 %v7001_v3, %v3793_v10 }
0x303a   :  { %v3936_v28 = vpop.permute.xlu0 %3935 }
0x303b   :  { %3797 = vrot.lane.b32.xlu1 %v3795_v20, %s7323_s28  ;;  %v3938_v58 = vmul.f32 %v7003_v56, %v3936_v28 }
0x303d   :  { %3940 = vrot.lane.b32.xlu0 %v3938_v58, %s7326_s11 }
0x30ad   :  { %v3798_v53 = vpop.permute.xlu1 %3797 }
0x30ae   :  { %v8151_v25 = vadd.f32 %v3798_v53, %v3790_v27 }
0x30af   :  { %v3941_v63 = vpop.permute.xlu0 %3940 }
0x30b0   :  { %7004 = vtanh.f32 %v8151_v25  ;;  %v8155_v46 = vadd.f32 %v3941_v63, %v3933_v62 }
0x30b2   :  { %7006 = vtanh.f32 %v8155_v46 }
0x30ba   :  { %v7005_v11 = vpop.eup %7004 }
0x30bb   :  { %3803 = vrot.lane.b32.xlu1 %v7005_v11, %s7323_s28 }
0x30bc   :  { %v7007_v13 = vpop.eup %7006 }
0x30bd   :  { %3946 = vrot.lane.b32.xlu0 %v7007_v13, %s7326_s11 }
0x312d   :  { %v3804_v15 = vpop.permute.xlu1 %3803 }
0x312e   :  { %v3806_v48 = vmul.f32 %v7001_v3, %v3804_v15 }
0x312f   :  { %v3947_v47 = vpop.permute.xlu0 %3946 }
0x3130   :  { %v3807_v55 = vpack.c.bf16 %v3806_v48, %v3806_v48  ;;  %v3949_v49 = vmul.f32 %v7003_v56, %v3947_v47 }
0x3132   :  { %3815 = vrot.lane.b32.xlu1 %v3807_v55, %s7324_s29  ;;  %v3950_v16 = vpack.c.bf16 %v3949_v49, %v3949_v49 }
0x3134   :  { %3992 = vrot.lane.b32.xlu0 %v3950_v16, %s7327_s12 }
0x31a4   :  { %v3816_v43 = vpop.permute.xlu1 %3815 }
0x31a5   :  { %6480 = vmatmul.mubr.msk.bf16.vlgmr.msra.gmra.mrb[108].mxu0 %vm105_vm3, %v3816_v43 }
0x31a6   :  { %6490 = vmatpush3.bf16.msra.mxu0 %v8018_v18  ;;  %6491 = vmatprep.mubr.msk.bf16.mxu0 %vm7320_vm1, %v7319_v2  ;;  %v3993_v19 = vpop.permute.xlu0 %3992 }
0x31a7   :  { %6501 = vmatprep.subr.bf16.mxu0 %v7319_v2  ;;  %6498 = vmatmul.mubr.msk.bf16.vlgmr.msra.gmra.mrb[112].mxu1 %vm218_vm4, %v3993_v19 }
0x31a8   :  { %6508 = vmatpush3.bf16.msra.mxu1 %v8003_v41  ;;  %6509 = vmatprep.mubr.msk.bf16.mxu1 %vm7320_vm1, %v7319_v2 }
0x31a9   :  { %6519 = vmatprep.subr.bf16.mxu1 %v7319_v2 }
0x31ad   :  { %6492 = vmatmul.mubr.msk.bf16.vlgmr.msra.gmra.mrb[112].mxu0 %vm105_vm3, %v3816_v43 }
0x31ae   :  { %6502 = vmatpush3.bf16.msra.mxu0 %v8026_v42  ;;  %6503 = vmatprep.mubr.msk.bf16.mxu0 %vm7320_vm1, %v7319_v2 }
0x31af   :  { %6513 = vmatprep.subr.bf16.mxu0 %v7319_v2  ;;  %6510 = vmatmul.mubr.msk.bf16.vlgmr.msra.gmra.mrb[116].mxu1 %vm218_vm4, %v3993_v19 }
0x31b0   :  { %6520 = vmatpush3.bf16.msra.mxu1 %v8044_v45  ;;  %6521 = vmatprep.mubr.msk.bf16.mxu1 %vm7320_vm1, %v7319_v2 }
0x31b1   :  { %6531 = vmatprep.subr.bf16.mxu1 %v7319_v2 }
0x3278   :  { %v8182_v0 = vpop.f32.mrb[108].mxu0 }
0x3279   :  { %v6481_v36 = vpop.f32.mrb[109].mxu0 }
0x327a   :  { %v3857_v59 = vpop.f32.mrb[110].mxu0  ;;  %v4031_v57 = vpop.f32.mrb[112].mxu1 }
0x327b   :  { %v6482_v54 = vpop.f32.mrb[111].mxu0  ;;  %v6499_v23 = vpop.f32.mrb[113].mxu1 }
0x327c   :  { %v4034_v24 = vpop.f32.mrb[114].mxu1 }
0x327d   :  { %v6500_v26 = vpop.f32.mrb[115].mxu1 }
0x3280   :  { %v3985_v8 = vpop.f32.mrb[112].mxu0 }
0x3281   :  { %v4032_v30 = vadd.f32 %v4031_v57, %v3985_v8  ;;  %v6493_v5 = vpop.f32.mrb[113].mxu0 }
0x3282   :  { %v3988_v29 = vpop.f32.mrb[114].mxu0  ;;  %v4174_v50 = vpop.f32.mrb[116].mxu1 }
0x3283   :  { %v4037_v32 = vadd.f32 %v8063_v1, %v4032_v30  ;;  %v6494_v14 = vpop.f32.mrb[115].mxu0  ;;  %v4180_v33 = vadd.f32 %v4174_v50, %v8036_v22  ;;  %v6511_v34 = vpop.f32.mrb[117].mxu1 }
0x3284   :  { %v4177_v7 = vpop.f32.mrb[118].mxu1 }
0x3285   :  { %7008 = vtanh.f32 %v4037_v32  ;;  %v6512_v35 = vpop.f32.mrb[119].mxu1  ;;  %v5906_v60 = vmul.f32 -1.442695, %v4037_v32  ;;  %v5910_v4 = vmul.f32 -1.442695, %v4180_v33 }
0x3286   :  { %7010 = vtanh.f32 %v4180_v33 }
0x3287   :  { %7012 = vpow2.f32 %v5906_v60 }
0x3288   :  { %7014 = vpow2.f32 %v5910_v4 }
0x328f   :  { %v7009_v37 = vpop.eup %7008 }
0x3290   :  { %v7011_v38 = vpop.eup %7010  ;;  %4047 = vrot.lane.b32.xlu1 %v7009_v37, %s7322_s27 }
0x3291   :  { %4190 = vrot.lane.b32.xlu0 %v7011_v38, %s7325_s10  ;;  %v7013_v31 = vpop.eup %7012 }
0x3292   :  { %v7015_v9 = vpop.eup %7014  ;;  %v4041_v39 = vadd.f32 1.0, %v7013_v31 }
0x3293   :  { %v4184_v40 = vadd.f32 1.0, %v7015_v9 }
0x3294   :  { %7016 = vrcp.f32 %v4041_v39 }
0x3295   :  { %7018 = vrcp.f32 %v4184_v40 }
0x329e   :  { %v7017_v21 = vpop.eup %7016 }
0x329f   :  { %v7019_v44 = vpop.eup %7018  ;;  %v4045_v10 = vmul.f32 %v7017_v21, %v8151_v25 }
0x32a0   :  { %v4188_v20 = vmul.f32 %v7019_v44, %v8155_v46 }
0x3302   :  { %v4048_v12 = vpop.permute.xlu1 %4047 }
0x3303   :  { %v4191_v6 = vpop.permute.xlu0 %4190  ;;  %v4050_v51 = vmul.f32 %v7017_v21, %v4048_v12 }
0x3304   :  { %v4193_v3 = vmul.f32 %v7019_v44, %v4191_v6 }
0x3305   :  { %4052 = vrot.lane.b32.xlu1 %v4050_v51, %s7323_s28 }
0x3306   :  { %4195 = vrot.lane.b32.xlu0 %v4193_v3, %s7326_s11 }
0x3377   :  { %v4053_v56 = vpop.permute.xlu1 %4052 }
0x3378   :  { %v4196_v28 = vpop.permute.xlu0 %4195  ;;  %v8192_v58 = vadd.f32 %v4053_v56, %v4045_v10 }
0x3379   :  { %v8194_v27 = vadd.f32 %v4196_v28, %v4188_v20 }
0x337a   :  { %7020 = vtanh.f32 %v8192_v58 }
0x337b   :  { %7022 = vtanh.f32 %v8194_v27 }
0x3384   :  { %v7021_v53 = vpop.eup %7020 }
0x3385   :  { %v7023_v62 = vpop.eup %7022  ;;  %4058 = vrot.lane.b32.xlu1 %v7021_v53, %s7323_s28 }
0x3386   :  { %4201 = vrot.lane.b32.xlu0 %v7023_v62, %s7326_s11  ;;  %v8250_v62 = vld [vmem:[%s8607_s3 + $0x9] ss:$0 sm:$0xff] }
0x33f7   :  { %v4059_v63 = vpop.permute.xlu1 %4058 }
0x33f8   :  { %v4202_v25 = vpop.permute.xlu0 %4201  ;;  %v4061_v11 = vmul.f32 %v7017_v21, %v4059_v63 }
0x33f9   :  { %v4204_v46 = vmul.f32 %v7019_v44, %v4202_v25 }
0x33fa   :  { %v4062_v13 = vpack.c.bf16 %v4061_v11, %v4061_v11 }
0x33fb   :  { %v4205_v15 = vpack.c.bf16 %v4204_v46, %v4204_v46 }
0x33fc   :  { %4070 = vrot.lane.b32.xlu1 %v4062_v13, %s7324_s29 }
0x33fd   :  { %4247 = vrot.lane.b32.xlu0 %v4205_v15, %s7327_s12 }
0x346e   :  { %v4071_v48 = vpop.permute.xlu1 %4070 }
0x346f   :  { %v4248_v55 = vpop.permute.xlu0 %4247  ;;  %6504 = vmatmul.mubr.msk.bf16.vlgmr.msra.gmra.mrb[116].mxu0 %vm105_vm3, %v4071_v48 }
0x3470   :  { %6514 = vmatpush3.bf16.msra.mxu0 %v8018_v18  ;;  %6522 = vmatmul.mubr.msk.bf16.vlgmr.msra.gmra.mrb[120].mxu1 %vm218_vm4, %v4248_v55 }
0x3471   :  { %6532 = vmatpush3.bf16.msra.mxu1 %v8003_v41  ;;  %6515 = vmatprep.mubr.msk.bf16.mxu0 %vm7320_vm1, %v7319_v2 }
0x3472   :  { %6533 = vmatprep.mubr.msk.bf16.mxu1 %vm7320_vm1, %v7319_v2  ;;  %6525 = vmatprep.subr.bf16.mxu0 %v7319_v2 }
0x3473   :  { %6543 = vmatprep.subr.bf16.mxu1 %v7319_v2 }
0x3477   :  { %6516 = vmatmul.mubr.msk.bf16.vlgmr.msra.gmra.mrb[120].mxu0 %vm105_vm3, %v4071_v48 }
0x3478   :  { %6534 = vmatmul.mubr.msk.bf16.vlgmr.msra.gmra.mrb[124].mxu1 %vm218_vm4, %v4248_v55  ;;  %6526 = vmatpush3.bf16.msra.mxu0 %v8026_v42 }
0x3479   :  { %6544 = vmatpush3.bf16.msra.mxu1 %v8044_v45  ;;  %6545 = vmatprep.mubr.msk.bf16.mxu1 %vm7320_vm1, %v7319_v2 }
0x347a   :  { %6527 = vmatprep.mubr.msk.bf16.mxu0 %vm7320_vm1, %v7319_v2  ;;  %6537 = vmatprep.subr.bf16.mxu0 %v7319_v2 }
0x347b   :  { %6555 = vmatprep.subr.bf16.mxu1 %v7319_v2 }
0x3542   :  { %v8222_v47 = vpop.f32.mrb[116].mxu0 }
0x3543   :  { %v4286_v49 = vpop.f32.mrb[120].mxu1  ;;  %v6505_v16 = vpop.f32.mrb[117].mxu0 }
0x3544   :  { %v6523_v43 = vpop.f32.mrb[121].mxu1  ;;  %v4112_v19 = vpop.f32.mrb[118].mxu0 }
0x3545   :  { %v4289_v36 = vpop.f32.mrb[122].mxu1  ;;  %v6506_v59 = vpop.f32.mrb[119].mxu0 }
0x3546   :  { %v6524_v57 = vpop.f32.mrb[123].mxu1 }
0x354a   :  { %v4240_v54 = vpop.f32.mrb[120].mxu0 }
0x354b   :  { %v4287_v23 = vadd.f32 %v4286_v49, %v4240_v54  ;;  %v4429_v24 = vpop.f32.mrb[124].mxu1  ;;  %v6517_v26 = vpop.f32.mrb[121].mxu0 }
0x354c   :  { %v4435_v8 = vadd.f32 %v4429_v24, %v8036_v22  ;;  %v6535_v30 = vpop.f32.mrb[125].mxu1  ;;  %v4243_v5 = vpop.f32.mrb[122].mxu0 }
0x354d   :  { %v4292_v29 = vadd.f32 %v8063_v1, %v4287_v23  ;;  %v4432_v32 = vpop.f32.mrb[126].mxu1  ;;  %v6518_v50 = vpop.f32.mrb[123].mxu0 }
0x354e   :  { %7024 = vtanh.f32 %v4435_v8  ;;  %v6536_v14 = vpop.f32.mrb[127].mxu1  ;;  %v5917_v7 = vmul.f32 -1.442695, %v4435_v8 }
0x354f   :  { %7026 = vtanh.f32 %v4292_v29  ;;  %v5913_v35 = vmul.f32 -1.442695, %v4292_v29 }
0x3550   :  { %7028 = vpow2.f32 %v5917_v7 }
0x3551   :  { %7030 = vpow2.f32 %v5913_v35 }
0x3558   :  { %v7025_v33 = vpop.eup %7024 }
0x3559   :  { %v7027_v34 = vpop.eup %7026  ;;  %4445 = vrot.lane.b32.xlu0 %v7025_v33, %s7325_s10 }
0x355a   :  { %4302 = vrot.lane.b32.xlu1 %v7027_v34, %s7322_s27  ;;  %v7029_v37 = vpop.eup %7028 }
0x355b   :  { %v7031_v38 = vpop.eup %7030  ;;  %v4439_v60 = vadd.f32 1.0, %v7029_v37 }
0x355c   :  { %v4296_v4 = vadd.f32 1.0, %v7031_v38 }
0x355d   :  { %7032 = vrcp.f32 %v4439_v60 }
0x355e   :  { %7034 = vrcp.f32 %v4296_v4 }
0x3567   :  { %v7033_v31 = vpop.eup %7032 }
0x3568   :  { %v7035_v39 = vpop.eup %7034  ;;  %v4443_v44 = vmul.f32 %v7033_v31, %v8194_v27  ;;  %v8243_v27 = vld [vmem:[%s8607_s3 + $0x8] ss:$0 sm:$0xff] }
0x3569   :  { %v4300_v51 = vmul.f32 %v7035_v39, %v8192_v58  ;;  %v3300_v58 = vmul.f32 0.0, %v8243_v27 }
0x356b   :  { %v3345_v53 = vadd.f32 %v8102_v61, %v3300_v58 }
0x356d   :  { %v3350_v63 = vadd.f32 %v8250_v62, %v3345_v53 }
0x35cb   :  { %v4446_v9 = vpop.permute.xlu0 %4445 }
0x35cc   :  { %v4448_v40 = vmul.f32 %v7033_v31, %v4446_v9  ;;  %v4303_v21 = vpop.permute.xlu1 %4302 }
0x35cd   :  { %v4305_v12 = vmul.f32 %v7035_v39, %v4303_v21 }
0x35ce   :  { %4450 = vrot.lane.b32.xlu0 %v4448_v40, %s7326_s11 }
0x35cf   :  { %4307 = vrot.lane.b32.xlu1 %v4305_v12, %s7323_s28 }
0x3640   :  { %v4451_v6 = vpop.permute.xlu0 %4450 }
0x3641   :  { %v8232_v3 = vadd.f32 %v4451_v6, %v4443_v44  ;;  %v4308_v10 = vpop.permute.xlu1 %4307 }
0x3642   :  { %v8234_v20 = vadd.f32 %v4308_v10, %v4300_v51 }
0x3643   :  { %7036 = vtanh.f32 %v8232_v3 }
0x3644   :  { %7038 = vtanh.f32 %v8234_v20 }
0x3645   :  { %7040 = vtanh.f32 %v3350_v63 }
0x364d   :  { %v7037_v56 = vpop.eup %7036 }
0x364e   :  { %v7039_v28 = vpop.eup %7038  ;;  %4456 = vrot.lane.b32.xlu0 %v7037_v56, %s7326_s11 }
0x364f   :  { %4313 = vrot.lane.b32.xlu1 %v7039_v28, %s7323_s28  ;;  %v7041_v55 = vpop.eup %7040 }
0x36c0   :  { %v4457_v25 = vpop.permute.xlu0 %4456 }
0x36c1   :  { %v4459_v11 = vmul.f32 %v7033_v31, %v4457_v25  ;;  %v4314_v46 = vpop.permute.xlu1 %4313 }
0x36c2   :  { %v4316_v13 = vmul.f32 %v7035_v39, %v4314_v46 }
0x36c3   :  { %v4460_v15 = vpack.c.bf16 %v4459_v11, %v4459_v11 }
0x36c4   :  { %v4317_v48 = vpack.c.bf16 %v4316_v13, %v4316_v13 }
0x36c5   :  { %4502 = vrot.lane.b32.xlu0 %v4460_v15, %s7327_s12 }
0x36c6   :  { %4325 = vrot.lane.b32.xlu1 %v4317_v48, %s7324_s29 }
0x36ca   :  { %3360 = vrot.lane.b32.xlu1 %v7041_v55, %s7330_s15 }
0x3737   :  { %v4503_v61 = vpop.permute.xlu0 %4502 }
0x3738   :  { %6546 = vmatmul.mubr.msk.bf16.vlgmr.msra.gmra.mrb[128].mxu1 %vm218_vm4, %v4503_v61  ;;  %v4326_v49 = vpop.permute.xlu1 %4325 }
0x3739   :  { %6528 = vmatmul.mubr.msk.bf16.vlgmr.msra.gmra.mrb[124].mxu0 %vm105_vm3, %v4326_v49  ;;  %6556 = vmatpush3.bf16.msra.mxu1 %v8003_v41  ;;  %v5887_v41 = vmul.f32 -1.442695, %v3350_v63  ;;  %v7332_v63 = vmov 2  }
0x373a   :  { %6538 = vmatpush3.bf16.msra.mxu0 %v8018_v18  ;;  %6557 = vmatprep.mubr.msk.bf16.mxu1 %vm7320_vm1, %v7319_v2 }
0x373b   :  { %6539 = vmatprep.mubr.msk.bf16.mxu0 %vm7320_vm1, %v7319_v2  ;;  %6549 = vmatprep.subr.bf16.mxu0 %v7319_v2  ;;  %7042 = vpow2.f32 %v5887_v41 }
0x373c   :  { %6567 = vmatprep.subr.bf16.mxu1 %v7319_v2  ;;  %v3361_v38 = vpop.permute.xlu1 %3360  ;;  %6680 = vset.pattern.permute.xlu0 %v7332_v63 }
0x373d   :  { %6681 = vset.pattern.permute.xlu1 %v7332_v63 }
0x3740   :  { %6558 = vmatmul.mubr.msk.bf16.vlgmr.msra.gmra.mrb[132].mxu1 %vm218_vm4, %v4503_v61 }
0x3741   :  { %6540 = vmatmul.mubr.msk.bf16.vlgmr.msra.gmra.mrb[128].mxu0 %vm105_vm3, %v4326_v49  ;;  %6568 = vmatpush3.bf16.msra.mxu1 %v8044_v45 }
0x3742   :  { %6550 = vmatpush3.bf16.msra.mxu0 %v8026_v42  ;;  %6551 = vmatprep.mubr.msk.bf16.mxu0 %vm7320_vm1, %v7319_v2 }
0x3743   :  { %6569 = vmatprep.mubr.msk.bf16.mxu1 %vm7320_vm1, %v7319_v2  ;;  %6561 = vmatprep.subr.bf16.mxu0 %v7319_v2 }
0x3744   :  { %6579 = vmatprep.subr.bf16.mxu1 %v7319_v2 }
0x3745   :  { %v7043_v24 = vpop.eup %7042 }
0x3746   :  { %v3354_v33 = vadd.f32 1.0, %v7043_v24 }
0x380b   :  { %v4541_v16 = vpop.f32.mrb[128].mxu1 }
0x380c   :  { %v6547_v43 = vpop.f32.mrb[129].mxu1  ;;  %v8276_v19 = vpop.f32.mrb[124].mxu0 }
0x380d   :  { %v4544_v36 = vpop.f32.mrb[130].mxu1  ;;  %v6529_v45 = vpop.f32.mrb[125].mxu0 }
0x380e   :  { %v6548_v59 = vpop.f32.mrb[131].mxu1  ;;  %v4367_v57 = vpop.f32.mrb[126].mxu0 }
0x380f   :  { %v6530_v54 = vpop.f32.mrb[127].mxu0 }
0x3813   :  { %v4684_v23 = vpop.f32.mrb[132].mxu1 }
0x3814   :  { %v4690_v26 = vadd.f32 %v4684_v23, %v8036_v22  ;;  %v6559_v8 = vpop.f32.mrb[133].mxu1  ;;  %v4495_v30 = vpop.f32.mrb[128].mxu0 }
0x3815   :  { %v4542_v5 = vadd.f32 %v4541_v16, %v4495_v30  ;;  %v4687_v29 = vpop.f32.mrb[134].mxu1  ;;  %v6541_v32 = vpop.f32.mrb[129].mxu0 }
0x3816   :  { %7044 = vtanh.f32 %v4690_v26  ;;  %v6560_v50 = vpop.f32.mrb[135].mxu1  ;;  %v4498_v14 = vpop.f32.mrb[130].mxu0  ;;  %v5924_v31 = vmul.f32 -1.442695, %v4690_v26  ;;  %v8326_v32 = vld [vmem:[#allocation3 + $0x24] ss:$48 sps:$4 sm:$0xff]  }
0x3817   :  { %v4547_v34 = vadd.f32 %v8063_v1, %v4542_v5  ;;  %v6542_v7 = vpop.f32.mrb[131].mxu0 }
0x3819   :  { %7046 = vtanh.f32 %v4547_v34  ;;  %v5920_v9 = vmul.f32 -1.442695, %v4547_v34 }
0x381a   :  { %7048 = vrcp.f32 %v3354_v33 }
0x381b   :  { %7050 = vpow2.f32 %v5924_v31 }
0x381c   :  { %7052 = vpow2.f32 %v5920_v9 }
0x3820   :  { %v7045_v35 = vpop.eup %7044 }
0x3821   :  { %4700 = vrot.lane.b32.xlu1 %v7045_v35, %s7325_s10 }
0x3823   :  { %v7047_v37 = vpop.eup %7046 }
0x3824   :  { %4557 = vrot.lane.b32.xlu0 %v7047_v37, %s7322_s27  ;;  %v7049_v60 = vpop.eup %7048 }
0x3825   :  { %v3363_v4 = vmul.f32 %v7049_v60, %v3361_v38  ;;  %v7051_v1 = vpop.eup %7050  ;;  %v3358_v28 = vmul.f32 0.0, %v7049_v60 }
0x3826   :  { %v7053_v39 = vpop.eup %7052  ;;  %v4694_v40 = vadd.f32 1.0, %v7051_v1 }
0x3827   :  { %v4551_v21 = vadd.f32 1.0, %v7053_v39 }
0x3828   :  { %3365 = vrot.lane.b32.xlu0 %v3363_v4, %s7331_s16  ;;  %7054 = vrcp.f32 %v4694_v40 }
0x3829   :  { %7056 = vrcp.f32 %v4551_v21 }
0x3832   :  { %v7055_v12 = vpop.eup %7054 }
0x3833   :  { %v7057_v51 = vpop.eup %7056  ;;  %v4698_v11 = vmul.f32 %v7055_v12, %v8232_v3 }
0x3834   :  { %v4555_v15 = vmul.f32 %v7057_v51, %v8234_v20 }
0x3893   :  { %v4701_v44 = vpop.permute.xlu1 %4700 }
0x3894   :  { %v4703_v6 = vmul.f32 %v7055_v12, %v4701_v44 }
0x3896   :  { %4705 = vrot.lane.b32.xlu0 %v4703_v6, %s7326_s11  ;;  %v4558_v10 = vpop.permute.xlu0 %4557 }
0x3897   :  { %v4560_v56 = vmul.f32 %v7057_v51, %v4558_v10  ;;  %v8343_v10 = vld [vmem:[%s8607_s3 + $0x7] ss:$0 sm:$0xff] }
0x3899   :  { %4562 = vrot.lane.b32.xlu1 %v4560_v56, %s7323_s28 }
0x389a   :  { %v3366_v58 = vpop.permute.xlu0 %3365 }
0x389b   :  { %v8285_v53 = vadd.f32 %v3366_v58, %v3358_v28 }
0x389d   :  { %7058 = vtanh.f32 %v8285_v53 }
0x38a7   :  { %v7059_v25 = vpop.eup %7058 }
0x38a8   :  { %3371 = vrot.lane.b32.xlu1 %v7059_v25, %s7331_s16 }
0x3908   :  { %v4706_v46 = vpop.permute.xlu0 %4705 }
0x3909   :  { %v8290_v13 = vadd.f32 %v4706_v46, %v4698_v11 }
0x390b   :  { %7060 = vtanh.f32 %v8290_v13  ;;  %v4563_v48 = vpop.permute.xlu1 %4562 }
0x390c   :  { %v8294_v55 = vadd.f32 %v4563_v48, %v4555_v15 }
0x390e   :  { %7062 = vtanh.f32 %v8294_v55 }
0x3915   :  { %v7061_v61 = vpop.eup %7060 }
0x3916   :  { %4711 = vrot.lane.b32.xlu1 %v7061_v61, %s7326_s11 }
0x3918   :  { %v7063_v49 = vpop.eup %7062 }
0x3919   :  { %4568 = vrot.lane.b32.xlu0 %v7063_v49, %s7323_s28 }
0x391a   :  { %v3372_v41 = vpop.permute.xlu1 %3371 }
0x391b   :  { %v8299_v3 = vmul.f32 %v7049_v60, %v3372_v41 }
0x391d   :  { %3555 = vperm.xlu0 %6680, %v8299_v3  }
0x3988   :  { %v4712_v16 = vpop.permute.xlu1 %4711 }
0x3989   :  { %v4714_v36 = vmul.f32 %v7055_v12, %v4712_v16 }
0x398b   :  { %v4569_v20 = vpop.permute.xlu0 %4568  ;;  %v4715_v59 = vpack.c.bf16 %v4714_v36, %v4714_v36 }
0x398c   :  { %v4571_v43 = vmul.f32 %v7057_v51, %v4569_v20 }
0x398e   :  { %v4572_v45 = vpack.c.bf16 %v4571_v43, %v4571_v43 }
0x3990   :  { %4580 = vrot.lane.b32.xlu1 %v4572_v45, %s7324_s29 }
0x3994   :  { %4757 = vrot.lane.b32.xlu1 %v4715_v59, %s7327_s12 }
0x399c   :  { %v3556_v57 = vpop.permute.xlu0 %3555 }
0x399d   :  { %v3558_v54 = vmul.f32 %v8243_v27, %v3556_v57 }
0x399f   :  { %v3600_v23 = vadd.f32 %v8142_v52, %v3558_v54  ;;  %v8314_v52 = vld [vmem:[#allocation3 + $0x20] ss:$48 sps:$4 sm:$0xff]  }
0x39a1   :  { %v3605_v24 = vadd.f32 %v8250_v62, %v3600_v23 }
0x39a3   :  { %7064 = vtanh.f32 %v3605_v24  ;;  %v5894_v8 = vmul.f32 -1.442695, %v3605_v24 }
0x39a5   :  { %7066 = vpow2.f32 %v5894_v8 }
0x39ad   :  { %v7065_v26 = vpop.eup %7064 }
0x39ae   :  { %3615 = vrot.lane.b32.xlu0 %v7065_v26, %s7330_s15 }
0x39af   :  { %v7067_v29 = vpop.eup %7066 }
0x39b0   :  { %v3609_v50 = vadd.f32 1.0, %v7067_v29 }
0x39b2   :  { %7068 = vrcp.f32 %v3609_v50 }
0x39bc   :  { %v7069_v14 = vpop.eup %7068 }
0x39bd   :  { %v3613_v7 = vmul.f32 %v7069_v14, %v8285_v53 }
0x3a02   :  { %v4581_v30 = vpop.permute.xlu1 %4580 }
0x3a03   :  { %6552 = vmatmul.mubr.msk.bf16.vlgmr.msra.gmra.mrb[132].mxu0 %vm105_vm3, %v4581_v30 }
0x3a04   :  { %6562 = vmatpush3.bf16.msra.mxu0 %v8018_v18  ;;  %6563 = vmatprep.mubr.msk.bf16.mxu0 %vm7320_vm1, %v7319_v2 }
0x3a05   :  { %6573 = vmatprep.subr.bf16.mxu0 %v7319_v2 }
0x3a06   :  { %v4758_v5 = vpop.permute.xlu1 %4757 }
0x3a07   :  { %6570 = vmatmul.mubr.msk.bf16.vlgmr.msra.gmra.mrb[136].mxu1 %vm218_vm4, %v4758_v5 }
0x3a08   :  { %6580 = vmatpush3.bf16.msra.mxu1 %v8314_v52  ;;  %6581 = vmatprep.mubr.msk.bf16.mxu1 %vm7320_vm1, %v7319_v2 }
0x3a09   :  { %6591 = vmatprep.subr.bf16.mxu1 %v7319_v2 }
0x3a0b   :  { %6564 = vmatmul.mubr.msk.bf16.vlgmr.msra.gmra.mrb[136].mxu0 %vm105_vm3, %v4581_v30 }
0x3a0c   :  { %6574 = vmatpush3.bf16.msra.mxu0 %v8026_v42  ;;  %6575 = vmatprep.mubr.msk.bf16.mxu0 %vm7320_vm1, %v7319_v2 }
0x3a0d   :  { %6585 = vmatprep.subr.bf16.mxu0 %v7319_v2 }
0x3a0f   :  { %6582 = vmatmul.mubr.msk.bf16.vlgmr.msra.gmra.mrb[140].mxu1 %vm218_vm4, %v4758_v5 }
0x3a10   :  { %6592 = vmatpush3.bf16.msra.mxu1 %v8326_v32  ;;  %6593 = vmatprep.mubr.msk.bf16.mxu1 %vm7320_vm1, %v7319_v2 }
0x3a11   :  { %6603 = vmatprep.subr.bf16.mxu1 %v7319_v2 }
0x3a20   :  { %v3616_v33 = vpop.permute.xlu0 %3615 }
0x3a21   :  { %v3618_v34 = vmul.f32 %v7069_v14, %v3616_v33 }
0x3a23   :  { %3620 = vrot.lane.b32.xlu1 %v3618_v34, %s7331_s16 }
0x3a95   :  { %v3621_v35 = vpop.permute.xlu1 %3620 }
0x3a96   :  { %v8334_v37 = vadd.f32 %v3621_v35, %v3613_v7 }
0x3a98   :  { %7070 = vtanh.f32 %v8334_v37 }
0x3aa2   :  { %v7071_v38 = vpop.eup %7070 }
0x3aa3   :  { %3626 = vrot.lane.b32.xlu0 %v7071_v38, %s7331_s16 }
0x3ad6   :  { %v8338_v60 = vpop.f32.mrb[132].mxu0 }
0x3ad7   :  { %v6553_v4 = vpop.f32.mrb[133].mxu0 }
0x3ad8   :  { %v4622_v31 = vpop.f32.mrb[134].mxu0 }
0x3ad9   :  { %v6554_v9 = vpop.f32.mrb[135].mxu0 }
0x3ada   :  { %v4796_v1 = vpop.f32.mrb[136].mxu1 }
0x3adb   :  { %v6571_v39 = vpop.f32.mrb[137].mxu1 }
0x3adc   :  { %v4799_v40 = vpop.f32.mrb[138].mxu1 }
0x3add   :  { %v6572_v21 = vpop.f32.mrb[139].mxu1 }
0x3ade   :  { %v4750_v12 = vpop.f32.mrb[136].mxu0 }
0x3adf   :  { %v4797_v44 = vadd.f32 %v4796_v1, %v4750_v12  ;;  %v6565_v6 = vpop.f32.mrb[137].mxu0 }
0x3ae0   :  { %v4753_v51 = vpop.f32.mrb[138].mxu0 }
0x3ae1   :  { %v4802_v56 = vadd.f32 %v8343_v10, %v4797_v44  ;;  %v6566_v28 = vpop.f32.mrb[139].mxu0 }
0x3ae2   :  { %v4939_v58 = vpop.f32.mrb[140].mxu1 }
0x3ae3   :  { %7072 = vtanh.f32 %v4802_v56  ;;  %v6583_v53 = vpop.f32.mrb[141].mxu1  ;;  %v4945_v46 = vadd.f32 %v4939_v58, %v8036_v22  ;;  %v5927_v49 = vmul.f32 -1.442695, %v4802_v56 }
0x3ae4   :  { %v4942_v63 = vpop.f32.mrb[142].mxu1 }
0x3ae5   :  { %v6584_v25 = vpop.f32.mrb[143].mxu1  ;;  %7074 = vtanh.f32 %v4945_v46  ;;  %v5931_v45 = vmul.f32 -1.442695, %v4945_v46 }
0x3ae6   :  { %7076 = vpow2.f32 %v5927_v49 }
0x3aed   :  { %v7073_v11 = vpop.eup %7072 }
0x3aee   :  { %4812 = vrot.lane.b32.xlu0 %v7073_v11, %s7322_s27 }
0x3aef   :  { %v7075_v61 = vpop.eup %7074 }
0x3af0   :  { %v7077_v41 = vpop.eup %7076 }
0x3af1   :  { %v4806_v16 = vadd.f32 1.0, %v7077_v41 }
0x3af3   :  { %7078 = vrcp.f32 %v4806_v16 }
0x3af4   :  { %7080 = vpow2.f32 %v5931_v45 }
0x3afd   :  { %v7079_v20 = vpop.eup %7078 }
0x3afe   :  { %v7081_v54 = vpop.eup %7080  ;;  %v4810_v50 = vmul.f32 %v7079_v20, %v8294_v55 }
0x3aff   :  { %v4949_v24 = vadd.f32 1.0, %v7081_v54 }
0x3b15   :  { %v3627_v15 = vpop.permute.xlu0 %3626 }
0x3b16   :  { %v8348_v48 = vmul.f32 %v7069_v14, %v3627_v15 }
0x3b18   :  { %3810 = vperm.xlu1 %6681, %v8348_v48  }
0x3b1c   :  { %4955 = vrot.lane.b32.xlu1 %v7075_v61, %s7325_s10 }
0x3b60   :  { %v4813_v43 = vpop.permute.xlu0 %4812 }
0x3b61   :  { %v4815_v36 = vmul.f32 %v7079_v20, %v4813_v43 }
0x3b63   :  { %4817 = vrot.lane.b32.xlu1 %v4815_v36, %s7323_s28 }
0x3b97   :  { %v3811_v59 = vpop.permute.xlu1 %3810 }
0x3b98   :  { %v3813_v57 = vmul.f32 %v8243_v27, %v3811_v59 }
0x3b9a   :  { %v3855_v23 = vadd.f32 %v8182_v0, %v3813_v57 }
0x3b9b   :  { %v4956_v30 = vpop.permute.xlu1 %4955 }
0x3b9c   :  { %v3860_v26 = vadd.f32 %v8250_v62, %v3855_v23 }
0x3b9e   :  { %7082 = vtanh.f32 %v3860_v26  ;;  %v5901_v34 = vmul.f32 -1.442695, %v3860_v26 }
0x3b9f   :  { %7084 = vrcp.f32 %v4949_v24 }
0x3ba8   :  { %v7083_v8 = vpop.eup %7082 }
0x3ba9   :  { %3870 = vrot.lane.b32.xlu0 %v7083_v8, %s7330_s15  ;;  %v7085_v5 = vpop.eup %7084 }
0x3baa   :  { %v4958_v29 = vmul.f32 %v7085_v5, %v4956_v30  ;;  %v4953_v55 = vmul.f32 %v7085_v5, %v8290_v13 }
0x3bad   :  { %4960 = vrot.lane.b32.xlu0 %v4958_v29, %s7326_s11 }
0x3bd5   :  { %v4818_v14 = vpop.permute.xlu1 %4817 }
0x3bd6   :  { %v8359_v33 = vadd.f32 %v4818_v14, %v4810_v50 }
0x3bd8   :  { %7086 = vtanh.f32 %v8359_v33 }
0x3bd9   :  { %7088 = vpow2.f32 %v5901_v34 }
0x3be2   :  { %v7087_v0 = vpop.eup %7086 }
0x3be3   :  { %4823 = vrot.lane.b32.xlu0 %v7087_v0, %s7323_s28  ;;  %v7089_v7 = vpop.eup %7088 }
0x3be4   :  { %v3864_v35 = vadd.f32 1.0, %v7089_v7 }
0x3be6   :  { %7090 = vrcp.f32 %v3864_v35 }
0x3bf0   :  { %v7091_v38 = vpop.eup %7090 }
0x3bf1   :  { %v3868_v44 = vmul.f32 %v7091_v38, %v8334_v37 }
0x3c1b   :  { %v3871_v4 = vpop.permute.xlu0 %3870 }
0x3c1c   :  { %v3873_v31 = vmul.f32 %v7091_v38, %v3871_v4 }
0x3c1e   :  { %3875 = vrot.lane.b32.xlu1 %v3873_v31, %s7331_s16 }
0x3c1f   :  { %v4961_v9 = vpop.permute.xlu0 %4960 }
0x3c20   :  { %v8365_v1 = vadd.f32 %v4961_v9, %v4953_v55 }
0x3c22   :  { %7092 = vtanh.f32 %v8365_v1 }
0x3c2c   :  { %v7093_v39 = vpop.eup %7092 }
0x3c2d   :  { %4966 = vrot.lane.b32.xlu1 %v7093_v39, %s7326_s11 }
0x3c55   :  { %v4824_v40 = vpop.permute.xlu0 %4823 }
0x3c56   :  { %v4826_v21 = vmul.f32 %v7079_v20, %v4824_v40 }
0x3c58   :  { %v4827_v12 = vpack.c.bf16 %v4826_v21, %v4826_v21 }
0x3c5a   :  { %4835 = vrot.lane.b32.xlu1 %v4827_v12, %s7324_s29 }
0x3c90   :  { %v3876_v6 = vpop.permute.xlu1 %3875 }
0x3c91   :  { %v8371_v51 = vadd.f32 %v3876_v6, %v3868_v44 }
0x3c93   :  { %7094 = vtanh.f32 %v8371_v51 }
0x3c9d   :  { %v7095_v13 = vpop.eup %7094 }
0x3c9e   :  { %3881 = vrot.lane.b32.xlu0 %v7095_v13, %s7331_s16 }
0x3c9f   :  { %v4967_v56 = vpop.permute.xlu1 %4966 }
0x3ca0   :  { %v4969_v28 = vmul.f32 %v7085_v5, %v4967_v56 }
0x3ca2   :  { %v4970_v58 = vpack.c.bf16 %v4969_v28, %v4969_v28 }
0x3ca4   :  { %5012 = vrot.lane.b32.xlu0 %v4970_v58, %s7327_s12 }
0x3ccc   :  { %v4836_v53 = vpop.permute.xlu1 %4835 }
0x3ccd   :  { %6576 = vmatmul.mubr.msk.bf16.vlgmr.msra.gmra.mrb[140].mxu0 %vm105_vm3, %v4836_v53 }
0x3cce   :  { %6586 = vmatpush3.bf16.msra.mxu0 %v8018_v18  ;;  %6587 = vmatprep.mubr.msk.bf16.mxu0 %vm7320_vm1, %v7319_v2 }
0x3ccf   :  { %6597 = vmatprep.subr.bf16.mxu0 %v7319_v2 }
0x3cd5   :  { %6588 = vmatmul.mubr.msk.bf16.vlgmr.msra.gmra.mrb[144].mxu0 %vm105_vm3, %v4836_v53 }
0x3cd6   :  { %6598 = vmatpush3.bf16.msra.mxu0 %v8026_v42  ;;  %6599 = vmatprep.mubr.msk.bf16.mxu0 %vm7320_vm1, %v7319_v2 }
0x3cd7   :  { %6609 = vmatprep.subr.bf16.mxu0 %v7319_v2 }
0x3d10   :  { %v3882_v37 = vpop.permute.xlu0 %3881 }
0x3d11   :  { %v8386_v63 = vmul.f32 %v7091_v38, %v3882_v37 }
0x3d13   :  { %4065 = vperm.xlu1 %6681, %v8386_v63  }
0x3d16   :  { %v5013_v25 = vpop.permute.xlu0 %5012 }
0x3d17   :  { %6594 = vmatmul.mubr.msk.bf16.vlgmr.msra.gmra.mrb[144].mxu1 %vm218_vm4, %v5013_v25 }
0x3d18   :  { %6604 = vmatpush3.bf16.msra.mxu1 %v8314_v52  ;;  %6605 = vmatprep.mubr.msk.bf16.mxu1 %vm7320_vm1, %v7319_v2 }
0x3d19   :  { %6615 = vmatprep.subr.bf16.mxu1 %v7319_v2 }
0x3d1f   :  { %6606 = vmatmul.mubr.msk.bf16.vlgmr.msra.gmra.mrb[148].mxu1 %vm218_vm4, %v5013_v25 }
0x3d20   :  { %6616 = vmatpush3.bf16.msra.mxu1 %v8326_v32  ;;  %6617 = vmatprep.mubr.msk.bf16.mxu1 %vm7320_vm1, %v7319_v2 }
0x3d21   :  { %6627 = vmatprep.subr.bf16.mxu1 %v7319_v2 }
0x3d92   :  { %v4066_v11 = vpop.permute.xlu1 %4065 }
0x3d93   :  { %v4068_v46 = vmul.f32 %v8243_v27, %v4066_v11 }
0x3d95   :  { %v4110_v15 = vadd.f32 %v8222_v47, %v4068_v46 }
0x3d97   :  { %v4115_v61 = vadd.f32 %v8250_v62, %v4110_v15 }
0x3d99   :  { %7096 = vtanh.f32 %v4115_v61  ;;  %v5908_v50 = vmul.f32 -1.442695, %v4115_v61 }
0x3d9b   :  { %7098 = vpow2.f32 %v5908_v50 }
0x3da0   :  { %v8402_v49 = vpop.f32.mrb[140].mxu0 }
0x3da1   :  { %v6577_v41 = vpop.f32.mrb[141].mxu0 }
0x3da2   :  { %v4877_v16 = vpop.f32.mrb[142].mxu0 }
0x3da3   :  { %v7097_v20 = vpop.eup %7096  ;;  %v6578_v43 = vpop.f32.mrb[143].mxu0 }
0x3da4   :  { %4125 = vrot.lane.b32.xlu0 %v7097_v20, %s7330_s15 }
0x3da5   :  { %v7099_v14 = vpop.eup %7098 }
0x3da6   :  { %v4119_v0 = vadd.f32 1.0, %v7099_v14 }
0x3da8   :  { %v5005_v36 = vpop.f32.mrb[144].mxu0  ;;  %7100 = vrcp.f32 %v4119_v0 }
0x3da9   :  { %v6589_v45 = vpop.f32.mrb[145].mxu0 }
0x3daa   :  { %v5008_v59 = vpop.f32.mrb[146].mxu0 }
0x3dab   :  { %v6590_v57 = vpop.f32.mrb[147].mxu0 }
0x3db2   :  { %v7101_v35 = vpop.eup %7100 }
0x3db3   :  { %v4123_v21 = vmul.f32 %v7101_v35, %v8371_v51 }
0x3dea   :  { %v5051_v54 = vpop.f32.mrb[144].mxu1 }
0x3deb   :  { %v5052_v23 = vadd.f32 %v5051_v54, %v5005_v36  ;;  %v6595_v24 = vpop.f32.mrb[145].mxu1 }
0x3dec   :  { %v5054_v26 = vpop.f32.mrb[146].mxu1 }
0x3ded   :  { %v6596_v47 = vpop.f32.mrb[147].mxu1  ;;  %v5057_v34 = vadd.f32 %v8343_v10, %v5052_v23 }
0x3def   :  { %7102 = vtanh.f32 %v5057_v34  ;;  %v5934_v53 = vmul.f32 -1.442695, %v5057_v34 }
0x3df2   :  { %v5194_v8 = vpop.f32.mrb[148].mxu1 }
0x3df3   :  { %v6607_v30 = vpop.f32.mrb[149].mxu1  ;;  %v5200_v7 = vadd.f32 %v5194_v8, %v8036_v22 }
0x3df4   :  { %v5197_v5 = vpop.f32.mrb[150].mxu1 }
0x3df5   :  { %v6608_v29 = vpop.f32.mrb[151].mxu1  ;;  %7104 = vtanh.f32 %v5200_v7  ;;  %v5938_v9 = vmul.f32 -1.442695, %v5200_v7 }
0x3df7   :  { %7106 = vpow2.f32 %v5938_v9 }
0x3df9   :  { %v7103_v31 = vpop.eup %7102 }
0x3dff   :  { %v7105_v55 = vpop.eup %7104 }
0x3e01   :  { %v7107_v39 = vpop.eup %7106 }
0x3e02   :  { %v5204_v40 = vadd.f32 1.0, %v7107_v39 }
0x3e04   :  { %7108 = vrcp.f32 %v5204_v40 }
0x3e0e   :  { %v7109_v13 = vpop.eup %7108 }
0x3e0f   :  { %v5208_v45 = vmul.f32 %v7109_v13, %v8365_v1 }
0x3e16   :  { %v4126_v38 = vpop.permute.xlu0 %4125 }
0x3e17   :  { %v4128_v4 = vmul.f32 %v7101_v35, %v4126_v38 }
0x3e19   :  { %4130 = vrot.lane.b32.xlu1 %v4128_v4, %s7331_s16 }
0x3e1d   :  { %5067 = vrot.lane.b32.xlu1 %v7103_v31, %s7322_s27 }
0x3e21   :  { %5210 = vrot.lane.b32.xlu1 %v7105_v55, %s7325_s10 }
0x3e8b   :  { %v4131_v12 = vpop.permute.xlu1 %4130 }
0x3e8c   :  { %v4133_v44 = vadd.f32 %v4131_v12, %v4123_v21 }
0x3e8e   :  { %7110 = vtanh.f32 %v4133_v44 }
0x3e8f   :  { %v5068_v6 = vpop.permute.xlu1 %5067  ;;  %7112 = vpow2.f32 %v5934_v53 }
0x3e93   :  { %v5211_v56 = vpop.permute.xlu1 %5210 }
0x3e94   :  { %v5213_v28 = vmul.f32 %v7109_v13, %v5211_v56 }
0x3e96   :  { %5215 = vrot.lane.b32.xlu1 %v5213_v28, %s7326_s11 }
0x3e98   :  { %v7111_v58 = vpop.eup %7110 }
0x3e99   :  { %4136 = vrot.lane.b32.xlu0 %v7111_v58, %s7331_s16  ;;  %v7113_v37 = vpop.eup %7112 }
0x3e9a   :  { %v5061_v25 = vadd.f32 1.0, %v7113_v37 }
0x3e9c   :  { %7114 = vrcp.f32 %v5061_v25 }
0x3ea6   :  { %v7115_v51 = vpop.eup %7114 }
0x3ea7   :  { %v5070_v15 = vmul.f32 %v7115_v51, %v5068_v6  ;;  %v5065_v20 = vmul.f32 %v7115_v51, %v8359_v33 }
0x3f08   :  { %v5216_v43 = vpop.permute.xlu1 %5215 }
0x3f09   :  { %v8424_v54 = vadd.f32 %v5216_v43, %v5208_v45 }
0x3f0b   :  { %v4137_v11 = vpop.permute.xlu0 %4136 }
0x3f0c   :  { %v8413_v46 = vmul.f32 %v7101_v35, %v4137_v11 }
0x3f0e   :  { %4320 = vperm.xlu0 %6680, %v8413_v46  }
0x3f12   :  { %5072 = vrot.lane.b32.xlu0 %v5070_v15, %s7323_s28 }
0x3f8d   :  { %v4321_v61 = vpop.permute.xlu0 %4320 }
0x3f8e   :  { %v4323_v41 = vmul.f32 %v8243_v27, %v4321_v61 }
0x3f90   :  { %v4365_v16 = vadd.f32 %v8276_v19, %v4323_v41 }
0x3f91   :  { %v5073_v36 = vpop.permute.xlu0 %5072 }
0x3f92   :  { %v4370_v59 = vadd.f32 %v8250_v62, %v4365_v16  ;;  %v8422_v57 = vadd.f32 %v5073_v36, %v5065_v20 }
0x3f94   :  { %7116 = vtanh.f32 %v4370_v59  ;;  %v5915_v33 = vmul.f32 -1.442695, %v4370_v59 }
0x3f95   :  { %7118 = vtanh.f32 %v8422_v57 }
0x3f96   :  { %7120 = vtanh.f32 %v8424_v54 }
0x3f97   :  { %7122 = vpow2.f32 %v5915_v33 }
0x3f9e   :  { %v7117_v23 = vpop.eup %7116 }
0x3f9f   :  { %v7119_v24 = vpop.eup %7118  ;;  %4380 = vrot.lane.b32.xlu0 %v7117_v23, %s7330_s15 }
0x3fa0   :  { %5078 = vrot.lane.b32.xlu1 %v7119_v24, %s7323_s28  ;;  %v7121_v19 = vpop.eup %7120 }
0x3fa1   :  { %v7123_v1 = vpop.eup %7122 }
0x3fa2   :  { %v4374_v26 = vadd.f32 1.0, %v7123_v1 }
0x3fa3   :  { %5221 = vrot.lane.b32.xlu0 %v7121_v19, %s7326_s11 }
0x3fa4   :  { %7124 = vrcp.f32 %v4374_v26 }
0x3fae   :  { %v7125_v47 = vpop.eup %7124 }
0x3faf   :  { %v4378_v7 = vmul.f32 %v7125_v47, %v4133_v44 }
0x4011   :  { %v4381_v8 = vpop.permute.xlu0 %4380 }
0x4012   :  { %v4383_v30 = vmul.f32 %v7125_v47, %v4381_v8  ;;  %v5079_v5 = vpop.permute.xlu1 %5078 }
0x4013   :  { %v5081_v29 = vmul.f32 %v7115_v51, %v5079_v5 }
0x4014   :  { %4385 = vrot.lane.b32.xlu1 %v4383_v30, %s7331_s16 }
0x4015   :  { %v5082_v50 = vpack.c.bf16 %v5081_v29, %v5081_v29  ;;  %v5222_v14 = vpop.permute.xlu0 %5221 }
0x4016   :  { %v5224_v0 = vmul.f32 %v7109_v13, %v5222_v14 }
0x4017   :  { %5090 = vrot.lane.b32.xlu0 %v5082_v50, %s7324_s29 }
0x4018   :  { %v5225_v34 = vpack.c.bf16 %v5224_v0, %v5224_v0 }
0x401a   :  { %5267 = vrot.lane.b32.xlu1 %v5225_v34, %s7327_s12 }
0x4086   :  { %v4386_v35 = vpop.permute.xlu1 %4385 }
0x4087   :  { %v8434_v38 = vadd.f32 %v4386_v35, %v4378_v7 }
0x4089   :  { %7126 = vtanh.f32 %v8434_v38  ;;  %v5091_v4 = vpop.permute.xlu0 %5090 }
0x408a   :  { %6600 = vmatmul.mubr.msk.bf16.vlgmr.msra.gmra.mrb[148].mxu0 %vm105_vm3, %v5091_v4 }
0x408b   :  { %6610 = vmatpush3.bf16.msra.mxu0 %v8018_v18  ;;  %6611 = vmatprep.mubr.msk.bf16.mxu0 %vm7320_vm1, %v7319_v2 }
0x408c   :  { %v5268_v31 = vpop.permute.xlu1 %5267  ;;  %6621 = vmatprep.subr.bf16.mxu0 %v7319_v2 }
0x408d   :  { %6618 = vmatmul.mubr.msk.bf16.vlgmr.msra.gmra.mrb[152].mxu1 %vm218_vm4, %v5268_v31 }
0x408e   :  { %6628 = vmatpush3.bf16.msra.mxu1 %v8314_v52  ;;  %6629 = vmatprep.mubr.msk.bf16.mxu1 %vm7320_vm1, %v7319_v2 }
0x408f   :  { %6639 = vmatprep.subr.bf16.mxu1 %v7319_v2 }
0x4092   :  { %6612 = vmatmul.mubr.msk.bf16.vlgmr.msra.gmra.mrb[152].mxu0 %vm105_vm3, %v5091_v4 }
0x4093   :  { %v7127_v55 = vpop.eup %7126  ;;  %6622 = vmatpush3.bf16.msra.mxu0 %v8026_v42  ;;  %6623 = vmatprep.mubr.msk.bf16.mxu0 %vm7320_vm1, %v7319_v2 }
0x4094   :  { %4391 = vrot.lane.b32.xlu0 %v7127_v55, %s7331_s16  ;;  %6633 = vmatprep.subr.bf16.mxu0 %v7319_v2 }
0x4095   :  { %6630 = vmatmul.mubr.msk.bf16.vlgmr.msra.gmra.mrb[156].mxu1 %vm218_vm4, %v5268_v31 }
0x4096   :  { %6640 = vmatpush3.bf16.msra.mxu1 %v8326_v32  ;;  %6641 = vmatprep.mubr.msk.bf16.mxu1 %vm7320_vm1, %v7319_v2 }
0x4106   :  { %v4392_v52 = vpop.permute.xlu0 %4391 }
0x4107   :  { %v8457_v9 = vmul.f32 %v7125_v47, %v4392_v52 }
0x4109   :  { %4575 = vperm.xlu1 %6681, %v8457_v9  }
0x415d   :  { %v8460_v39 = vpop.f32.mrb[148].mxu0 }
0x415e   :  { %v6601_v40 = vpop.f32.mrb[149].mxu0 }
0x415f   :  { %v5132_v21 = vpop.f32.mrb[150].mxu0 }
0x4160   :  { %v6602_v12 = vpop.f32.mrb[151].mxu0  ;;  %v5306_v44 = vpop.f32.mrb[152].mxu1 }
0x4161   :  { %v6619_v6 = vpop.f32.mrb[153].mxu1 }
0x4162   :  { %v5309_v13 = vpop.f32.mrb[154].mxu1 }
0x4163   :  { %v6620_v56 = vpop.f32.mrb[155].mxu1 }
0x4165   :  { %v5260_v28 = vpop.f32.mrb[152].mxu0 }
0x4166   :  { %v5307_v58 = vadd.f32 %v5306_v44, %v5260_v28  ;;  %v6613_v32 = vpop.f32.mrb[153].mxu0 }
0x4167   :  { %v5263_v53 = vpop.f32.mrb[154].mxu0 }
0x4168   :  { %v6614_v37 = vpop.f32.mrb[155].mxu0  ;;  %v5449_v25 = vpop.f32.mrb[156].mxu1  ;;  %v5312_v43 = vadd.f32 %v8343_v10, %v5307_v58 }
0x4169   :  { %v6631_v11 = vpop.f32.mrb[157].mxu1  ;;  %v5455_v36 = vadd.f32 %v5449_v25, %v8036_v22 }
0x416a   :  { %v5452_v51 = vpop.f32.mrb[158].mxu1  ;;  %v5941_v22 = vmul.f32 -1.442695, %v5312_v43 }
0x416b   :  { %v6632_v15 = vpop.f32.mrb[159].mxu1  ;;  %v5945_v47 = vmul.f32 -1.442695, %v5455_v36 }
0x4188   :  { %v4576_v61 = vpop.permute.xlu1 %4575 }
0x4189   :  { %v4578_v41 = vmul.f32 %v8243_v27, %v4576_v61 }
0x418b   :  { %v4620_v16 = vadd.f32 %v8338_v60, %v4578_v41 }
0x418d   :  { %v4625_v20 = vadd.f32 %v8250_v62, %v4620_v16 }
0x418f   :  { %7128 = vtanh.f32 %v4625_v20  ;;  %v5922_v24 = vmul.f32 -1.442695, %v4625_v20 }
0x4190   :  { %7130 = vtanh.f32 %v5312_v43 }
0x4191   :  { %7132 = vtanh.f32 %v5455_v36 }
0x4192   :  { %7134 = vpow2.f32 %v5922_v24 }
0x4199   :  { %v7129_v45 = vpop.eup %7128 }
0x419a   :  { %4635 = vrot.lane.b32.xlu0 %v7129_v45, %s7330_s15  ;;  %v7131_v59 = vpop.eup %7130 }
0x419b   :  { %v7133_v23 = vpop.eup %7132 }
0x419c   :  { %v7135_v60 = vpop.eup %7134 }
0x419d   :  { %v4629_v19 = vadd.f32 1.0, %v7135_v60 }
0x419e   :  { %5322 = vrot.lane.b32.xlu0 %v7131_v59, %s7322_s27 }
0x419f   :  { %7136 = vrcp.f32 %v4629_v19 }
0x41a0   :  { %7138 = vpow2.f32 %v5941_v22 }
0x41a1   :  { %7140 = vpow2.f32 %v5945_v47 }
0x41a2   :  { %5465 = vrot.lane.b32.xlu0 %v7133_v23, %s7325_s10 }
0x41a9   :  { %v7137_v33 = vpop.eup %7136 }
0x41aa   :  { %v7139_v8 = vpop.eup %7138  ;;  %v4633_v30 = vmul.f32 %v7137_v33, %v8434_v38 }
0x41ab   :  { %v5316_v29 = vadd.f32 1.0, %v7139_v8  ;;  %v7141_v14 = vpop.eup %7140 }
0x41ac   :  { %v5459_v0 = vadd.f32 1.0, %v7141_v14 }
0x420c   :  { %v4636_v1 = vpop.permute.xlu0 %4635 }
0x420d   :  { %v4638_v26 = vmul.f32 %v7137_v33, %v4636_v1 }
0x420f   :  { %4640 = vrot.lane.b32.xlu1 %v4638_v26, %s7331_s16 }
0x4210   :  { %v5323_v34 = vpop.permute.xlu0 %5322 }
0x4214   :  { %v5466_v31 = vpop.permute.xlu0 %5465 }
0x4281   :  { %v4641_v5 = vpop.permute.xlu1 %4640 }
0x4282   :  { %v8472_v50 = vadd.f32 %v4641_v5, %v4633_v30 }
0x4284   :  { %7142 = vtanh.f32 %v8472_v50 }
0x4285   :  { %7144 = vrcp.f32 %v5316_v29 }
0x4286   :  { %7146 = vrcp.f32 %v5459_v0 }
0x428e   :  { %v7143_v7 = vpop.eup %7142 }
0x428f   :  { %4646 = vrot.lane.b32.xlu1 %v7143_v7, %s7331_s16  ;;  %v7145_v35 = vpop.eup %7144 }
0x4290   :  { %v5325_v4 = vmul.f32 %v7145_v35, %v5323_v34  ;;  %v7147_v38 = vpop.eup %7146  ;;  %v5320_v21 = vmul.f32 %v7145_v35, %v8422_v57  ;;  %v8515_v34 = vld [vmem:[%s8607_s3 + $0x8] ss:$0 sm:$0xff] }
0x4291   :  { %v5468_v55 = vmul.f32 %v7147_v38, %v5466_v31  ;;  %v5463_v6 = vmul.f32 %v7147_v38, %v8424_v54 }
0x4293   :  { %5327 = vrot.lane.b32.xlu1 %v5325_v4, %s7323_s28  ;;  %v8522_v4 = vld [vmem:[%s8607_s3 + $0x9] ss:$0 sm:$0xff]  ;;  %s7333_s3 = smov 126  }
0x4297   :  { %5470 = vrot.lane.b32.xlu1 %v5468_v55, %s7326_s11 }
0x4301   :  { %v4647_v52 = vpop.permute.xlu1 %4646 }
0x4302   :  { %v8478_v40 = vmul.f32 %v7137_v33, %v4647_v52 }
0x4304   :  { %4830 = vperm.xlu0 %6680, %v8478_v40  }
0x4305   :  { %v5328_v12 = vpop.permute.xlu1 %5327 }
0x4306   :  { %v8482_v44 = vadd.f32 %v5328_v12, %v5320_v21 }
0x4308   :  { %7148 = vtanh.f32 %v8482_v44 }
0x4309   :  { %v5471_v13 = vpop.permute.xlu1 %5470 }
0x430a   :  { %v5473_v56 = vadd.f32 %v5471_v13, %v5463_v6 }
0x430c   :  { %7150 = vtanh.f32 %v5473_v56 }
0x4312   :  { %v7149_v28 = vpop.eup %7148 }
0x4313   :  { %5333 = vrot.lane.b32.xlu0 %v7149_v28, %s7323_s28 }
0x4316   :  { %v7151_v58 = vpop.eup %7150 }
0x4317   :  { %5476 = vrot.lane.b32.xlu1 %v7151_v58, %s7326_s11 }
0x4383   :  { %v4831_v32 = vpop.permute.xlu0 %4830 }
0x4384   :  { %v4833_v53 = vmul.f32 %v8243_v27, %v4831_v32 }
0x4386   :  { %v4875_v57 = vadd.f32 %v8402_v49, %v4833_v53 }
0x4387   :  { %v5334_v37 = vpop.permute.xlu0 %5333 }
0x4388   :  { %v4880_v25 = vadd.f32 %v8250_v62, %v4875_v57  ;;  %v5336_v11 = vmul.f32 %v7145_v35, %v5334_v37 }
0x4389   :  { %v5477_v51 = vpop.permute.xlu1 %5476 }
0x438a   :  { %7152 = vtanh.f32 %v4880_v25  ;;  %v5337_v54 = vpack.c.bf16 %v5336_v11, %v5336_v11  ;;  %v5479_v15 = vmul.f32 %v7147_v38, %v5477_v51  ;;  %v5929_v16 = vmul.f32 -1.442695, %v4880_v25 }
0x438c   :  { %5345 = vrot.lane.b32.xlu1 %v5337_v54, %s7324_s29  ;;  %v5480_v41 = vpack.c.bf16 %v5479_v15, %v5479_v15  ;;  %7154 = vpow2.f32 %v5929_v16 }
0x4394   :  { %v7153_v61 = vpop.eup %7152 }
0x4395   :  { %4890 = vrot.lane.b32.xlu0 %v7153_v61, %s7330_s15 }
0x4396   :  { %v7155_v27 = vpop.eup %7154 }
0x4397   :  { %v4884_v49 = vadd.f32 1.0, %v7155_v27 }
0x4399   :  { %5522 = vrot.lane.b32.xlu0 %v5480_v41, %s7327_s12  ;;  %7156 = vrcp.f32 %v4884_v49 }
0x43a3   :  { %v7157_v62 = vpop.eup %7156 }
0x43fe   :  { %v5346_v20 = vpop.permute.xlu1 %5345 }
0x43ff   :  { %6624 = vmatmul.mubr.msk.bf16.vlgmr.msra.gmra.mrb[156].mxu0 %vm105_vm3, %v5346_v20 }
0x4400   :  { %6634 = vmatpush3.bf16.msra.mxu0 %v8018_v18  ;;  %6635 = vmatprep.mubr.msk.bf16.mxu0 %vm7320_vm1, %v7319_v2  ;;  %v4888_v18 = vmul.f32 %v7157_v62, %v8472_v50 }
0x4401   :  { %6645 = vmatprep.subr.bf16.mxu0 %v7319_v2 }
0x4407   :  { %6636 = vmatmul.mubr.msk.bf16.vlgmr.msra.gmra.mrb[160].mxu0 %vm105_vm3, %v5346_v20  ;;  %v4891_v43 = vpop.permute.xlu0 %4890 }
0x4408   :  { %v4893_v36 = vmul.f32 %v7157_v62, %v4891_v43  ;;  %6646 = vmatpush3.bf16.msra.mxu0 %v8026_v42  ;;  %6647 = vmatprep.mubr.msk.bf16.mxu0 %vm7320_vm1, %v7319_v2 }
0x440a   :  { %4895 = vrot.lane.b32.xlu1 %v4893_v36, %s7331_s16 }
0x440b   :  { %v5523_v45 = vpop.permute.xlu0 %5522 }
0x440c   :  { %6642 = vmatmul.mubr.msk.bf16.vlgmr.msra.gmra.mrb[160].mxu1 %vm218_vm4, %v5523_v45 }
0x447c   :  { %v4896_v59 = vpop.permute.xlu1 %4895 }
0x447d   :  { %v4898_v23 = vadd.f32 %v4896_v59, %v4888_v18 }
0x447f   :  { %7158 = vtanh.f32 %v4898_v23 }
0x4489   :  { %v7159_v24 = vpop.eup %7158 }
0x448a   :  { %4901 = vrot.lane.b32.xlu0 %v7159_v24, %s7331_s16 }
0x44d2   :  { %v8507_v60 = vpop.f32.mrb[156].mxu0 }
0x44d3   :  { %v6625_v19 = vpop.f32.mrb[157].mxu0 }
0x44d4   :  { %v5387_v42 = vpop.f32.mrb[158].mxu0 }
0x44d5   :  { %v6626_v33 = vpop.f32.mrb[159].mxu0 }
0x44da   :  { %v5515_v1 = vpop.f32.mrb[160].mxu0 }
0x44db   :  { %v6637_v2 = vpop.f32.mrb[161].mxu0 }
0x44dc   :  { %v5518_v26 = vpop.f32.mrb[162].mxu0 }
0x44dd   :  { %v6638_v22 = vpop.f32.mrb[163].mxu0 }
0x44df   :  { %v5561_v47 = vpop.f32.mrb[160].mxu1 }
0x44e0   :  { %v5562_v8 = vadd.f32 %v5561_v47, %v5515_v1  ;;  %v6643_v30 = vpop.f32.mrb[161].mxu1 }
0x44e1   :  { %v5564_v5 = vpop.f32.mrb[162].mxu1 }
0x44e2   :  { %v6644_v29 = vpop.f32.mrb[163].mxu1  ;;  %v5567_v38 = vadd.f32 %v8343_v10, %v5562_v8 }
0x44e4   :  { %v5948_v12 = vmul.f32 -1.442695, %v5567_v38 }
0x44fc   :  { %v4902_v50 = vpop.permute.xlu0 %4901 }
0x44fd   :  { %v8509_v14 = vmul.f32 %v7157_v62, %v4902_v50 }
0x44ff   :  { %5085 = vperm.xlu1 %6681, %v8509_v14  }
0x457e   :  { %v5086_v0 = vpop.permute.xlu1 %5085 }
0x457f   :  { %v5088_v7 = vmul.f32 %v8515_v34, %v5086_v0 }
0x4581   :  { %v5130_v35 = vadd.f32 %v8460_v39, %v5088_v7 }
0x4583   :  { %v5135_v31 = vadd.f32 %v8522_v4, %v5130_v35 }
0x4585   :  { %7160 = vtanh.f32 %v5135_v31  ;;  %v5936_v21 = vmul.f32 -1.442695, %v5135_v31 }
0x4586   :  { %7162 = vtanh.f32 %v5567_v38 }
0x4587   :  { %7164 = vpow2.f32 %v5936_v21 }
0x4588   :  { %7166 = vpow2.f32 %v5948_v12 }
0x458f   :  { %v7161_v55 = vpop.eup %7160 }
0x4590   :  { %5145 = vrot.lane.b32.xlu0 %v7161_v55, %s7330_s15  ;;  %v7163_v52 = vpop.eup %7162 }
0x4591   :  { %v7165_v39 = vpop.eup %7164 }
0x4592   :  { %v5139_v6 = vadd.f32 1.0, %v7165_v39  ;;  %v7167_v13 = vpop.eup %7166 }
0x4593   :  { %v5571_v56 = vadd.f32 1.0, %v7167_v13 }
0x4594   :  { %5577 = vrot.lane.b32.xlu0 %v7163_v52, %s7322_s27  ;;  %7168 = vrcp.f32 %v5139_v6  ;;  %s7334_s27 = smov 3  }
0x4595   :  { %7170 = vrcp.f32 %v5571_v56 }
0x459e   :  { %v7169_v28 = vpop.eup %7168 }
0x459f   :  { %v7171_v32 = vpop.eup %7170  ;;  %v5143_v37 = vmul.f32 %v7169_v28, %v4898_v23 }
0x45a0   :  { %v5575_v54 = vmul.f32 %v7171_v32, %v8482_v44 }
0x4602   :  { %v5146_v10 = vpop.permute.xlu0 %5145 }
0x4603   :  { %v5148_v58 = vmul.f32 %v7169_v28, %v5146_v10 }
0x4605   :  { %5150 = vrot.lane.b32.xlu1 %v5148_v58, %s7331_s16 }
0x4606   :  { %v5578_v53 = vpop.permute.xlu0 %5577 }
0x4607   :  { %v5580_v57 = vmul.f32 %v7171_v32, %v5578_v53 }
0x4609   :  { %5582 = vrot.lane.b32.xlu1 %v5580_v57, %s7323_s28 }
0x4677   :  { %v5151_v25 = vpop.permute.xlu1 %5150 }
0x4678   :  { %v5153_v11 = vadd.f32 %v5151_v25, %v5143_v37 }
0x467a   :  { %7172 = vtanh.f32 %v5153_v11 }
0x467b   :  { %v5583_v51 = vpop.permute.xlu1 %5582 }
0x467c   :  { %v5585_v15 = vadd.f32 %v5583_v51, %v5575_v54 }
0x467e   :  { %7174 = vtanh.f32 %v5585_v15 }
0x4684   :  { %v7173_v61 = vpop.eup %7172 }
0x4685   :  { %5156 = vrot.lane.b32.xlu0 %v7173_v61, %s7331_s16 }
0x4688   :  { %v7175_v41 = vpop.eup %7174 }
0x4689   :  { %5588 = vrot.lane.b32.xlu0 %v7175_v41, %s7323_s28  ;;  %s7335_s28 = smov 5  }
0x46f7   :  { %v5157_v16 = vpop.permute.xlu0 %5156 }
0x46f8   :  { %v5159_v27 = vmul.f32 %v7169_v28, %v5157_v16 }
0x46fa   :  { %5340 = vperm.xlu1 %6681, %v5159_v27  }
0x46fb   :  { %v5589_v49 = vpop.permute.xlu0 %5588 }
0x46fc   :  { %v5591_v20 = vmul.f32 %v7171_v32, %v5589_v49 }
0x46fe   :  { %v5592_v62 = vpack.c.bf16 %v5591_v20, %v5591_v20 }
0x4700   :  { %5600 = vrot.lane.b32.xlu1 %v5592_v62, %s7324_s29  ;;  %s7336_s29 = smov 127  }
0x4779   :  { %v5341_v43 = vpop.permute.xlu1 %5340 }
0x477a   :  { %v5343_v44 = vmul.f32 %v8515_v34, %v5341_v43 }
0x477c   :  { %v5385_v36 = vadd.f32 %v8507_v60, %v5343_v44 }
0x477d   :  { %v5601_v45 = vpop.permute.xlu1 %5600 }
0x477e   :  { %v5390_v18 = vadd.f32 %v8522_v4, %v5385_v36  ;;  %6648 = vmatmul.mubr.msk.bf16.vlgmr.msra.gmra.mrb[164].mxu0 %vm105_vm3, %v5601_v45 }
0x4780   :  { %7176 = vtanh.f32 %v5390_v18  ;;  %v5943_v23 = vmul.f32 -1.442695, %v5390_v18 }
0x4782   :  { %7178 = vpow2.f32 %v5943_v23 }
0x478a   :  { %v7177_v59 = vpop.eup %7176 }
0x478b   :  { %5400 = vrot.lane.b32.xlu0 %v7177_v59, %s7330_s15 }
0x478c   :  { %v7179_v24 = vpop.eup %7178 }
0x478d   :  { %v5394_v19 = vadd.f32 1.0, %v7179_v24 }
0x478f   :  { %7180 = vrcp.f32 %v5394_v19 }
0x4799   :  { %v7181_v42 = vpop.eup %7180 }
0x479a   :  { %v5398_v47 = vmul.f32 %v7181_v42, %v5153_v11 }
0x47fd   :  { %v5401_v33 = vpop.permute.xlu0 %5400 }
0x47fe   :  { %v5403_v1 = vmul.f32 %v7181_v42, %v5401_v33 }
0x4800   :  { %5405 = vrot.lane.b32.xlu1 %v5403_v1, %s7331_s16 }
0x4851   :  { %v5639_v60 = vpop.f32.mrb[164].mxu0 }
0x4852   :  { %v6649_v2 = vpop.f32.mrb[165].mxu0 }
0x4853   :  { %v5642_v26 = vpop.f32.mrb[166].mxu0 }
0x4854   :  { %v6650_v22 = vpop.f32.mrb[167].mxu0 }
0x4872   :  { %v5406_v8 = vpop.permute.xlu1 %5405 }
0x4873   :  { %v5408_v30 = vadd.f32 %v5406_v8, %v5398_v47 }
0x4875   :  { %7182 = vtanh.f32 %v5408_v30 }
0x487f   :  { %v7183_v5 = vpop.eup %7182 }
0x4880   :  { %5411 = vrot.lane.b32.xlu0 %v7183_v5, %s7331_s16 }
0x48f2   :  { %v5412_v29 = vpop.permute.xlu0 %5411 }
0x48f3   :  { %v5414_v50 = vmul.f32 %v7181_v42, %v5412_v29 }
0x48f5   :  { %5595 = vperm.xlu1 %6681, %v5414_v50  }
0x4974   :  { %v5596_v0 = vpop.permute.xlu1 %5595 }
0x4975   :  { %v5598_v7 = vmul.f32 %v8515_v34, %v5596_v0 }
0x4977   :  { %v5640_v35 = vadd.f32 %v5639_v60, %v5598_v7 }
0x4979   :  { %v5645_v31 = vadd.f32 %v8522_v4, %v5640_v35 }
0x497b   :  { %7184 = vtanh.f32 %v5645_v31  ;;  %v5950_v55 = vmul.f32 -1.442695, %v5645_v31 }
0x497d   :  { %7186 = vpow2.f32 %v5950_v55 }
0x4985   :  { %v7185_v38 = vpop.eup %7184 }
0x4986   :  { %5655 = vrot.lane.b32.xlu0 %v7185_v38, %s7330_s15 }
0x4987   :  { %v7187_v52 = vpop.eup %7186 }
0x4988   :  { %v5649_v21 = vadd.f32 1.0, %v7187_v52 }
0x498a   :  { %7188 = vrcp.f32 %v5649_v21 }
0x4994   :  { %v7189_v12 = vpop.eup %7188 }
0x4995   :  { %v5653_v34 = vmul.f32 %v7189_v12, %v5408_v30 }
0x49f8   :  { %v5656_v39 = vpop.permute.xlu0 %5655 }
0x49f9   :  { %v5658_v6 = vmul.f32 %v7189_v12, %v5656_v39 }
0x49fb   :  { %5660 = vrot.lane.b32.xlu1 %v5658_v6, %s7331_s16 }
0x49ff   :  { %5670 = vrot.lane.b32.xlu1 %v8299_v3, %s7333_s3 }
0x4a03   :  { %5676 = vrot.lane.b32.xlu1 %v8413_v46, %s7331_s16 }
0x4a07   :  { %5682 = vrot.lane.b32.xlu1 %v8478_v40, %s7334_s27 }
0x4a0b   :  { %5688 = vrot.lane.b32.xlu1 %v5159_v27, %s7335_s28 }
0x4a6d   :  { %v5661_v4 = vpop.permute.xlu1 %5660 }
0x4a6e   :  { %v5663_v13 = vadd.f32 %v5661_v4, %v5653_v34 }
0x4a70   :  { %7190 = vtanh.f32 %v5663_v13 }
0x4a71   :  { %v5671_v40 = vpop.permute.xlu1 %5670 }
0x4a75   :  { %v5677_v58 = vpop.permute.xlu1 %5676 }
0x4a7a   :  { %v7191_v56 = vpop.eup %7190 }
0x4a7b   :  { %5666 = vrot.lane.b32.xlu0 %v7191_v56, %s7331_s16 }
0x4a7f   :  { %5673 = vrot.lane.b32.xlu0 %v8348_v48, %s7336_s29 }
0x4a83   :  { %5679 = vrot.lane.b32.xlu0 %v8457_v9, %s7337_s20 }
0x4a87   :  { %5685 = vrot.lane.b32.xlu0 %v8509_v14, %s7338_s21  ;;  %v5683_v14 = vpop.permute.xlu1 %5682 }
0x4a8b   :  { %5691 = vrot.lane.b32.xlu0 %v5414_v50, %s7339_s22  ;;  %v5689_v25 = vpop.permute.xlu1 %5688 }
0x4aed   :  { %v5667_v3 = vpop.permute.xlu0 %5666 }
0x4aee   :  { %v5669_v46 = vmul.f32 %v7189_v12, %v5667_v3 }
0x4af0   :  { %5695 = vrot.lane.b32.xlu1 %v5669_v46, %s7340_s2 }
0x4af1   :  { %v5674_v28 = vpop.permute.xlu0 %5673 }
0x4af2   :  { %v5699_v10 = vsel %vm5698_vm7, %v5671_v40, %v5674_v28 }
0x4af3   :  { %v5701_v32 = vsel %vm5700_vm8, %v5699_v10, %v8386_v63 }
0x4af4   :  { %v5703_v9 = vsel %vm5702_vm9, %v5701_v32, %v5677_v58 }
0x4af5   :  { %v5680_v48 = vpop.permute.xlu0 %5679 }
0x4af6   :  { %v5705_v57 = vsel %vm5704_vm10, %v5703_v9, %v5680_v48 }
0x4af7   :  { %v5707_v37 = vsel %vm5706_vm11, %v5705_v57, %v5683_v14 }
0x4af9   :  { %v5686_v53 = vpop.permute.xlu0 %5685 }
0x4afa   :  { %v5709_v11 = vsel %vm5708_vm12, %v5707_v37, %v5686_v53 }
0x4afb   :  { %v5711_v51 = vsel %vm5710_vm13, %v5709_v11, %v5689_v25 }
0x4afd   :  { %v5692_v54 = vpop.permute.xlu0 %5691 }
0x4afe   :  { %v5712_v15 = vsel %vm105_vm3, %v5711_v51, %v5692_v54 }
0x4b62   :  { %v5696_v61 = vpop.permute.xlu1 %5695 }
0x4b63   :  { %v5714_v63 = vsel %vm5713_vm14, %v5712_v15, %v5696_v61 }
0x4b64   :  { %5720 = vrot.lane.b32.xlu1 %v5714_v63, %s7336_s29  ;;  %5716 = vrot.lane.b32.xlu0 %v5714_v63, %s7331_s16 }
0x4b68   :  { %2932 = vrot.lane.b32.xlu0 %v7991_v17, %s7327_s12 }
0x4b69   :  { %7252 = shalt.err (!%p7249_p3)
}
0x4b6a   :  { %s7253_s26 = scalar_lea.hbm %s8611_s7, 32 }
0x4b6b   :  { %p7254_p4 = scmp.ne.s32.totalorder %s8611_s7, %s7253_s26  ;;  %p7257_p5 = scmp.lt.u32.totalorder %s7253_s26, %s8611_s7 }
0x4b6d   :  { %p7259_p6 = pnand %p7257_p5, %p7254_p4 }
0x4b6f   :  { %7262 = shalt.err (!%p7259_p6)
}
0x4b70   :  { %5765 = dma.vmem_to_hbm [thread:$0]  %s5763_s23, 32, %s8611_s7, [#allocation10]   ;;  %v5736_v59 = vstv %s8609_s5 }
0x4b71   :  { %s5951_s16 = sld [smem:[#allocation7 + $0x1]]  ;;  %s5724_s17 = sld [smem:[#allocation7]] }
0x4b72   :  { %s5952_s4 = sld [smem:[#allocation7 + $0x2]]  ;;  %s7342_s10 = smov [#allocation11]  }
0x4b73   :  { %s5772_s11 = sshll.u32 %s7342_s10, 4  ;;  %s5773_s11 = int_to_ptr.vmem [resolvable:$true] %s5772_s11 }
0x4b74   :  { %s7263_s19 = scalar_lea.vmem %s5773_s11, 32  ;;  %p7268_p8 = scmp.lt.s32.totalorder %s5773_s11, %s5773_s11 }
0x4b75   :  { %p7264_p7 = scmp.ne.s32.totalorder %s5773_s11, %s7263_s19  ;;  %p7269_p9 = scmp.lt.s32.totalorder %s7263_s19, %s7263_s19 }
0x4b77   :  { %v5730_v17 = vstv %s5951_s16  ;;  %v5728_v41 = vstv %s5724_s17  ;;  %p7270_p10 = por %p7269_p9, %p7268_p8 }
0x4b78   :  { %v5733_v49 = vstv %s5952_s4  ;;  %v5731_v43 = vmul.f32 %v5730_v17, %v5714_v63 }
0x4b79   :  { %p7271_p11 = pnand %p7270_p10, %p7264_p7 }
0x4bd6   :  { %v5721_v16 = vpop.permute.xlu1 %5720  ;;  %v5717_v27 = vpop.permute.xlu0 %5716 }
0x4bd7   :  { %v5723_v20 = vsel %vm5713_vm14, %v5721_v16, 0.0  ;;  %v5719_v62 = vsel %vm5698_vm7, 0.0, %v5717_v27 }
0x4bd8   :  { %v5729_v44 = vmul.f32 %v5728_v41, %v5719_v62  ;;  %v5734_v36 = vmul.f32 %v5733_v49, %v5723_v20 }
0x4bda   :  { %v5732_v45 = vadd.f32 %v5731_v43, %v5729_v44  ;;  %v2933_v18 = vpop.permute.xlu0 %2932 }
0x4bdb   :  { %2935 = vst.msk [vmem:[#allocation11] sm:$0x3] %vm2929_vm6, %v2933_v18 }
0x4bdc   :  { %v5735_v23 = vadd.f32 %v5734_v36, %v5732_v45 }
0x4bdd   :  { %7274 = shalt.err (!%p7271_p11)
}
0x4bde   :  { %s7275_s28 = scalar_lea.hbm %s8612_s8, 32 }
0x4bdf   :  { %p7276_p12 = scmp.ne.s32.totalorder %s8612_s8, %s7275_s28  ;;  %p7279_p13 = scmp.lt.u32.totalorder %s7275_s28, %s8612_s8 }
0x4be1   :  { %p7281_p0 = pnand %p7279_p13, %p7276_p12 }
0x4be3   :  { %7284 = shalt.err (!%p7281_p0)
}
0x4be4   :  { %5775 = dma.vmem_to_hbm [thread:$0]  %s5773_s11, 32, %s8612_s8, [#allocation10]   ;;  %v5737_v24 = vadd.f32 %v5736_v59, %v5735_v23  ;;  %vm5744_vm15 = vcmask 74752  }
0x4be5   :  { %s7343_s1 = smov [#allocation8]  }
0x4be6   :  { %v5953_v19 = vmul.f32 -1.442695, %v5737_v24  ;;  %s5752_s23 = sshll.u32 %s7343_s1, 4  ;;  %s5753_s23 = int_to_ptr.vmem [resolvable:$true] %s5752_s23 }
0x4be7   :  { %s7285_s24 = scalar_lea.vmem %s5753_s23, 32  ;;  %p7290_p2 = scmp.lt.s32.totalorder %s5753_s23, %s5753_s23 }
0x4be8   :  { %7192 = vpow2.f32 %v5953_v19  ;;  %p7286_p1 = scmp.ne.s32.totalorder %s5753_s23, %s7285_s24  ;;  %p7291_p3 = scmp.lt.s32.totalorder %s7285_s24, %s7285_s24 }
0x4bea   :  { %p7292_p4 = por %p7291_p3, %p7290_p2 }
0x4bec   :  { %p7293_p5 = pnand %p7292_p4, %p7286_p1 }
0x4bf2   :  { %v7193_v42 = vpop.eup %7192 }
0x4bf3   :  { %v5741_v33 = vadd.f32 1.0, %v7193_v42 }
0x4bf5   :  { %7194 = vrcp.f32 %v5741_v33 }
0x4bff   :  { %v7195_v1 = vpop.eup %7194 }
0x4c00   :  { %5745 = vst.msk [vmem:[#allocation8] sm:$0x3] %vm5744_vm15, %v7195_v1 }
0x4c01   :  { %7296 = shalt.err (!%p7293_p5)
}
0x4c02   :  { %s7297_s25 = scalar_lea.hbm %s8610_s6, 32 }
0x4c03   :  { %p7298_p6 = scmp.ne.s32.totalorder %s8610_s6, %s7297_s25  ;;  %p7301_p7 = scmp.lt.u32.totalorder %s7297_s25, %s8610_s6 }
0x4c05   :  { %p7303_p8 = pnand %p7301_p7, %p7298_p6 }
0x4c07   :  { %7306 = shalt.err (!%p7303_p8)
}
0x4c08   :  { %5755 = dma.vmem_to_hbm [thread:$0]  %s5753_s23, 32, %s8610_s6, [#allocation5]  }
0x4c09   :  { %7311 = dma.done.wait [#allocation5], 32  }
0x4c0a   :  { %7312 = vsyncadd [#allocation5], 4294967264 }
0x4c0b   :  { %7313 = dma.done.wait [#allocation10], 64  }
0x4c0c   :  { %7314 = vsyncadd [#allocation10], 4294967232 }
0x4c0d   :  { %5785 = vsyncpa [#allocation4], 1 }
0x4c0e   :  { %5786 = vsyncpa [#allocation5], 1 }
0x4c0f   :  { %5787 = vsyncpa [#allocation10], 1 }
0x4c10   :  { %5788 = vsyncpa [#allocation6], 1 }

</bundles_post_ra>
